<compile_context>
chip_gen: v7x
topology: tpu7x:2x2x1
jax: 0.10.0
libtpu: 0.0.40
codegen_flags: <defaults>
</compile_context>

<pallas_src>
import functools

import jax
import jax.numpy as jnp
from jax.experimental import pallas as pl
from jax.experimental.pallas import tpu as pltpu

NEG = -1e30  # "-inf" pad for max pooling (finite; safe because pooling follows ReLU)


def _round_up(x, m):
    return (x + m - 1) // m * m


def _ceil_div(a, b):
    return -(-a // b)


def _vmem_limit_bytes():
    """Per-generation scoped-VMEM limit (v7x: 64 MiB physical; v5e/v6e: 128 MiB)."""
    cap = 64 * 1024 * 1024
    try:
        info = pltpu.get_tpu_info()
        cap = int(getattr(info, "vmem_capacity_bytes", cap))
    except Exception:
        pass
    return max(16 * 1024 * 1024, min(cap * 5 // 8, 48 * 1024 * 1024))


VMEM_LIMIT = _vmem_limit_bytes()


def _pick_rows(m, bytes_per_row, budget=6 << 20, cap=4096):
    """Row tile sized by bytes (not rows); multiple of 8; >=2 grid steps if possible."""
    tm = (budget // max(bytes_per_row, 1)) // 8 * 8
    tm = max(8, min(cap, tm))
    if m > 8:
        tm = min(tm, _round_up(_ceil_div(m, 2), 8))
    return tm


def _pick_frames(n_frames, bytes_per_frame, budget=8 << 20, cap=8):
    """Frames per grid step: amortize ~0.35us step overhead; keep >=2 steps (v7x)."""
    f = max(1, min(cap, budget // max(bytes_per_frame, 1)))
    if n_frames >= 2:
        f = min(f, _ceil_div(n_frames, 2))
    return max(1, min(f, n_frames))


# ----------------------------------------------------------------------------
# Pallas kernels
# ----------------------------------------------------------------------------
def _gemm_bn_relu_kernel(x_ref, w_ref, s_ref, b_ref, o_ref):
    acc = jnp.dot(x_ref[...], w_ref[...], preferred_element_type=jnp.float32)
    o_ref[...] = jnp.maximum(acc * s_ref[...] + b_ref[...], 0.0).astype(o_ref.dtype)


def _spatial_tap_kernel(x_ref, w_ref, s_ref, b_ref, o_ref, *, ktaps, row_shift,
                        out_rows):
    """Per frame f: acc = sum_dy x[f, dy*row_shift : +out_rows, :] @ w[dy]; BN+ReLU."""
    nf = x_ref.shape[0]
    n = w_ref.shape[2]
    s = s_ref[...]
    b = b_ref[...]
    for f in range(nf):
        acc = jnp.zeros((out_rows, n), jnp.float32)
        for t in range(ktaps):
            xs = x_ref[f, pl.ds(t * row_shift, out_rows), :]
            acc = acc + jnp.dot(xs, w_ref[t], preferred_element_type=jnp.float32)
        o_ref[f] = jnp.maximum(acc * s + b, 0.0).astype(o_ref.dtype)


def _temporal_last_kernel(x_ref, wt_ref, ts_ref, tb_ref, wl_ref, ls_ref, lb_ref,
                          o_ref, *, ktaps, t_out):
    """Fused (t_3|t_5) temporal conv + BN + ReLU + last 1x1x1 conv + BN + ReLU.

    x_ref is (Tp*S, 2C) (whole spatial extent) or (Tp, st, 2C) (spatial tile).
    """
    c2 = wt_ref.shape[2]
    c = wl_ref.shape[1]
    tiled = x_ref.ndim == 3
    stile = x_ref.shape[1] if tiled else o_ref.shape[0] // t_out
    rows = t_out * stile
    acc = jnp.zeros((rows, c2), jnp.float32)
    for t in range(ktaps):
        if tiled:
            xs = x_ref[pl.ds(t, t_out)].reshape(rows, c2)
        else:
            xs = x_ref[pl.ds(t * stile, rows), :]
        acc = acc + jnp.dot(xs, wt_ref[t], preferred_element_type=jnp.float32)
    # acc dies here: cast straight to bf16 before the second matmul (caps live f32).
    y = jnp.maximum(acc * ts_ref[...] + tb_ref[...], 0.0).astype(jnp.bfloat16)
    out = jnp.dot(y, wl_ref[...], preferred_element_type=jnp.float32)
    out = jnp.maximum(out * ls_ref[...] + lb_ref[...], 0.0).astype(o_ref.dtype)
    o_ref[...] = out.reshape(t_out, stile, c) if tiled else out


def _maxpool_kernel(x_ref, o_ref, *, wc):
    """x_ref: (3, F, Hq, 2*wc) -- 3 W-taps; lanes hold (even padded row | odd row).
    o_ref: (F, Ho, wc).  Max over 3 W-taps and padded rows 2y, 2y+1, 2y+2."""
    ho = o_ref.shape[1]
    m = None
    for dx in range(3):
        a = x_ref[dx, :, pl.ds(0, ho), :]          # rows 2y | 2y+1
        b = x_ref[dx, :, pl.ds(1, ho), :]          # rows 2y+2 | 2y+3
        v = jnp.maximum(jnp.maximum(a[..., :wc], a[..., wc:]), b[..., :wc])
        m = v if m is None else jnp.maximum(m, v)
    o_ref[...] = m


def _global_max_kernel(x_ref, o_ref):
    """(F, S, C) -> (F, 1, C): spatial max via one sublane (XLU) reduction."""
    o_ref[...] = jnp.max(x_ref[...], axis=1, keepdims=True).astype(o_ref.dtype)


# ----------------------------------------------------------------------------
# Wrappers (im2col / layout glue in XLA, GEMMs / reductions in Pallas)
# ----------------------------------------------------------------------------
def gemm_bn_relu(x, w, scale, bias, out_dtype=jnp.bfloat16):
    """relu(bn(x @ w)); x (M,K) bf16, w (K,N) bf16, scale/bias (N,) f32."""
    m, k = x.shape
    n = w.shape[1]
    per_row = (k * 2 + n * 2) * 2 + n * 4     # bf16 in/out double-buffered + f32 acc
    tm = _pick_rows(m, per_row)
    return pl.pallas_call(
        _gemm_bn_relu_kernel,
        out_shape=jax.ShapeDtypeStruct((m, n), out_dtype),
        grid=(pl.cdiv(m, tm),),
        in_specs=[
            pl.BlockSpec((tm, k), lambda i: (i, 0)),
            pl.BlockSpec((k, n), lambda i: (0, 0)),
            pl.BlockSpec((1, n), lambda i: (0, 0)),
            pl.BlockSpec((1, n), lambda i: (0, 0)),
        ],
        out_specs=pl.BlockSpec((tm, n), lambda i: (i, 0)),
        compiler_params=pltpu.CompilerParams(
            dimension_semantics=("parallel",), vmem_limit_bytes=VMEM_LIMIT),
    )(x, w, scale.reshape(1, n), bias.reshape(1, n))


def spatial_conv_fused(x, wmat, scale, bias, out_dtype=jnp.bfloat16):
    """Fused s_3+s_5 Conv3d (1,5,5), stride 1, pad (0,2,2) + BN + ReLU.

    x: (B,T,H,W,Cin) bf16;  wmat: (5, 5*Cin, 2*Cout) bf16, wmat[dy, dx*Cin+c, n].
    W-direction im2col in XLA (5x); the 5 H-direction taps are accumulated
    in-kernel; several frames are processed per grid step.
    """
    B, T, H, W, Cin = x.shape
    kh = kw = 5
    N = wmat.shape[2]
    BT = B * T
    xp = jnp.pad(x, ((0, 0), (0, 0), (2, 2), (2, 2), (0, 0)))
    Hp = H + 4
    colw = jnp.concatenate([xp[:, :, :, dx:dx + W, :] for dx in range(kw)], axis=-1)
    colw = colw.reshape(BT, Hp * W, kw * Cin)

    per_frame = (Hp * W * kw * Cin * 2 + H * W * N * 2) * 2 + H * W * N * 4
    F = _pick_frames(BT, per_frame)

    out = pl.pallas_call(
        functools.partial(_spatial_tap_kernel,
                          ktaps=kh, row_shift=W, out_rows=H * W),
        out_shape=jax.ShapeDtypeStruct((BT, H * W, N), out_dtype),
        grid=(pl.cdiv(BT, F),),
        in_specs=[
            pl.BlockSpec((F, Hp * W, kw * Cin), lambda i: (i, 0, 0)),
            pl.BlockSpec((kh, kw * Cin, N), lambda i: (0, 0, 0)),
            pl.BlockSpec((1, N), lambda i: (0, 0)),
            pl.BlockSpec((1, N), lambda i: (0, 0)),
        ],
        out_specs=pl.BlockSpec((F, H * W, N), lambda i: (i, 0, 0)),
        compiler_params=pltpu.CompilerParams(
            dimension_semantics=("parallel",), vmem_limit_bytes=VMEM_LIMIT),
    )(colw, wmat, scale.reshape(1, N), bias.reshape(1, N))
    return out.reshape(B, T, H, W, N)


def spatial_conv_s2_fused(x, wmat, scale, bias, out_dtype=jnp.bfloat16):
    """Fused s_3+s_5 Conv3d (1,5,5), stride (1,2,2), pad (0,2,2) + BN + ReLU.

    Only used for block1 (Cin=1, tiny): classic im2col GEMM with K=25, N=64.
    """
    B, T, H, W, Cin = x.shape
    N = wmat.shape[2]
    xp = jnp.pad(x, ((0, 0), (0, 0), (2, 2), (2, 2), (0, 0)))
    Ho = (H - 1) // 2 + 1
    Wo = (W - 1) // 2 + 1
    taps = [xp[:, :, dy:dy + 2 * (Ho - 1) + 1:2, dx:dx + 2 * (Wo - 1) + 1:2, :]
            for dy in range(5) for dx in range(5)]
    col = jnp.concatenate(taps, axis=-1).reshape(B * T * Ho * Wo, 25 * Cin)
    y = gemm_bn_relu(col, wmat.reshape(25 * Cin, N), scale, bias, out_dtype)
    return y.reshape(B, T, Ho, Wo, N)


def temporal_last_fused(x, wt, ts, tb, wl, ls, lb, out_dtype=jnp.bfloat16):
    """Fused t_3/t_5 temporal conv + BN + ReLU + last 1x1x1 conv + BN + ReLU.

    x: (B, T, S, 2C) bf16 (fused spatial output).  Returns (B, T, S, C).
    """
    B, T, S, C2 = x.shape
    C = wl.shape[1]
    ktaps = wt.shape[0]            # 5
    pad = (ktaps - 1) // 2         # 2
    Tp = T + 2 * pad
    xp = jnp.pad(x, ((0, 0), (pad, pad), (0, 0), (0, 0)))

    # Explicit VMEM accounting (bytes) per unit of spatial tile st.
    per = Tp * C2 * 2 * 2          # input block (bf16), double buffered
    per += T * C * 2 * 2           # output block (bf16), double buffered
    per += T * C2 * 4              # f32 accumulator
    per += T * C2 * 2              # bf16 intermediate y
    per += T * C * 4               # f32 second accumulator
    fixed = ktaps * C2 * C2 * 2 + C2 * C * 2 + 2 * (C2 + C) * 4 + (1 << 20)
    budget = int(VMEM_LIMIT * 0.6)
    st = (budget - fixed) // per
    st = max(16, st // 16 * 16)    # multiple of 16 keeps in-kernel reshapes clean

    params = (wt, ts.reshape(1, C2), tb.reshape(1, C2),
              wl, ls.reshape(1, C), lb.reshape(1, C))

    if st >= S:
        # Whole spatial extent per step: flat (Tp*S, 2C) block per batch item.
        xflat = xp.reshape(B, Tp * S, C2)
        out = pl.pallas_call(
            functools.partial(_temporal_last_kernel, ktaps=ktaps, t_out=T),
            out_shape=jax.ShapeDtypeStruct((B, T * S, C), out_dtype),
            grid=(B,),
            in_specs=[
                pl.BlockSpec((None, Tp * S, C2), lambda b: (b, 0, 0)),
                pl.BlockSpec((ktaps, C2, C2), lambda b: (0, 0, 0)),
                pl.BlockSpec((1, C2), lambda b: (0, 0)),
                pl.BlockSpec((1, C2), lambda b: (0, 0)),
                pl.BlockSpec((C2, C), lambda b: (0, 0)),
                pl.BlockSpec((1, C), lambda b: (0, 0)),
                pl.BlockSpec((1, C), lambda b: (0, 0)),
            ],
            out_specs=pl.BlockSpec((None, T * S, C), lambda b: (b, 0, 0)),
            compiler_params=pltpu.CompilerParams(
                dimension_semantics=("parallel",), vmem_limit_bytes=VMEM_LIMIT),
        )(xflat, *params)
        return out.reshape(B, T, S, C)

    # Spatial tiling via a 2-D grid and 3-D blocks (no XLA transpose needed).
    ns = _ceil_div(S, st)
    out = pl.pallas_call(
        functools.partial(_temporal_last_kernel, ktaps=ktaps, t_out=T),
        out_shape=jax.ShapeDtypeStruct((B, T, S, C), out_dtype),
        grid=(B, ns),
        in_specs=[
            pl.BlockSpec((None, Tp, st, C2), lambda b, j: (b, 0, j, 0)),
            pl.BlockSpec((ktaps, C2, C2), lambda b, j: (0, 0, 0)),
            pl.BlockSpec((1, C2), lambda b, j: (0, 0)),
            pl.BlockSpec((1, C2), lambda b, j: (0, 0)),
            pl.BlockSpec((C2, C), lambda b, j: (0, 0)),
            pl.BlockSpec((1, C), lambda b, j: (0, 0)),
            pl.BlockSpec((1, C), lambda b, j: (0, 0)),
        ],
        out_specs=pl.BlockSpec((None, T, st, C), lambda b, j: (b, 0, j, 0)),
        compiler_params=pltpu.CompilerParams(
            dimension_semantics=("parallel", "parallel"),
            vmem_limit_bytes=VMEM_LIMIT),
    )(xp, *params)
    return out


def maxpool_spatial(x):
    """MaxPool3d kernel (1,3,3), stride (1,2,2), padding (0,1,1).

    Only the 3 W-direction taps are materialized in XLA (stride-2 slices); the
    3 H-direction taps are reduced in-kernel from an even/odd row pairing, with
    lane-dense (Wo*C)-wide blocks.
    """
    B, T, H, W, C = x.shape
    BT = B * T
    Ho = (H - 1) // 2 + 1
    Wo = (W - 1) // 2 + 1
    pad_b = 1 if H % 2 == 0 else 2            # Hp even and Hp >= 2*Ho + 2
    xp = jnp.pad(x, ((0, 0), (0, 0), (1, pad_b), (1, 1), (0, 0)),
                 constant_values=NEG)
    Hp = H + 1 + pad_b
    Hq = Hp // 2
    col = jnp.stack(
        [xp[:, :, :, dx:dx + 2 * (Wo - 1) + 1:2, :] for dx in range(3)], axis=0)
    wc = Wo * C
    col = col.reshape(3, BT, Hq, 2 * wc)

    per_frame = 3 * Hq * 2 * wc * 2 * 2 + Ho * wc * 2 * 2
    F = _pick_frames(BT, per_frame)

    out = pl.pallas_call(
        functools.partial(_maxpool_kernel, wc=wc),
        out_shape=jax.ShapeDtypeStruct((BT, Ho, wc), x.dtype),
        grid=(pl.cdiv(BT, F),),
        in_specs=[pl.BlockSpec((3, F, Hq, 2 * wc), lambda i: (0, i, 0, 0))],
        out_specs=pl.BlockSpec((F, Ho, wc), lambda i: (i, 0, 0)),
        compiler_params=pltpu.CompilerParams(dimension_semantics=("parallel",)),
    )(col)
    return out.reshape(B, T, Ho, Wo, C)


def global_spatial_max(x):
    """AdaptiveMaxPool2d((1,1)) over (H, W): (B,T,H,W,C) -> (B,T,C) f32.

    Transpose-free: per-frame-chunk block with a single spatial (sublane) max.
    """
    B, T, H, W, C = x.shape
    BT = B * T
    S = H * W
    xf = x.reshape(BT, S, C)
    per_frame = S * C * 2 * 2 + C * 4 * 2
    F = _pick_frames(BT, per_frame, cap=64)
    out = pl.pallas_call(
        _global_max_kernel,
        out_shape=jax.ShapeDtypeStruct((BT, 1, C), jnp.float32),
        grid=(pl.cdiv(BT, F),),
        in_specs=[pl.BlockSpec((F, S, C), lambda i: (i, 0, 0))],
        out_specs=pl.BlockSpec((F, 1, C), lambda i: (i, 0, 0)),
        compiler_params=pltpu.CompilerParams(dimension_semantics=("parallel",)),
    )(xf)
    return out.reshape(B, T, C)


# ----------------------------------------------------------------------------
# Parameters (kaiming-normal convs, eval-mode BatchNorm), pre-folded / fused
# ----------------------------------------------------------------------------
def kaiming_normal(key, shape):
    # shape = (Cout, Cin, kd, kh, kw); fan_in = Cin*kd*kh*kw (matches torch).
    fan_in = shape[1] * shape[2] * shape[3] * shape[4]
    return jax.random.normal(key, shape, jnp.float32) * jnp.sqrt(2.0 / fan_in)


def bn_affine(c, eps=1e-3):
    # Eval-mode BN with gamma=1, beta=0, running_mean=0, running_var=1.
    gamma = jnp.ones((c,), jnp.float32)
    beta = jnp.zeros((c,), jnp.float32)
    rm = jnp.zeros((c,), jnp.float32)
    rv = jnp.ones((c,), jnp.float32)
    scale = gamma / jnp.sqrt(rv + eps)
    return scale, beta - rm * scale


def make_block_params(key, cin, cout):
    ks = jax.random.split(key, 5)
    w_s3 = kaiming_normal(ks[0], (cout, cin, 1, 3, 3))
    w_t3 = kaiming_normal(ks[1], (cout, cout, 3, 1, 1))
    w_s5 = kaiming_normal(ks[2], (cout, cin, 1, 5, 5))
    w_t5 = kaiming_normal(ks[3], (cout, cout, 5, 1, 1))
    w_l = kaiming_normal(ks[4], (cout, cout, 1, 1, 1))
    s_s3, b_s3 = bn_affine(cout)
    s_t3, b_t3 = bn_affine(cout)
    s_s5, b_s5 = bn_affine(cout)
    s_t5, b_t5 = bn_affine(cout)
    s_l, b_l = bn_affine(cout)

    # Fuse s_3 / s_5: zero-pad 3x3 to 5x5, concat along output channels.
    w_s3p = jnp.pad(w_s3[:, :, 0], ((0, 0), (0, 0), (1, 1), (1, 1)))     # (C,Cin,5,5)
    w_scat = jnp.concatenate([w_s3p, w_s5[:, :, 0]], axis=0)             # (2C,Cin,5,5)
    sp_w = jnp.transpose(w_scat, (2, 3, 1, 0)).reshape(5, 5 * cin, 2 * cout)

    # Fuse t_3 / t_5: 5-tap block-diagonal temporal conv on the 2C activation.
    w3t = jnp.transpose(w_t3[:, :, :, 0, 0], (2, 1, 0))                  # (3,C,C)
    w5t = jnp.transpose(w_t5[:, :, :, 0, 0], (2, 1, 0))                  # (5,C,C)
    t_w = jnp.zeros((5, 2 * cout, 2 * cout), jnp.float32)
    t_w = t_w.at[1:4, :cout, :cout].set(w3t)
    t_w = t_w.at[:, cout:, cout:].set(w5t)

    # Fold the (x_3 + x_5) add into the last 1x1x1 conv: [W; W] stacked.
    wl1 = jnp.transpose(w_l[:, :, 0, 0, 0], (1, 0))                      # (C,C)
    l_w = jnp.concatenate([wl1, wl1], axis=0)                            # (2C,C)

    return {
        "sp_w": sp_w.astype(jnp.bfloat16),
        "sp_scale": jnp.concatenate([s_s3, s_s5]),
        "sp_bias": jnp.concatenate([b_s3, b_s5]),
        "t_w": t_w.astype(jnp.bfloat16),
        "t_scale": jnp.concatenate([s_t3, s_t5]),
        "t_bias": jnp.concatenate([b_t3, b_t5]),
        "l_w": l_w.astype(jnp.bfloat16),
        "l_scale": s_l,
        "l_bias": b_l,
    }


def make_encoder_params(key):
    k1, k2, k3 = jax.random.split(key, 3)
    return {
        "block1": make_block_params(k1, 1, 32),
        "block2": make_block_params(k2, 32, 64),
        "block3": make_block_params(k3, 64, 128),
    }


# ----------------------------------------------------------------------------
# Forward pass
# ----------------------------------------------------------------------------
def visual_block(x, p, is_down=False):
    if is_down:
        y = spatial_conv_s2_fused(x, p["sp_w"], p["sp_scale"], p["sp_bias"])
    else:
        y = spatial_conv_fused(x, p["sp_w"], p["sp_scale"], p["sp_bias"])
    B, T, H, W, C2 = y.shape
    y = temporal_last_fused(y.reshape(B, T, H * W, C2),
                            p["t_w"], p["t_scale"], p["t_bias"],
                            p["l_w"], p["l_scale"], p["l_bias"])
    return y.reshape(B, T, H, W, y.shape[-1])


def visual_encoder_forward(x_ncdhw, params):
    # PyTorch input (B, C=1, T, H, W) -> channels-last (B, T, H, W, 1), bf16.
    x = jnp.transpose(x_ncdhw, (0, 2, 3, 4, 1)).astype(jnp.bfloat16)
    x = visual_block(x, params["block1"], is_down=True)
    x = maxpool_spatial(x)
    x = visual_block(x, params["block2"])
    x = maxpool_spatial(x)
    x = visual_block(x, params["block3"])
    # transpose(1,2) + reshape + AdaptiveMaxPool2d((1,1)) + view == global HW max.
    return global_spatial_max(x)                           # (B, T, 128) f32


# ----------------------------------------------------------------------------
if __name__ == "__main__":
    key = jax.random.PRNGKey(0)
    kp, kx = jax.random.split(key)
    params = make_encoder_params(kp)

    B, T, H, W = 2, 4, 16, 16
    x = jax.random.normal(kx, (B, 1, T, H, W), jnp.float32)   # NCDHW like PyTorch

    fwd = jax.jit(lambda a: visual_encoder_forward(a, params))
    out = fwd(x)
    jax.block_until_ready(out)

    assert out.shape == (B, T, 128), out.shape
    assert out.dtype == jnp.float32
    assert bool(jnp.isfinite(out).all())
    print("KERNEL_OK")
</pallas_src>

<mosaic_0001>
module attributes {stable_mosaic.version = 11 : i64} {
  func.func @_gemm_bn_relu_kernel(%arg0: i32, %arg1: memref<256x25xbf16, #tpu.memory_space<vmem>>, %arg2: memref<25x64xbf16, #tpu.memory_space<vmem>>, %arg3: memref<1x64xf32, #tpu.memory_space<vmem>>, %arg4: memref<1x64xf32, #tpu.memory_space<vmem>>, %arg5: memref<256x64xbf16, #tpu.memory_space<vmem>>) attributes {dimension_semantics = [#tpu.dimension_semantics<parallel>], iteration_bounds = array<i64: 2>, scalar_prefetch = 0 : i64, scratch_operands = 0 : i64, tpu.core_type = #tpu.core_type<tc>, window_params = [{transform_indices = @transform_0, window_bounds = array<i64: 256, 25>}, {pipeline_mode = #tpu.pipeline_mode<synchronous>, transform_indices = @transform_1, window_bounds = array<i64: 25, 64>}, {pipeline_mode = #tpu.pipeline_mode<synchronous>, transform_indices = @transform_2, window_bounds = array<i64: 1, 64>}, {pipeline_mode = #tpu.pipeline_mode<synchronous>, transform_indices = @transform_3, window_bounds = array<i64: 1, 64>}, {transform_indices = @transform_4, window_bounds = array<i64: 256, 64>}]} {
    %c0 = arith.constant 0 : index
    %c0_0 = arith.constant 0 : index
    %0 = vector.load %arg1[%c0, %c0_0] : memref<256x25xbf16, #tpu.memory_space<vmem>>, vector<256x25xbf16>
    %c0_1 = arith.constant 0 : index
    %c0_2 = arith.constant 0 : index
    %1 = vector.load %arg2[%c0_1, %c0_2] : memref<25x64xbf16, #tpu.memory_space<vmem>>, vector<25x64xbf16>
    %cst = arith.constant dense<0.000000e+00> : vector<256x64xf32>
    %2 = tpu.matmul %0, %1, %cst {dimension_numbers = #tpu.dot_dimension_numbers<[1], [0], [0], [1], [0, 0, 1, 1], [], []>} : vector<256x25xbf16>, vector<25x64xbf16>, vector<256x64xf32> -> vector<256x64xf32>
    %c0_3 = arith.constant 0 : index
    %c0_4 = arith.constant 0 : index
    %3 = vector.load %arg3[%c0_3, %c0_4] : memref<1x64xf32, #tpu.memory_space<vmem>>, vector<1x64xf32>
    %4 = vector.broadcast %3 : vector<1x64xf32> to vector<256x64xf32>
    %5 = arith.mulf %2, %4 : vector<256x64xf32>
    %c0_5 = arith.constant 0 : index
    %c0_6 = arith.constant 0 : index
    %6 = vector.load %arg4[%c0_5, %c0_6] : memref<1x64xf32, #tpu.memory_space<vmem>>, vector<1x64xf32>
    %7 = vector.broadcast %6 : vector<1x64xf32> to vector<256x64xf32>
    %8 = arith.addf %5, %7 : vector<256x64xf32>
    %cst_7 = arith.constant 0.000000e+00 : f32
    %9 = vector.broadcast %cst_7 : f32 to vector<256x64xf32>
    %10 = arith.maximumf %8, %9 : vector<256x64xf32>
    %11 = arith.truncf %10 : vector<256x64xf32> to vector<256x64xbf16>
    %c0_8 = arith.constant 0 : index
    %c0_9 = arith.constant 0 : index
    %12 = vector.load %arg5[%c0_8, %c0_9] : memref<256x64xbf16, #tpu.memory_space<vmem>>, vector<256x64xbf16>
    tpu.vector_store %arg5[%c0_8, %c0_9], %11 {strides = array<i32>} : memref<256x64xbf16, #tpu.memory_space<vmem>>, vector<256x64xbf16>,
    return
  }
  func.func @transform_0(%arg0: i32) -> (i32, i32) {
    %c0_i32 = arith.constant 0 : i32
    %c0_i32_0 = arith.constant 0 : i32
    return %arg0, %c0_i32 : i32, i32
  }
  func.func @transform_1(%arg0: i32) -> (i32, i32) {
    %c0_i32 = arith.constant 0 : i32
    %c0_i32_0 = arith.constant 0 : i32
    %c0_i32_1 = arith.constant 0 : i32
    return %c0_i32, %c0_i32_0 : i32, i32
  }
  func.func @transform_2(%arg0: i32) -> (i32, i32) {
    %c0_i32 = arith.constant 0 : i32
    %c0_i32_0 = arith.constant 0 : i32
    %c0_i32_1 = arith.constant 0 : i32
    return %c0_i32, %c0_i32_0 : i32, i32
  }
  func.func @transform_3(%arg0: i32) -> (i32, i32) {
    %c0_i32 = arith.constant 0 : i32
    %c0_i32_0 = arith.constant 0 : i32
    %c0_i32_1 = arith.constant 0 : i32
    return %c0_i32, %c0_i32_0 : i32, i32
  }
  func.func @transform_4(%arg0: i32) -> (i32, i32) {
    %c0_i32 = arith.constant 0 : i32
    %c0_i32_0 = arith.constant 0 : i32
    return %arg0, %c0_i32 : i32, i32
  }
}

module attributes {stable_mosaic.version = 11 : i64} {
  func.func @_temporal_last_kernel(%arg0: i32, %arg1: memref<1x512x64xbf16, #tpu.memory_space<vmem>>, %arg2: memref<5x64x64xbf16, #tpu.memory_space<vmem>>, %arg3: memref<1x64xf32, #tpu.memory_space<vmem>>, %arg4: memref<1x64xf32, #tpu.memory_space<vmem>>, %arg5: memref<64x32xbf16, #tpu.memory_space<vmem>>, %arg6: memref<1x32xf32, #tpu.memory_space<vmem>>, %arg7: memref<1x32xf32, #tpu.memory_space<vmem>>, %arg8: memref<1x256x32xbf16, #tpu.memory_space<vmem>>) attributes {dimension_semantics = [#tpu.dimension_semantics<parallel>], iteration_bounds = array<i64: 2>, scalar_prefetch = 0 : i64, scratch_operands = 0 : i64, tpu.core_type = #tpu.core_type<tc>, window_params = [{transform_indices = @transform_0, window_bounds = array<i64: 1, 512, 64>}, {pipeline_mode = #tpu.pipeline_mode<synchronous>, transform_indices = @transform_1, window_bounds = array<i64: 5, 64, 64>}, {pipeline_mode = #tpu.pipeline_mode<synchronous>, transform_indices = @transform_2, window_bounds = array<i64: 1, 64>}, {pipeline_mode = #tpu.pipeline_mode<synchronous>, transform_indices = @transform_3, window_bounds = array<i64: 1, 64>}, {pipeline_mode = #tpu.pipeline_mode<synchronous>, transform_indices = @transform_4, window_bounds = array<i64: 64, 32>}, {pipeline_mode = #tpu.pipeline_mode<synchronous>, transform_indices = @transform_5, window_bounds = array<i64: 1, 32>}, {pipeline_mode = #tpu.pipeline_mode<synchronous>, transform_indices = @transform_6, window_bounds = array<i64: 1, 32>}, {transform_indices = @transform_7, window_bounds = array<i64: 1, 256, 32>}]} {
    %cst = arith.constant 0.000000e+00 : f32
    %0 = vector.broadcast %cst : f32 to vector<256x64xf32>
    %c0 = arith.constant 0 : index
    %c0_0 = arith.constant 0 : index
    %c0_1 = arith.constant 0 : index
    %1 = vector.load %arg1[%c0, %c0_0, %c0_1] : memref<1x512x64xbf16, #tpu.memory_space<vmem>>, vector<1x256x64xbf16>
    %2 = vector.shape_cast %1 : vector<1x256x64xbf16> to vector<256x64xbf16>
    %c0_2 = arith.constant 0 : index
    %c0_3 = arith.constant 0 : index
    %c0_4 = arith.constant 0 : index
    %3 = vector.load %arg2[%c0_2, %c0_3, %c0_4] : memref<5x64x64xbf16, #tpu.memory_space<vmem>>, vector<1x64x64xbf16>
    %4 = vector.shape_cast %3 : vector<1x64x64xbf16> to vector<64x64xbf16>
    %cst_5 = arith.constant dense<0.000000e+00> : vector<256x64xf32>
    %5 = tpu.matmul %2, %4, %cst_5 {dimension_numbers = #tpu.dot_dimension_numbers<[1], [0], [0], [1], [0, 0, 1, 1], [], []>} : vector<256x64xbf16>, vector<64x64xbf16>, vector<256x64xf32> -> vector<256x64xf32>
    %6 = arith.addf %0, %5 : vector<256x64xf32>
    %c0_6 = arith.constant 0 : index
    %c64 = arith.constant 64 : index
    %c0_7 = arith.constant 0 : index
    %7 = vector.load %arg1[%c0_6, %c64, %c0_7] : memref<1x512x64xbf16, #tpu.memory_space<vmem>>, vector<1x256x64xbf16>
    %8 = vector.shape_cast %7 : vector<1x256x64xbf16> to vector<256x64xbf16>
    %c1 = arith.constant 1 : index
    %c0_8 = arith.constant 0 : index
    %c0_9 = arith.constant 0 : index
    %9 = vector.load %arg2[%c1, %c0_8, %c0_9] : memref<5x64x64xbf16, #tpu.memory_space<vmem>>, vector<1x64x64xbf16>
    %10 = vector.shape_cast %9 : vector<1x64x64xbf16> to vector<64x64xbf16>
    %cst_10 = arith.constant dense<0.000000e+00> : vector<256x64xf32>
    %11 = tpu.matmul %8, %10, %cst_10 {dimension_numbers = #tpu.dot_dimension_numbers<[1], [0], [0], [1], [0, 0, 1, 1], [], []>} : vector<256x64xbf16>, vector<64x64xbf16>, vector<256x64xf32> -> vector<256x64xf32>
    %12 = arith.addf %6, %11 : vector<256x64xf32>
    %c0_11 = arith.constant 0 : index
    %c128 = arith.constant 128 : index
    %c0_12 = arith.constant 0 : index
    %13 = vector.load %arg1[%c0_11, %c128, %c0_12] : memref<1x512x64xbf16, #tpu.memory_space<vmem>>, vector<1x256x64xbf16>
    %14 = vector.shape_cast %13 : vector<1x256x64xbf16> to vector<256x64xbf16>
    %c2 = arith.constant 2 : index
    %c0_13 = arith.constant 0 : index
    %c0_14 = arith.constant 0 : index
    %15 = vector.load %arg2[%c2, %c0_13, %c0_14] : memref<5x64x64xbf16, #tpu.memory_space<vmem>>, vector<1x64x64xbf16>
    %16 = vector.shape_cast %15 : vector<1x64x64xbf16> to vector<64x64xbf16>
    %cst_15 = arith.constant dense<0.000000e+00> : vector<256x64xf32>
    %17 = tpu.matmul %14, %16, %cst_15 {dimension_numbers = #tpu.dot_dimension_numbers<[1], [0], [0], [1], [0, 0, 1, 1], [], []>} : vector<256x64xbf16>, vector<64x64xbf16>, vector<256x64xf32> -> vector<256x64xf32>
    %18 = arith.addf %12, %17 : vector<256x64xf32>
    %c0_16 = arith.constant 0 : index
    %c192 = arith.constant 192 : index
    %c0_17 = arith.constant 0 : index
    %19 = vector.load %arg1[%c0_16, %c192, %c0_17] : memref<1x512x64xbf16, #tpu.memory_space<vmem>>, vector<1x256x64xbf16>
    %20 = vector.shape_cast %19 : vector<1x256x64xbf16> to vector<256x64xbf16>
    %c3 = arith.constant 3 : index
    %c0_18 = arith.constant 0 : index
    %c0_19 = arith.constant 0 : index
    %21 = vector.load %arg2[%c3, %c0_18, %c0_19] : memref<5x64x64xbf16, #tpu.memory_space<vmem>>, vector<1x64x64xbf16>
    %22 = vector.shape_cast %21 : vector<1x64x64xbf16> to vector<64x64xbf16>
    %cst_20 = arith.constant dense<0.000000e+00> : vector<256x64xf32>
    %23 = tpu.matmul %20, %22, %cst_20 {dimension_numbers = #tpu.dot_dimension_numbers<[1], [0], [0], [1], [0, 0, 1, 1], [], []>} : vector<256x64xbf16>, vector<64x64xbf16>, vector<256x64xf32> -> vector<256x64xf32>
    %24 = arith.addf %18, %23 : vector<256x64xf32>
    %c0_21 = arith.constant 0 : index
    %c256 = arith.constant 256 : index
    %c0_22 = arith.constant 0 : index
    %25 = vector.load %arg1[%c0_21, %c256, %c0_22] : memref<1x512x64xbf16, #tpu.memory_space<vmem>>, vector<1x256x64xbf16>
    %26 = vector.shape_cast %25 : vector<1x256x64xbf16> to vector<256x64xbf16>
    %c4 = arith.constant 4 : index
    %c0_23 = arith.constant 0 : index
    %c0_24 = arith.constant 0 : index
    %27 = vector.load %arg2[%c4, %c0_23, %c0_24] : memref<5x64x64xbf16, #tpu.memory_space<vmem>>, vector<1x64x64xbf16>
    %28 = vector.shape_cast %27 : vector<1x64x64xbf16> to vector<64x64xbf16>
    %cst_25 = arith.constant dense<0.000000e+00> : vector<256x64xf32>
    %29 = tpu.matmul %26, %28, %cst_25 {dimension_numbers = #tpu.dot_dimension_numbers<[1], [0], [0], [1], [0, 0, 1, 1], [], []>} : vector<256x64xbf16>, vector<64x64xbf16>, vector<256x64xf32> -> vector<256x64xf32>
    %30 = arith.addf %24, %29 : vector<256x64xf32>
    %c0_26 = arith.constant 0 : index
    %c0_27 = arith.constant 0 : index
    %31 = vector.load %arg3[%c0_26, %c0_27] : memref<1x64xf32, #tpu.memory_space<vmem>>, vector<1x64xf32>
    %32 = vector.broadcast %31 : vector<1x64xf32> to vector<256x64xf32>
    %33 = arith.mulf %30, %32 : vector<256x64xf32>
    %c0_28 = arith.constant 0 : index
    %c0_29 = arith.constant 0 : index
    %34 = vector.load %arg4[%c0_28, %c0_29] : memref<1x64xf32, #tpu.memory_space<vmem>>, vector<1x64xf32>
    %35 = vector.broadcast %34 : vector<1x64xf32> to vector<256x64xf32>
    %36 = arith.addf %33, %35 : vector<256x64xf32>
    %cst_30 = arith.constant 0.000000e+00 : f32
    %37 = vector.broadcast %cst_30 : f32 to vector<256x64xf32>
    %38 = arith.maximumf %36, %37 : vector<256x64xf32>
    %39 = arith.truncf %38 : vector<256x64xf32> to vector<256x64xbf16>
    %c0_31 = arith.constant 0 : index
    %c0_32 = arith.constant 0 : index
    %40 = vector.load %arg5[%c0_31, %c0_32] : memref<64x32xbf16, #tpu.memory_space<vmem>>, vector<64x32xbf16>
    %cst_33 = arith.constant dense<0.000000e+00> : vector<256x32xf32>
    %41 = tpu.matmul %39, %40, %cst_33 {dimension_numbers = #tpu.dot_dimension_numbers<[1], [0], [0], [1], [0, 0, 1, 1], [], []>} : vector<256x64xbf16>, vector<64x32xbf16>, vector<256x32xf32> -> vector<256x32xf32>
    %c0_34 = arith.constant 0 : index
    %c0_35 = arith.constant 0 : index
    %42 = vector.load %arg6[%c0_34, %c0_35] : memref<1x32xf32, #tpu.memory_space<vmem>>, vector<1x32xf32>
    %43 = vector.broadcast %42 : vector<1x32xf32> to vector<256x32xf32>
    %44 = arith.mulf %41, %43 : vector<256x32xf32>
    %c0_36 = arith.constant 0 : index
    %c0_37 = arith.constant 0 : index
    %45 = vector.load %arg7[%c0_36, %c0_37] : memref<1x32xf32, #tpu.memory_space<vmem>>, vector<1x32xf32>
    %46 = vector.broadcast %45 : vector<1x32xf32> to vector<256x32xf32>
    %47 = arith.addf %44, %46 : vector<256x32xf32>
    %cst_38 = arith.constant 0.000000e+00 : f32
    %48 = vector.broadcast %cst_38 : f32 to vector<256x32xf32>
    %49 = arith.maximumf %47, %48 : vector<256x32xf32>
    %50 = arith.truncf %49 : vector<256x32xf32> to vector<256x32xbf16>
    %c0_39 = arith.constant 0 : index
    %c0_40 = arith.constant 0 : index
    %c0_41 = arith.constant 0 : index
    %51 = vector.load %arg8[%c0_39, %c0_40, %c0_41] : memref<1x256x32xbf16, #tpu.memory_space<vmem>>, vector<1x256x32xbf16>
    %52 = vector.shape_cast %51 : vector<1x256x32xbf16> to vector<256x32xbf16>
    %53 = vector.shape_cast %50 : vector<256x32xbf16> to vector<1x256x32xbf16>
    tpu.vector_store %arg8[%c0_39, %c0_40, %c0_41], %53 {strides = array<i32>} : memref<1x256x32xbf16, #tpu.memory_space<vmem>>, vector<1x256x32xbf16>,
    return
  }
  func.func @transform_0(%arg0: i32) -> (i32, i32, i32) {
    %c0_i32 = arith.constant 0 : i32
    %c0_i32_0 = arith.constant 0 : i32
    %c0_i32_1 = arith.constant 0 : i32
    return %arg0, %c0_i32, %c0_i32_0 : i32, i32, i32
  }
  func.func @transform_1(%arg0: i32) -> (i32, i32, i32) {
    %c0_i32 = arith.constant 0 : i32
    %c0_i32_0 = arith.constant 0 : i32
    %c0_i32_1 = arith.constant 0 : i32
    %c0_i32_2 = arith.constant 0 : i32
    return %c0_i32, %c0_i32_0, %c0_i32_1 : i32, i32, i32
  }
  func.func @transform_2(%arg0: i32) -> (i32, i32) {
    %c0_i32 = arith.constant 0 : i32
    %c0_i32_0 = arith.constant 0 : i32
    %c0_i32_1 = arith.constant 0 : i32
    return %c0_i32, %c0_i32_0 : i32, i32
  }
  func.func @transform_3(%arg0: i32) -> (i32, i32) {
    %c0_i32 = arith.constant 0 : i32
    %c0_i32_0 = arith.constant 0 : i32
    %c0_i32_1 = arith.constant 0 : i32
    return %c0_i32, %c0_i32_0 : i32, i32
  }
  func.func @transform_4(%arg0: i32) -> (i32, i32) {
    %c0_i32 = arith.constant 0 : i32
    %c0_i32_0 = arith.constant 0 : i32
    %c0_i32_1 = arith.constant 0 : i32
    return %c0_i32, %c0_i32_0 : i32, i32
  }
  func.func @transform_5(%arg0: i32) -> (i32, i32) {
    %c0_i32 = arith.constant 0 : i32
    %c0_i32_0 = arith.constant 0 : i32
    %c0_i32_1 = arith.constant 0 : i32
    return %c0_i32, %c0_i32_0 : i32, i32
  }
  func.func @transform_6(%arg0: i32) -> (i32, i32) {
    %c0_i32 = arith.constant 0 : i32
    %c0_i32_0 = arith.constant 0 : i32
    %c0_i32_1 = arith.constant 0 : i32
    return %c0_i32, %c0_i32_0 : i32, i32
  }
  func.func @transform_7(%arg0: i32) -> (i32, i32, i32) {
    %c0_i32 = arith.constant 0 : i32
    %c0_i32_0 = arith.constant 0 : i32
    %c0_i32_1 = arith.constant 0 : i32
    return %arg0, %c0_i32, %c0_i32_0 : i32, i32, i32
  }
}

module attributes {stable_mosaic.version = 11 : i64} {
  func.func @_maxpool_kernel(%arg0: i32, %arg1: memref<3x4x5x256xbf16, #tpu.memory_space<vmem>>, %arg2: memref<4x4x128xbf16, #tpu.memory_space<vmem>>) attributes {dimension_semantics = [#tpu.dimension_semantics<parallel>], iteration_bounds = array<i64: 2>, scalar_prefetch = 0 : i64, scratch_operands = 0 : i64, tpu.core_type = #tpu.core_type<tc>, window_params = [{transform_indices = @transform_0, window_bounds = array<i64: 3, 4, 5, 256>}, {transform_indices = @transform_1, window_bounds = array<i64: 4, 4, 128>}]} {
    %c0 = arith.constant 0 : index
    %c0_0 = arith.constant 0 : index
    %c0_1 = arith.constant 0 : index
    %c0_2 = arith.constant 0 : index
    %0 = vector.load %arg1[%c0, %c0_0, %c0_1, %c0_2] : memref<3x4x5x256xbf16, #tpu.memory_space<vmem>>, vector<1x4x4x256xbf16>
    %1 = vector.shape_cast %0 : vector<1x4x4x256xbf16> to vector<4x4x256xbf16>
    %c0_3 = arith.constant 0 : index
    %c0_4 = arith.constant 0 : index
    %c1 = arith.constant 1 : index
    %c0_5 = arith.constant 0 : index
    %2 = vector.load %arg1[%c0_3, %c0_4, %c1, %c0_5] : memref<3x4x5x256xbf16, #tpu.memory_space<vmem>>, vector<1x4x4x256xbf16>
    %3 = vector.shape_cast %2 : vector<1x4x4x256xbf16> to vector<4x4x256xbf16>
    %4 = vector.extract_strided_slice %1 {offsets = [0, 0, 0], sizes = [4, 4, 128], strides = [1, 1, 1]} : vector<4x4x256xbf16> to vector<4x4x128xbf16>
    %5 = vector.extract_strided_slice %1 {offsets = [0, 0, 128], sizes = [4, 4, 128], strides = [1, 1, 1]} : vector<4x4x256xbf16> to vector<4x4x128xbf16>
    %6 = arith.maximumf %4, %5 : vector<4x4x128xbf16>
    %7 = vector.extract_strided_slice %3 {offsets = [0, 0, 0], sizes = [4, 4, 128], strides = [1, 1, 1]} : vector<4x4x256xbf16> to vector<4x4x128xbf16>
    %8 = arith.maximumf %6, %7 : vector<4x4x128xbf16>
    %c1_6 = arith.constant 1 : index
    %c0_7 = arith.constant 0 : index
    %c0_8 = arith.constant 0 : index
    %c0_9 = arith.constant 0 : index
    %9 = vector.load %arg1[%c1_6, %c0_7, %c0_8, %c0_9] : memref<3x4x5x256xbf16, #tpu.memory_space<vmem>>, vector<1x4x4x256xbf16>
    %10 = vector.shape_cast %9 : vector<1x4x4x256xbf16> to vector<4x4x256xbf16>
    %c1_10 = arith.constant 1 : index
    %c0_11 = arith.constant 0 : index
    %c1_12 = arith.constant 1 : index
    %c0_13 = arith.constant 0 : index
    %11 = vector.load %arg1[%c1_10, %c0_11, %c1_12, %c0_13] : memref<3x4x5x256xbf16, #tpu.memory_space<vmem>>, vector<1x4x4x256xbf16>
    %12 = vector.shape_cast %11 : vector<1x4x4x256xbf16> to vector<4x4x256xbf16>
    %13 = vector.extract_strided_slice %10 {offsets = [0, 0, 0], sizes = [4, 4, 128], strides = [1, 1, 1]} : vector<4x4x256xbf16> to vector<4x4x128xbf16>
    %14 = vector.extract_strided_slice %10 {offsets = [0, 0, 128], sizes = [4, 4, 128], strides = [1, 1, 1]} : vector<4x4x256xbf16> to vector<4x4x128xbf16>
    %15 = arith.maximumf %13, %14 : vector<4x4x128xbf16>
    %16 = vector.extract_strided_slice %12 {offsets = [0, 0, 0], sizes = [4, 4, 128], strides = [1, 1, 1]} : vector<4x4x256xbf16> to vector<4x4x128xbf16>
    %17 = arith.maximumf %15, %16 : vector<4x4x128xbf16>
    %18 = arith.maximumf %8, %17 : vector<4x4x128xbf16>
    %c2 = arith.constant 2 : index
    %c0_14 = arith.constant 0 : index
    %c0_15 = arith.constant 0 : index
    %c0_16 = arith.constant 0 : index
    %19 = vector.load %arg1[%c2, %c0_14, %c0_15, %c0_16] : memref<3x4x5x256xbf16, #tpu.memory_space<vmem>>, vector<1x4x4x256xbf16>
    %20 = vector.shape_cast %19 : vector<1x4x4x256xbf16> to vector<4x4x256xbf16>
    %c2_17 = arith.constant 2 : index
    %c0_18 = arith.constant 0 : index
    %c1_19 = arith.constant 1 : index
    %c0_20 = arith.constant 0 : index
    %21 = vector.load %arg1[%c2_17, %c0_18, %c1_19, %c0_20] : memref<3x4x5x256xbf16, #tpu.memory_space<vmem>>, vector<1x4x4x256xbf16>
    %22 = vector.shape_cast %21 : vector<1x4x4x256xbf16> to vector<4x4x256xbf16>
    %23 = vector.extract_strided_slice %20 {offsets = [0, 0, 0], sizes = [4, 4, 128], strides = [1, 1, 1]} : vector<4x4x256xbf16> to vector<4x4x128xbf16>
    %24 = vector.extract_strided_slice %20 {offsets = [0, 0, 128], sizes = [4, 4, 128], strides = [1, 1, 1]} : vector<4x4x256xbf16> to vector<4x4x128xbf16>
    %25 = arith.maximumf %23, %24 : vector<4x4x128xbf16>
    %26 = vector.extract_strided_slice %22 {offsets = [0, 0, 0], sizes = [4, 4, 128], strides = [1, 1, 1]} : vector<4x4x256xbf16> to vector<4x4x128xbf16>
    %27 = arith.maximumf %25, %26 : vector<4x4x128xbf16>
    %28 = arith.maximumf %18, %27 : vector<4x4x128xbf16>
    %c0_21 = arith.constant 0 : index
    %c0_22 = arith.constant 0 : index
    %c0_23 = arith.constant 0 : index
    %29 = vector.load %arg2[%c0_21, %c0_22, %c0_23] : memref<4x4x128xbf16, #tpu.memory_space<vmem>>, vector<4x4x128xbf16>
    tpu.vector_store %arg2[%c0_21, %c0_22, %c0_23], %28 {strides = array<i32>} : memref<4x4x128xbf16, #tpu.memory_space<vmem>>, vector<4x4x128xbf16>,
    return
  }
  func.func @transform_0(%arg0: i32) -> (i32, i32, i32, i32) {
    %c0_i32 = arith.constant 0 : i32
    %c0_i32_0 = arith.constant 0 : i32
    %c0_i32_1 = arith.constant 0 : i32
    %c0_i32_2 = arith.constant 0 : i32
    return %c0_i32, %arg0, %c0_i32_0, %c0_i32_1 : i32, i32, i32, i32
  }
  func.func @transform_1(%arg0: i32) -> (i32, i32, i32) {
    %c0_i32 = arith.constant 0 : i32
    %c0_i32_0 = arith.constant 0 : i32
    %c0_i32_1 = arith.constant 0 : i32
    return %arg0, %c0_i32, %c0_i32_0 : i32, i32, i32
  }
}

module attributes {stable_mosaic.version = 11 : i64} {
  func.func @_spatial_tap_kernel(%arg0: i32, %arg1: memref<4x32x160xbf16, #tpu.memory_space<vmem>>, %arg2: memref<5x160x128xbf16, #tpu.memory_space<vmem>>, %arg3: memref<1x128xf32, #tpu.memory_space<vmem>>, %arg4: memref<1x128xf32, #tpu.memory_space<vmem>>, %arg5: memref<4x16x128xbf16, #tpu.memory_space<vmem>>) attributes {dimension_semantics = [#tpu.dimension_semantics<parallel>], iteration_bounds = array<i64: 2>, scalar_prefetch = 0 : i64, scratch_operands = 0 : i64, tpu.core_type = #tpu.core_type<tc>, window_params = [{transform_indices = @transform_0, window_bounds = array<i64: 4, 32, 160>}, {pipeline_mode = #tpu.pipeline_mode<synchronous>, transform_indices = @transform_1, window_bounds = array<i64: 5, 160, 128>}, {pipeline_mode = #tpu.pipeline_mode<synchronous>, transform_indices = @transform_2, window_bounds = array<i64: 1, 128>}, {pipeline_mode = #tpu.pipeline_mode<synchronous>, transform_indices = @transform_3, window_bounds = array<i64: 1, 128>}, {transform_indices = @transform_4, window_bounds = array<i64: 4, 16, 128>}]} {
    %c0 = arith.constant 0 : index
    %c0_0 = arith.constant 0 : index
    %0 = vector.load %arg3[%c0, %c0_0] : memref<1x128xf32, #tpu.memory_space<vmem>>, vector<1x128xf32>
    %c0_1 = arith.constant 0 : index
    %c0_2 = arith.constant 0 : index
    %1 = vector.load %arg4[%c0_1, %c0_2] : memref<1x128xf32, #tpu.memory_space<vmem>>, vector<1x128xf32>
    %cst = arith.constant 0.000000e+00 : f32
    %2 = vector.broadcast %cst : f32 to vector<16x128xf32>
    %c0_3 = arith.constant 0 : index
    %c0_4 = arith.constant 0 : index
    %c0_5 = arith.constant 0 : index
    %3 = vector.load %arg1[%c0_3, %c0_4, %c0_5] : memref<4x32x160xbf16, #tpu.memory_space<vmem>>, vector<1x16x160xbf16>
    %4 = vector.shape_cast %3 : vector<1x16x160xbf16> to vector<16x160xbf16>
    %c0_6 = arith.constant 0 : index
    %c0_7 = arith.constant 0 : index
    %c0_8 = arith.constant 0 : index
    %5 = vector.load %arg2[%c0_6, %c0_7, %c0_8] : memref<5x160x128xbf16, #tpu.memory_space<vmem>>, vector<1x160x128xbf16>
    %6 = vector.shape_cast %5 : vector<1x160x128xbf16> to vector<160x128xbf16>
    %cst_9 = arith.constant dense<0.000000e+00> : vector<16x128xf32>
    %7 = tpu.matmul %4, %6, %cst_9 {dimension_numbers = #tpu.dot_dimension_numbers<[1], [0], [0], [1], [0, 0, 1, 1], [], []>} : vector<16x160xbf16>, vector<160x128xbf16>, vector<16x128xf32> -> vector<16x128xf32>
    %8 = arith.addf %2, %7 : vector<16x128xf32>
    %c0_10 = arith.constant 0 : index
    %c4 = arith.constant 4 : index
    %c0_11 = arith.constant 0 : index
    %9 = vector.load %arg1[%c0_10, %c4, %c0_11] : memref<4x32x160xbf16, #tpu.memory_space<vmem>>, vector<1x16x160xbf16>
    %10 = vector.shape_cast %9 : vector<1x16x160xbf16> to vector<16x160xbf16>
    %c1 = arith.constant 1 : index
    %c0_12 = arith.constant 0 : index
    %c0_13 = arith.constant 0 : index
    %11 = vector.load %arg2[%c1, %c0_12, %c0_13] : memref<5x160x128xbf16, #tpu.memory_space<vmem>>, vector<1x160x128xbf16>
    %12 = vector.shape_cast %11 : vector<1x160x128xbf16> to vector<160x128xbf16>
    %cst_14 = arith.constant dense<0.000000e+00> : vector<16x128xf32>
    %13 = tpu.matmul %10, %12, %cst_14 {dimension_numbers = #tpu.dot_dimension_numbers<[1], [0], [0], [1], [0, 0, 1, 1], [], []>} : vector<16x160xbf16>, vector<160x128xbf16>, vector<16x128xf32> -> vector<16x128xf32>
    %14 = arith.addf %8, %13 : vector<16x128xf32>
    %c0_15 = arith.constant 0 : index
    %c8 = arith.constant 8 : index
    %c0_16 = arith.constant 0 : index
    %15 = vector.load %arg1[%c0_15, %c8, %c0_16] : memref<4x32x160xbf16, #tpu.memory_space<vmem>>, vector<1x16x160xbf16>
    %16 = vector.shape_cast %15 : vector<1x16x160xbf16> to vector<16x160xbf16>
    %c2 = arith.constant 2 : index
    %c0_17 = arith.constant 0 : index
    %c0_18 = arith.constant 0 : index
    %17 = vector.load %arg2[%c2, %c0_17, %c0_18] : memref<5x160x128xbf16, #tpu.memory_space<vmem>>, vector<1x160x128xbf16>
    %18 = vector.shape_cast %17 : vector<1x160x128xbf16> to vector<160x128xbf16>
    %cst_19 = arith.constant dense<0.000000e+00> : vector<16x128xf32>
    %19 = tpu.matmul %16, %18, %cst_19 {dimension_numbers = #tpu.dot_dimension_numbers<[1], [0], [0], [1], [0, 0, 1, 1], [], []>} : vector<16x160xbf16>, vector<160x128xbf16>, vector<16x128xf32> -> vector<16x128xf32>
    %20 = arith.addf %14, %19 : vector<16x128xf32>
    %c0_20 = arith.constant 0 : index
    %c12 = arith.constant 12 : index
    %c0_21 = arith.constant 0 : index
    %21 = vector.load %arg1[%c0_20, %c12, %c0_21] : memref<4x32x160xbf16, #tpu.memory_space<vmem>>, vector<1x16x160xbf16>
    %22 = vector.shape_cast %21 : vector<1x16x160xbf16> to vector<16x160xbf16>
    %c3 = arith.constant 3 : index
    %c0_22 = arith.constant 0 : index
    %c0_23 = arith.constant 0 : index
    %23 = vector.load %arg2[%c3, %c0_22, %c0_23] : memref<5x160x128xbf16, #tpu.memory_space<vmem>>, vector<1x160x128xbf16>
    %24 = vector.shape_cast %23 : vector<1x160x128xbf16> to vector<160x128xbf16>
    %cst_24 = arith.constant dense<0.000000e+00> : vector<16x128xf32>
    %25 = tpu.matmul %22, %24, %cst_24 {dimension_numbers = #tpu.dot_dimension_numbers<[1], [0], [0], [1], [0, 0, 1, 1], [], []>} : vector<16x160xbf16>, vector<160x128xbf16>, vector<16x128xf32> -> vector<16x128xf32>
    %26 = arith.addf %20, %25 : vector<16x128xf32>
    %c0_25 = arith.constant 0 : index
    %c16 = arith.constant 16 : index
    %c0_26 = arith.constant 0 : index
    %27 = vector.load %arg1[%c0_25, %c16, %c0_26] : memref<4x32x160xbf16, #tpu.memory_space<vmem>>, vector<1x16x160xbf16>
    %28 = vector.shape_cast %27 : vector<1x16x160xbf16> to vector<16x160xbf16>
    %c4_27 = arith.constant 4 : index
    %c0_28 = arith.constant 0 : index
    %c0_29 = arith.constant 0 : index
    %29 = vector.load %arg2[%c4_27, %c0_28, %c0_29] : memref<5x160x128xbf16, #tpu.memory_space<vmem>>, vector<1x160x128xbf16>
    %30 = vector.shape_cast %29 : vector<1x160x128xbf16> to vector<160x128xbf16>
    %cst_30 = arith.constant dense<0.000000e+00> : vector<16x128xf32>
    %31 = tpu.matmul %28, %30, %cst_30 {dimension_numbers = #tpu.dot_dimension_numbers<[1], [0], [0], [1], [0, 0, 1, 1], [], []>} : vector<16x160xbf16>, vector<160x128xbf16>, vector<16x128xf32> -> vector<16x128xf32>
    %32 = arith.addf %26, %31 : vector<16x128xf32>
    %33 = vector.broadcast %0 : vector<1x128xf32> to vector<16x128xf32>
    %34 = arith.mulf %32, %33 : vector<16x128xf32>
    %35 = vector.broadcast %1 : vector<1x128xf32> to vector<16x128xf32>
    %36 = arith.addf %34, %35 : vector<16x128xf32>
    %cst_31 = arith.constant 0.000000e+00 : f32
    %37 = vector.broadcast %cst_31 : f32 to vector<16x128xf32>
    %38 = arith.maximumf %36, %37 : vector<16x128xf32>
    %39 = arith.truncf %38 : vector<16x128xf32> to vector<16x128xbf16>
    %c0_32 = arith.constant 0 : index
    %c0_33 = arith.constant 0 : index
    %c0_34 = arith.constant 0 : index
    %40 = vector.load %arg5[%c0_32, %c0_33, %c0_34] : memref<4x16x128xbf16, #tpu.memory_space<vmem>>, vector<1x16x128xbf16>
    %41 = vector.shape_cast %40 : vector<1x16x128xbf16> to vector<16x128xbf16>
    %42 = vector.shape_cast %39 : vector<16x128xbf16> to vector<1x16x128xbf16>
    tpu.vector_store %arg5[%c0_32, %c0_33, %c0_34], %42 {strides = array<i32>} : memref<4x16x128xbf16, #tpu.memory_space<vmem>>, vector<1x16x128xbf16>,
    %cst_35 = arith.constant 0.000000e+00 : f32
    %43 = vector.broadcast %cst_35 : f32 to vector<16x128xf32>
    %c1_36 = arith.constant 1 : index
    %c0_37 = arith.constant 0 : index
    %c0_38 = arith.constant 0 : index
    %44 = vector.load %arg1[%c1_36, %c0_37, %c0_38] : memref<4x32x160xbf16, #tpu.memory_space<vmem>>, vector<1x16x160xbf16>
    %45 = vector.shape_cast %44 : vector<1x16x160xbf16> to vector<16x160xbf16>
    %c0_39 = arith.constant 0 : index
    %c0_40 = arith.constant 0 : index
    %c0_41 = arith.constant 0 : index
    %46 = vector.load %arg2[%c0_39, %c0_40, %c0_41] : memref<5x160x128xbf16, #tpu.memory_space<vmem>>, vector<1x160x128xbf16>
    %47 = vector.shape_cast %46 : vector<1x160x128xbf16> to vector<160x128xbf16>
    %cst_42 = arith.constant dense<0.000000e+00> : vector<16x128xf32>
    %48 = tpu.matmul %45, %47, %cst_42 {dimension_numbers = #tpu.dot_dimension_numbers<[1], [0], [0], [1], [0, 0, 1, 1], [], []>} : vector<16x160xbf16>, vector<160x128xbf16>, vector<16x128xf32> -> vector<16x128xf32>
    %49 = arith.addf %43, %48 : vector<16x128xf32>
    %c1_43 = arith.constant 1 : index
    %c4_44 = arith.constant 4 : index
    %c0_45 = arith.constant 0 : index
    %50 = vector.load %arg1[%c1_43, %c4_44, %c0_45] : memref<4x32x160xbf16, #tpu.memory_space<vmem>>, vector<1x16x160xbf16>
    %51 = vector.shape_cast %50 : vector<1x16x160xbf16> to vector<16x160xbf16>
    %c1_46 = arith.constant 1 : index
    %c0_47 = arith.constant 0 : index
    %c0_48 = arith.constant 0 : index
    %52 = vector.load %arg2[%c1_46, %c0_47, %c0_48] : memref<5x160x128xbf16, #tpu.memory_space<vmem>>, vector<1x160x128xbf16>
    %53 = vector.shape_cast %52 : vector<1x160x128xbf16> to vector<160x128xbf16>
    %cst_49 = arith.constant dense<0.000000e+00> : vector<16x128xf32>
    %54 = tpu.matmul %51, %53, %cst_49 {dimension_numbers = #tpu.dot_dimension_numbers<[1], [0], [0], [1], [0, 0, 1, 1], [], []>} : vector<16x160xbf16>, vector<160x128xbf16>, vector<16x128xf32> -> vector<16x128xf32>
    %55 = arith.addf %49, %54 : vector<16x128xf32>
    %c1_50 = arith.constant 1 : index
    %c8_51 = arith.constant 8 : index
    %c0_52 = arith.constant 0 : index
    %56 = vector.load %arg1[%c1_50, %c8_51, %c0_52] : memref<4x32x160xbf16, #tpu.memory_space<vmem>>, vector<1x16x160xbf16>
    %57 = vector.shape_cast %56 : vector<1x16x160xbf16> to vector<16x160xbf16>
    %c2_53 = arith.constant 2 : index
    %c0_54 = arith.constant 0 : index
    %c0_55 = arith.constant 0 : index
    %58 = vector.load %arg2[%c2_53, %c0_54, %c0_55] : memref<5x160x128xbf16, #tpu.memory_space<vmem>>, vector<1x160x128xbf16>
    %59 = vector.shape_cast %58 : vector<1x160x128xbf16> to vector<160x128xbf16>
    %cst_56 = arith.constant dense<0.000000e+00> : vector<16x128xf32>
    %60 = tpu.matmul %57, %59, %cst_56 {dimension_numbers = #tpu.dot_dimension_numbers<[1], [0], [0], [1], [0, 0, 1, 1], [], []>} : vector<16x160xbf16>, vector<160x128xbf16>, vector<16x128xf32> -> vector<16x128xf32>
    %61 = arith.addf %55, %60 : vector<16x128xf32>
    %c1_57 = arith.constant 1 : index
    %c12_58 = arith.constant 12 : index
    %c0_59 = arith.constant 0 : index
    %62 = vector.load %arg1[%c1_57, %c12_58, %c0_59] : memref<4x32x160xbf16, #tpu.memory_space<vmem>>, vector<1x16x160xbf16>
    %63 = vector.shape_cast %62 : vector<1x16x160xbf16> to vector<16x160xbf16>
    %c3_60 = arith.constant 3 : index
    %c0_61 = arith.constant 0 : index
    %c0_62 = arith.constant 0 : index
    %64 = vector.load %arg2[%c3_60, %c0_61, %c0_62] : memref<5x160x128xbf16, #tpu.memory_space<vmem>>, vector<1x160x128xbf16>
    %65 = vector.shape_cast %64 : vector<1x160x128xbf16> to vector<160x128xbf16>
    %cst_63 = arith.constant dense<0.000000e+00> : vector<16x128xf32>
    %66 = tpu.matmul %63, %65, %cst_63 {dimension_numbers = #tpu.dot_dimension_numbers<[1], [0], [0], [1], [0, 0, 1, 1], [], []>} : vector<16x160xbf16>, vector<160x128xbf16>, vector<16x128xf32> -> vector<16x128xf32>
    %67 = arith.addf %61, %66 : vector<16x128xf32>
    %c1_64 = arith.constant 1 : index
    %c16_65 = arith.constant 16 : index
    %c0_66 = arith.constant 0 : index
    %68 = vector.load %arg1[%c1_64, %c16_65, %c0_66] : memref<4x32x160xbf16, #tpu.memory_space<vmem>>, vector<1x16x160xbf16>
    %69 = vector.shape_cast %68 : vector<1x16x160xbf16> to vector<16x160xbf16>
    %c4_67 = arith.constant 4 : index
    %c0_68 = arith.constant 0 : index
    %c0_69 = arith.constant 0 : index
    %70 = vector.load %arg2[%c4_67, %c0_68, %c0_69] : memref<5x160x128xbf16, #tpu.memory_space<vmem>>, vector<1x160x128xbf16>
    %71 = vector.shape_cast %70 : vector<1x160x128xbf16> to vector<160x128xbf16>
    %cst_70 = arith.constant dense<0.000000e+00> : vector<16x128xf32>
    %72 = tpu.matmul %69, %71, %cst_70 {dimension_numbers = #tpu.dot_dimension_numbers<[1], [0], [0], [1], [0, 0, 1, 1], [], []>} : vector<16x160xbf16>, vector<160x128xbf16>, vector<16x128xf32> -> vector<16x128xf32>
    %73 = arith.addf %67, %72 : vector<16x128xf32>
    %74 = vector.broadcast %0 : vector<1x128xf32> to vector<16x128xf32>
    %75 = arith.mulf %73, %74 : vector<16x128xf32>
    %76 = vector.broadcast %1 : vector<1x128xf32> to vector<16x128xf32>
    %77 = arith.addf %75, %76 : vector<16x128xf32>
    %cst_71 = arith.constant 0.000000e+00 : f32
    %78 = vector.broadcast %cst_71 : f32 to vector<16x128xf32>
    %79 = arith.maximumf %77, %78 : vector<16x128xf32>
    %80 = arith.truncf %79 : vector<16x128xf32> to vector<16x128xbf16>
    %c1_72 = arith.constant 1 : index
    %c0_73 = arith.constant 0 : index
    %c0_74 = arith.constant 0 : index
    %81 = vector.load %arg5[%c1_72, %c0_73, %c0_74] : memref<4x16x128xbf16, #tpu.memory_space<vmem>>, vector<1x16x128xbf16>
    %82 = vector.shape_cast %81 : vector<1x16x128xbf16> to vector<16x128xbf16>
    %83 = vector.shape_cast %80 : vector<16x128xbf16> to vector<1x16x128xbf16>
    tpu.vector_store %arg5[%c1_72, %c0_73, %c0_74], %83 {strides = array<i32>} : memref<4x16x128xbf16, #tpu.memory_space<vmem>>, vector<1x16x128xbf16>,
    %cst_75 = arith.constant 0.000000e+00 : f32
    %84 = vector.broadcast %cst_75 : f32 to vector<16x128xf32>
    %c2_76 = arith.constant 2 : index
    %c0_77 = arith.constant 0 : index
    %c0_78 = arith.constant 0 : index
    %85 = vector.load %arg1[%c2_76, %c0_77, %c0_78] : memref<4x32x160xbf16, #tpu.memory_space<vmem>>, vector<1x16x160xbf16>
    %86 = vector.shape_cast %85 : vector<1x16x160xbf16> to vector<16x160xbf16>
    %c0_79 = arith.constant 0 : index
    %c0_80 = arith.constant 0 : index
    %c0_81 = arith.constant 0 : index
    %87 = vector.load %arg2[%c0_79, %c0_80, %c0_81] : memref<5x160x128xbf16, #tpu.memory_space<vmem>>, vector<1x160x128xbf16>
    %88 = vector.shape_cast %87 : vector<1x160x128xbf16> to vector<160x128xbf16>
    %cst_82 = arith.constant dense<0.000000e+00> : vector<16x128xf32>
    %89 = tpu.matmul %86, %88, %cst_82 {dimension_numbers = #tpu.dot_dimension_numbers<[1], [0], [0], [1], [0, 0, 1, 1], [], []>} : vector<16x160xbf16>, vector<160x128xbf16>, vector<16x128xf32> -> vector<16x128xf32>
    %90 = arith.addf %84, %89 : vector<16x128xf32>
    %c2_83 = arith.constant 2 : index
    %c4_84 = arith.constant 4 : index
    %c0_85 = arith.constant 0 : index
    %91 = vector.load %arg1[%c2_83, %c4_84, %c0_85] : memref<4x32x160xbf16, #tpu.memory_space<vmem>>, vector<1x16x160xbf16>
    %92 = vector.shape_cast %91 : vector<1x16x160xbf16> to vector<16x160xbf16>
    %c1_86 = arith.constant 1 : index
    %c0_87 = arith.constant 0 : index
    %c0_88 = arith.constant 0 : index
    %93 = vector.load %arg2[%c1_86, %c0_87, %c0_88] : memref<5x160x128xbf16, #tpu.memory_space<vmem>>, vector<1x160x128xbf16>
    %94 = vector.shape_cast %93 : vector<1x160x128xbf16> to vector<160x128xbf16>
    %cst_89 = arith.constant dense<0.000000e+00> : vector<16x128xf32>
    %95 = tpu.matmul %92, %94, %cst_89 {dimension_numbers = #tpu.dot_dimension_numbers<[1], [0], [0], [1], [0, 0, 1, 1], [], []>} : vector<16x160xbf16>, vector<160x128xbf16>, vector<16x128xf32> -> vector<16x128xf32>
    %96 = arith.addf %90, %95 : vector<16x128xf32>
    %c2_90 = arith.constant 2 : index
    %c8_91 = arith.constant 8 : index
    %c0_92 = arith.constant 0 : index
    %97 = vector.load %arg1[%c2_90, %c8_91, %c0_92] : memref<4x32x160xbf16, #tpu.memory_space<vmem>>, vector<1x16x160xbf16>
    %98 = vector.shape_cast %97 : vector<1x16x160xbf16> to vector<16x160xbf16>
    %c2_93 = arith.constant 2 : index
    %c0_94 = arith.constant 0 : index
    %c0_95 = arith.constant 0 : index
    %99 = vector.load %arg2[%c2_93, %c0_94, %c0_95] : memref<5x160x128xbf16, #tpu.memory_space<vmem>>, vector<1x160x128xbf16>
    %100 = vector.shape_cast %99 : vector<1x160x128xbf16> to vector<160x128xbf16>
    %cst_96 = arith.constant dense<0.000000e+00> : vector<16x128xf32>
    %101 = tpu.matmul %98, %100, %cst_96 {dimension_numbers = #tpu.dot_dimension_numbers<[1], [0], [0], [1], [0, 0, 1, 1], [], []>} : vector<16x160xbf16>, vector<160x128xbf16>, vector<16x128xf32> -> vector<16x128xf32>
    %102 = arith.addf %96, %101 : vector<16x128xf32>
    %c2_97 = arith.constant 2 : index
    %c12_98 = arith.constant 12 : index
    %c0_99 = arith.constant 0 : index
    %103 = vector.load %arg1[%c2_97, %c12_98, %c0_99] : memref<4x32x160xbf16, #tpu.memory_space<vmem>>, vector<1x16x160xbf16>
    %104 = vector.shape_cast %103 : vector<1x16x160xbf16> to vector<16x160xbf16>
    %c3_100 = arith.constant 3 : index
    %c0_101 = arith.constant 0 : index
    %c0_102 = arith.constant 0 : index
    %105 = vector.load %arg2[%c3_100, %c0_101, %c0_102] : memref<5x160x128xbf16, #tpu.memory_space<vmem>>, vector<1x160x128xbf16>
    %106 = vector.shape_cast %105 : vector<1x160x128xbf16> to vector<160x128xbf16>
    %cst_103 = arith.constant dense<0.000000e+00> : vector<16x128xf32>
    %107 = tpu.matmul %104, %106, %cst_103 {dimension_numbers = #tpu.dot_dimension_numbers<[1], [0], [0], [1], [0, 0, 1, 1], [], []>} : vector<16x160xbf16>, vector<160x128xbf16>, vector<16x128xf32> -> vector<16x128xf32>
    %108 = arith.addf %102, %107 : vector<16x128xf32>
    %c2_104 = arith.constant 2 : index
    %c16_105 = arith.constant 16 : index
    %c0_106 = arith.constant 0 : index
    %109 = vector.load %arg1[%c2_104, %c16_105, %c0_106] : memref<4x32x160xbf16, #tpu.memory_space<vmem>>, vector<1x16x160xbf16>
    %110 = vector.shape_cast %109 : vector<1x16x160xbf16> to vector<16x160xbf16>
    %c4_107 = arith.constant 4 : index
    %c0_108 = arith.constant 0 : index
    %c0_109 = arith.constant 0 : index
    %111 = vector.load %arg2[%c4_107, %c0_108, %c0_109] : memref<5x160x128xbf16, #tpu.memory_space<vmem>>, vector<1x160x128xbf16>
    %112 = vector.shape_cast %111 : vector<1x160x128xbf16> to vector<160x128xbf16>
    %cst_110 = arith.constant dense<0.000000e+00> : vector<16x128xf32>
    %113 = tpu.matmul %110, %112, %cst_110 {dimension_numbers = #tpu.dot_dimension_numbers<[1], [0], [0], [1], [0, 0, 1, 1], [], []>} : vector<16x160xbf16>, vector<160x128xbf16>, vector<16x128xf32> -> vector<16x128xf32>
    %114 = arith.addf %108, %113 : vector<16x128xf32>
    %115 = vector.broadcast %0 : vector<1x128xf32> to vector<16x128xf32>
    %116 = arith.mulf %114, %115 : vector<16x128xf32>
    %117 = vector.broadcast %1 : vector<1x128xf32> to vector<16x128xf32>
    %118 = arith.addf %116, %117 : vector<16x128xf32>
    %cst_111 = arith.constant 0.000000e+00 : f32
    %119 = vector.broadcast %cst_111 : f32 to vector<16x128xf32>
    %120 = arith.maximumf %118, %119 : vector<16x128xf32>
    %121 = arith.truncf %120 : vector<16x128xf32> to vector<16x128xbf16>
    %c2_112 = arith.constant 2 : index
    %c0_113 = arith.constant 0 : index
    %c0_114 = arith.constant 0 : index
    %122 = vector.load %arg5[%c2_112, %c0_113, %c0_114] : memref<4x16x128xbf16, #tpu.memory_space<vmem>>, vector<1x16x128xbf16>
    %123 = vector.shape_cast %122 : vector<1x16x128xbf16> to vector<16x128xbf16>
    %124 = vector.shape_cast %121 : vector<16x128xbf16> to vector<1x16x128xbf16>
    tpu.vector_store %arg5[%c2_112, %c0_113, %c0_114], %124 {strides = array<i32>} : memref<4x16x128xbf16, #tpu.memory_space<vmem>>, vector<1x16x128xbf16>,
    %cst_115 = arith.constant 0.000000e+00 : f32
    %125 = vector.broadcast %cst_115 : f32 to vector<16x128xf32>
    %c3_116 = arith.constant 3 : index
    %c0_117 = arith.constant 0 : index
    %c0_118 = arith.constant 0 : index
    %126 = vector.load %arg1[%c3_116, %c0_117, %c0_118] : memref<4x32x160xbf16, #tpu.memory_space<vmem>>, vector<1x16x160xbf16>
    %127 = vector.shape_cast %126 : vector<1x16x160xbf16> to vector<16x160xbf16>
    %c0_119 = arith.constant 0 : index
    %c0_120 = arith.constant 0 : index
    %c0_121 = arith.constant 0 : index
    %128 = vector.load %arg2[%c0_119, %c0_120, %c0_121] : memref<5x160x128xbf16, #tpu.memory_space<vmem>>, vector<1x160x128xbf16>
    %129 = vector.shape_cast %128 : vector<1x160x128xbf16> to vector<160x128xbf16>
    %cst_122 = arith.constant dense<0.000000e+00> : vector<16x128xf32>
    %130 = tpu.matmul %127, %129, %cst_122 {dimension_numbers = #tpu.dot_dimension_numbers<[1], [0], [0], [1], [0, 0, 1, 1], [], []>} : vector<16x160xbf16>, vector<160x128xbf16>, vector<16x128xf32> -> vector<16x128xf32>
    %131 = arith.addf %125, %130 : vector<16x128xf32>
    %c3_123 = arith.constant 3 : index
    %c4_124 = arith.constant 4 : index
    %c0_125 = arith.constant 0 : index
    %132 = vector.load %arg1[%c3_123, %c4_124, %c0_125] : memref<4x32x160xbf16, #tpu.memory_space<vmem>>, vector<1x16x160xbf16>
    %133 = vector.shape_cast %132 : vector<1x16x160xbf16> to vector<16x160xbf16>
    %c1_126 = arith.constant 1 : index
    %c0_127 = arith.constant 0 : index
    %c0_128 = arith.constant 0 : index
    %134 = vector.load %arg2[%c1_126, %c0_127, %c0_128] : memref<5x160x128xbf16, #tpu.memory_space<vmem>>, vector<1x160x128xbf16>
    %135 = vector.shape_cast %134 : vector<1x160x128xbf16> to vector<160x128xbf16>
    %cst_129 = arith.constant dense<0.000000e+00> : vector<16x128xf32>
    %136 = tpu.matmul %133, %135, %cst_129 {dimension_numbers = #tpu.dot_dimension_numbers<[1], [0], [0], [1], [0, 0, 1, 1], [], []>} : vector<16x160xbf16>, vector<160x128xbf16>, vector<16x128xf32> -> vector<16x128xf32>
    %137 = arith.addf %131, %136 : vector<16x128xf32>
    %c3_130 = arith.constant 3 : index
    %c8_131 = arith.constant 8 : index
    %c0_132 = arith.constant 0 : index
    %138 = vector.load %arg1[%c3_130, %c8_131, %c0_132] : memref<4x32x160xbf16, #tpu.memory_space<vmem>>, vector<1x16x160xbf16>
    %139 = vector.shape_cast %138 : vector<1x16x160xbf16> to vector<16x160xbf16>
    %c2_133 = arith.constant 2 : index
    %c0_134 = arith.constant 0 : index
    %c0_135 = arith.constant 0 : index
    %140 = vector.load %arg2[%c2_133, %c0_134, %c0_135] : memref<5x160x128xbf16, #tpu.memory_space<vmem>>, vector<1x160x128xbf16>
    %141 = vector.shape_cast %140 : vector<1x160x128xbf16> to vector<160x128xbf16>
    %cst_136 = arith.constant dense<0.000000e+00> : vector<16x128xf32>
    %142 = tpu.matmul %139, %141, %cst_136 {dimension_numbers = #tpu.dot_dimension_numbers<[1], [0], [0], [1], [0, 0, 1, 1], [], []>} : vector<16x160xbf16>, vector<160x128xbf16>, vector<16x128xf32> -> vector<16x128xf32>
    %143 = arith.addf %137, %142 : vector<16x128xf32>
    %c3_137 = arith.constant 3 : index
    %c12_138 = arith.constant 12 : index
    %c0_139 = arith.constant 0 : index
    %144 = vector.load %arg1[%c3_137, %c12_138, %c0_139] : memref<4x32x160xbf16, #tpu.memory_space<vmem>>, vector<1x16x160xbf16>
    %145 = vector.shape_cast %144 : vector<1x16x160xbf16> to vector<16x160xbf16>
    %c3_140 = arith.constant 3 : index
    %c0_141 = arith.constant 0 : index
    %c0_142 = arith.constant 0 : index
    %146 = vector.load %arg2[%c3_140, %c0_141, %c0_142] : memref<5x160x128xbf16, #tpu.memory_space<vmem>>, vector<1x160x128xbf16>
    %147 = vector.shape_cast %146 : vector<1x160x128xbf16> to vector<160x128xbf16>
    %cst_143 = arith.constant dense<0.000000e+00> : vector<16x128xf32>
    %148 = tpu.matmul %145, %147, %cst_143 {dimension_numbers = #tpu.dot_dimension_numbers<[1], [0], [0], [1], [0, 0, 1, 1], [], []>} : vector<16x160xbf16>, vector<160x128xbf16>, vector<16x128xf32> -> vector<16x128xf32>
    %149 = arith.addf %143, %148 : vector<16x128xf32>
    %c3_144 = arith.constant 3 : index
    %c16_145 = arith.constant 16 : index
    %c0_146 = arith.constant 0 : index
    %150 = vector.load %arg1[%c3_144, %c16_145, %c0_146] : memref<4x32x160xbf16, #tpu.memory_space<vmem>>, vector<1x16x160xbf16>
    %151 = vector.shape_cast %150 : vector<1x16x160xbf16> to vector<16x160xbf16>
    %c4_147 = arith.constant 4 : index
    %c0_148 = arith.constant 0 : index
    %c0_149 = arith.constant 0 : index
    %152 = vector.load %arg2[%c4_147, %c0_148, %c0_149] : memref<5x160x128xbf16, #tpu.memory_space<vmem>>, vector<1x160x128xbf16>
    %153 = vector.shape_cast %152 : vector<1x160x128xbf16> to vector<160x128xbf16>
    %cst_150 = arith.constant dense<0.000000e+00> : vector<16x128xf32>
    %154 = tpu.matmul %151, %153, %cst_150 {dimension_numbers = #tpu.dot_dimension_numbers<[1], [0], [0], [1], [0, 0, 1, 1], [], []>} : vector<16x160xbf16>, vector<160x128xbf16>, vector<16x128xf32> -> vector<16x128xf32>
    %155 = arith.addf %149, %154 : vector<16x128xf32>
    %156 = vector.broadcast %0 : vector<1x128xf32> to vector<16x128xf32>
    %157 = arith.mulf %155, %156 : vector<16x128xf32>
    %158 = vector.broadcast %1 : vector<1x128xf32> to vector<16x128xf32>
    %159 = arith.addf %157, %158 : vector<16x128xf32>
    %cst_151 = arith.constant 0.000000e+00 : f32
    %160 = vector.broadcast %cst_151 : f32 to vector<16x128xf32>
    %161 = arith.maximumf %159, %160 : vector<16x128xf32>
    %162 = arith.truncf %161 : vector<16x128xf32> to vector<16x128xbf16>
    %c3_152 = arith.constant 3 : index
    %c0_153 = arith.constant 0 : index
    %c0_154 = arith.constant 0 : index
    %163 = vector.load %arg5[%c3_152, %c0_153, %c0_154] : memref<4x16x128xbf16, #tpu.memory_space<vmem>>, vector<1x16x128xbf16>
    %164 = vector.shape_cast %163 : vector<1x16x128xbf16> to vector<16x128xbf16>
    %165 = vector.shape_cast %162 : vector<16x128xbf16> to vector<1x16x128xbf16>
    tpu.vector_store %arg5[%c3_152, %c0_153, %c0_154], %165 {strides = array<i32>} : memref<4x16x128xbf16, #tpu.memory_space<vmem>>, vector<1x16x128xbf16>,
    return
  }
  func.func @transform_0(%arg0: i32) -> (i32, i32, i32) {
    %c0_i32 = arith.constant 0 : i32
    %c0_i32_0 = arith.constant 0 : i32
    %c0_i32_1 = arith.constant 0 : i32
    return %arg0, %c0_i32, %c0_i32_0 : i32, i32, i32
  }
  func.func @transform_1(%arg0: i32) -> (i32, i32, i32) {
    %c0_i32 = arith.constant 0 : i32
    %c0_i32_0 = arith.constant 0 : i32
    %c0_i32_1 = arith.constant 0 : i32
    %c0_i32_2 = arith.constant 0 : i32
    return %c0_i32, %c0_i32_0, %c0_i32_1 : i32, i32, i32
  }
  func.func @transform_2(%arg0: i32) -> (i32, i32) {
    %c0_i32 = arith.constant 0 : i32
    %c0_i32_0 = arith.constant 0 : i32
    %c0_i32_1 = arith.constant 0 : i32
    return %c0_i32, %c0_i32_0 : i32, i32
  }
  func.func @transform_3(%arg0: i32) -> (i32, i32) {
    %c0_i32 = arith.constant 0 : i32
    %c0_i32_0 = arith.constant 0 : i32
    %c0_i32_1 = arith.constant 0 : i32
    return %c0_i32, %c0_i32_0 : i32, i32
  }
  func.func @transform_4(%arg0: i32) -> (i32, i32, i32) {
    %c0_i32 = arith.constant 0 : i32
    %c0_i32_0 = arith.constant 0 : i32
    %c0_i32_1 = arith.constant 0 : i32
    return %arg0, %c0_i32, %c0_i32_0 : i32, i32, i32
  }
}

module attributes {stable_mosaic.version = 11 : i64} {
  func.func @_temporal_last_kernel(%arg0: i32, %arg1: memref<1x128x128xbf16, #tpu.memory_space<vmem>>, %arg2: memref<5x128x128xbf16, #tpu.memory_space<vmem>>, %arg3: memref<1x128xf32, #tpu.memory_space<vmem>>, %arg4: memref<1x128xf32, #tpu.memory_space<vmem>>, %arg5: memref<128x64xbf16, #tpu.memory_space<vmem>>, %arg6: memref<1x64xf32, #tpu.memory_space<vmem>>, %arg7: memref<1x64xf32, #tpu.memory_space<vmem>>, %arg8: memref<1x64x64xbf16, #tpu.memory_space<vmem>>) attributes {dimension_semantics = [#tpu.dimension_semantics<parallel>], iteration_bounds = array<i64: 2>, scalar_prefetch = 0 : i64, scratch_operands = 0 : i64, tpu.core_type = #tpu.core_type<tc>, window_params = [{transform_indices = @transform_0, window_bounds = array<i64: 1, 128, 128>}, {pipeline_mode = #tpu.pipeline_mode<synchronous>, transform_indices = @transform_1, window_bounds = array<i64: 5, 128, 128>}, {pipeline_mode = #tpu.pipeline_mode<synchronous>, transform_indices = @transform_2, window_bounds = array<i64: 1, 128>}, {pipeline_mode = #tpu.pipeline_mode<synchronous>, transform_indices = @transform_3, window_bounds = array<i64: 1, 128>}, {pipeline_mode = #tpu.pipeline_mode<synchronous>, transform_indices = @transform_4, window_bounds = array<i64: 128, 64>}, {pipeline_mode = #tpu.pipeline_mode<synchronous>, transform_indices = @transform_5, window_bounds = array<i64: 1, 64>}, {pipeline_mode = #tpu.pipeline_mode<synchronous>, transform_indices = @transform_6, window_bounds = array<i64: 1, 64>}, {transform_indices = @transform_7, window_bounds = array<i64: 1, 64, 64>}]} {
    %cst = arith.constant 0.000000e+00 : f32
    %0 = vector.broadcast %cst : f32 to vector<64x128xf32>
    %c0 = arith.constant 0 : index
    %c0_0 = arith.constant 0 : index
    %c0_1 = arith.constant 0 : index
    %1 = vector.load %arg1[%c0, %c0_0, %c0_1] : memref<1x128x128xbf16, #tpu.memory_space<vmem>>, vector<1x64x128xbf16>
    %2 = vector.shape_cast %1 : vector<1x64x128xbf16> to vector<64x128xbf16>
    %c0_2 = arith.constant 0 : index
    %c0_3 = arith.constant 0 : index
    %c0_4 = arith.constant 0 : index
    %3 = vector.load %arg2[%c0_2, %c0_3, %c0_4] : memref<5x128x128xbf16, #tpu.memory_space<vmem>>, vector<1x128x128xbf16>
    %4 = vector.shape_cast %3 : vector<1x128x128xbf16> to vector<128x128xbf16>
    %cst_5 = arith.constant dense<0.000000e+00> : vector<64x128xf32>
    %5 = tpu.matmul %2, %4, %cst_5 {dimension_numbers = #tpu.dot_dimension_numbers<[1], [0], [0], [1], [0, 0, 1, 1], [], []>} : vector<64x128xbf16>, vector<128x128xbf16>, vector<64x128xf32> -> vector<64x128xf32>
    %6 = arith.addf %0, %5 : vector<64x128xf32>
    %c0_6 = arith.constant 0 : index
    %c16 = arith.constant 16 : index
    %c0_7 = arith.constant 0 : index
    %7 = vector.load %arg1[%c0_6, %c16, %c0_7] : memref<1x128x128xbf16, #tpu.memory_space<vmem>>, vector<1x64x128xbf16>
    %8 = vector.shape_cast %7 : vector<1x64x128xbf16> to vector<64x128xbf16>
    %c1 = arith.constant 1 : index
    %c0_8 = arith.constant 0 : index
    %c0_9 = arith.constant 0 : index
    %9 = vector.load %arg2[%c1, %c0_8, %c0_9] : memref<5x128x128xbf16, #tpu.memory_space<vmem>>, vector<1x128x128xbf16>
    %10 = vector.shape_cast %9 : vector<1x128x128xbf16> to vector<128x128xbf16>
    %cst_10 = arith.constant dense<0.000000e+00> : vector<64x128xf32>
    %11 = tpu.matmul %8, %10, %cst_10 {dimension_numbers = #tpu.dot_dimension_numbers<[1], [0], [0], [1], [0, 0, 1, 1], [], []>} : vector<64x128xbf16>, vector<128x128xbf16>, vector<64x128xf32> -> vector<64x128xf32>
    %12 = arith.addf %6, %11 : vector<64x128xf32>
    %c0_11 = arith.constant 0 : index
    %c32 = arith.constant 32 : index
    %c0_12 = arith.constant 0 : index
    %13 = vector.load %arg1[%c0_11, %c32, %c0_12] : memref<1x128x128xbf16, #tpu.memory_space<vmem>>, vector<1x64x128xbf16>
    %14 = vector.shape_cast %13 : vector<1x64x128xbf16> to vector<64x128xbf16>
    %c2 = arith.constant 2 : index
    %c0_13 = arith.constant 0 : index
    %c0_14 = arith.constant 0 : index
    %15 = vector.load %arg2[%c2, %c0_13, %c0_14] : memref<5x128x128xbf16, #tpu.memory_space<vmem>>, vector<1x128x128xbf16>
    %16 = vector.shape_cast %15 : vector<1x128x128xbf16> to vector<128x128xbf16>
    %cst_15 = arith.constant dense<0.000000e+00> : vector<64x128xf32>
    %17 = tpu.matmul %14, %16, %cst_15 {dimension_numbers = #tpu.dot_dimension_numbers<[1], [0], [0], [1], [0, 0, 1, 1], [], []>} : vector<64x128xbf16>, vector<128x128xbf16>, vector<64x128xf32> -> vector<64x128xf32>
    %18 = arith.addf %12, %17 : vector<64x128xf32>
    %c0_16 = arith.constant 0 : index
    %c48 = arith.constant 48 : index
    %c0_17 = arith.constant 0 : index
    %19 = vector.load %arg1[%c0_16, %c48, %c0_17] : memref<1x128x128xbf16, #tpu.memory_space<vmem>>, vector<1x64x128xbf16>
    %20 = vector.shape_cast %19 : vector<1x64x128xbf16> to vector<64x128xbf16>
    %c3 = arith.constant 3 : index
    %c0_18 = arith.constant 0 : index
    %c0_19 = arith.constant 0 : index
    %21 = vector.load %arg2[%c3, %c0_18, %c0_19] : memref<5x128x128xbf16, #tpu.memory_space<vmem>>, vector<1x128x128xbf16>
    %22 = vector.shape_cast %21 : vector<1x128x128xbf16> to vector<128x128xbf16>
    %cst_20 = arith.constant dense<0.000000e+00> : vector<64x128xf32>
    %23 = tpu.matmul %20, %22, %cst_20 {dimension_numbers = #tpu.dot_dimension_numbers<[1], [0], [0], [1], [0, 0, 1, 1], [], []>} : vector<64x128xbf16>, vector<128x128xbf16>, vector<64x128xf32> -> vector<64x128xf32>
    %24 = arith.addf %18, %23 : vector<64x128xf32>
    %c0_21 = arith.constant 0 : index
    %c64 = arith.constant 64 : index
    %c0_22 = arith.constant 0 : index
    %25 = vector.load %arg1[%c0_21, %c64, %c0_22] : memref<1x128x128xbf16, #tpu.memory_space<vmem>>, vector<1x64x128xbf16>
    %26 = vector.shape_cast %25 : vector<1x64x128xbf16> to vector<64x128xbf16>
    %c4 = arith.constant 4 : index
    %c0_23 = arith.constant 0 : index
    %c0_24 = arith.constant 0 : index
    %27 = vector.load %arg2[%c4, %c0_23, %c0_24] : memref<5x128x128xbf16, #tpu.memory_space<vmem>>, vector<1x128x128xbf16>
    %28 = vector.shape_cast %27 : vector<1x128x128xbf16> to vector<128x128xbf16>
    %cst_25 = arith.constant dense<0.000000e+00> : vector<64x128xf32>
    %29 = tpu.matmul %26, %28, %cst_25 {dimension_numbers = #tpu.dot_dimension_numbers<[1], [0], [0], [1], [0, 0, 1, 1], [], []>} : vector<64x128xbf16>, vector<128x128xbf16>, vector<64x128xf32> -> vector<64x128xf32>
    %30 = arith.addf %24, %29 : vector<64x128xf32>
    %c0_26 = arith.constant 0 : index
    %c0_27 = arith.constant 0 : index
    %31 = vector.load %arg3[%c0_26, %c0_27] : memref<1x128xf32, #tpu.memory_space<vmem>>, vector<1x128xf32>
    %32 = vector.broadcast %31 : vector<1x128xf32> to vector<64x128xf32>
    %33 = arith.mulf %30, %32 : vector<64x128xf32>
    %c0_28 = arith.constant 0 : index
    %c0_29 = arith.constant 0 : index
    %34 = vector.load %arg4[%c0_28, %c0_29] : memref<1x128xf32, #tpu.memory_space<vmem>>, vector<1x128xf32>
    %35 = vector.broadcast %34 : vector<1x128xf32> to vector<64x128xf32>
    %36 = arith.addf %33, %35 : vector<64x128xf32>
    %cst_30 = arith.constant 0.000000e+00 : f32
    %37 = vector.broadcast %cst_30 : f32 to vector<64x128xf32>
    %38 = arith.maximumf %36, %37 : vector<64x128xf32>
    %39 = arith.truncf %38 : vector<64x128xf32> to vector<64x128xbf16>
    %c0_31 = arith.constant 0 : index
    %c0_32 = arith.constant 0 : index
    %40 = vector.load %arg5[%c0_31, %c0_32] : memref<128x64xbf16, #tpu.memory_space<vmem>>, vector<128x64xbf16>
    %cst_33 = arith.constant dense<0.000000e+00> : vector<64x64xf32>
    %41 = tpu.matmul %39, %40, %cst_33 {dimension_numbers = #tpu.dot_dimension_numbers<[1], [0], [0], [1], [0, 0, 1, 1], [], []>} : vector<64x128xbf16>, vector<128x64xbf16>, vector<64x64xf32> -> vector<64x64xf32>
    %c0_34 = arith.constant 0 : index
    %c0_35 = arith.constant 0 : index
    %42 = vector.load %arg6[%c0_34, %c0_35] : memref<1x64xf32, #tpu.memory_space<vmem>>, vector<1x64xf32>
    %43 = vector.broadcast %42 : vector<1x64xf32> to vector<64x64xf32>
    %44 = arith.mulf %41, %43 : vector<64x64xf32>
    %c0_36 = arith.constant 0 : index
    %c0_37 = arith.constant 0 : index
    %45 = vector.load %arg7[%c0_36, %c0_37] : memref<1x64xf32, #tpu.memory_space<vmem>>, vector<1x64xf32>
    %46 = vector.broadcast %45 : vector<1x64xf32> to vector<64x64xf32>
    %47 = arith.addf %44, %46 : vector<64x64xf32>
    %cst_38 = arith.constant 0.000000e+00 : f32
    %48 = vector.broadcast %cst_38 : f32 to vector<64x64xf32>
    %49 = arith.maximumf %47, %48 : vector<64x64xf32>
    %50 = arith.truncf %49 : vector<64x64xf32> to vector<64x64xbf16>
    %c0_39 = arith.constant 0 : index
    %c0_40 = arith.constant 0 : index
    %c0_41 = arith.constant 0 : index
    %51 = vector.load %arg8[%c0_39, %c0_40, %c0_41] : memref<1x64x64xbf16, #tpu.memory_space<vmem>>, vector<1x64x64xbf16>
    %52 = vector.shape_cast %51 : vector<1x64x64xbf16> to vector<64x64xbf16>
    %53 = vector.shape_cast %50 : vector<64x64xbf16> to vector<1x64x64xbf16>
    tpu.vector_store %arg8[%c0_39, %c0_40, %c0_41], %53 {strides = array<i32>} : memref<1x64x64xbf16, #tpu.memory_space<vmem>>, vector<1x64x64xbf16>,
    return
  }
  func.func @transform_0(%arg0: i32) -> (i32, i32, i32) {
    %c0_i32 = arith.constant 0 : i32
    %c0_i32_0 = arith.constant 0 : i32
    %c0_i32_1 = arith.constant 0 : i32
    return %arg0, %c0_i32, %c0_i32_0 : i32, i32, i32
  }
  func.func @transform_1(%arg0: i32) -> (i32, i32, i32) {
    %c0_i32 = arith.constant 0 : i32
    %c0_i32_0 = arith.constant 0 : i32
    %c0_i32_1 = arith.constant 0 : i32
    %c0_i32_2 = arith.constant 0 : i32
    return %c0_i32, %c0_i32_0, %c0_i32_1 : i32, i32, i32
  }
  func.func @transform_2(%arg0: i32) -> (i32, i32) {
    %c0_i32 = arith.constant 0 : i32
    %c0_i32_0 = arith.constant 0 : i32
    %c0_i32_1 = arith.constant 0 : i32
    return %c0_i32, %c0_i32_0 : i32, i32
  }
  func.func @transform_3(%arg0: i32) -> (i32, i32) {
    %c0_i32 = arith.constant 0 : i32
    %c0_i32_0 = arith.constant 0 : i32
    %c0_i32_1 = arith.constant 0 : i32
    return %c0_i32, %c0_i32_0 : i32, i32
  }
  func.func @transform_4(%arg0: i32) -> (i32, i32) {
    %c0_i32 = arith.constant 0 : i32
    %c0_i32_0 = arith.constant 0 : i32
    %c0_i32_1 = arith.constant 0 : i32
    return %c0_i32, %c0_i32_0 : i32, i32
  }
  func.func @transform_5(%arg0: i32) -> (i32, i32) {
    %c0_i32 = arith.constant 0 : i32
    %c0_i32_0 = arith.constant 0 : i32
    %c0_i32_1 = arith.constant 0 : i32
    return %c0_i32, %c0_i32_0 : i32, i32
  }
  func.func @transform_6(%arg0: i32) -> (i32, i32) {
    %c0_i32 = arith.constant 0 : i32
    %c0_i32_0 = arith.constant 0 : i32
    %c0_i32_1 = arith.constant 0 : i32
    return %c0_i32, %c0_i32_0 : i32, i32
  }
  func.func @transform_7(%arg0: i32) -> (i32, i32, i32) {
    %c0_i32 = arith.constant 0 : i32
    %c0_i32_0 = arith.constant 0 : i32
    %c0_i32_1 = arith.constant 0 : i32
    return %arg0, %c0_i32, %c0_i32_0 : i32, i32, i32
  }
}

module attributes {stable_mosaic.version = 11 : i64} {
  func.func @_maxpool_kernel(%arg0: i32, %arg1: memref<3x4x3x256xbf16, #tpu.memory_space<vmem>>, %arg2: memref<4x2x128xbf16, #tpu.memory_space<vmem>>) attributes {dimension_semantics = [#tpu.dimension_semantics<parallel>], iteration_bounds = array<i64: 2>, scalar_prefetch = 0 : i64, scratch_operands = 0 : i64, tpu.core_type = #tpu.core_type<tc>, window_params = [{transform_indices = @transform_0, window_bounds = array<i64: 3, 4, 3, 256>}, {transform_indices = @transform_1, window_bounds = array<i64: 4, 2, 128>}]} {
    %c0 = arith.constant 0 : index
    %c0_0 = arith.constant 0 : index
    %c0_1 = arith.constant 0 : index
    %c0_2 = arith.constant 0 : index
    %0 = vector.load %arg1[%c0, %c0_0, %c0_1, %c0_2] : memref<3x4x3x256xbf16, #tpu.memory_space<vmem>>, vector<1x4x2x256xbf16>
    %1 = vector.shape_cast %0 : vector<1x4x2x256xbf16> to vector<4x2x256xbf16>
    %c0_3 = arith.constant 0 : index
    %c0_4 = arith.constant 0 : index
    %c1 = arith.constant 1 : index
    %c0_5 = arith.constant 0 : index
    %2 = vector.load %arg1[%c0_3, %c0_4, %c1, %c0_5] : memref<3x4x3x256xbf16, #tpu.memory_space<vmem>>, vector<1x4x2x256xbf16>
    %3 = vector.shape_cast %2 : vector<1x4x2x256xbf16> to vector<4x2x256xbf16>
    %4 = vector.extract_strided_slice %1 {offsets = [0, 0, 0], sizes = [4, 2, 128], strides = [1, 1, 1]} : vector<4x2x256xbf16> to vector<4x2x128xbf16>
    %5 = vector.extract_strided_slice %1 {offsets = [0, 0, 128], sizes = [4, 2, 128], strides = [1, 1, 1]} : vector<4x2x256xbf16> to vector<4x2x128xbf16>
    %6 = arith.maximumf %4, %5 : vector<4x2x128xbf16>
    %7 = vector.extract_strided_slice %3 {offsets = [0, 0, 0], sizes = [4, 2, 128], strides = [1, 1, 1]} : vector<4x2x256xbf16> to vector<4x2x128xbf16>
    %8 = arith.maximumf %6, %7 : vector<4x2x128xbf16>
    %c1_6 = arith.constant 1 : index
    %c0_7 = arith.constant 0 : index
    %c0_8 = arith.constant 0 : index
    %c0_9 = arith.constant 0 : index
    %9 = vector.load %arg1[%c1_6, %c0_7, %c0_8, %c0_9] : memref<3x4x3x256xbf16, #tpu.memory_space<vmem>>, vector<1x4x2x256xbf16>
    %10 = vector.shape_cast %9 : vector<1x4x2x256xbf16> to vector<4x2x256xbf16>
    %c1_10 = arith.constant 1 : index
    %c0_11 = arith.constant 0 : index
    %c1_12 = arith.constant 1 : index
    %c0_13 = arith.constant 0 : index
    %11 = vector.load %arg1[%c1_10, %c0_11, %c1_12, %c0_13] : memref<3x4x3x256xbf16, #tpu.memory_space<vmem>>, vector<1x4x2x256xbf16>
    %12 = vector.shape_cast %11 : vector<1x4x2x256xbf16> to vector<4x2x256xbf16>
    %13 = vector.extract_strided_slice %10 {offsets = [0, 0, 0], sizes = [4, 2, 128], strides = [1, 1, 1]} : vector<4x2x256xbf16> to vector<4x2x128xbf16>
    %14 = vector.extract_strided_slice %10 {offsets = [0, 0, 128], sizes = [4, 2, 128], strides = [1, 1, 1]} : vector<4x2x256xbf16> to vector<4x2x128xbf16>
    %15 = arith.maximumf %13, %14 : vector<4x2x128xbf16>
    %16 = vector.extract_strided_slice %12 {offsets = [0, 0, 0], sizes = [4, 2, 128], strides = [1, 1, 1]} : vector<4x2x256xbf16> to vector<4x2x128xbf16>
    %17 = arith.maximumf %15, %16 : vector<4x2x128xbf16>
    %18 = arith.maximumf %8, %17 : vector<4x2x128xbf16>
    %c2 = arith.constant 2 : index
    %c0_14 = arith.constant 0 : index
    %c0_15 = arith.constant 0 : index
    %c0_16 = arith.constant 0 : index
    %19 = vector.load %arg1[%c2, %c0_14, %c0_15, %c0_16] : memref<3x4x3x256xbf16, #tpu.memory_space<vmem>>, vector<1x4x2x256xbf16>
    %20 = vector.shape_cast %19 : vector<1x4x2x256xbf16> to vector<4x2x256xbf16>
    %c2_17 = arith.constant 2 : index
    %c0_18 = arith.constant 0 : index
    %c1_19 = arith.constant 1 : index
    %c0_20 = arith.constant 0 : index
    %21 = vector.load %arg1[%c2_17, %c0_18, %c1_19, %c0_20] : memref<3x4x3x256xbf16, #tpu.memory_space<vmem>>, vector<1x4x2x256xbf16>
    %22 = vector.shape_cast %21 : vector<1x4x2x256xbf16> to vector<4x2x256xbf16>
    %23 = vector.extract_strided_slice %20 {offsets = [0, 0, 0], sizes = [4, 2, 128], strides = [1, 1, 1]} : vector<4x2x256xbf16> to vector<4x2x128xbf16>
    %24 = vector.extract_strided_slice %20 {offsets = [0, 0, 128], sizes = [4, 2, 128], strides = [1, 1, 1]} : vector<4x2x256xbf16> to vector<4x2x128xbf16>
    %25 = arith.maximumf %23, %24 : vector<4x2x128xbf16>
    %26 = vector.extract_strided_slice %22 {offsets = [0, 0, 0], sizes = [4, 2, 128], strides = [1, 1, 1]} : vector<4x2x256xbf16> to vector<4x2x128xbf16>
    %27 = arith.maximumf %25, %26 : vector<4x2x128xbf16>
    %28 = arith.maximumf %18, %27 : vector<4x2x128xbf16>
    %c0_21 = arith.constant 0 : index
    %c0_22 = arith.constant 0 : index
    %c0_23 = arith.constant 0 : index
    %29 = vector.load %arg2[%c0_21, %c0_22, %c0_23] : memref<4x2x128xbf16, #tpu.memory_space<vmem>>, vector<4x2x128xbf16>
    tpu.vector_store %arg2[%c0_21, %c0_22, %c0_23], %28 {strides = array<i32>} : memref<4x2x128xbf16, #tpu.memory_space<vmem>>, vector<4x2x128xbf16>,
    return
  }
  func.func @transform_0(%arg0: i32) -> (i32, i32, i32, i32) {
    %c0_i32 = arith.constant 0 : i32
    %c0_i32_0 = arith.constant 0 : i32
    %c0_i32_1 = arith.constant 0 : i32
    %c0_i32_2 = arith.constant 0 : i32
    return %c0_i32, %arg0, %c0_i32_0, %c0_i32_1 : i32, i32, i32, i32
  }
  func.func @transform_1(%arg0: i32) -> (i32, i32, i32) {
    %c0_i32 = arith.constant 0 : i32
    %c0_i32_0 = arith.constant 0 : i32
    %c0_i32_1 = arith.constant 0 : i32
    return %arg0, %c0_i32, %c0_i32_0 : i32, i32, i32
  }
}

module attributes {stable_mosaic.version = 11 : i64} {
  func.func @_spatial_tap_kernel(%arg0: i32, %arg1: memref<4x12x320xbf16, #tpu.memory_space<vmem>>, %arg2: memref<5x320x256xbf16, #tpu.memory_space<vmem>>, %arg3: memref<1x256xf32, #tpu.memory_space<vmem>>, %arg4: memref<1x256xf32, #tpu.memory_space<vmem>>, %arg5: memref<4x4x256xbf16, #tpu.memory_space<vmem>>) attributes {dimension_semantics = [#tpu.dimension_semantics<parallel>], iteration_bounds = array<i64: 2>, scalar_prefetch = 0 : i64, scratch_operands = 0 : i64, tpu.core_type = #tpu.core_type<tc>, window_params = [{transform_indices = @transform_0, window_bounds = array<i64: 4, 12, 320>}, {pipeline_mode = #tpu.pipeline_mode<synchronous>, transform_indices = @transform_1, window_bounds = array<i64: 5, 320, 256>}, {pipeline_mode = #tpu.pipeline_mode<synchronous>, transform_indices = @transform_2, window_bounds = array<i64: 1, 256>}, {pipeline_mode = #tpu.pipeline_mode<synchronous>, transform_indices = @transform_3, window_bounds = array<i64: 1, 256>}, {transform_indices = @transform_4, window_bounds = array<i64: 4, 4, 256>}]} {
    %c0 = arith.constant 0 : index
    %c0_0 = arith.constant 0 : index
    %0 = vector.load %arg3[%c0, %c0_0] : memref<1x256xf32, #tpu.memory_space<vmem>>, vector<1x256xf32>
    %c0_1 = arith.constant 0 : index
    %c0_2 = arith.constant 0 : index
    %1 = vector.load %arg4[%c0_1, %c0_2] : memref<1x256xf32, #tpu.memory_space<vmem>>, vector<1x256xf32>
    %cst = arith.constant 0.000000e+00 : f32
    %2 = vector.broadcast %cst : f32 to vector<4x256xf32>
    %c0_3 = arith.constant 0 : index
    %c0_4 = arith.constant 0 : index
    %c0_5 = arith.constant 0 : index
    %3 = vector.load %arg1[%c0_3, %c0_4, %c0_5] : memref<4x12x320xbf16, #tpu.memory_space<vmem>>, vector<1x4x320xbf16>
    %4 = vector.shape_cast %3 : vector<1x4x320xbf16> to vector<4x320xbf16>
    %c0_6 = arith.constant 0 : index
    %c0_7 = arith.constant 0 : index
    %c0_8 = arith.constant 0 : index
    %5 = vector.load %arg2[%c0_6, %c0_7, %c0_8] : memref<5x320x256xbf16, #tpu.memory_space<vmem>>, vector<1x320x256xbf16>
    %6 = vector.shape_cast %5 : vector<1x320x256xbf16> to vector<320x256xbf16>
    %cst_9 = arith.constant dense<0.000000e+00> : vector<4x256xf32>
    %7 = tpu.matmul %4, %6, %cst_9 {dimension_numbers = #tpu.dot_dimension_numbers<[1], [0], [0], [1], [0, 0, 1, 1], [], []>} : vector<4x320xbf16>, vector<320x256xbf16>, vector<4x256xf32> -> vector<4x256xf32>
    %8 = arith.addf %2, %7 : vector<4x256xf32>
    %c0_10 = arith.constant 0 : index
    %c2 = arith.constant 2 : index
    %c0_11 = arith.constant 0 : index
    %9 = vector.load %arg1[%c0_10, %c2, %c0_11] : memref<4x12x320xbf16, #tpu.memory_space<vmem>>, vector<1x4x320xbf16>
    %10 = vector.shape_cast %9 : vector<1x4x320xbf16> to vector<4x320xbf16>
    %c1 = arith.constant 1 : index
    %c0_12 = arith.constant 0 : index
    %c0_13 = arith.constant 0 : index
    %11 = vector.load %arg2[%c1, %c0_12, %c0_13] : memref<5x320x256xbf16, #tpu.memory_space<vmem>>, vector<1x320x256xbf16>
    %12 = vector.shape_cast %11 : vector<1x320x256xbf16> to vector<320x256xbf16>
    %cst_14 = arith.constant dense<0.000000e+00> : vector<4x256xf32>
    %13 = tpu.matmul %10, %12, %cst_14 {dimension_numbers = #tpu.dot_dimension_numbers<[1], [0], [0], [1], [0, 0, 1, 1], [], []>} : vector<4x320xbf16>, vector<320x256xbf16>, vector<4x256xf32> -> vector<4x256xf32>
    %14 = arith.addf %8, %13 : vector<4x256xf32>
    %c0_15 = arith.constant 0 : index
    %c4 = arith.constant 4 : index
    %c0_16 = arith.constant 0 : index
    %15 = vector.load %arg1[%c0_15, %c4, %c0_16] : memref<4x12x320xbf16, #tpu.memory_space<vmem>>, vector<1x4x320xbf16>
    %16 = vector.shape_cast %15 : vector<1x4x320xbf16> to vector<4x320xbf16>
    %c2_17 = arith.constant 2 : index
    %c0_18 = arith.constant 0 : index
    %c0_19 = arith.constant 0 : index
    %17 = vector.load %arg2[%c2_17, %c0_18, %c0_19] : memref<5x320x256xbf16, #tpu.memory_space<vmem>>, vector<1x320x256xbf16>
    %18 = vector.shape_cast %17 : vector<1x320x256xbf16> to vector<320x256xbf16>
    %cst_20 = arith.constant dense<0.000000e+00> : vector<4x256xf32>
    %19 = tpu.matmul %16, %18, %cst_20 {dimension_numbers = #tpu.dot_dimension_numbers<[1], [0], [0], [1], [0, 0, 1, 1], [], []>} : vector<4x320xbf16>, vector<320x256xbf16>, vector<4x256xf32> -> vector<4x256xf32>
    %20 = arith.addf %14, %19 : vector<4x256xf32>
    %c0_21 = arith.constant 0 : index
    %c6 = arith.constant 6 : index
    %c0_22 = arith.constant 0 : index
    %21 = vector.load %arg1[%c0_21, %c6, %c0_22] : memref<4x12x320xbf16, #tpu.memory_space<vmem>>, vector<1x4x320xbf16>
    %22 = vector.shape_cast %21 : vector<1x4x320xbf16> to vector<4x320xbf16>
    %c3 = arith.constant 3 : index
    %c0_23 = arith.constant 0 : index
    %c0_24 = arith.constant 0 : index
    %23 = vector.load %arg2[%c3, %c0_23, %c0_24] : memref<5x320x256xbf16, #tpu.memory_space<vmem>>, vector<1x320x256xbf16>
    %24 = vector.shape_cast %23 : vector<1x320x256xbf16> to vector<320x256xbf16>
    %cst_25 = arith.constant dense<0.000000e+00> : vector<4x256xf32>
    %25 = tpu.matmul %22, %24, %cst_25 {dimension_numbers = #tpu.dot_dimension_numbers<[1], [0], [0], [1], [0, 0, 1, 1], [], []>} : vector<4x320xbf16>, vector<320x256xbf16>, vector<4x256xf32> -> vector<4x256xf32>
    %26 = arith.addf %20, %25 : vector<4x256xf32>
    %c0_26 = arith.constant 0 : index
    %c8 = arith.constant 8 : index
    %c0_27 = arith.constant 0 : index
    %27 = vector.load %arg1[%c0_26, %c8, %c0_27] : memref<4x12x320xbf16, #tpu.memory_space<vmem>>, vector<1x4x320xbf16>
    %28 = vector.shape_cast %27 : vector<1x4x320xbf16> to vector<4x320xbf16>
    %c4_28 = arith.constant 4 : index
    %c0_29 = arith.constant 0 : index
    %c0_30 = arith.constant 0 : index
    %29 = vector.load %arg2[%c4_28, %c0_29, %c0_30] : memref<5x320x256xbf16, #tpu.memory_space<vmem>>, vector<1x320x256xbf16>
    %30 = vector.shape_cast %29 : vector<1x320x256xbf16> to vector<320x256xbf16>
    %cst_31 = arith.constant dense<0.000000e+00> : vector<4x256xf32>
    %31 = tpu.matmul %28, %30, %cst_31 {dimension_numbers = #tpu.dot_dimension_numbers<[1], [0], [0], [1], [0, 0, 1, 1], [], []>} : vector<4x320xbf16>, vector<320x256xbf16>, vector<4x256xf32> -> vector<4x256xf32>
    %32 = arith.addf %26, %31 : vector<4x256xf32>
    %33 = vector.broadcast %0 : vector<1x256xf32> to vector<4x256xf32>
    %34 = arith.mulf %32, %33 : vector<4x256xf32>
    %35 = vector.broadcast %1 : vector<1x256xf32> to vector<4x256xf32>
    %36 = arith.addf %34, %35 : vector<4x256xf32>
    %cst_32 = arith.constant 0.000000e+00 : f32
    %37 = vector.broadcast %cst_32 : f32 to vector<4x256xf32>
    %38 = arith.maximumf %36, %37 : vector<4x256xf32>
    %39 = arith.truncf %38 : vector<4x256xf32> to vector<4x256xbf16>
    %c0_33 = arith.constant 0 : index
    %c0_34 = arith.constant 0 : index
    %c0_35 = arith.constant 0 : index
    %40 = vector.load %arg5[%c0_33, %c0_34, %c0_35] : memref<4x4x256xbf16, #tpu.memory_space<vmem>>, vector<1x4x256xbf16>
    %41 = vector.shape_cast %40 : vector<1x4x256xbf16> to vector<4x256xbf16>
    %42 = vector.shape_cast %39 : vector<4x256xbf16> to vector<1x4x256xbf16>
    tpu.vector_store %arg5[%c0_33, %c0_34, %c0_35], %42 {strides = array<i32>} : memref<4x4x256xbf16, #tpu.memory_space<vmem>>, vector<1x4x256xbf16>,
    %cst_36 = arith.constant 0.000000e+00 : f32
    %43 = vector.broadcast %cst_36 : f32 to vector<4x256xf32>
    %c1_37 = arith.constant 1 : index
    %c0_38 = arith.constant 0 : index
    %c0_39 = arith.constant 0 : index
    %44 = vector.load %arg1[%c1_37, %c0_38, %c0_39] : memref<4x12x320xbf16, #tpu.memory_space<vmem>>, vector<1x4x320xbf16>
    %45 = vector.shape_cast %44 : vector<1x4x320xbf16> to vector<4x320xbf16>
    %c0_40 = arith.constant 0 : index
    %c0_41 = arith.constant 0 : index
    %c0_42 = arith.constant 0 : index
    %46 = vector.load %arg2[%c0_40, %c0_41, %c0_42] : memref<5x320x256xbf16, #tpu.memory_space<vmem>>, vector<1x320x256xbf16>
    %47 = vector.shape_cast %46 : vector<1x320x256xbf16> to vector<320x256xbf16>
    %cst_43 = arith.constant dense<0.000000e+00> : vector<4x256xf32>
    %48 = tpu.matmul %45, %47, %cst_43 {dimension_numbers = #tpu.dot_dimension_numbers<[1], [0], [0], [1], [0, 0, 1, 1], [], []>} : vector<4x320xbf16>, vector<320x256xbf16>, vector<4x256xf32> -> vector<4x256xf32>
    %49 = arith.addf %43, %48 : vector<4x256xf32>
    %c1_44 = arith.constant 1 : index
    %c2_45 = arith.constant 2 : index
    %c0_46 = arith.constant 0 : index
    %50 = vector.load %arg1[%c1_44, %c2_45, %c0_46] : memref<4x12x320xbf16, #tpu.memory_space<vmem>>, vector<1x4x320xbf16>
    %51 = vector.shape_cast %50 : vector<1x4x320xbf16> to vector<4x320xbf16>
    %c1_47 = arith.constant 1 : index
    %c0_48 = arith.constant 0 : index
    %c0_49 = arith.constant 0 : index
    %52 = vector.load %arg2[%c1_47, %c0_48, %c0_49] : memref<5x320x256xbf16, #tpu.memory_space<vmem>>, vector<1x320x256xbf16>
    %53 = vector.shape_cast %52 : vector<1x320x256xbf16> to vector<320x256xbf16>
    %cst_50 = arith.constant dense<0.000000e+00> : vector<4x256xf32>
    %54 = tpu.matmul %51, %53, %cst_50 {dimension_numbers = #tpu.dot_dimension_numbers<[1], [0], [0], [1], [0, 0, 1, 1], [], []>} : vector<4x320xbf16>, vector<320x256xbf16>, vector<4x256xf32> -> vector<4x256xf32>
    %55 = arith.addf %49, %54 : vector<4x256xf32>
    %c1_51 = arith.constant 1 : index
    %c4_52 = arith.constant 4 : index
    %c0_53 = arith.constant 0 : index
    %56 = vector.load %arg1[%c1_51, %c4_52, %c0_53] : memref<4x12x320xbf16, #tpu.memory_space<vmem>>, vector<1x4x320xbf16>
    %57 = vector.shape_cast %56 : vector<1x4x320xbf16> to vector<4x320xbf16>
    %c2_54 = arith.constant 2 : index
    %c0_55 = arith.constant 0 : index
    %c0_56 = arith.constant 0 : index
    %58 = vector.load %arg2[%c2_54, %c0_55, %c0_56] : memref<5x320x256xbf16, #tpu.memory_space<vmem>>, vector<1x320x256xbf16>
    %59 = vector.shape_cast %58 : vector<1x320x256xbf16> to vector<320x256xbf16>
    %cst_57 = arith.constant dense<0.000000e+00> : vector<4x256xf32>
    %60 = tpu.matmul %57, %59, %cst_57 {dimension_numbers = #tpu.dot_dimension_numbers<[1], [0], [0], [1], [0, 0, 1, 1], [], []>} : vector<4x320xbf16>, vector<320x256xbf16>, vector<4x256xf32> -> vector<4x256xf32>
    %61 = arith.addf %55, %60 : vector<4x256xf32>
    %c1_58 = arith.constant 1 : index
    %c6_59 = arith.constant 6 : index
    %c0_60 = arith.constant 0 : index
    %62 = vector.load %arg1[%c1_58, %c6_59, %c0_60] : memref<4x12x320xbf16, #tpu.memory_space<vmem>>, vector<1x4x320xbf16>
    %63 = vector.shape_cast %62 : vector<1x4x320xbf16> to vector<4x320xbf16>
    %c3_61 = arith.constant 3 : index
    %c0_62 = arith.constant 0 : index
    %c0_63 = arith.constant 0 : index
    %64 = vector.load %arg2[%c3_61, %c0_62, %c0_63] : memref<5x320x256xbf16, #tpu.memory_space<vmem>>, vector<1x320x256xbf16>
    %65 = vector.shape_cast %64 : vector<1x320x256xbf16> to vector<320x256xbf16>
    %cst_64 = arith.constant dense<0.000000e+00> : vector<4x256xf32>
    %66 = tpu.matmul %63, %65, %cst_64 {dimension_numbers = #tpu.dot_dimension_numbers<[1], [0], [0], [1], [0, 0, 1, 1], [], []>} : vector<4x320xbf16>, vector<320x256xbf16>, vector<4x256xf32> -> vector<4x256xf32>
    %67 = arith.addf %61, %66 : vector<4x256xf32>
    %c1_65 = arith.constant 1 : index
    %c8_66 = arith.constant 8 : index
    %c0_67 = arith.constant 0 : index
    %68 = vector.load %arg1[%c1_65, %c8_66, %c0_67] : memref<4x12x320xbf16, #tpu.memory_space<vmem>>, vector<1x4x320xbf16>
    %69 = vector.shape_cast %68 : vector<1x4x320xbf16> to vector<4x320xbf16>
    %c4_68 = arith.constant 4 : index
    %c0_69 = arith.constant 0 : index
    %c0_70 = arith.constant 0 : index
    %70 = vector.load %arg2[%c4_68, %c0_69, %c0_70] : memref<5x320x256xbf16, #tpu.memory_space<vmem>>, vector<1x320x256xbf16>
    %71 = vector.shape_cast %70 : vector<1x320x256xbf16> to vector<320x256xbf16>
    %cst_71 = arith.constant dense<0.000000e+00> : vector<4x256xf32>
    %72 = tpu.matmul %69, %71, %cst_71 {dimension_numbers = #tpu.dot_dimension_numbers<[1], [0], [0], [1], [0, 0, 1, 1], [], []>} : vector<4x320xbf16>, vector<320x256xbf16>, vector<4x256xf32> -> vector<4x256xf32>
    %73 = arith.addf %67, %72 : vector<4x256xf32>
    %74 = vector.broadcast %0 : vector<1x256xf32> to vector<4x256xf32>
    %75 = arith.mulf %73, %74 : vector<4x256xf32>
    %76 = vector.broadcast %1 : vector<1x256xf32> to vector<4x256xf32>
    %77 = arith.addf %75, %76 : vector<4x256xf32>
    %cst_72 = arith.constant 0.000000e+00 : f32
    %78 = vector.broadcast %cst_72 : f32 to vector<4x256xf32>
    %79 = arith.maximumf %77, %78 : vector<4x256xf32>
    %80 = arith.truncf %79 : vector<4x256xf32> to vector<4x256xbf16>
    %c1_73 = arith.constant 1 : index
    %c0_74 = arith.constant 0 : index
    %c0_75 = arith.constant 0 : index
    %81 = vector.load %arg5[%c1_73, %c0_74, %c0_75] : memref<4x4x256xbf16, #tpu.memory_space<vmem>>, vector<1x4x256xbf16>
    %82 = vector.shape_cast %81 : vector<1x4x256xbf16> to vector<4x256xbf16>
    %83 = vector.shape_cast %80 : vector<4x256xbf16> to vector<1x4x256xbf16>
    tpu.vector_store %arg5[%c1_73, %c0_74, %c0_75], %83 {strides = array<i32>} : memref<4x4x256xbf16, #tpu.memory_space<vmem>>, vector<1x4x256xbf16>,
    %cst_76 = arith.constant 0.000000e+00 : f32
    %84 = vector.broadcast %cst_76 : f32 to vector<4x256xf32>
    %c2_77 = arith.constant 2 : index
    %c0_78 = arith.constant 0 : index
    %c0_79 = arith.constant 0 : index
    %85 = vector.load %arg1[%c2_77, %c0_78, %c0_79] : memref<4x12x320xbf16, #tpu.memory_space<vmem>>, vector<1x4x320xbf16>
    %86 = vector.shape_cast %85 : vector<1x4x320xbf16> to vector<4x320xbf16>
    %c0_80 = arith.constant 0 : index
    %c0_81 = arith.constant 0 : index
    %c0_82 = arith.constant 0 : index
    %87 = vector.load %arg2[%c0_80, %c0_81, %c0_82] : memref<5x320x256xbf16, #tpu.memory_space<vmem>>, vector<1x320x256xbf16>
    %88 = vector.shape_cast %87 : vector<1x320x256xbf16> to vector<320x256xbf16>
    %cst_83 = arith.constant dense<0.000000e+00> : vector<4x256xf32>
    %89 = tpu.matmul %86, %88, %cst_83 {dimension_numbers = #tpu.dot_dimension_numbers<[1], [0], [0], [1], [0, 0, 1, 1], [], []>} : vector<4x320xbf16>, vector<320x256xbf16>, vector<4x256xf32> -> vector<4x256xf32>
    %90 = arith.addf %84, %89 : vector<4x256xf32>
    %c2_84 = arith.constant 2 : index
    %c2_85 = arith.constant 2 : index
    %c0_86 = arith.constant 0 : index
    %91 = vector.load %arg1[%c2_84, %c2_85, %c0_86] : memref<4x12x320xbf16, #tpu.memory_space<vmem>>, vector<1x4x320xbf16>
    %92 = vector.shape_cast %91 : vector<1x4x320xbf16> to vector<4x320xbf16>
    %c1_87 = arith.constant 1 : index
    %c0_88 = arith.constant 0 : index
    %c0_89 = arith.constant 0 : index
    %93 = vector.load %arg2[%c1_87, %c0_88, %c0_89] : memref<5x320x256xbf16, #tpu.memory_space<vmem>>, vector<1x320x256xbf16>
    %94 = vector.shape_cast %93 : vector<1x320x256xbf16> to vector<320x256xbf16>
    %cst_90 = arith.constant dense<0.000000e+00> : vector<4x256xf32>
    %95 = tpu.matmul %92, %94, %cst_90 {dimension_numbers = #tpu.dot_dimension_numbers<[1], [0], [0], [1], [0, 0, 1, 1], [], []>} : vector<4x320xbf16>, vector<320x256xbf16>, vector<4x256xf32> -> vector<4x256xf32>
    %96 = arith.addf %90, %95 : vector<4x256xf32>
    %c2_91 = arith.constant 2 : index
    %c4_92 = arith.constant 4 : index
    %c0_93 = arith.constant 0 : index
    %97 = vector.load %arg1[%c2_91, %c4_92, %c0_93] : memref<4x12x320xbf16, #tpu.memory_space<vmem>>, vector<1x4x320xbf16>
    %98 = vector.shape_cast %97 : vector<1x4x320xbf16> to vector<4x320xbf16>
    %c2_94 = arith.constant 2 : index
    %c0_95 = arith.constant 0 : index
    %c0_96 = arith.constant 0 : index
    %99 = vector.load %arg2[%c2_94, %c0_95, %c0_96] : memref<5x320x256xbf16, #tpu.memory_space<vmem>>, vector<1x320x256xbf16>
    %100 = vector.shape_cast %99 : vector<1x320x256xbf16> to vector<320x256xbf16>
    %cst_97 = arith.constant dense<0.000000e+00> : vector<4x256xf32>
    %101 = tpu.matmul %98, %100, %cst_97 {dimension_numbers = #tpu.dot_dimension_numbers<[1], [0], [0], [1], [0, 0, 1, 1], [], []>} : vector<4x320xbf16>, vector<320x256xbf16>, vector<4x256xf32> -> vector<4x256xf32>
    %102 = arith.addf %96, %101 : vector<4x256xf32>
    %c2_98 = arith.constant 2 : index
    %c6_99 = arith.constant 6 : index
    %c0_100 = arith.constant 0 : index
    %103 = vector.load %arg1[%c2_98, %c6_99, %c0_100] : memref<4x12x320xbf16, #tpu.memory_space<vmem>>, vector<1x4x320xbf16>
    %104 = vector.shape_cast %103 : vector<1x4x320xbf16> to vector<4x320xbf16>
    %c3_101 = arith.constant 3 : index
    %c0_102 = arith.constant 0 : index
    %c0_103 = arith.constant 0 : index
    %105 = vector.load %arg2[%c3_101, %c0_102, %c0_103] : memref<5x320x256xbf16, #tpu.memory_space<vmem>>, vector<1x320x256xbf16>
    %106 = vector.shape_cast %105 : vector<1x320x256xbf16> to vector<320x256xbf16>
    %cst_104 = arith.constant dense<0.000000e+00> : vector<4x256xf32>
    %107 = tpu.matmul %104, %106, %cst_104 {dimension_numbers = #tpu.dot_dimension_numbers<[1], [0], [0], [1], [0, 0, 1, 1], [], []>} : vector<4x320xbf16>, vector<320x256xbf16>, vector<4x256xf32> -> vector<4x256xf32>
    %108 = arith.addf %102, %107 : vector<4x256xf32>
    %c2_105 = arith.constant 2 : index
    %c8_106 = arith.constant 8 : index
    %c0_107 = arith.constant 0 : index
    %109 = vector.load %arg1[%c2_105, %c8_106, %c0_107] : memref<4x12x320xbf16, #tpu.memory_space<vmem>>, vector<1x4x320xbf16>
    %110 = vector.shape_cast %109 : vector<1x4x320xbf16> to vector<4x320xbf16>
    %c4_108 = arith.constant 4 : index
    %c0_109 = arith.constant 0 : index
    %c0_110 = arith.constant 0 : index
    %111 = vector.load %arg2[%c4_108, %c0_109, %c0_110] : memref<5x320x256xbf16, #tpu.memory_space<vmem>>, vector<1x320x256xbf16>
    %112 = vector.shape_cast %111 : vector<1x320x256xbf16> to vector<320x256xbf16>
    %cst_111 = arith.constant dense<0.000000e+00> : vector<4x256xf32>
    %113 = tpu.matmul %110, %112, %cst_111 {dimension_numbers = #tpu.dot_dimension_numbers<[1], [0], [0], [1], [0, 0, 1, 1], [], []>} : vector<4x320xbf16>, vector<320x256xbf16>, vector<4x256xf32> -> vector<4x256xf32>
    %114 = arith.addf %108, %113 : vector<4x256xf32>
    %115 = vector.broadcast %0 : vector<1x256xf32> to vector<4x256xf32>
    %116 = arith.mulf %114, %115 : vector<4x256xf32>
    %117 = vector.broadcast %1 : vector<1x256xf32> to vector<4x256xf32>
    %118 = arith.addf %116, %117 : vector<4x256xf32>
    %cst_112 = arith.constant 0.000000e+00 : f32
    %119 = vector.broadcast %cst_112 : f32 to vector<4x256xf32>
    %120 = arith.maximumf %118, %119 : vector<4x256xf32>
    %121 = arith.truncf %120 : vector<4x256xf32> to vector<4x256xbf16>
    %c2_113 = arith.constant 2 : index
    %c0_114 = arith.constant 0 : index
    %c0_115 = arith.constant 0 : index
    %122 = vector.load %arg5[%c2_113, %c0_114, %c0_115] : memref<4x4x256xbf16, #tpu.memory_space<vmem>>, vector<1x4x256xbf16>
    %123 = vector.shape_cast %122 : vector<1x4x256xbf16> to vector<4x256xbf16>
    %124 = vector.shape_cast %121 : vector<4x256xbf16> to vector<1x4x256xbf16>
    tpu.vector_store %arg5[%c2_113, %c0_114, %c0_115], %124 {strides = array<i32>} : memref<4x4x256xbf16, #tpu.memory_space<vmem>>, vector<1x4x256xbf16>,
    %cst_116 = arith.constant 0.000000e+00 : f32
    %125 = vector.broadcast %cst_116 : f32 to vector<4x256xf32>
    %c3_117 = arith.constant 3 : index
    %c0_118 = arith.constant 0 : index
    %c0_119 = arith.constant 0 : index
    %126 = vector.load %arg1[%c3_117, %c0_118, %c0_119] : memref<4x12x320xbf16, #tpu.memory_space<vmem>>, vector<1x4x320xbf16>
    %127 = vector.shape_cast %126 : vector<1x4x320xbf16> to vector<4x320xbf16>
    %c0_120 = arith.constant 0 : index
    %c0_121 = arith.constant 0 : index
    %c0_122 = arith.constant 0 : index
    %128 = vector.load %arg2[%c0_120, %c0_121, %c0_122] : memref<5x320x256xbf16, #tpu.memory_space<vmem>>, vector<1x320x256xbf16>
    %129 = vector.shape_cast %128 : vector<1x320x256xbf16> to vector<320x256xbf16>
    %cst_123 = arith.constant dense<0.000000e+00> : vector<4x256xf32>
    %130 = tpu.matmul %127, %129, %cst_123 {dimension_numbers = #tpu.dot_dimension_numbers<[1], [0], [0], [1], [0, 0, 1, 1], [], []>} : vector<4x320xbf16>, vector<320x256xbf16>, vector<4x256xf32> -> vector<4x256xf32>
    %131 = arith.addf %125, %130 : vector<4x256xf32>
    %c3_124 = arith.constant 3 : index
    %c2_125 = arith.constant 2 : index
    %c0_126 = arith.constant 0 : index
    %132 = vector.load %arg1[%c3_124, %c2_125, %c0_126] : memref<4x12x320xbf16, #tpu.memory_space<vmem>>, vector<1x4x320xbf16>
    %133 = vector.shape_cast %132 : vector<1x4x320xbf16> to vector<4x320xbf16>
    %c1_127 = arith.constant 1 : index
    %c0_128 = arith.constant 0 : index
    %c0_129 = arith.constant 0 : index
    %134 = vector.load %arg2[%c1_127, %c0_128, %c0_129] : memref<5x320x256xbf16, #tpu.memory_space<vmem>>, vector<1x320x256xbf16>
    %135 = vector.shape_cast %134 : vector<1x320x256xbf16> to vector<320x256xbf16>
    %cst_130 = arith.constant dense<0.000000e+00> : vector<4x256xf32>
    %136 = tpu.matmul %133, %135, %cst_130 {dimension_numbers = #tpu.dot_dimension_numbers<[1], [0], [0], [1], [0, 0, 1, 1], [], []>} : vector<4x320xbf16>, vector<320x256xbf16>, vector<4x256xf32> -> vector<4x256xf32>
    %137 = arith.addf %131, %136 : vector<4x256xf32>
    %c3_131 = arith.constant 3 : index
    %c4_132 = arith.constant 4 : index
    %c0_133 = arith.constant 0 : index
    %138 = vector.load %arg1[%c3_131, %c4_132, %c0_133] : memref<4x12x320xbf16, #tpu.memory_space<vmem>>, vector<1x4x320xbf16>
    %139 = vector.shape_cast %138 : vector<1x4x320xbf16> to vector<4x320xbf16>
    %c2_134 = arith.constant 2 : index
    %c0_135 = arith.constant 0 : index
    %c0_136 = arith.constant 0 : index
    %140 = vector.load %arg2[%c2_134, %c0_135, %c0_136] : memref<5x320x256xbf16, #tpu.memory_space<vmem>>, vector<1x320x256xbf16>
    %141 = vector.shape_cast %140 : vector<1x320x256xbf16> to vector<320x256xbf16>
    %cst_137 = arith.constant dense<0.000000e+00> : vector<4x256xf32>
    %142 = tpu.matmul %139, %141, %cst_137 {dimension_numbers = #tpu.dot_dimension_numbers<[1], [0], [0], [1], [0, 0, 1, 1], [], []>} : vector<4x320xbf16>, vector<320x256xbf16>, vector<4x256xf32> -> vector<4x256xf32>
    %143 = arith.addf %137, %142 : vector<4x256xf32>
    %c3_138 = arith.constant 3 : index
    %c6_139 = arith.constant 6 : index
    %c0_140 = arith.constant 0 : index
    %144 = vector.load %arg1[%c3_138, %c6_139, %c0_140] : memref<4x12x320xbf16, #tpu.memory_space<vmem>>, vector<1x4x320xbf16>
    %145 = vector.shape_cast %144 : vector<1x4x320xbf16> to vector<4x320xbf16>
    %c3_141 = arith.constant 3 : index
    %c0_142 = arith.constant 0 : index
    %c0_143 = arith.constant 0 : index
    %146 = vector.load %arg2[%c3_141, %c0_142, %c0_143] : memref<5x320x256xbf16, #tpu.memory_space<vmem>>, vector<1x320x256xbf16>
    %147 = vector.shape_cast %146 : vector<1x320x256xbf16> to vector<320x256xbf16>
    %cst_144 = arith.constant dense<0.000000e+00> : vector<4x256xf32>
    %148 = tpu.matmul %145, %147, %cst_144 {dimension_numbers = #tpu.dot_dimension_numbers<[1], [0], [0], [1], [0, 0, 1, 1], [], []>} : vector<4x320xbf16>, vector<320x256xbf16>, vector<4x256xf32> -> vector<4x256xf32>
    %149 = arith.addf %143, %148 : vector<4x256xf32>
    %c3_145 = arith.constant 3 : index
    %c8_146 = arith.constant 8 : index
    %c0_147 = arith.constant 0 : index
    %150 = vector.load %arg1[%c3_145, %c8_146, %c0_147] : memref<4x12x320xbf16, #tpu.memory_space<vmem>>, vector<1x4x320xbf16>
    %151 = vector.shape_cast %150 : vector<1x4x320xbf16> to vector<4x320xbf16>
    %c4_148 = arith.constant 4 : index
    %c0_149 = arith.constant 0 : index
    %c0_150 = arith.constant 0 : index
    %152 = vector.load %arg2[%c4_148, %c0_149, %c0_150] : memref<5x320x256xbf16, #tpu.memory_space<vmem>>, vector<1x320x256xbf16>
    %153 = vector.shape_cast %152 : vector<1x320x256xbf16> to vector<320x256xbf16>
    %cst_151 = arith.constant dense<0.000000e+00> : vector<4x256xf32>
    %154 = tpu.matmul %151, %153, %cst_151 {dimension_numbers = #tpu.dot_dimension_numbers<[1], [0], [0], [1], [0, 0, 1, 1], [], []>} : vector<4x320xbf16>, vector<320x256xbf16>, vector<4x256xf32> -> vector<4x256xf32>
    %155 = arith.addf %149, %154 : vector<4x256xf32>
    %156 = vector.broadcast %0 : vector<1x256xf32> to vector<4x256xf32>
    %157 = arith.mulf %155, %156 : vector<4x256xf32>
    %158 = vector.broadcast %1 : vector<1x256xf32> to vector<4x256xf32>
    %159 = arith.addf %157, %158 : vector<4x256xf32>
    %cst_152 = arith.constant 0.000000e+00 : f32
    %160 = vector.broadcast %cst_152 : f32 to vector<4x256xf32>
    %161 = arith.maximumf %159, %160 : vector<4x256xf32>
    %162 = arith.truncf %161 : vector<4x256xf32> to vector<4x256xbf16>
    %c3_153 = arith.constant 3 : index
    %c0_154 = arith.constant 0 : index
    %c0_155 = arith.constant 0 : index
    %163 = vector.load %arg5[%c3_153, %c0_154, %c0_155] : memref<4x4x256xbf16, #tpu.memory_space<vmem>>, vector<1x4x256xbf16>
    %164 = vector.shape_cast %163 : vector<1x4x256xbf16> to vector<4x256xbf16>
    %165 = vector.shape_cast %162 : vector<4x256xbf16> to vector<1x4x256xbf16>
    tpu.vector_store %arg5[%c3_153, %c0_154, %c0_155], %165 {strides = array<i32>} : memref<4x4x256xbf16, #tpu.memory_space<vmem>>, vector<1x4x256xbf16>,
    return
  }
  func.func @transform_0(%arg0: i32) -> (i32, i32, i32) {
    %c0_i32 = arith.constant 0 : i32
    %c0_i32_0 = arith.constant 0 : i32
    %c0_i32_1 = arith.constant 0 : i32
    return %arg0, %c0_i32, %c0_i32_0 : i32, i32, i32
  }
  func.func @transform_1(%arg0: i32) -> (i32, i32, i32) {
    %c0_i32 = arith.constant 0 : i32
    %c0_i32_0 = arith.constant 0 : i32
    %c0_i32_1 = arith.constant 0 : i32
    %c0_i32_2 = arith.constant 0 : i32
    return %c0_i32, %c0_i32_0, %c0_i32_1 : i32, i32, i32
  }
  func.func @transform_2(%arg0: i32) -> (i32, i32) {
    %c0_i32 = arith.constant 0 : i32
    %c0_i32_0 = arith.constant 0 : i32
    %c0_i32_1 = arith.constant 0 : i32
    return %c0_i32, %c0_i32_0 : i32, i32
  }
  func.func @transform_3(%arg0: i32) -> (i32, i32) {
    %c0_i32 = arith.constant 0 : i32
    %c0_i32_0 = arith.constant 0 : i32
    %c0_i32_1 = arith.constant 0 : i32
    return %c0_i32, %c0_i32_0 : i32, i32
  }
  func.func @transform_4(%arg0: i32) -> (i32, i32, i32) {
    %c0_i32 = arith.constant 0 : i32
    %c0_i32_0 = arith.constant 0 : i32
    %c0_i32_1 = arith.constant 0 : i32
    return %arg0, %c0_i32, %c0_i32_0 : i32, i32, i32
  }
}

module attributes {stable_mosaic.version = 11 : i64} {
  func.func @_temporal_last_kernel(%arg0: i32, %arg1: memref<1x32x256xbf16, #tpu.memory_space<vmem>>, %arg2: memref<5x256x256xbf16, #tpu.memory_space<vmem>>, %arg3: memref<1x256xf32, #tpu.memory_space<vmem>>, %arg4: memref<1x256xf32, #tpu.memory_space<vmem>>, %arg5: memref<256x128xbf16, #tpu.memory_space<vmem>>, %arg6: memref<1x128xf32, #tpu.memory_space<vmem>>, %arg7: memref<1x128xf32, #tpu.memory_space<vmem>>, %arg8: memref<1x16x128xbf16, #tpu.memory_space<vmem>>) attributes {dimension_semantics = [#tpu.dimension_semantics<parallel>], iteration_bounds = array<i64: 2>, scalar_prefetch = 0 : i64, scratch_operands = 0 : i64, tpu.core_type = #tpu.core_type<tc>, window_params = [{transform_indices = @transform_0, window_bounds = array<i64: 1, 32, 256>}, {pipeline_mode = #tpu.pipeline_mode<synchronous>, transform_indices = @transform_1, window_bounds = array<i64: 5, 256, 256>}, {pipeline_mode = #tpu.pipeline_mode<synchronous>, transform_indices = @transform_2, window_bounds = array<i64: 1, 256>}, {pipeline_mode = #tpu.pipeline_mode<synchronous>, transform_indices = @transform_3, window_bounds = array<i64: 1, 256>}, {pipeline_mode = #tpu.pipeline_mode<synchronous>, transform_indices = @transform_4, window_bounds = array<i64: 256, 128>}, {pipeline_mode = #tpu.pipeline_mode<synchronous>, transform_indices = @transform_5, window_bounds = array<i64: 1, 128>}, {pipeline_mode = #tpu.pipeline_mode<synchronous>, transform_indices = @transform_6, window_bounds = array<i64: 1, 128>}, {transform_indices = @transform_7, window_bounds = array<i64: 1, 16, 128>}]} {
    %cst = arith.constant 0.000000e+00 : f32
    %0 = vector.broadcast %cst : f32 to vector<16x256xf32>
    %c0 = arith.constant 0 : index
    %c0_0 = arith.constant 0 : index
    %c0_1 = arith.constant 0 : index
    %1 = vector.load %arg1[%c0, %c0_0, %c0_1] : memref<1x32x256xbf16, #tpu.memory_space<vmem>>, vector<1x16x256xbf16>
    %2 = vector.shape_cast %1 : vector<1x16x256xbf16> to vector<16x256xbf16>
    %c0_2 = arith.constant 0 : index
    %c0_3 = arith.constant 0 : index
    %c0_4 = arith.constant 0 : index
    %3 = vector.load %arg2[%c0_2, %c0_3, %c0_4] : memref<5x256x256xbf16, #tpu.memory_space<vmem>>, vector<1x256x256xbf16>
    %4 = vector.shape_cast %3 : vector<1x256x256xbf16> to vector<256x256xbf16>
    %cst_5 = arith.constant dense<0.000000e+00> : vector<16x256xf32>
    %5 = tpu.matmul %2, %4, %cst_5 {dimension_numbers = #tpu.dot_dimension_numbers<[1], [0], [0], [1], [0, 0, 1, 1], [], []>} : vector<16x256xbf16>, vector<256x256xbf16>, vector<16x256xf32> -> vector<16x256xf32>
    %6 = arith.addf %0, %5 : vector<16x256xf32>
    %c0_6 = arith.constant 0 : index
    %c4 = arith.constant 4 : index
    %c0_7 = arith.constant 0 : index
    %7 = vector.load %arg1[%c0_6, %c4, %c0_7] : memref<1x32x256xbf16, #tpu.memory_space<vmem>>, vector<1x16x256xbf16>
    %8 = vector.shape_cast %7 : vector<1x16x256xbf16> to vector<16x256xbf16>
    %c1 = arith.constant 1 : index
    %c0_8 = arith.constant 0 : index
    %c0_9 = arith.constant 0 : index
    %9 = vector.load %arg2[%c1, %c0_8, %c0_9] : memref<5x256x256xbf16, #tpu.memory_space<vmem>>, vector<1x256x256xbf16>
    %10 = vector.shape_cast %9 : vector<1x256x256xbf16> to vector<256x256xbf16>
    %cst_10 = arith.constant dense<0.000000e+00> : vector<16x256xf32>
    %11 = tpu.matmul %8, %10, %cst_10 {dimension_numbers = #tpu.dot_dimension_numbers<[1], [0], [0], [1], [0, 0, 1, 1], [], []>} : vector<16x256xbf16>, vector<256x256xbf16>, vector<16x256xf32> -> vector<16x256xf32>
    %12 = arith.addf %6, %11 : vector<16x256xf32>
    %c0_11 = arith.constant 0 : index
    %c8 = arith.constant 8 : index
    %c0_12 = arith.constant 0 : index
    %13 = vector.load %arg1[%c0_11, %c8, %c0_12] : memref<1x32x256xbf16, #tpu.memory_space<vmem>>, vector<1x16x256xbf16>
    %14 = vector.shape_cast %13 : vector<1x16x256xbf16> to vector<16x256xbf16>
    %c2 = arith.constant 2 : index
    %c0_13 = arith.constant 0 : index
    %c0_14 = arith.constant 0 : index
    %15 = vector.load %arg2[%c2, %c0_13, %c0_14] : memref<5x256x256xbf16, #tpu.memory_space<vmem>>, vector<1x256x256xbf16>
    %16 = vector.shape_cast %15 : vector<1x256x256xbf16> to vector<256x256xbf16>
    %cst_15 = arith.constant dense<0.000000e+00> : vector<16x256xf32>
    %17 = tpu.matmul %14, %16, %cst_15 {dimension_numbers = #tpu.dot_dimension_numbers<[1], [0], [0], [1], [0, 0, 1, 1], [], []>} : vector<16x256xbf16>, vector<256x256xbf16>, vector<16x256xf32> -> vector<16x256xf32>
    %18 = arith.addf %12, %17 : vector<16x256xf32>
    %c0_16 = arith.constant 0 : index
    %c12 = arith.constant 12 : index
    %c0_17 = arith.constant 0 : index
    %19 = vector.load %arg1[%c0_16, %c12, %c0_17] : memref<1x32x256xbf16, #tpu.memory_space<vmem>>, vector<1x16x256xbf16>
    %20 = vector.shape_cast %19 : vector<1x16x256xbf16> to vector<16x256xbf16>
    %c3 = arith.constant 3 : index
    %c0_18 = arith.constant 0 : index
    %c0_19 = arith.constant 0 : index
    %21 = vector.load %arg2[%c3, %c0_18, %c0_19] : memref<5x256x256xbf16, #tpu.memory_space<vmem>>, vector<1x256x256xbf16>
    %22 = vector.shape_cast %21 : vector<1x256x256xbf16> to vector<256x256xbf16>
    %cst_20 = arith.constant dense<0.000000e+00> : vector<16x256xf32>
    %23 = tpu.matmul %20, %22, %cst_20 {dimension_numbers = #tpu.dot_dimension_numbers<[1], [0], [0], [1], [0, 0, 1, 1], [], []>} : vector<16x256xbf16>, vector<256x256xbf16>, vector<16x256xf32> -> vector<16x256xf32>
    %24 = arith.addf %18, %23 : vector<16x256xf32>
    %c0_21 = arith.constant 0 : index
    %c16 = arith.constant 16 : index
    %c0_22 = arith.constant 0 : index
    %25 = vector.load %arg1[%c0_21, %c16, %c0_22] : memref<1x32x256xbf16, #tpu.memory_space<vmem>>, vector<1x16x256xbf16>
    %26 = vector.shape_cast %25 : vector<1x16x256xbf16> to vector<16x256xbf16>
    %c4_23 = arith.constant 4 : index
    %c0_24 = arith.constant 0 : index
    %c0_25 = arith.constant 0 : index
    %27 = vector.load %arg2[%c4_23, %c0_24, %c0_25] : memref<5x256x256xbf16, #tpu.memory_space<vmem>>, vector<1x256x256xbf16>
    %28 = vector.shape_cast %27 : vector<1x256x256xbf16> to vector<256x256xbf16>
    %cst_26 = arith.constant dense<0.000000e+00> : vector<16x256xf32>
    %29 = tpu.matmul %26, %28, %cst_26 {dimension_numbers = #tpu.dot_dimension_numbers<[1], [0], [0], [1], [0, 0, 1, 1], [], []>} : vector<16x256xbf16>, vector<256x256xbf16>, vector<16x256xf32> -> vector<16x256xf32>
    %30 = arith.addf %24, %29 : vector<16x256xf32>
    %c0_27 = arith.constant 0 : index
    %c0_28 = arith.constant 0 : index
    %31 = vector.load %arg3[%c0_27, %c0_28] : memref<1x256xf32, #tpu.memory_space<vmem>>, vector<1x256xf32>
    %32 = vector.broadcast %31 : vector<1x256xf32> to vector<16x256xf32>
    %33 = arith.mulf %30, %32 : vector<16x256xf32>
    %c0_29 = arith.constant 0 : index
    %c0_30 = arith.constant 0 : index
    %34 = vector.load %arg4[%c0_29, %c0_30] : memref<1x256xf32, #tpu.memory_space<vmem>>, vector<1x256xf32>
    %35 = vector.broadcast %34 : vector<1x256xf32> to vector<16x256xf32>
    %36 = arith.addf %33, %35 : vector<16x256xf32>
    %cst_31 = arith.constant 0.000000e+00 : f32
    %37 = vector.broadcast %cst_31 : f32 to vector<16x256xf32>
    %38 = arith.maximumf %36, %37 : vector<16x256xf32>
    %39 = arith.truncf %38 : vector<16x256xf32> to vector<16x256xbf16>
    %c0_32 = arith.constant 0 : index
    %c0_33 = arith.constant 0 : index
    %40 = vector.load %arg5[%c0_32, %c0_33] : memref<256x128xbf16, #tpu.memory_space<vmem>>, vector<256x128xbf16>
    %cst_34 = arith.constant dense<0.000000e+00> : vector<16x128xf32>
    %41 = tpu.matmul %39, %40, %cst_34 {dimension_numbers = #tpu.dot_dimension_numbers<[1], [0], [0], [1], [0, 0, 1, 1], [], []>} : vector<16x256xbf16>, vector<256x128xbf16>, vector<16x128xf32> -> vector<16x128xf32>
    %c0_35 = arith.constant 0 : index
    %c0_36 = arith.constant 0 : index
    %42 = vector.load %arg6[%c0_35, %c0_36] : memref<1x128xf32, #tpu.memory_space<vmem>>, vector<1x128xf32>
    %43 = vector.broadcast %42 : vector<1x128xf32> to vector<16x128xf32>
    %44 = arith.mulf %41, %43 : vector<16x128xf32>
    %c0_37 = arith.constant 0 : index
    %c0_38 = arith.constant 0 : index
    %45 = vector.load %arg7[%c0_37, %c0_38] : memref<1x128xf32, #tpu.memory_space<vmem>>, vector<1x128xf32>
    %46 = vector.broadcast %45 : vector<1x128xf32> to vector<16x128xf32>
    %47 = arith.addf %44, %46 : vector<16x128xf32>
    %cst_39 = arith.constant 0.000000e+00 : f32
    %48 = vector.broadcast %cst_39 : f32 to vector<16x128xf32>
    %49 = arith.maximumf %47, %48 : vector<16x128xf32>
    %50 = arith.truncf %49 : vector<16x128xf32> to vector<16x128xbf16>
    %c0_40 = arith.constant 0 : index
    %c0_41 = arith.constant 0 : index
    %c0_42 = arith.constant 0 : index
    %51 = vector.load %arg8[%c0_40, %c0_41, %c0_42] : memref<1x16x128xbf16, #tpu.memory_space<vmem>>, vector<1x16x128xbf16>
    %52 = vector.shape_cast %51 : vector<1x16x128xbf16> to vector<16x128xbf16>
    %53 = vector.shape_cast %50 : vector<16x128xbf16> to vector<1x16x128xbf16>
    tpu.vector_store %arg8[%c0_40, %c0_41, %c0_42], %53 {strides = array<i32>} : memref<1x16x128xbf16, #tpu.memory_space<vmem>>, vector<1x16x128xbf16>,
    return
  }
  func.func @transform_0(%arg0: i32) -> (i32, i32, i32) {
    %c0_i32 = arith.constant 0 : i32
    %c0_i32_0 = arith.constant 0 : i32
    %c0_i32_1 = arith.constant 0 : i32
    return %arg0, %c0_i32, %c0_i32_0 : i32, i32, i32
  }
  func.func @transform_1(%arg0: i32) -> (i32, i32, i32) {
    %c0_i32 = arith.constant 0 : i32
    %c0_i32_0 = arith.constant 0 : i32
    %c0_i32_1 = arith.constant 0 : i32
    %c0_i32_2 = arith.constant 0 : i32
    return %c0_i32, %c0_i32_0, %c0_i32_1 : i32, i32, i32
  }
  func.func @transform_2(%arg0: i32) -> (i32, i32) {
    %c0_i32 = arith.constant 0 : i32
    %c0_i32_0 = arith.constant 0 : i32
    %c0_i32_1 = arith.constant 0 : i32
    return %c0_i32, %c0_i32_0 : i32, i32
  }
  func.func @transform_3(%arg0: i32) -> (i32, i32) {
    %c0_i32 = arith.constant 0 : i32
    %c0_i32_0 = arith.constant 0 : i32
    %c0_i32_1 = arith.constant 0 : i32
    return %c0_i32, %c0_i32_0 : i32, i32
  }
  func.func @transform_4(%arg0: i32) -> (i32, i32) {
    %c0_i32 = arith.constant 0 : i32
    %c0_i32_0 = arith.constant 0 : i32
    %c0_i32_1 = arith.constant 0 : i32
    return %c0_i32, %c0_i32_0 : i32, i32
  }
  func.func @transform_5(%arg0: i32) -> (i32, i32) {
    %c0_i32 = arith.constant 0 : i32
    %c0_i32_0 = arith.constant 0 : i32
    %c0_i32_1 = arith.constant 0 : i32
    return %c0_i32, %c0_i32_0 : i32, i32
  }
  func.func @transform_6(%arg0: i32) -> (i32, i32) {
    %c0_i32 = arith.constant 0 : i32
    %c0_i32_0 = arith.constant 0 : i32
    %c0_i32_1 = arith.constant 0 : i32
    return %c0_i32, %c0_i32_0 : i32, i32
  }
  func.func @transform_7(%arg0: i32) -> (i32, i32, i32) {
    %c0_i32 = arith.constant 0 : i32
    %c0_i32_0 = arith.constant 0 : i32
    %c0_i32_1 = arith.constant 0 : i32
    return %arg0, %c0_i32, %c0_i32_0 : i32, i32, i32
  }
}

module attributes {stable_mosaic.version = 11 : i64} {
  func.func @_global_max_kernel(%arg0: i32, %arg1: memref<4x4x128xbf16, #tpu.memory_space<vmem>>, %arg2: memref<4x1x128xf32, #tpu.memory_space<vmem>>) attributes {dimension_semantics = [#tpu.dimension_semantics<parallel>], iteration_bounds = array<i64: 2>, scalar_prefetch = 0 : i64, scratch_operands = 0 : i64, tpu.core_type = #tpu.core_type<tc>, window_params = [{transform_indices = @transform_0, window_bounds = array<i64: 4, 4, 128>}, {transform_indices = @transform_1, window_bounds = array<i64: 4, 1, 128>}]} {
    %c0 = arith.constant 0 : index
    %c0_0 = arith.constant 0 : index
    %c0_1 = arith.constant 0 : index
    %0 = vector.load %arg1[%c0, %c0_0, %c0_1] : memref<4x4x128xbf16, #tpu.memory_space<vmem>>, vector<4x4x128xbf16>
    %cst = arith.constant dense<0xFF80> : vector<4x128xbf16>
    %1 = vector.multi_reduction <maximumf>, %0, %cst [1] : vector<4x4x128xbf16> to vector<4x128xbf16>
    %2 = vector.shape_cast %1 : vector<4x128xbf16> to vector<4x1x128xbf16>
    %3 = arith.extf %2 : vector<4x1x128xbf16> to vector<4x1x128xf32>
    %c0_2 = arith.constant 0 : index
    %c0_3 = arith.constant 0 : index
    %c0_4 = arith.constant 0 : index
    %4 = vector.load %arg2[%c0_2, %c0_3, %c0_4] : memref<4x1x128xf32, #tpu.memory_space<vmem>>, vector<4x1x128xf32>
    tpu.vector_store %arg2[%c0_2, %c0_3, %c0_4], %3 {strides = array<i32>} : memref<4x1x128xf32, #tpu.memory_space<vmem>>, vector<4x1x128xf32>,
    return
  }
  func.func @transform_0(%arg0: i32) -> (i32, i32, i32) {
    %c0_i32 = arith.constant 0 : i32
    %c0_i32_0 = arith.constant 0 : i32
    %c0_i32_1 = arith.constant 0 : i32
    return %arg0, %c0_i32, %c0_i32_0 : i32, i32, i32
  }
  func.func @transform_1(%arg0: i32) -> (i32, i32, i32) {
    %c0_i32 = arith.constant 0 : i32
    %c0_i32_0 = arith.constant 0 : i32
    %c0_i32_1 = arith.constant 0 : i32
    return %arg0, %c0_i32, %c0_i32_0 : i32, i32, i32
  }
}

</mosaic_0001>

<bundles_post_ra>
// kernel: _lambda_.9
= control target key start
LH: loop header
LB: loop body
LE: loop exit
PB: predicated region body
PF: predicated region fallthrough
CT: control target
= control target key end

     0   :  { %s1103_s15 = smov 0   ;;  %s1307_s0 = inlined_call_operand.vmem [shape: bf16[512,25], index: 0, kind: input, shape index: {}]   ;;  %s1308_s1 = inlined_call_operand.vmem [shape: bf16[25,64], index: 1, kind: input, shape index: {}]   ;;  %s1309_s2 = inlined_call_operand.vmem [shape: f32[1,64], index: 2, kind: input, shape index: {}]   ;;  %s1310_s3 = inlined_call_operand.vmem [shape: f32[1,64], index: 3, kind: input, shape index: {}]   ;;  %s1311_s4 = inlined_call_operand.vmem [shape: bf16[512,64], index: 4, kind: output, shape index: {}]  }
   0x1 LB: > { %s873_s16 = sadd.s32 4294967295, %s1075_s15   ;;  %p877_p0 = scmp.ge.s32.totalorder %s1075_s15, 1  ;;  %s1075_s15 = sphi %s1103_s15, %s14_s15  }
   0x2   : > { %p163_p1 = scmp.lt.s32.totalorder %s1075_s15, 3 }
   0x4   : > { %p164_p2 = pnand %p877_p0, %p163_p1 }
   0x5   : > { %v1051_v0 = vld [vmem:[%s1308_s1] sm:$0xff] (!%p164_p2)   ;;  %vm378_vm0 = vcmask (!%p164_p2), 1043456   ;;  %v1052_v1 = vld [vmem:[%s1308_s1 + $0x8] sm:$0x1f] (!%p164_p2)   ;;  %vm379_vm1 = vcmask (!%p164_p2), 1044480   ;;  %s878_s21 = sshll.u32 (!%p164_p2), %s873_s16, 5 }
   0x6   : > { %167 = sbr.rel (%p164_p2) target bundleno = 269 (0x10d), region = 36  ;;  %1002 = vmatprep.subr.bf16.mxu0 (!%p164_p2), %v1051_v0  ;;  %1038 = vmatprep.subr.bf16.mxu1 (!%p164_p2), %v1051_v0  ;;  %v1077_v2 = vmov (!%p164_p2), 65535   ;;  %p190_p3 = scmp.lt.s32.totalorder (!%p164_p2), %s878_s21, 63  ;;  %vm329_vm2 = vcmask (!%p164_p2), 203776   ;;  %v1162_v22 = vld [vmem:[%s1309_s2] ss:$0 sm:$0xff] (!%p164_p2) }
   0x7   : > { %1003 = vmatpush3.bf16.msra.mxu0 (!%p164_p2), %v1051_v0  ;;  %1040 = vmatpush3.bf16.msra.mxu1 (!%p164_p2), %v1051_v0  ;;  %v380_v3 = vsel (!%p164_p2), %vm378_vm0, 4294967295, %v1077_v2  ;;  %v1167_v24 = vld [vmem:[%s1310_s3] ss:$0 sm:$0xff] (!%p164_p2)  ;;  %vm784_vm3 = vcmask (!%p164_p2), 519168  }
   0x8   : > { %v381_v4 = vsel (!%p164_p2), %vm379_vm1, %v380_v3, 0 }
   0x9   : > { %v383_v5 = vand.u32 (!%p164_p2), %v1052_v1, %v381_v4 }
   0xb   : > { %1004 = vmatprep.subr.bf16.mxu0 (!%p164_p2), %v383_v5  ;;  %1039 = vmatprep.subr.bf16.mxu1 (!%p164_p2), %v383_v5 }
   0xc   : > { %1005 = vmatpush3.bf16.msra.mxu0 (!%p164_p2), %v383_v5  ;;  %1041 = vmatpush3.bf16.msra.mxu1 (!%p164_p2), %v383_v5 }
   0xd   : > { %s1313_s21 = smov (!%p190_p3, %s878_s21), 63 }
   0xe   : > { %s879_s22 = sshll.u32 %s1313_s21, 2 }
   0xf   : > { %s1125_s25 = scalar_lea.vmem %s1307_s0, %s879_s22  ;;  %s1187_s6 = scalar_lea.vmem %s1311_s4, %s879_s22 }
  0x10   : > { %v1053_v6 = vld [vmem:[%s1125_s25] sm:$0xff]   ;;  %v1055_v8 = vld [vmem:[%s1125_s25 + $0x8] sm:$0xff]   ;;  %v1057_v10 = vld [vmem:[%s1125_s25 + $0x10] sm:$0xff]  }
  0x11   : > { %v1054_v7 = vld [vmem:[%s1125_s25 + $0x40] sm:$0xff]   ;;  %1006 = vmatprep.mubr.msk.bf16.mxu0 %vm329_vm2, %v1053_v6  ;;  %v1056_v9 = vld [vmem:[%s1125_s25 + $0x48] sm:$0xff]   ;;  %v1058_v11 = vld [vmem:[%s1125_s25 + $0x50] sm:$0xff]  }
  0x12   : > { %1022 = vmatprep.mubr.msk.bf16.mxu1 %vm329_vm2, %v1054_v7  ;;  %1007 = vmatmul.mubr.msk.bf16.vlgmr.msra.gmra.mrb[0].mxu0 %vm329_vm2, %v1055_v8  ;;  %v1059_v12 = vld [vmem:[%s1125_s25 + $0x18] sm:$0xff]   ;;  %v1061_v14 = vld [vmem:[%s1125_s25 + $0x20] sm:$0xff]   ;;  %v1063_v16 = vld [vmem:[%s1125_s25 + $0x28] sm:$0xff]  }
  0x13   : > { %1023 = vmatmul.mubr.msk.bf16.vlgmr.msra.gmra.mrb[0].mxu1 %vm329_vm2, %v1056_v9  ;;  %1010 = vmatprep.mubr.msk.bf16.mxu0 %vm329_vm2, %v1057_v10  ;;  %v1060_v13 = vld [vmem:[%s1125_s25 + $0x58] sm:$0xff]   ;;  %v1062_v15 = vld [vmem:[%s1125_s25 + $0x60] sm:$0xff]   ;;  %v1064_v17 = vld [vmem:[%s1125_s25 + $0x68] sm:$0xff]  }
  0x14   : > { %1026 = vmatprep.mubr.msk.bf16.mxu1 %vm329_vm2, %v1058_v11  ;;  %v1065_v18 = vld [vmem:[%s1125_s25 + $0x30] sm:$0xff]   ;;  %v1067_v20 = vld [vmem:[%s1125_s25 + $0x38] sm:$0xff]  }
  0x15   : > { %v1066_v19 = vld [vmem:[%s1125_s25 + $0x70] sm:$0xff]   ;;  %v1068_v21 = vld [vmem:[%s1125_s25 + $0x78] sm:$0xff]  }
  0x1a   : > { %1011 = vmatmul.mubr.msk.bf16.gmra.mrb[4].mxu0 %vm329_vm2, %v1059_v12 }
  0x1b   : > { %1027 = vmatmul.mubr.msk.bf16.gmra.mrb[4].mxu1 %vm329_vm2, %v1060_v13  ;;  %1014 = vmatprep.mubr.msk.bf16.mxu0 %vm329_vm2, %v1061_v14 }
  0x1c   : > { %1030 = vmatprep.mubr.msk.bf16.mxu1 %vm329_vm2, %v1062_v15 }
  0x22   : > { %1015 = vmatmul.mubr.msk.bf16.gmra.mrb[8].mxu0 %vm329_vm2, %v1063_v16 }
  0x23   : > { %1031 = vmatmul.mubr.msk.bf16.gmra.mrb[8].mxu1 %vm329_vm2, %v1064_v17  ;;  %1018 = vmatprep.mubr.msk.bf16.mxu0 %vm329_vm2, %v1065_v18 }
  0x24   : > { %1034 = vmatprep.mubr.msk.bf16.mxu1 %vm329_vm2, %v1066_v19 }
  0x2a   : > { %1019 = vmatmul.mubr.msk.bf16.gmra.mrb[12].mxu0 %vm329_vm2, %v1067_v20 }
  0x2b   : > { %1035 = vmatmul.mubr.msk.bf16.gmra.mrb[12].mxu1 %vm329_vm2, %v1068_v21 }
  0xe5   : > { %v1008_v23 = vpop.f32.mrb[0].mxu0 }
  0xe6   : > { %v555_v25 = vmul.f32 %v1008_v23, %v1162_v22  ;;  %v1024_v26 = vpop.f32.mrb[0].mxu1  ;;  %v419_v27 = vpop.f32.mrb[1].mxu0 }
  0xe7   : > { %v571_v28 = vmul.f32 %v1024_v26, %v1162_v22  ;;  %v553_v29 = vmul.f32 %v1162_v22, %v419_v27  ;;  %v483_v30 = vpop.f32.mrb[1].mxu1  ;;  %v1009_v31 = vpop.f32.mrb[2].mxu0 }
  0xe8   : > { %v594_v32 = vadd.f32 %v1167_v24, %v555_v25  ;;  %v569_v33 = vmul.f32 %v1162_v22, %v483_v30  ;;  %v556_v34 = vmul.f32 %v1009_v31, %v1162_v22  ;;  %v1025_v35 = vpop.f32.mrb[2].mxu1  ;;  %v422_v36 = vpop.f32.mrb[3].mxu0 }
  0xe9   : > { %v610_v37 = vadd.f32 %v1167_v24, %v571_v28  ;;  %v592_v38 = vadd.f32 %v1167_v24, %v553_v29  ;;  %v572_v39 = vmul.f32 %v1025_v35, %v1162_v22  ;;  %v554_v40 = vmul.f32 %v1162_v22, %v422_v36  ;;  %v486_v41 = vpop.f32.mrb[3].mxu1 }
  0xea   : > { %v626_v42 = vmax.f32 %v594_v32, 0.0  ;;  %v608_v43 = vadd.f32 %v1167_v24, %v569_v33  ;;  %v595_v44 = vadd.f32 %v1167_v24, %v556_v34  ;;  %v570_v45 = vmul.f32 %v1162_v22, %v486_v41 }
  0xeb   : > { %v642_v46 = vmax.f32 %v610_v37, 0.0  ;;  %v624_v47 = vmax.f32 %v592_v38, 0.0  ;;  %v611_v48 = vadd.f32 %v1167_v24, %v572_v39  ;;  %v593_v49 = vadd.f32 %v1167_v24, %v554_v40 }
  0xec   : > { %v954_v50 = vpack.c.bf16 %v626_v42, %v626_v42  ;;  %v640_v51 = vmax.f32 %v608_v43, 0.0  ;;  %v627_v52 = vmax.f32 %v595_v44, 0.0  ;;  %v609_v53 = vadd.f32 %v1167_v24, %v570_v45 }
  0xed   : > { %v970_v54 = vpack.c.bf16 %v642_v46, %v642_v46  ;;  %v952_v55 = vpack.c.bf16 %v624_v47, %v624_v47  ;;  %v643_v56 = vmax.f32 %v611_v48, 0.0  ;;  %v625_v57 = vmax.f32 %v593_v49, 0.0  ;;  %v1012_v58 = vpop.f32.mrb[4].mxu0 }
  0xee   : > { %787 = vst.msk [vmem:[%s1187_s6 + $0x8] sm:$0xf] %vm784_vm3, %v954_v50  ;;  %v968_v59 = vpack.c.bf16 %v640_v51, %v640_v51  ;;  %v955_v60 = vpack.c.bf16 %v627_v52, %v627_v52  ;;  %v641_v61 = vmax.f32 %v609_v53, 0.0  ;;  %v559_v62 = vmul.f32 %v1012_v58, %v1162_v22  ;;  %v1028_v63 = vpop.f32.mrb[4].mxu1  ;;  %v435_v0 = vpop.f32.mrb[5].mxu0 }
  0xef   : > { %803 = vst.msk [vmem:[%s1187_s6 + $0x48] sm:$0xf] %vm784_vm3, %v970_v54  ;;  %785 = vst.msk [vmem:[%s1187_s6] sm:$0xf] %vm784_vm3, %v952_v55  ;;  %v971_v1 = vpack.c.bf16 %v643_v56, %v643_v56  ;;  %v953_v2 = vpack.c.bf16 %v625_v57, %v625_v57  ;;  %v575_v3 = vmul.f32 %v1028_v63, %v1162_v22  ;;  %v499_v5 = vpop.f32.mrb[5].mxu1  ;;  %v1013_v6 = vpop.f32.mrb[6].mxu0 }
  0xf0   : > { %v557_v4 = vmul.f32 %v1162_v22, %v435_v0  ;;  %801 = vst.msk [vmem:[%s1187_s6 + $0x40] sm:$0xf] %vm784_vm3, %v968_v59  ;;  %788 = vst.msk [vmem:[%s1187_s6 + $0xc] sm:$0xf] %vm784_vm3, %v955_v60  ;;  %v969_v7 = vpack.c.bf16 %v641_v61, %v641_v61  ;;  %v598_v8 = vadd.f32 %v1167_v24, %v559_v62  ;;  %v1029_v11 = vpop.f32.mrb[6].mxu1  ;;  %v438_v12 = vpop.f32.mrb[7].mxu0 }
  0xf1   : > { %v573_v9 = vmul.f32 %v1162_v22, %v499_v5  ;;  %v560_v10 = vmul.f32 %v1013_v6, %v1162_v22  ;;  %804 = vst.msk [vmem:[%s1187_s6 + $0x4c] sm:$0xf] %vm784_vm3, %v971_v1  ;;  %786 = vst.msk [vmem:[%s1187_s6 + $0x4] sm:$0xf] %vm784_vm3, %v953_v2  ;;  %v614_v13 = vadd.f32 %v1167_v24, %v575_v3  ;;  %v502_v17 = vpop.f32.mrb[7].mxu1 }
  0xf2   : > { %v596_v14 = vadd.f32 %v1167_v24, %v557_v4  ;;  %v576_v15 = vmul.f32 %v1029_v11, %v1162_v22  ;;  %v558_v16 = vmul.f32 %v1162_v22, %v438_v12  ;;  %802 = vst.msk [vmem:[%s1187_s6 + $0x44] sm:$0xf] %vm784_vm3, %v969_v7  ;;  %v630_v18 = vmax.f32 %v598_v8, 0.0 }
  0xf3   : > { %v612_v19 = vadd.f32 %v1167_v24, %v573_v9  ;;  %v599_v20 = vadd.f32 %v1167_v24, %v560_v10  ;;  %v574_v21 = vmul.f32 %v1162_v22, %v502_v17  ;;  %v646_v23 = vmax.f32 %v614_v13, 0.0 }
  0xf4   : > { %v628_v25 = vmax.f32 %v596_v14, 0.0  ;;  %v615_v26 = vadd.f32 %v1167_v24, %v576_v15  ;;  %v597_v27 = vadd.f32 %v1167_v24, %v558_v16  ;;  %v958_v28 = vpack.c.bf16 %v630_v18, %v630_v18 }
  0xf5   : > { %v644_v29 = vmax.f32 %v612_v19, 0.0  ;;  %v631_v30 = vmax.f32 %v599_v20, 0.0  ;;  %v613_v31 = vadd.f32 %v1167_v24, %v574_v21  ;;  %v974_v32 = vpack.c.bf16 %v646_v23, %v646_v23  ;;  %v1016_v36 = vpop.f32.mrb[8].mxu0 }
  0xf6   : > { %v956_v33 = vpack.c.bf16 %v628_v25, %v628_v25  ;;  %v647_v34 = vmax.f32 %v615_v26, 0.0  ;;  %v629_v35 = vmax.f32 %v597_v27, 0.0  ;;  %791 = vst.msk [vmem:[%s1187_s6 + $0x18] sm:$0xf] %vm784_vm3, %v958_v28  ;;  %v563_v40 = vmul.f32 %v1016_v36, %v1162_v22  ;;  %v1032_v41 = vpop.f32.mrb[8].mxu1  ;;  %v451_v42 = vpop.f32.mrb[9].mxu0 }
  0xf7   : > { %v972_v37 = vpack.c.bf16 %v644_v29, %v644_v29  ;;  %v959_v38 = vpack.c.bf16 %v631_v30, %v631_v30  ;;  %v645_v39 = vmax.f32 %v613_v31, 0.0  ;;  %807 = vst.msk [vmem:[%s1187_s6 + $0x58] sm:$0xf] %vm784_vm3, %v974_v32  ;;  %v579_v45 = vmul.f32 %v1032_v41, %v1162_v22  ;;  %v515_v47 = vpop.f32.mrb[9].mxu1  ;;  %v1017_v48 = vpop.f32.mrb[10].mxu0 }
  0xf8   : > { %789 = vst.msk [vmem:[%s1187_s6 + $0x10] sm:$0xf] %vm784_vm3, %v956_v33  ;;  %v975_v43 = vpack.c.bf16 %v647_v34, %v647_v34  ;;  %v957_v44 = vpack.c.bf16 %v629_v35, %v629_v35  ;;  %v561_v46 = vmul.f32 %v1162_v22, %v451_v42  ;;  %v602_v50 = vadd.f32 %v1167_v24, %v563_v40  ;;  %v1033_v53 = vpop.f32.mrb[10].mxu1  ;;  %v454_v54 = vpop.f32.mrb[11].mxu0 }
  0xf9   : > { %805 = vst.msk [vmem:[%s1187_s6 + $0x50] sm:$0xf] %vm784_vm3, %v972_v37  ;;  %792 = vst.msk [vmem:[%s1187_s6 + $0x1c] sm:$0xf] %vm784_vm3, %v959_v38  ;;  %v973_v49 = vpack.c.bf16 %v645_v39, %v645_v39  ;;  %v577_v51 = vmul.f32 %v1162_v22, %v515_v47  ;;  %v564_v52 = vmul.f32 %v1017_v48, %v1162_v22  ;;  %v518_v59 = vpop.f32.mrb[11].mxu1 }
  0xfa   : > { %808 = vst.msk [vmem:[%s1187_s6 + $0x5c] sm:$0xf] %vm784_vm3, %v975_v43  ;;  %790 = vst.msk [vmem:[%s1187_s6 + $0x14] sm:$0xf] %vm784_vm3, %v957_v44  ;;  %v618_v55 = vadd.f32 %v1167_v24, %v579_v45  ;;  %v600_v56 = vadd.f32 %v1167_v24, %v561_v46  ;;  %v580_v57 = vmul.f32 %v1033_v53, %v1162_v22  ;;  %v634_v60 = vmax.f32 %v602_v50, 0.0 }
  0xfb   : > { %v562_v58 = vmul.f32 %v1162_v22, %v454_v54  ;;  %806 = vst.msk [vmem:[%s1187_s6 + $0x54] sm:$0xf] %vm784_vm3, %v973_v49  ;;  %v616_v61 = vadd.f32 %v1167_v24, %v577_v51  ;;  %v603_v62 = vadd.f32 %v1167_v24, %v564_v52  ;;  %v578_v63 = vmul.f32 %v1162_v22, %v518_v59 }
  0xfc   : > { %v650_v0 = vmax.f32 %v618_v55, 0.0  ;;  %v632_v1 = vmax.f32 %v600_v56, 0.0  ;;  %v619_v2 = vadd.f32 %v1167_v24, %v580_v57  ;;  %v962_v4 = vpack.c.bf16 %v634_v60, %v634_v60 }
  0xfd   : > { %v601_v3 = vadd.f32 %v1167_v24, %v562_v58  ;;  %v648_v5 = vmax.f32 %v616_v61, 0.0  ;;  %v635_v6 = vmax.f32 %v603_v62, 0.0  ;;  %v617_v7 = vadd.f32 %v1167_v24, %v578_v63  ;;  %v1020_v12 = vpop.f32.mrb[12].mxu0 }
  0xfe   : > { %v978_v8 = vpack.c.bf16 %v650_v0, %v650_v0  ;;  %v960_v9 = vpack.c.bf16 %v632_v1, %v632_v1  ;;  %v651_v10 = vmax.f32 %v619_v2, 0.0  ;;  %795 = vst.msk [vmem:[%s1187_s6 + $0x28] sm:$0xf] %vm784_vm3, %v962_v4  ;;  %v567_v16 = vmul.f32 %v1020_v12, %v1162_v22  ;;  %v1036_v17 = vpop.f32.mrb[12].mxu1  ;;  %v467_v18 = vpop.f32.mrb[13].mxu0 }
  0xff   : > { %v633_v11 = vmax.f32 %v601_v3, 0.0  ;;  %v976_v13 = vpack.c.bf16 %v648_v5, %v648_v5  ;;  %v963_v14 = vpack.c.bf16 %v635_v6, %v635_v6  ;;  %v649_v15 = vmax.f32 %v617_v7, 0.0  ;;  %v531_v25 = vpop.f32.mrb[13].mxu1  ;;  %v1021_v26 = vpop.f32.mrb[14].mxu0 }
 0x100   : > { %811 = vst.msk [vmem:[%s1187_s6 + $0x68] sm:$0xf] %vm784_vm3, %v978_v8  ;;  %793 = vst.msk [vmem:[%s1187_s6 + $0x20] sm:$0xf] %vm784_vm3, %v960_v9  ;;  %v979_v19 = vpack.c.bf16 %v651_v10, %v651_v10  ;;  %v583_v21 = vmul.f32 %v1036_v17, %v1162_v22  ;;  %v565_v23 = vmul.f32 %v1162_v22, %v467_v18  ;;  %v1037_v31 = vpop.f32.mrb[14].mxu1  ;;  %v470_v32 = vpop.f32.mrb[15].mxu0 }
 0x101   : > { %v961_v20 = vpack.c.bf16 %v633_v11, %v633_v11  ;;  %809 = vst.msk [vmem:[%s1187_s6 + $0x60] sm:$0xf] %vm784_vm3, %v976_v13  ;;  %796 = vst.msk [vmem:[%s1187_s6 + $0x2c] sm:$0xf] %vm784_vm3, %v963_v14  ;;  %v977_v27 = vpack.c.bf16 %v649_v15, %v649_v15  ;;  %v606_v28 = vadd.f32 %v1167_v24, %v567_v16  ;;  %v534_v37 = vpop.f32.mrb[15].mxu1 }
 0x102   : > { %v581_v29 = vmul.f32 %v1162_v22, %v531_v25  ;;  %v568_v30 = vmul.f32 %v1021_v26, %v1162_v22  ;;  %812 = vst.msk [vmem:[%s1187_s6 + $0x6c] sm:$0xf] %vm784_vm3, %v979_v19  ;;  %v622_v33 = vadd.f32 %v1167_v24, %v583_v21  ;;  %v604_v34 = vadd.f32 %v1167_v24, %v565_v23 }
 0x103   : > { %794 = vst.msk [vmem:[%s1187_s6 + $0x24] sm:$0xf] %vm784_vm3, %v961_v20  ;;  %v584_v35 = vmul.f32 %v1037_v31, %v1162_v22  ;;  %v566_v36 = vmul.f32 %v1162_v22, %v470_v32  ;;  %810 = vst.msk [vmem:[%s1187_s6 + $0x64] sm:$0xf] %vm784_vm3, %v977_v27  ;;  %v638_v38 = vmax.f32 %v606_v28, 0.0  ;;  %v582_v41 = vmul.f32 %v1162_v22, %v534_v37 }
 0x104   : > { %v620_v39 = vadd.f32 %v1167_v24, %v581_v29  ;;  %v607_v40 = vadd.f32 %v1167_v24, %v568_v30  ;;  %v654_v42 = vmax.f32 %v622_v33, 0.0  ;;  %v636_v43 = vmax.f32 %v604_v34, 0.0 }
 0x105   : > { %v623_v44 = vadd.f32 %v1167_v24, %v584_v35  ;;  %v605_v45 = vadd.f32 %v1167_v24, %v566_v36  ;;  %v966_v46 = vpack.c.bf16 %v638_v38, %v638_v38  ;;  %v621_v49 = vadd.f32 %v1167_v24, %v582_v41 }
 0x106   : > { %v652_v47 = vmax.f32 %v620_v39, 0.0  ;;  %v639_v48 = vmax.f32 %v607_v40, 0.0  ;;  %v982_v50 = vpack.c.bf16 %v654_v42, %v654_v42  ;;  %v964_v51 = vpack.c.bf16 %v636_v43, %v636_v43 }
 0x107   : > { %v655_v22 = vmax.f32 %v623_v44, 0.0  ;;  %v637_v52 = vmax.f32 %v605_v45, 0.0  ;;  %799 = vst.msk [vmem:[%s1187_s6 + $0x38] sm:$0xf] %vm784_vm3, %v966_v46  ;;  %v653_v55 = vmax.f32 %v621_v49, 0.0 }
 0x108   : > { %v980_v53 = vpack.c.bf16 %v652_v47, %v652_v47  ;;  %v967_v54 = vpack.c.bf16 %v639_v48, %v639_v48  ;;  %815 = vst.msk [vmem:[%s1187_s6 + $0x78] sm:$0xf] %vm784_vm3, %v982_v50  ;;  %797 = vst.msk [vmem:[%s1187_s6 + $0x30] sm:$0xf] %vm784_vm3, %v964_v51 }
 0x109   : > { %v983_v56 = vpack.c.bf16 %v655_v22, %v655_v22  ;;  %v965_v57 = vpack.c.bf16 %v637_v52, %v637_v52  ;;  %v981_v24 = vpack.c.bf16 %v653_v55, %v653_v55 }
 0x10a   : > { %813 = vst.msk [vmem:[%s1187_s6 + $0x70] sm:$0xf] %vm784_vm3, %v980_v53  ;;  %800 = vst.msk [vmem:[%s1187_s6 + $0x3c] sm:$0xf] %vm784_vm3, %v967_v54 }
 0x10b   : > { %816 = vst.msk [vmem:[%s1187_s6 + $0x7c] sm:$0xf] %vm784_vm3, %v983_v56  ;;  %798 = vst.msk [vmem:[%s1187_s6 + $0x34] sm:$0xf] %vm784_vm3, %v965_v57 }
 0x10c   : > { %814 = vst.msk [vmem:[%s1187_s6 + $0x74] sm:$0xf] %vm784_vm3, %v981_v24 }
 0x10d PF: > { %s14_s15 = sadd.s32 1, %s1075_s15  }
 0x10e   : > { %p11_p4 = scmp.ge.s32.totalorder %s14_s15, 4  }
 0x110   :  { %13 = sbr.rel (!%p11_p4) target bundleno = 1 (0x1), region = 66 }

// kernel: _lambda_.11
= control target key start
LH: loop header
LB: loop body
LE: loop exit
PB: predicated region body
PF: predicated region fallthrough
CT: control target
= control target key end

     0   :  { %s569_s6 = smov 0   ;;  %s571_s7 = smov 0   ;;  %s662_s0 = inlined_call_operand.vmem [shape: bf16[3,8,5,256], index: 0, kind: input, shape index: {}]   ;;  %s663_s1 = inlined_call_operand.vmem [shape: bf16[8,4,128], index: 1, kind: output, shape index: {}]  }
   0x1   :  { %s573_s8 = smov 0  }
   0x2 LB: > { %s479_s9 = sadd.s32 4294967295, %s557_s8   ;;  %s586_s10 = sadd.s32 1, %s557_s8   ;;  %s557_s8 = sphi %s573_s8, %s666_s8   ;;  %s553_s7 = sphi %s571_s7, %s665_s7   ;;  %s549_s6 = sphi %s569_s6, %s664_s6  }
   0x3   : > { %s15_s11 = ssub.s32 %s557_s8, %s586_s10  ;;  %s18_s12 = sadd.s32 1, %s553_s7 }
   0x4   : > { %p16_p0 = scmp.eq.s32.totalorder %s15_s11, 0  ;;  %p25_p1 = scmp.ne.s32.totalorder %s553_s7, %s549_s6 }
   0x5   : > { %p26_p2 = scmp.eq.s32.totalorder %s557_s8, 0  ;;  %p482_p4 = scmp.ge.s32.totalorder %s557_s8, 2 }
   0x6   : > { %s595_s13 = scalar_select %p16_p0, %s553_s7, %s18_s12  }
   0x7   : > { %p27_p3 = por %p26_p2, %p25_p1  ;;  %77 = sbr.rel (%p482_p4) target bundleno = 25 (0x19), region = 16 }
   0xe   : > { %80 = sbr.rel (!%p27_p3) target bundleno = 25 (0x19), region = 20  ;;  %s82_s14 = sand.u32 (%p27_p3), 1, %s553_s7  }
   0xf   : > { %s508_s15 = sshll.u32 (%p27_p3), %s557_s8, 5  ;;  %s509_s16 = smul.u32 (%p27_p3), 96, %s82_s14 }
  0x10   : > { %s88_s19 = scalar_lea.vmem (%p27_p3), %s662_s0, %s508_s15 }
  0x11   : > { %v138_v0 = vld [vmem:[%s88_s19] sm:$0xff] (%p27_p3)  ;;  %v140_v1 = vld [vmem:[%s88_s19 + $0x8] sm:$0xff] (%p27_p3)  ;;  %v142_v2 = vld [vmem:[%s88_s19 + $0x10] sm:$0xff] (%p27_p3)  ;;  %s84_s20 = scalar_lea.vmem (%p27_p3), [#allocation2], %s509_s16 }
  0x12   : > { %v144_v3 = vld [vmem:[%s88_s19 + $0x18] sm:$0xff] (%p27_p3)  ;;  %v146_v4 = vld [vmem:[%s88_s19 + $0x40] sm:$0xff] (%p27_p3)  ;;  %v148_v5 = vld [vmem:[%s88_s19 + $0x48] sm:$0xff] (%p27_p3)  ;;  %139 = vst [vmem:[%s84_s20] sm:$0xff] (%p27_p3), %v138_v0 }
  0x13   : > { %141 = vst [vmem:[%s84_s20 + $0x8] sm:$0xff] (%p27_p3), %v140_v1  ;;  %143 = vst [vmem:[%s84_s20 + $0x10] sm:$0xff] (%p27_p3), %v142_v2  ;;  %v150_v6 = vld [vmem:[%s88_s19 + $0x50] sm:$0xff] (%p27_p3)  ;;  %v152_v7 = vld [vmem:[%s88_s19 + $0x58] sm:$0xff] (%p27_p3) }
  0x14   : > { %145 = vst [vmem:[%s84_s20 + $0x18] sm:$0xff] (%p27_p3), %v144_v3  ;;  %147 = vst [vmem:[%s84_s20 + $0x20] sm:$0xff] (%p27_p3), %v146_v4  ;;  %v154_v8 = vld [vmem:[%s88_s19 + $0x80] sm:$0xff] (%p27_p3)  ;;  %v156_v9 = vld [vmem:[%s88_s19 + $0x88] sm:$0xff] (%p27_p3) }
  0x15   : > { %149 = vst [vmem:[%s84_s20 + $0x28] sm:$0xff] %v148_v5  ;;  %151 = vst [vmem:[%s84_s20 + $0x30] sm:$0xff] %v150_v6  ;;  %v158_v10 = vld [vmem:[%s88_s19 + $0x90] sm:$0xff]  ;;  %v160_v11 = vld [vmem:[%s88_s19 + $0x98] sm:$0xff] }
  0x16   : > { %153 = vst [vmem:[%s84_s20 + $0x38] sm:$0xff] %v152_v7  ;;  %155 = vst [vmem:[%s84_s20 + $0x40] sm:$0xff] %v154_v8 }
  0x17   : > { %157 = vst [vmem:[%s84_s20 + $0x48] sm:$0xff] %v156_v9  ;;  %159 = vst [vmem:[%s84_s20 + $0x50] sm:$0xff] %v158_v10 }
  0x18   : > { %161 = vst [vmem:[%s84_s20 + $0x58] sm:$0xff] %v160_v11 }
  0x19 PF: > { %p486_p5 = scmp.ge.s32.totalorder %s557_s8, 1  ;;  %p166_p6 = scmp.lt.s32.totalorder %s557_s8, 3 }
  0x1b   : > { %p167_p7 = pnand %p486_p5, %p166_p6 }
  0x1c   : > { %s173_s21 = sand.u32 (!%p167_p7), 1, %s549_s6   ;;  %s612_s24 = sshll.u32 (!%p167_p7), %s479_s9, 2 }
  0x1d   : > { %170 = sbr.rel (%p167_p7) target bundleno = 72 (0x48), region = 58  ;;  %p194_p8 = scmp.lt.s32.totalorder (!%p167_p7), %s612_s24, 7 }
  0x1e   : > { %s510_s22 = smul.u32 (!%p167_p7), 96, %s173_s21 }
  0x20   : > { %s606_s23 = scalar_lea.vmem (!%p167_p7), [#allocation2], %s510_s22 }
  0x21   : > { %v199_v12 = vld [vmem:[%s606_s23] sm:$0x33] (!%p167_p7)  ;;  %v200_v29 = vld [vmem:[%s606_s23 + $0x8] sm:$0x33] (!%p167_p7)  ;;  %v201_v55 = vld [vmem:[%s606_s23 + $0x10] sm:$0x33] (!%p167_p7) }
  0x22   : > { %v203_v13 = vld [vmem:[%s606_s23] sm:$0x77] (!%p167_p7)  ;;  %v211_v14 = vrot.slane (!%p167_p7), %v199_v12, 4  ;;  %v204_v33 = vld [vmem:[%s606_s23 + $0x8] sm:$0x77] (!%p167_p7)  ;;  %v212_v34 = vrot.slane (!%p167_p7), %v200_v29, 4 }
  0x23   : > { %v224_v15 = vshrl.u32 (!%p167_p7), %v203_v13, 16  ;;  %v227_v16 = vshll.u32 (!%p167_p7), %v203_v13, 16  ;;  %v489_v17 = vld [vmem:[%s606_s23 + $0x20] sm:$0x33] (!%p167_p7)  ;;  %v233_v38 = vshrl.u32 (!%p167_p7), %v204_v33, 16  ;;  %v236_v43 = vshll.u32 (!%p167_p7), %v204_v33, 16 }
  0x24   : > { %v493_v18 = vld [vmem:[%s606_s23 + $0x20] sm:$0x77]  ;;  %v280_v19 = vrot.slane %v489_v17, 4  ;;  %v219_v25 = vmax.bf16 %v211_v14, %v199_v12  ;;  %v490_v39 = vld [vmem:[%s606_s23 + $0x28] sm:$0x33]  ;;  %s668_s24 = smov (!%p194_p8, %s612_s24), 7  ;;  %v220_v51 = vmax.bf16 %v212_v34, %v200_v29 }
  0x25   : > { %v497_v20 = vld [vmem:[%s606_s23 + $0x40] sm:$0x33]  ;;  %v226_v21 = vrot.slane %v224_v15, 4  ;;  %v229_v22 = vrot.slane %v227_v16, 5  ;;  %v293_v23 = vshrl.u32 %v493_v18, 16  ;;  %v296_v26 = vshll.u32 %v493_v18, 16 }
  0x26   : > { %v501_v24 = vld [vmem:[%s606_s23 + $0x40] sm:$0x77]  ;;  %v353_v27 = vrot.slane %v497_v20, 4  ;;  %v288_v35 = vmax.bf16 %v489_v17, %v280_v19  ;;  %v494_v44 = vld [vmem:[%s606_s23 + $0x28] sm:$0x77]  ;;  %v235_v46 = vrot.slane %v233_v38, 4 }
  0x27   : > { %v366_v28 = vshrl.u32 %v501_v24, 16  ;;  %v230_v30 = vor.u32 %v229_v22, %v226_v21  ;;  %v295_v31 = vrot.slane %v293_v23, 4  ;;  %v369_v32 = vshll.u32 %v501_v24, 16  ;;  %v498_v49 = vld [vmem:[%s606_s23 + $0x48] sm:$0x33]  ;;  %s488_s25 = sshll.u32 %s668_s24, 1 }
  0x28   : > { %v298_v36 = vrot.slane %v296_v26, 5  ;;  %v361_v41 = vmax.bf16 %v497_v20, %v353_v27  ;;  %v281_v47 = vrot.slane %v490_v39, 4  ;;  %v302_v48 = vshrl.u32 %v494_v44, 16  ;;  %v502_v54 = vld [vmem:[%s606_s23 + $0x48] sm:$0x77]  ;;  %s639_s28 = scalar_lea.vmem %s663_s1, %s488_s25 }
  0x29   : > { %v368_v37 = vrot.slane %v366_v28, 4  ;;  %v231_v40 = vrot.slane %v230_v30, 4  ;;  %v371_v42 = vrot.slane %v369_v32, 5  ;;  %v238_v52 = vrot.slane %v236_v43, 5  ;;  %v205_v0 = vld [vmem:[%s606_s23 + $0x10] sm:$0x77] }
  0x2a   : > { %v299_v45 = vor.u32 %v298_v36, %v295_v31  ;;  %v305_v53 = vshll.u32 %v494_v44, 16  ;;  %v304_v58 = vrot.slane %v302_v48, 4  ;;  %v354_v59 = vrot.slane %v498_v49, 4  ;;  %v491_v5 = vld [vmem:[%s606_s23 + $0x30] sm:$0x33] }
  0x2b   : > { %v372_v50 = vor.u32 %v371_v42, %v368_v37  ;;  %v263_v56 = vmax.bf16 %v231_v40, %v219_v25  ;;  %v239_v61 = vor.u32 %v238_v52, %v235_v46  ;;  %v375_v63 = vshrl.u32 %v502_v54, 16  ;;  %v495_v10 = vld [vmem:[%s606_s23 + $0x30] sm:$0x77]  ;;  %v202_v29 = vld [vmem:[%s606_s23 + $0x18] sm:$0x33] }
  0x2c   : > { %v300_v57 = vrot.slane %v299_v45, 4  ;;  %v307_v62 = vrot.slane %v305_v53, 5  ;;  %v289_v2 = vmax.bf16 %v490_v39, %v281_v47  ;;  %v378_v3 = vshll.u32 %v502_v54, 16  ;;  %v499_v15 = vld [vmem:[%s606_s23 + $0x50] sm:$0x33] }
  0x2d   : > { %v373_v60 = vrot.slane %v372_v50, 4  ;;  %v213_v4 = vrot.slane %v201_v55, 4  ;;  %v240_v7 = vrot.slane %v239_v61, 4  ;;  %v377_v9 = vrot.slane %v375_v63, 4  ;;  %v503_v20 = vld [vmem:[%s606_s23 + $0x50] sm:$0x77] }
  0x2e   : > { %v332_v1 = vmax.bf16 %v300_v57, %v288_v35  ;;  %v308_v8 = vor.u32 %v307_v62, %v304_v58  ;;  %v362_v12 = vmax.bf16 %v498_v49, %v354_v59  ;;  %v380_v13 = vrot.slane %v378_v3, 5  ;;  %v206_v34 = vld [vmem:[%s606_s23 + $0x18] sm:$0x77] }
  0x2f   : > { %v405_v6 = vmax.bf16 %v373_v60, %v361_v41  ;;  %v242_v14 = vshrl.u32 %v205_v0, 16  ;;  %v264_v16 = vmax.bf16 %v240_v7, %v220_v51  ;;  %v245_v18 = vshll.u32 %v205_v0, 16  ;;  %v492_v43 = vld [vmem:[%s606_s23 + $0x38] sm:$0x33] }
  0x30   : > { %v336_v11 = vmax.bf16 %v332_v1, %v263_v56  ;;  %v309_v17 = vrot.slane %v308_v8, 4  ;;  %v282_v19 = vrot.slane %v491_v5, 4  ;;  %v381_v22 = vor.u32 %v380_v13, %v377_v9  ;;  %v496_v48 = vld [vmem:[%s606_s23 + $0x38] sm:$0x77] }
  0x31   : > { %v244_v23 = vrot.slane %v242_v14, 4  ;;  %v311_v24 = vshrl.u32 %v495_v10, 16  ;;  %v221_v26 = vmax.bf16 %v213_v4, %v201_v55  ;;  %v247_v27 = vrot.slane %v245_v18, 5  ;;  %v500_v53 = vld [vmem:[%s606_s23 + $0x58] sm:$0x33] }
  0x32   : > { %v409_v21 = vmax.bf16 %v405_v6, %v336_v11  ;;  %v333_v25 = vmax.bf16 %v309_v17, %v289_v2  ;;  %v314_v28 = vshll.u32 %v495_v10, 16  ;;  %v382_v30 = vrot.slane %v381_v22, 4  ;;  %v504_v54 = vld [vmem:[%s606_s23 + $0x58] sm:$0x77] }
  0x33   : > { %v313_v31 = vrot.slane %v311_v24, 4  ;;  %v355_v32 = vrot.slane %v499_v15, 4  ;;  %v384_v33 = vshrl.u32 %v503_v20, 16  ;;  %v248_v36 = vor.u32 %v247_v27, %v244_v23 }
  0x34   : > { %413 = vst [vmem:[%s639_s28] sm:$0x3] %v409_v21  ;;  %v337_v35 = vmax.bf16 %v333_v25, %v264_v16  ;;  %v316_v37 = vrot.slane %v314_v28, 5  ;;  %v387_v38 = vshll.u32 %v503_v20, 16  ;;  %v406_v39 = vmax.bf16 %v382_v30, %v362_v12 }
  0x35   : > { %v290_v40 = vmax.bf16 %v491_v5, %v282_v19  ;;  %v386_v41 = vrot.slane %v384_v33, 4  ;;  %v214_v42 = vrot.slane %v202_v29, 4  ;;  %v249_v44 = vrot.slane %v248_v36, 4 }
  0x36   : > { %v317_v45 = vor.u32 %v316_v37, %v313_v31  ;;  %v389_v46 = vrot.slane %v387_v38, 5  ;;  %v251_v47 = vshrl.u32 %v206_v34, 16  ;;  %v410_v49 = vmax.bf16 %v406_v39, %v337_v35 }
  0x37   : > { %v363_v50 = vmax.bf16 %v499_v15, %v355_v32  ;;  %v222_v51 = vmax.bf16 %v214_v42, %v202_v29  ;;  %v254_v52 = vshll.u32 %v206_v34, 16  ;;  %v265_v55 = vmax.bf16 %v249_v44, %v221_v26 }
  0x38   : > { %v318_v56 = vrot.slane %v317_v45, 4  ;;  %v390_v57 = vor.u32 %v389_v46, %v386_v41  ;;  %v253_v58 = vrot.slane %v251_v47, 4  ;;  %414 = vst [vmem:[%s639_s28 + $0x2] sm:$0x3] %v410_v49  ;;  %v283_v60 = vrot.slane %v492_v43, 4 }
  0x39   : > { %v256_v59 = vrot.slane %v254_v52, 5  ;;  %v320_v61 = vshrl.u32 %v496_v48, 16  ;;  %v323_v62 = vshll.u32 %v496_v48, 16  ;;  %v356_v1 = vrot.slane %v500_v53, 4 }
  0x3a   : > { %v334_v63 = vmax.bf16 %v318_v56, %v290_v40  ;;  %v391_v0 = vrot.slane %v390_v57, 4  ;;  %v393_v2 = vshrl.u32 %v504_v54, 16  ;;  %v396_v6 = vshll.u32 %v504_v54, 16 }
  0x3b   : > { %v257_v3 = vor.u32 %v256_v59, %v253_v58  ;;  %v322_v4 = vrot.slane %v320_v61, 4  ;;  %v325_v5 = vrot.slane %v323_v62, 5  ;;  %v291_v11 = vmax.bf16 %v492_v43, %v283_v60 }
  0x3c   : > { %v338_v7 = vmax.bf16 %v334_v63, %v265_v55  ;;  %v407_v8 = vmax.bf16 %v391_v0, %v363_v50  ;;  %v395_v9 = vrot.slane %v393_v2, 4  ;;  %v398_v13 = vrot.slane %v396_v6, 5 }
  0x3d   : > { %v258_v10 = vrot.slane %v257_v3, 4  ;;  %v326_v12 = vor.u32 %v325_v5, %v322_v4  ;;  %v364_v17 = vmax.bf16 %v500_v53, %v356_v1 }
  0x3e   : > { %v411_v14 = vmax.bf16 %v407_v8, %v338_v7  ;;  %v399_v18 = vor.u32 %v398_v13, %v395_v9 }
  0x3f   : > { %v266_v15 = vmax.bf16 %v258_v10, %v222_v51  ;;  %v327_v16 = vrot.slane %v326_v12, 4 }
  0x40   : > { %415 = vst [vmem:[%s639_s28 + $0x4] sm:$0x3] %v411_v14  ;;  %v400_v20 = vrot.slane %v399_v18, 4 }
  0x41   : > { %v335_v19 = vmax.bf16 %v327_v16, %v291_v11 }
  0x42   : > { %v408_v22 = vmax.bf16 %v400_v20, %v364_v17 }
  0x43   : > { %v339_v21 = vmax.bf16 %v335_v19, %v266_v15 }
  0x45   : > { %v412_v23 = vmax.bf16 %v408_v22, %v339_v21 }
  0x47   : > { %416 = vst [vmem:[%s639_s28 + $0x6] sm:$0x3] %v412_v23 }
  0x48 PF: > { %p8_p9 = scmp.ge.s32.totalorder %s586_s10, 4   ;;  %s664_s6 = smov %s553_s7 }
  0x49   : > { %s665_s7 = smov %s595_s13  ;;  %s666_s8 = smov %s586_s10 }
  0x4a   :  { %10 = sbr.rel (!%p8_p9) target bundleno = 2 (0x2), region = 99 }

// kernel: _lambda_.10
= control target key start
LH: loop header
LB: loop body
LE: loop exit
PB: predicated region body
PF: predicated region fallthrough
CT: control target
= control target key end

     0   :  { %s3656_s24 = smov 0   ;;  %s4249_s0 = inlined_call_operand.vmem [shape: bf16[2,512,64], index: 0, kind: input, shape index: {}]   ;;  %s4250_s1 = inlined_call_operand.vmem [shape: bf16[5,64,64], index: 1, kind: input, shape index: {}]   ;;  %s4251_s2 = inlined_call_operand.vmem [shape: f32[1,64], index: 2, kind: input, shape index: {}]   ;;  %s4252_s3 = inlined_call_operand.vmem [shape: f32[1,64], index: 3, kind: input, shape index: {}]   ;;  %s4253_s4 = inlined_call_operand.vmem [shape: bf16[64,32], index: 4, kind: input, shape index: {}]   ;;  %s4254_s5 = inlined_call_operand.vmem [shape: f32[1,32], index: 5, kind: input, shape index: {}]   ;;  %s4255_s6 = inlined_call_operand.vmem [shape: f32[1,32], index: 6, kind: input, shape index: {}]   ;;  %s4256_s7 = inlined_call_operand.vmem [shape: bf16[2,256,32], index: 7, kind: output, shape index: {}]  }
   0x1 LB: > { %s2719_s25 = sadd.s32 4294967295, %s3614_s24   ;;  %p2723_p0 = scmp.ge.s32.totalorder %s3614_s24, 1  ;;  %s3614_s24 = sphi %s3656_s24, %s17_s24  }
   0x2   : > { %p237_p1 = scmp.lt.s32.totalorder %s3614_s24, 3 }
   0x4   : > { %p238_p2 = pnand %p2723_p0, %p237_p1 }
   0x5   : > { %v3516_v0 = vld [vmem:[%s4250_s1 + $0x20] sm:$0xff] (!%p238_p2)   ;;  %p269_p3 = scmp.lt.s32.totalorder (!%p238_p2), %s2719_s25, 1  ;;  %v3518_v2 = vld [vmem:[%s4250_s1 + $0x28] sm:$0xff] (!%p238_p2)   ;;  %v3520_v4 = vld [vmem:[%s4250_s1 + $0x30] sm:$0xff] (!%p238_p2)   ;;  %vm441_vm0 = vcmask (!%p238_p2), 523264   ;;  %vm2631_vm1 = vcmask (!%p238_p2), 257024  }
   0x6   : > { %241 = sbr.rel (%p238_p2) target bundleno = 657 (0x291), region = 48  ;;  %v3517_v1 = vld [vmem:[%s4250_s1 + $0x40] sm:$0xff] (!%p238_p2)   ;;  %3140 = vmatprep.subr.bf16.mxu1 (!%p238_p2), %v3516_v0  ;;  %v3519_v3 = vld [vmem:[%s4250_s1 + $0x48] sm:$0xff] (!%p238_p2)   ;;  %v3521_v5 = vld [vmem:[%s4250_s1 + $0x50] sm:$0xff] (!%p238_p2)  }
   0x7   : > { %3220 = vmatprep.subr.bf16.mxu0 (!%p238_p2), %v3517_v1  ;;  %3141 = vmatpush3.bf16.msra.mxu1 (!%p238_p2), %v3516_v0  ;;  %v3522_v6 = vld [vmem:[%s4250_s1 + $0x38] sm:$0xff] (!%p238_p2)   ;;  %v3528_v11 = vld [vmem:[%s4250_s1 + $0x60] sm:$0xff] (!%p238_p2)   ;;  %v3537_v16 = vld [vmem:[%s4250_s1 + $0x68] sm:$0xff] (!%p238_p2)  }
   0x8   : > { %3221 = vmatpush3.bf16.msra.mxu0 (!%p238_p2), %v3517_v1  ;;  %3142 = vmatprep.subr.bf16.mxu1 (!%p238_p2), %v3518_v2  ;;  %v3523_v7 = vld [vmem:[%s4250_s1 + $0x58] sm:$0xff] (!%p238_p2)   ;;  %v3546_v22 = vld [vmem:[%s4250_s1 + $0x70] sm:$0xff] (!%p238_p2)   ;;  %v3554_v28 = vld [vmem:[%s4250_s1] sm:$0xff] (!%p238_p2)  }
   0x9   : > { %3222 = vmatprep.subr.bf16.mxu0 (!%p238_p2), %v3519_v3  ;;  %v3556_v30 = vld [vmem:[%s4250_s1 + $0x78] sm:$0xff] (!%p238_p2)   ;;  %v3557_v31 = vld [vmem:[%s4250_s1 + $0x8] sm:$0xff] (!%p238_p2)   ;;  %v3561_v33 = vld [vmem:[%s4250_s1 + $0x10] sm:$0xff] (!%p238_p2)  }
   0xa   : > { %v3563_v37 = vld [vmem:[%s4250_s1 + $0x18] sm:$0xff] (!%p238_p2)   ;;  %v3568_v38 = vld [vmem:[%s4250_s1 + $0x80] sm:$0xff] (!%p238_p2)   ;;  %v3575_v55 = vld [vmem:[%s4250_s1 + $0x88] sm:$0xff] (!%p238_p2)  }
   0xb   : > { %3143 = vmatpush3.bf16.msra.mxu1 (!%p238_p2), %v3518_v2  ;;  %v3580_v58 = vld [vmem:[%s4250_s1 + $0x90] sm:$0xff] (!%p238_p2)   ;;  %v3585_v60 = vld [vmem:[%s4250_s1 + $0x98] sm:$0xff] (!%p238_p2)  }
   0xc   : > { %3223 = vmatpush3.bf16.msra.mxu0 (!%p238_p2), %v3519_v3  ;;  %3144 = vmatprep.subr.bf16.mxu1 (!%p238_p2), %v3520_v4 }
   0xd   : > { %s4258_s25 = smov (!%p269_p3, %s2719_s25), 1  ;;  %3224 = vmatprep.subr.bf16.mxu0 %v3521_v5 }
   0xe   : > { %s2986_s13 = sshll.u32 %s4258_s25, 8  ;;  %s2987_s22 = sshll.u32 %s4258_s25, 7 }
   0xf   : > { %s3688_s18 = scalar_lea.vmem %s4249_s0, %s2986_s13  ;;  %3145 = vmatpush3.bf16.msra.mxu1 %v3520_v4  ;;  %s4123_s27 = scalar_lea.vmem %s4256_s7, %s2987_s22 }
  0x10   : > { %v3697_v8 = vld [vmem:[%s3688_s18 + $0x20] sm:$0xff]   ;;  %3225 = vmatpush3.bf16.msra.mxu0 %v3521_v5  ;;  %3146 = vmatprep.subr.bf16.mxu1 %v3522_v6  ;;  %v3704_v10 = vld [vmem:[%s3688_s18 + $0x28] sm:$0xff]   ;;  %v3711_v13 = vld [vmem:[%s3688_s18 + $0x30] sm:$0xff]  }
  0x11   : > { %v3525_v9 = vld [vmem:[%s3688_s18 + $0x40] sm:$0xff]   ;;  %3148 = vmatprep.mubr.msk.bf16.mxu1 %vm441_vm0, %v3697_v8  ;;  %3226 = vmatprep.subr.bf16.mxu0 %v3523_v7  ;;  %v3527_v12 = vld [vmem:[%s3688_s18 + $0x48] sm:$0xff]   ;;  %v3530_v14 = vld [vmem:[%s3688_s18 + $0x50] sm:$0xff]  }
  0x12   : > { %3228 = vmatprep.mubr.msk.bf16.mxu0 %vm441_vm0, %v3525_v9  ;;  %v3721_v15 = vld [vmem:[%s3688_s18 + $0x38] sm:$0xff]   ;;  %v3728_v18 = vld [vmem:[%s3688_s18 + $0x40] sm:$0xff]   ;;  %v3738_v20 = vld [vmem:[%s3688_s18 + $0x48] sm:$0xff]  }
  0x13   : > { %3147 = vmatpush3.bf16.msra.mxu1 %v3522_v6  ;;  %v3532_v17 = vld [vmem:[%s3688_s18 + $0x58] sm:$0xff]   ;;  %v3534_v19 = vld [vmem:[%s3688_s18 + $0x60] sm:$0xff]   ;;  %v3536_v21 = vld [vmem:[%s3688_s18 + $0x68] sm:$0xff]  }
  0x14   : > { %3227 = vmatpush3.bf16.msra.mxu0 %v3523_v7  ;;  %v3745_v23 = vld [vmem:[%s3688_s18 + $0x50] sm:$0xff]   ;;  %v3755_v25 = vld [vmem:[%s3688_s18 + $0x58] sm:$0xff]   ;;  %v3759_v27 = vld [vmem:[%s3688_s18 + $0x60] sm:$0xff]   ;;  %3180 = vmatprep.subr.bf16.mxu1 %v3554_v28 }
  0x15   : > { %3260 = vmatprep.subr.bf16.mxu0 %v3528_v11  ;;  %v3539_v24 = vld [vmem:[%s3688_s18 + $0x70] sm:$0xff]   ;;  %v3541_v26 = vld [vmem:[%s3688_s18 + $0x78] sm:$0xff]   ;;  %v3543_v29 = vld [vmem:[%s3688_s18 + $0x80] sm:$0xff]  }
  0x16   : > { %3149 = vmatmul.mubr.msk.bf16.vlgmr.msra.gmra.mrb[0].mxu1 %vm441_vm0, %v3704_v10  ;;  %v3778_v32 = vld [vmem:[%s3688_s18 + $0x68] sm:$0xff]   ;;  %v3785_v35 = vld [vmem:[%s3688_s18 + $0x70] sm:$0xff]   ;;  %v3801_v39 = vld [vmem:[%s3688_s18 + $0x78] sm:$0xff]  }
  0x17   : > { %3229 = vmatmul.mubr.msk.bf16.vlgmr.msra.gmra.mrb[0].mxu0 %vm441_vm0, %v3527_v12  ;;  %3152 = vmatprep.mubr.msk.bf16.mxu1 %vm441_vm0, %v3711_v13  ;;  %v3545_v34 = vld [vmem:[%s3688_s18 + $0x88] sm:$0xff]   ;;  %v3548_v36 = vld [vmem:[%s3688_s18 + $0x90] sm:$0xff]   ;;  %v3550_v40 = vld [vmem:[%s3688_s18 + $0x98] sm:$0xff]  }
  0x18   : > { %3261 = vmatpush3.bf16.msra.mxu0 %v3528_v11  ;;  %3232 = vmatprep.mubr.msk.bf16.mxu0 %vm441_vm0, %v3530_v14  ;;  %v3551_v41 = vld [vmem:[%s3688_s18 + $0x80] sm:$0xff]   ;;  %v3553_v43 = vld [vmem:[%s3688_s18 + $0x88] sm:$0xff]   ;;  %v3558_v45 = vld [vmem:[%s3688_s18 + $0x90] sm:$0xff]  }
  0x19   : > { %3262 = vmatprep.subr.bf16.mxu0 %v3537_v16  ;;  %3181 = vmatpush3.bf16.msra.mxu1 %v3554_v28  ;;  %v3552_v42 = vld [vmem:[%s3688_s18 + $0xa0] sm:$0xff]   ;;  %v3555_v44 = vld [vmem:[%s3688_s18 + $0xa8] sm:$0xff]   ;;  %v3559_v46 = vld [vmem:[%s3688_s18 + $0xb0] sm:$0xff]  }
  0x1a   : > { %3182 = vmatprep.subr.bf16.mxu1 %v3557_v31  ;;  %v3560_v47 = vld [vmem:[%s3688_s18 + $0x98] sm:$0xff]   ;;  %v3564_v49 = vld [vmem:[%s3688_s18] sm:$0xff]   ;;  %v3566_v51 = vld [vmem:[%s3688_s18 + $0x8] sm:$0xff]  }
  0x1b   : > { %v3562_v48 = vld [vmem:[%s3688_s18 + $0xb8] sm:$0xff]   ;;  %v3565_v50 = vld [vmem:[%s3688_s18 + $0x60] sm:$0xff]   ;;  %v3567_v52 = vld [vmem:[%s3688_s18 + $0x68] sm:$0xff]  }
  0x1c   : > { %3263 = vmatpush3.bf16.msra.mxu0 %v3537_v16  ;;  %v3569_v53 = vld [vmem:[%s3688_s18 + $0x10] sm:$0xff]   ;;  %v3571_v56 = vld [vmem:[%s3688_s18 + $0x18] sm:$0xff]   ;;  %v3573_v59 = vld [vmem:[%s3688_s18 + $0x80] sm:$0xff]  }
  0x1d   : > { %3264 = vmatprep.subr.bf16.mxu0 %v3546_v22  ;;  %3183 = vmatpush3.bf16.msra.mxu1 %v3557_v31  ;;  %v3570_v54 = vld [vmem:[%s3688_s18 + $0x70] sm:$0xff]   ;;  %v3572_v57 = vld [vmem:[%s3688_s18 + $0x78] sm:$0xff]   ;;  %v3574_v61 = vld [vmem:[%s3688_s18 + $0x88] sm:$0xff]  }
  0x1e   : > { %3153 = vmatmul.mubr.msk.bf16.gmra.mrb[4].mxu1 %vm441_vm0, %v3721_v15  ;;  %3184 = vmatprep.subr.bf16.mxu1 %v3561_v33  ;;  %v3576_v62 = vld [vmem:[%s3688_s18 + $0x90] sm:$0xff]   ;;  %v3577_v63 = vld [vmem:[%s3688_s18 + $0x98] sm:$0xff]   ;;  %v3578_v0 = vld [vmem:[%s3688_s18 + $0xa0] sm:$0xff]  }
  0x1f   : > { %3233 = vmatmul.mubr.msk.bf16.gmra.mrb[4].mxu0 %vm441_vm0, %v3532_v17  ;;  %3156 = vmatprep.mubr.msk.bf16.mxu1 %vm441_vm0, %v3728_v18  ;;  %v3579_v1 = vld [vmem:[%s3688_s18 + $0xa8] sm:$0xff]   ;;  %v3581_v2 = vld [vmem:[%s3688_s18 + $0xb0] sm:$0xff]   ;;  %v3582_v3 = vld [vmem:[%s3688_s18 + $0xb8] sm:$0xff]  }
  0x20   : > { %3236 = vmatprep.mubr.msk.bf16.mxu0 %vm441_vm0, %v3534_v19  ;;  %3265 = vmatpush3.bf16.msra.mxu0 %v3546_v22  ;;  %v3583_v4 = vld [vmem:[%s3688_s18 + $0xc0] sm:$0xff]   ;;  %v3584_v5 = vld [vmem:[%s3688_s18 + $0xc8] sm:$0xff]   ;;  %v3586_v6 = vld [vmem:[%s3688_s18 + $0xd0] sm:$0xff]  }
  0x21   : > { %3266 = vmatprep.subr.bf16.mxu0 %v3556_v30  ;;  %3185 = vmatpush3.bf16.msra.mxu1 %v3561_v33  ;;  %v3587_v7 = vld [vmem:[%s3688_s18 + $0xd8] sm:$0xff]   ;;  %v3589_v9 = vld [vmem:[%s3688_s18 + $0x88] sm:$0xff]   ;;  %v3592_v12 = vld [vmem:[%s3688_s18 + $0xa0] sm:$0xff]  }
  0x22   : > { %3186 = vmatprep.subr.bf16.mxu1 %v3563_v37  ;;  %v3591_v11 = vld [vmem:[%s3688_s18 + $0x98] sm:$0xff]   ;;  %v3594_v14 = vld [vmem:[%s3688_s18 + $0xb0] sm:$0xff]   ;;  %v3596_v16 = vld [vmem:[%s3688_s18 + $0xc0] sm:$0xff]  }
  0x23   : > { %v3597_v17 = vld [vmem:[%s3688_s18 + $0xc8] sm:$0xff]   ;;  %v3604_v19 = vld [vmem:[%s4253_s4] sm:$0xff]  }
  0x24   : > { %3267 = vmatpush3.bf16.msra.mxu0 %v3556_v30  ;;  %v3601_v22 = vld [vmem:[%s3688_s18 + $0xe8] sm:$0xff]  }
  0x25   : > { %3300 = vmatprep.subr.bf16.mxu0 %v3568_v38  ;;  %3187 = vmatpush3.bf16.msra.mxu1 %v3563_v37 }
  0x26   : > { %3157 = vmatmul.mubr.msk.bf16.gmra.mrb[8].mxu1 %vm441_vm0, %v3738_v20  ;;  %3340 = vmatprep.subr.bf16.mxu1 %v3604_v19 }
  0x27   : > { %3237 = vmatmul.mubr.msk.bf16.gmra.mrb[8].mxu0 %vm441_vm0, %v3536_v21  ;;  %3160 = vmatprep.mubr.msk.bf16.mxu1 %vm441_vm0, %v3745_v23  ;;  %v3600_v21 = vld [vmem:[%s3688_s18 + $0xe0] sm:$0xff]  }
  0x28   : > { %3240 = vmatprep.mubr.msk.bf16.mxu0 %vm441_vm0, %v3539_v24  ;;  %v3605_v24 = vld [vmem:[%s4253_s4 + $0x8] sm:$0xff]  }
  0x2e   : > { %3161 = vmatmul.mubr.msk.bf16.gmra.mrb[12].mxu1 %vm441_vm0, %v3755_v25 }
  0x2f   : > { %3241 = vmatmul.mubr.msk.bf16.gmra.mrb[12].mxu0 %vm441_vm0, %v3541_v26  ;;  %3164 = vmatprep.mubr.msk.bf16.mxu1 %vm441_vm0, %v3759_v27  ;;  %v3606_v26 = vld [vmem:[%s4253_s4 + $0x10] sm:$0xff]  }
  0x30   : > { %3244 = vmatprep.mubr.msk.bf16.mxu0 %vm441_vm0, %v3543_v29 }
  0x36   : > { %3165 = vmatmul.mubr.msk.bf16.gmra.mrb[16].mxu1 %vm441_vm0, %v3778_v32 }
  0x37   : > { %3245 = vmatmul.mubr.msk.bf16.gmra.mrb[16].mxu0 %vm441_vm0, %v3545_v34  ;;  %3168 = vmatprep.mubr.msk.bf16.mxu1 %vm441_vm0, %v3785_v35 }
  0x38   : > { %3248 = vmatprep.mubr.msk.bf16.mxu0 %vm441_vm0, %v3548_v36 }
  0x3e   : > { %3169 = vmatmul.mubr.msk.bf16.gmra.mrb[20].mxu1 %vm441_vm0, %v3801_v39 }
  0x3f   : > { %3249 = vmatmul.mubr.msk.bf16.gmra.mrb[20].mxu0 %vm441_vm0, %v3550_v40  ;;  %3172 = vmatprep.mubr.msk.bf16.mxu1 %vm441_vm0, %v3551_v41 }
  0x40   : > { %3252 = vmatprep.mubr.msk.bf16.mxu0 %vm441_vm0, %v3552_v42 }
  0x46   : > { %3173 = vmatmul.mubr.msk.bf16.gmra.mrb[24].mxu1 %vm441_vm0, %v3553_v43 }
  0x47   : > { %3253 = vmatmul.mubr.msk.bf16.gmra.mrb[24].mxu0 %vm441_vm0, %v3555_v44  ;;  %3176 = vmatprep.mubr.msk.bf16.mxu1 %vm441_vm0, %v3558_v45 }
  0x48   : > { %3256 = vmatprep.mubr.msk.bf16.mxu0 %vm441_vm0, %v3559_v46 }
  0x4e   : > { %3177 = vmatmul.mubr.msk.bf16.gmra.mrb[28].mxu1 %vm441_vm0, %v3560_v47 }
  0x4f   : > { %3257 = vmatmul.mubr.msk.bf16.gmra.mrb[28].mxu0 %vm441_vm0, %v3562_v48  ;;  %3188 = vmatprep.mubr.msk.bf16.mxu1 %vm441_vm0, %v3564_v49 }
  0x50   : > { %3268 = vmatprep.mubr.msk.bf16.mxu0 %vm441_vm0, %v3565_v50 }
  0x56   : > { %3189 = vmatmul.mubr.msk.bf16.vlgmr.msra.gmra.mrb[0].mxu1 %vm441_vm0, %v3566_v51 }
  0x57   : > { %3269 = vmatmul.mubr.msk.bf16.vlgmr.msra.gmra.mrb[0].mxu0 %vm441_vm0, %v3567_v52  ;;  %3192 = vmatprep.mubr.msk.bf16.mxu1 %vm441_vm0, %v3569_v53 }
  0x58   : > { %3301 = vmatpush3.bf16.msra.mxu0 %v3568_v38  ;;  %3272 = vmatprep.mubr.msk.bf16.mxu0 %vm441_vm0, %v3570_v54 }
  0x59   : > { %3302 = vmatprep.subr.bf16.mxu0 %v3575_v55  ;;  %3341 = vmatpush3.bf16.msra.mxu1 %v3604_v19 }
  0x5a   : > { %3342 = vmatprep.subr.bf16.mxu1 %v3605_v24 }
  0x5c   : > { %3303 = vmatpush3.bf16.msra.mxu0 %v3575_v55 }
  0x5d   : > { %3304 = vmatprep.subr.bf16.mxu0 %v3580_v58  ;;  %3343 = vmatpush3.bf16.msra.mxu1 %v3605_v24 }
  0x5e   : > { %3193 = vmatmul.mubr.msk.bf16.gmra.mrb[4].mxu1 %vm441_vm0, %v3571_v56  ;;  %3344 = vmatprep.subr.bf16.mxu1 %v3606_v26 }
  0x5f   : > { %3273 = vmatmul.mubr.msk.bf16.gmra.mrb[4].mxu0 %vm441_vm0, %v3572_v57  ;;  %3196 = vmatprep.mubr.msk.bf16.mxu1 %vm441_vm0, %v3697_v8  ;;  %v3588_v8 = vld [vmem:[%s3688_s18 + $0x80] sm:$0xff]  }
  0x60   : > { %3276 = vmatprep.mubr.msk.bf16.mxu0 %vm441_vm0, %v3573_v59  ;;  %3305 = vmatpush3.bf16.msra.mxu0 %v3580_v58 }
  0x61   : > { %3306 = vmatprep.subr.bf16.mxu0 %v3585_v60  ;;  %3345 = vmatpush3.bf16.msra.mxu1 %v3606_v26 }
  0x64   : > { %3307 = vmatpush3.bf16.msra.mxu0 %v3585_v60 }
  0x66   : > { %3197 = vmatmul.mubr.msk.bf16.gmra.mrb[8].mxu1 %vm441_vm0, %v3704_v10  ;;  %v3590_v10 = vld [vmem:[%s3688_s18 + $0x90] sm:$0xff]  }
  0x67   : > { %3277 = vmatmul.mubr.msk.bf16.gmra.mrb[8].mxu0 %vm441_vm0, %v3574_v61  ;;  %3200 = vmatprep.mubr.msk.bf16.mxu1 %vm441_vm0, %v3711_v13  ;;  %v3593_v13 = vld [vmem:[%s3688_s18 + $0xa8] sm:$0xff]   ;;  %v3991_v61 = vld [vmem:[%s4251_s2] ss:$0 sm:$0xff] }
  0x68   : > { %3280 = vmatprep.mubr.msk.bf16.mxu0 %vm441_vm0, %v3576_v62 }
  0x6e   : > { %3201 = vmatmul.mubr.msk.bf16.gmra.mrb[12].mxu1 %vm441_vm0, %v3721_v15  ;;  %v3595_v15 = vld [vmem:[%s3688_s18 + $0xb8] sm:$0xff]  }
  0x6f   : > { %3281 = vmatmul.mubr.msk.bf16.gmra.mrb[12].mxu0 %vm441_vm0, %v3577_v63  ;;  %3204 = vmatprep.mubr.msk.bf16.mxu1 %vm441_vm0, %v3728_v18  ;;  %v3598_v18 = vld [vmem:[%s3688_s18 + $0xd0] sm:$0xff]  }
  0x70   : > { %3284 = vmatprep.mubr.msk.bf16.mxu0 %vm441_vm0, %v3578_v0  ;;  %v3996_v0 = vld [vmem:[%s4252_s3] ss:$0 sm:$0xff] }
  0x76   : > { %3205 = vmatmul.mubr.msk.bf16.gmra.mrb[16].mxu1 %vm441_vm0, %v3738_v20  ;;  %v3599_v20 = vld [vmem:[%s3688_s18 + $0xd8] sm:$0xff]  }
  0x77   : > { %3285 = vmatmul.mubr.msk.bf16.gmra.mrb[16].mxu0 %vm441_vm0, %v3579_v1  ;;  %3208 = vmatprep.mubr.msk.bf16.mxu1 %vm441_vm0, %v3745_v23  ;;  %v3602_v23 = vld [vmem:[%s3688_s18 + $0xf0] sm:$0xff]  }
  0x78   : > { %3288 = vmatprep.mubr.msk.bf16.mxu0 %vm441_vm0, %v3581_v2 }
  0x7e   : > { %3209 = vmatmul.mubr.msk.bf16.gmra.mrb[20].mxu1 %vm441_vm0, %v3755_v25  ;;  %v3603_v25 = vld [vmem:[%s3688_s18 + $0xf8] sm:$0xff]  }
  0x7f   : > { %3289 = vmatmul.mubr.msk.bf16.gmra.mrb[20].mxu0 %vm441_vm0, %v3582_v3  ;;  %3212 = vmatprep.mubr.msk.bf16.mxu1 %vm441_vm0, %v3759_v27  ;;  %v3607_v27 = vld [vmem:[%s4253_s4 + $0x18] sm:$0xff]  }
  0x80   : > { %3292 = vmatprep.mubr.msk.bf16.mxu0 %vm441_vm0, %v3583_v4  ;;  %3346 = vmatprep.subr.bf16.mxu1 %v3607_v27 }
  0x81   : > { %3347 = vmatpush3.bf16.msra.mxu1 %v3607_v27 }
  0x86   : > { %3213 = vmatmul.mubr.msk.bf16.gmra.mrb[24].mxu1 %vm441_vm0, %v3778_v32 }
  0x87   : > { %3293 = vmatmul.mubr.msk.bf16.gmra.mrb[24].mxu0 %vm441_vm0, %v3584_v5  ;;  %3216 = vmatprep.mubr.msk.bf16.mxu1 %vm441_vm0, %v3785_v35 }
  0x88   : > { %3296 = vmatprep.mubr.msk.bf16.mxu0 %vm441_vm0, %v3586_v6 }
  0x8e   : > { %3217 = vmatmul.mubr.msk.bf16.gmra.mrb[28].mxu1 %vm441_vm0, %v3801_v39 }
  0x8f   : > { %3297 = vmatmul.mubr.msk.bf16.gmra.mrb[28].mxu0 %vm441_vm0, %v3587_v7 }
  0x90   : > { %3308 = vmatprep.mubr.msk.bf16.mxu0 %vm441_vm0, %v3588_v8 }
  0x97   : > { %3309 = vmatmul.mubr.msk.bf16.vlgmr.msra.gmra.mrb[0].mxu0 %vm441_vm0, %v3589_v9 }
  0x98   : > { %3312 = vmatprep.mubr.msk.bf16.mxu0 %vm441_vm0, %v3590_v10 }
  0x9f   : > { %3313 = vmatmul.mubr.msk.bf16.gmra.mrb[4].mxu0 %vm441_vm0, %v3591_v11 }
  0xa0   : > { %3316 = vmatprep.mubr.msk.bf16.mxu0 %vm441_vm0, %v3592_v12 }
  0xa7   : > { %3317 = vmatmul.mubr.msk.bf16.gmra.mrb[8].mxu0 %vm441_vm0, %v3593_v13 }
  0xa8   : > { %3320 = vmatprep.mubr.msk.bf16.mxu0 %vm441_vm0, %v3594_v14 }
  0xaf   : > { %3321 = vmatmul.mubr.msk.bf16.gmra.mrb[12].mxu0 %vm441_vm0, %v3595_v15 }
  0xb0   : > { %3324 = vmatprep.mubr.msk.bf16.mxu0 %vm441_vm0, %v3596_v16 }
  0xb7   : > { %3325 = vmatmul.mubr.msk.bf16.gmra.mrb[16].mxu0 %vm441_vm0, %v3597_v17 }
  0xb8   : > { %3328 = vmatprep.mubr.msk.bf16.mxu0 %vm441_vm0, %v3598_v18 }
  0xbf   : > { %3329 = vmatmul.mubr.msk.bf16.gmra.mrb[20].mxu0 %vm441_vm0, %v3599_v20 }
  0xc0   : > { %3332 = vmatprep.mubr.msk.bf16.mxu0 %vm441_vm0, %v3600_v21 }
  0xc7   : > { %3333 = vmatmul.mubr.msk.bf16.gmra.mrb[24].mxu0 %vm441_vm0, %v3601_v22 }
  0xc8   : > { %3336 = vmatprep.mubr.msk.bf16.mxu0 %vm441_vm0, %v3602_v23 }
  0xcf   : > { %3337 = vmatmul.mubr.msk.bf16.gmra.mrb[28].mxu0 %vm441_vm0, %v3603_v25 }
 0x129   : > { %v3190_v28 = vpop.f32.mrb[0].mxu1 }
 0x12a   : > { %v741_v29 = vpop.f32.mrb[1].mxu1 }
 0x12b   : > { %v3191_v30 = vpop.f32.mrb[2].mxu1 }
 0x12c   : > { %v744_v31 = vpop.f32.mrb[3].mxu1 }
 0x131   : > { %v3194_v32 = vpop.f32.mrb[4].mxu1 }
 0x132   : > { %v757_v33 = vpop.f32.mrb[5].mxu1 }
 0x133   : > { %v3195_v34 = vpop.f32.mrb[6].mxu1 }
 0x134   : > { %v760_v35 = vpop.f32.mrb[7].mxu1 }
 0x139   : > { %v3940_v36 = vpop.f32.mrb[8].mxu1 }
 0x13a   : > { %v3942_v37 = vpop.f32.mrb[9].mxu1 }
 0x13b   : > { %v3944_v38 = vpop.f32.mrb[10].mxu1 }
 0x13c   : > { %v3946_v39 = vpop.f32.mrb[11].mxu1 }
 0x141   : > { %v3948_v40 = vpop.f32.mrb[12].mxu1 }
 0x142   : > { %v3950_v41 = vpop.f32.mrb[13].mxu1 }
 0x143   : > { %v3952_v42 = vpop.f32.mrb[14].mxu1 }
 0x144   : > { %v3954_v43 = vpop.f32.mrb[15].mxu1 }
 0x149   : > { %v3956_v44 = vpop.f32.mrb[16].mxu1 }
 0x14a   : > { %v3958_v45 = vpop.f32.mrb[17].mxu1 }
 0x14b   : > { %v3960_v46 = vpop.f32.mrb[18].mxu1 }
 0x14c   : > { %v3962_v47 = vpop.f32.mrb[19].mxu1 }
 0x151   : > { %v3964_v48 = vpop.f32.mrb[20].mxu1 }
 0x152   : > { %v3966_v49 = vpop.f32.mrb[21].mxu1 }
 0x153   : > { %v3968_v50 = vpop.f32.mrb[22].mxu1 }
 0x154   : > { %v3970_v51 = vpop.f32.mrb[23].mxu1 }
 0x159   : > { %v3972_v52 = vpop.f32.mrb[24].mxu1 }
 0x15a   : > { %v3974_v53 = vpop.f32.mrb[25].mxu1 }
 0x15b   : > { %v3976_v54 = vpop.f32.mrb[26].mxu1 }
 0x15c   : > { %v3978_v55 = vpop.f32.mrb[27].mxu1 }
 0x161   : > { %v3980_v56 = vpop.f32.mrb[28].mxu1 }
 0x162   : > { %v3982_v57 = vpop.f32.mrb[29].mxu1 }
 0x163   : > { %v3984_v58 = vpop.f32.mrb[30].mxu1 }
 0x164   : > { %v3986_v59 = vpop.f32.mrb[31].mxu1 }
 0x16a   : > { %v3310_v60 = vpop.f32.mrb[0].mxu0 }
 0x16b   : > { %v3380_v62 = vadd.f32 %v3310_v60, %v3190_v28  ;;  %v1867_v63 = vpop.f32.mrb[1].mxu0 }
 0x16c   : > { %v3381_v1 = vadd.f32 %v1867_v63, %v741_v29  ;;  %v3311_v2 = vpop.f32.mrb[2].mxu0 }
 0x16d   : > { %v2035_v3 = vmul.f32 %v3380_v62, %v3991_v61  ;;  %v3382_v4 = vadd.f32 %v3311_v2, %v3191_v30  ;;  %v1870_v5 = vpop.f32.mrb[3].mxu0 }
 0x16e   : > { %v2033_v6 = vmul.f32 %v3381_v1, %v3991_v61  ;;  %v3383_v7 = vadd.f32 %v1870_v5, %v744_v31 }
 0x16f   : > { %v2074_v8 = vadd.f32 %v3996_v0, %v2035_v3  ;;  %v2036_v9 = vmul.f32 %v3382_v4, %v3991_v61 }
 0x170   : > { %v2072_v10 = vadd.f32 %v3996_v0, %v2033_v6  ;;  %v2034_v11 = vmul.f32 %v3383_v7, %v3991_v61 }
 0x171   : > { %v2075_v12 = vadd.f32 %v3996_v0, %v2036_v9  ;;  %v2106_v15 = vmax.f32 %v2074_v8, 0.0 }
 0x172   : > { %v2073_v13 = vadd.f32 %v3996_v0, %v2034_v11  ;;  %v3314_v14 = vpop.f32.mrb[4].mxu0  ;;  %v2104_v19 = vmax.f32 %v2072_v10, 0.0 }
 0x173   : > { %v2107_v16 = vmax.f32 %v2075_v12, 0.0  ;;  %v3384_v17 = vadd.f32 %v3314_v14, %v3194_v32  ;;  %v1883_v18 = vpop.f32.mrb[5].mxu0 }
 0x174   : > { %v2105_v20 = vmax.f32 %v2073_v13, 0.0  ;;  %v3385_v21 = vadd.f32 %v1883_v18, %v757_v33  ;;  %v3315_v22 = vpop.f32.mrb[6].mxu0 }
 0x175   : > { %v2137_v23 = vpack.c.bf16 %v2107_v16, %v2106_v15  ;;  %v2039_v24 = vmul.f32 %v3384_v17, %v3991_v61  ;;  %v3386_v25 = vadd.f32 %v3315_v22, %v3195_v34  ;;  %v1886_v26 = vpop.f32.mrb[7].mxu0 }
 0x176   : > { %v2136_v27 = vpack.c.bf16 %v2105_v20, %v2104_v19  ;;  %v2037_v28 = vmul.f32 %v3385_v21, %v3991_v61  ;;  %v3387_v29 = vadd.f32 %v1886_v26, %v760_v35 }
 0x177   : > { %v2078_v30 = vadd.f32 %v3996_v0, %v2039_v24  ;;  %v2040_v31 = vmul.f32 %v3386_v25, %v3991_v61 }
 0x178   : > { %v2076_v32 = vadd.f32 %v3996_v0, %v2037_v28  ;;  %v2038_v60 = vmul.f32 %v3387_v29, %v3991_v61  ;;  %3348 = vmatprep.mubr.msk.bf16.mxu1 %vm441_vm0, %v2136_v27 }
 0x179   : > { %v2079_v33 = vadd.f32 %v3996_v0, %v2040_v31  ;;  %3349 = vmatmul.mubr.msk.bf16.vlgmr.msra.gmra.mrb[32].mxu1 %vm441_vm0, %v2137_v23  ;;  %v2110_v63 = vmax.f32 %v2078_v30, 0.0 }
 0x17a   : > { %v2077_v34 = vadd.f32 %v3996_v0, %v2038_v60  ;;  %v3318_v62 = vpop.f32.mrb[8].mxu0  ;;  %v2108_v3 = vmax.f32 %v2076_v32, 0.0 }
 0x17b   : > { %v2111_v1 = vmax.f32 %v2079_v33, 0.0  ;;  %v3388_v35 = vadd.f32 %v3318_v62, %v3940_v36  ;;  %v1899_v2 = vpop.f32.mrb[9].mxu0 }
 0x17c   : > { %v2109_v4 = vmax.f32 %v2077_v34, 0.0  ;;  %v3389_v5 = vadd.f32 %v1899_v2, %v3942_v37  ;;  %v3319_v6 = vpop.f32.mrb[10].mxu0 }
 0x17d   : > { %v2139_v7 = vpack.c.bf16 %v2111_v1, %v2110_v63  ;;  %v2043_v8 = vmul.f32 %v3388_v35, %v3991_v61  ;;  %v3390_v9 = vadd.f32 %v3319_v6, %v3944_v38  ;;  %v1902_v10 = vpop.f32.mrb[11].mxu0 }
 0x17e   : > { %v2138_v11 = vpack.c.bf16 %v2109_v4, %v2108_v3  ;;  %v2041_v12 = vmul.f32 %v3389_v5, %v3991_v61  ;;  %v3391_v13 = vadd.f32 %v1902_v10, %v3946_v39 }
 0x17f   : > { %v2082_v14 = vadd.f32 %v3996_v0, %v2043_v8  ;;  %v2044_v36 = vmul.f32 %v3390_v9, %v3991_v61 }
 0x180   : > { %v2080_v15 = vadd.f32 %v3996_v0, %v2041_v12  ;;  %v2042_v37 = vmul.f32 %v3391_v13, %v3991_v61  ;;  %3352 = vmatprep.mubr.msk.bf16.mxu1 %vm441_vm0, %v2138_v11 }
 0x181   : > { %v2083_v16 = vadd.f32 %v3996_v0, %v2044_v36  ;;  %3353 = vmatmul.mubr.msk.bf16.gmra.mrb[36].mxu1 %vm441_vm0, %v2139_v7  ;;  %v2114_v18 = vmax.f32 %v2082_v14, 0.0 }
 0x182   : > { %v2081_v38 = vadd.f32 %v3996_v0, %v2042_v37  ;;  %v3322_v17 = vpop.f32.mrb[12].mxu0  ;;  %v2112_v21 = vmax.f32 %v2080_v15, 0.0 }
 0x183   : > { %v2115_v19 = vmax.f32 %v2083_v16, 0.0  ;;  %v3392_v39 = vadd.f32 %v3322_v17, %v3948_v40  ;;  %v1915_v20 = vpop.f32.mrb[13].mxu0 }
 0x184   : > { %v2113_v22 = vmax.f32 %v2081_v38, 0.0  ;;  %v3393_v23 = vadd.f32 %v1915_v20, %v3950_v41  ;;  %v3323_v24 = vpop.f32.mrb[14].mxu0 }
 0x185   : > { %v2141_v25 = vpack.c.bf16 %v2115_v19, %v2114_v18  ;;  %v2047_v26 = vmul.f32 %v3392_v39, %v3991_v61  ;;  %v3394_v27 = vadd.f32 %v3323_v24, %v3952_v42  ;;  %v1918_v28 = vpop.f32.mrb[15].mxu0 }
 0x186   : > { %v2140_v29 = vpack.c.bf16 %v2113_v22, %v2112_v21  ;;  %v2045_v30 = vmul.f32 %v3393_v23, %v3991_v61  ;;  %v3395_v31 = vadd.f32 %v1918_v28, %v3954_v43 }
 0x187   : > { %v2086_v32 = vadd.f32 %v3996_v0, %v2047_v26  ;;  %v2048_v40 = vmul.f32 %v3394_v27, %v3991_v61 }
 0x188   : > { %v2084_v60 = vadd.f32 %v3996_v0, %v2045_v30  ;;  %v2046_v41 = vmul.f32 %v3395_v31, %v3991_v61  ;;  %3356 = vmatprep.mubr.msk.bf16.mxu1 %vm441_vm0, %v2140_v29 }
 0x189   : > { %v2087_v33 = vadd.f32 %v3996_v0, %v2048_v40  ;;  %3357 = vmatmul.mubr.msk.bf16.gmra.mrb[40].mxu1 %vm441_vm0, %v2141_v25  ;;  %v2118_v62 = vmax.f32 %v2086_v32, 0.0 }
 0x18a   : > { %v2085_v42 = vadd.f32 %v3996_v0, %v2046_v41  ;;  %v3326_v34 = vpop.f32.mrb[16].mxu0  ;;  %v2116_v35 = vmax.f32 %v2084_v60, 0.0 }
 0x18b   : > { %v2119_v63 = vmax.f32 %v2087_v33, 0.0  ;;  %v3396_v43 = vadd.f32 %v3326_v34, %v3956_v44  ;;  %v1931_v1 = vpop.f32.mrb[17].mxu0 }
 0x18c   : > { %v2117_v2 = vmax.f32 %v2085_v42, 0.0  ;;  %v3397_v3 = vadd.f32 %v1931_v1, %v3958_v45  ;;  %v3327_v4 = vpop.f32.mrb[18].mxu0 }
 0x18d   : > { %v2143_v5 = vpack.c.bf16 %v2119_v63, %v2118_v62  ;;  %v2051_v6 = vmul.f32 %v3396_v43, %v3991_v61  ;;  %v3398_v7 = vadd.f32 %v3327_v4, %v3960_v46  ;;  %v1934_v8 = vpop.f32.mrb[19].mxu0 }
 0x18e   : > { %v2142_v9 = vpack.c.bf16 %v2117_v2, %v2116_v35  ;;  %v2049_v10 = vmul.f32 %v3397_v3, %v3991_v61  ;;  %v3399_v11 = vadd.f32 %v1934_v8, %v3962_v47 }
 0x18f   : > { %v2090_v12 = vadd.f32 %v3996_v0, %v2051_v6  ;;  %v2052_v44 = vmul.f32 %v3398_v7, %v3991_v61 }
 0x190   : > { %v2088_v13 = vadd.f32 %v3996_v0, %v2049_v10  ;;  %v2050_v45 = vmul.f32 %v3399_v11, %v3991_v61  ;;  %3360 = vmatprep.mubr.msk.bf16.mxu1 %vm441_vm0, %v2142_v9 }
 0x191   : > { %v2091_v14 = vadd.f32 %v3996_v0, %v2052_v44  ;;  %3361 = vmatmul.mubr.msk.bf16.gmra.mrb[44].mxu1 %vm441_vm0, %v2143_v5  ;;  %v2122_v15 = vmax.f32 %v2090_v12, 0.0 }
 0x192   : > { %v2089_v46 = vadd.f32 %v3996_v0, %v2050_v45  ;;  %v3330_v36 = vpop.f32.mrb[20].mxu0  ;;  %v2120_v38 = vmax.f32 %v2088_v13, 0.0 }
 0x193   : > { %v2123_v37 = vmax.f32 %v2091_v14, 0.0  ;;  %v3400_v47 = vadd.f32 %v3330_v36, %v3964_v48  ;;  %v1947_v16 = vpop.f32.mrb[21].mxu0 }
 0x194   : > { %v2121_v17 = vmax.f32 %v2089_v46, 0.0  ;;  %v3401_v18 = vadd.f32 %v1947_v16, %v3966_v49  ;;  %v3331_v19 = vpop.f32.mrb[22].mxu0 }
 0x195   : > { %v2145_v39 = vpack.c.bf16 %v2123_v37, %v2122_v15  ;;  %v2055_v20 = vmul.f32 %v3400_v47, %v3991_v61  ;;  %v3402_v21 = vadd.f32 %v3331_v19, %v3968_v50  ;;  %v1950_v22 = vpop.f32.mrb[23].mxu0 }
 0x196   : > { %v2144_v23 = vpack.c.bf16 %v2121_v17, %v2120_v38  ;;  %v2053_v24 = vmul.f32 %v3401_v18, %v3991_v61  ;;  %v3403_v25 = vadd.f32 %v1950_v22, %v3970_v51 }
 0x197   : > { %v2094_v26 = vadd.f32 %v3996_v0, %v2055_v20  ;;  %v2056_v48 = vmul.f32 %v3402_v21, %v3991_v61 }
 0x198   : > { %v2092_v27 = vadd.f32 %v3996_v0, %v2053_v24  ;;  %v2054_v49 = vmul.f32 %v3403_v25, %v3991_v61  ;;  %3364 = vmatprep.mubr.msk.bf16.mxu1 %vm441_vm0, %v2144_v23 }
 0x199   : > { %v2095_v28 = vadd.f32 %v3996_v0, %v2056_v48  ;;  %3365 = vmatmul.mubr.msk.bf16.gmra.mrb[48].mxu1 %vm441_vm0, %v2145_v39  ;;  %v2126_v30 = vmax.f32 %v2094_v26, 0.0 }
 0x19a   : > { %v2093_v50 = vadd.f32 %v3996_v0, %v2054_v49  ;;  %v3334_v29 = vpop.f32.mrb[24].mxu0  ;;  %v2124_v40 = vmax.f32 %v2092_v27, 0.0 }
 0x19b   : > { %v2127_v31 = vmax.f32 %v2095_v28, 0.0  ;;  %v3404_v51 = vadd.f32 %v3334_v29, %v3972_v52  ;;  %v1963_v32 = vpop.f32.mrb[25].mxu0 }
 0x19c   : > { %v2125_v60 = vmax.f32 %v2093_v50, 0.0  ;;  %v3405_v41 = vadd.f32 %v1963_v32, %v3974_v53  ;;  %v3335_v33 = vpop.f32.mrb[26].mxu0 }
 0x19d   : > { %v2147_v42 = vpack.c.bf16 %v2127_v31, %v2126_v30  ;;  %v2059_v34 = vmul.f32 %v3404_v51, %v3991_v61  ;;  %v3406_v62 = vadd.f32 %v3335_v33, %v3976_v54  ;;  %v1966_v63 = vpop.f32.mrb[27].mxu0 }
 0x19e   : > { %v2146_v43 = vpack.c.bf16 %v2125_v60, %v2124_v40  ;;  %v2057_v1 = vmul.f32 %v3405_v41, %v3991_v61  ;;  %v3407_v35 = vadd.f32 %v1966_v63, %v3978_v55 }
 0x19f   : > { %v2098_v2 = vadd.f32 %v3996_v0, %v2059_v34  ;;  %v2060_v52 = vmul.f32 %v3406_v62, %v3991_v61 }
 0x1a0   : > { %v2096_v3 = vadd.f32 %v3996_v0, %v2057_v1  ;;  %v2058_v53 = vmul.f32 %v3407_v35, %v3991_v61  ;;  %3368 = vmatprep.mubr.msk.bf16.mxu1 %vm441_vm0, %v2146_v43 }
 0x1a1   : > { %v2099_v4 = vadd.f32 %v3996_v0, %v2060_v52  ;;  %3369 = vmatmul.mubr.msk.bf16.gmra.mrb[52].mxu1 %vm441_vm0, %v2147_v42  ;;  %v2130_v6 = vmax.f32 %v2098_v2, 0.0 }
 0x1a2   : > { %v2097_v54 = vadd.f32 %v3996_v0, %v2058_v53  ;;  %v3338_v5 = vpop.f32.mrb[28].mxu0  ;;  %v2128_v9 = vmax.f32 %v2096_v3, 0.0 }
 0x1a3   : > { %v2131_v7 = vmax.f32 %v2099_v4, 0.0  ;;  %v3408_v55 = vadd.f32 %v3338_v5, %v3980_v56  ;;  %v1979_v8 = vpop.f32.mrb[29].mxu0 }
 0x1a4   : > { %v2129_v10 = vmax.f32 %v2097_v54, 0.0  ;;  %v3409_v11 = vadd.f32 %v1979_v8, %v3982_v57  ;;  %v3339_v12 = vpop.f32.mrb[30].mxu0 }
 0x1a5   : > { %v2149_v44 = vpack.c.bf16 %v2131_v7, %v2130_v6  ;;  %v2063_v13 = vmul.f32 %v3408_v55, %v3991_v61  ;;  %v3410_v45 = vadd.f32 %v3339_v12, %v3984_v58  ;;  %v1982_v14 = vpop.f32.mrb[31].mxu0 }
 0x1a6   : > { %v2148_v46 = vpack.c.bf16 %v2129_v10, %v2128_v9  ;;  %v2061_v36 = vmul.f32 %v3409_v11, %v3991_v61  ;;  %v3411_v15 = vadd.f32 %v1982_v14, %v3986_v59 }
 0x1a7   : > { %v2102_v37 = vadd.f32 %v3996_v0, %v2063_v13  ;;  %v2064_v56 = vmul.f32 %v3410_v45, %v3991_v61 }
 0x1a8   : > { %v2100_v47 = vadd.f32 %v3996_v0, %v2061_v36  ;;  %v2062_v57 = vmul.f32 %v3411_v15, %v3991_v61  ;;  %3372 = vmatprep.mubr.msk.bf16.mxu1 %vm441_vm0, %v2148_v46  ;;  %v4105_v61 = vld [vmem:[%s4254_s5] ss:$0 sm:$0xff] }
 0x1a9   : > { %v2103_v16 = vadd.f32 %v3996_v0, %v2064_v56  ;;  %3373 = vmatmul.mubr.msk.bf16.gmra.mrb[56].mxu1 %vm441_vm0, %v2149_v44  ;;  %v2134_v38 = vmax.f32 %v2102_v37, 0.0 }
 0x1aa   : > { %v2101_v58 = vadd.f32 %v3996_v0, %v2062_v57  ;;  %v2132_v59 = vmax.f32 %v2100_v47, 0.0  ;;  %v4110_v0 = vld [vmem:[%s4255_s6] ss:$0 sm:$0xff] }
 0x1ab   : > { %v2135_v17 = vmax.f32 %v2103_v16, 0.0 }
 0x1ac   : > { %v2133_v18 = vmax.f32 %v2101_v58, 0.0 }
 0x1ad   : > { %v2151_v19 = vpack.c.bf16 %v2135_v17, %v2134_v38 }
 0x1ae   : > { %v2150_v39 = vpack.c.bf16 %v2133_v18, %v2132_v59 }
 0x1b0   : > { %3376 = vmatprep.mubr.msk.bf16.mxu1 %vm441_vm0, %v2150_v39 }
 0x1b1   : > { %3377 = vmatmul.mubr.msk.bf16.gmra.mrb[60].mxu1 %vm441_vm0, %v2151_v19 }
 0x24c   : > { %v3350_v20 = vpop.f32.mrb[32].mxu1 }
 0x24d   : > { %v2402_v21 = vmul.f32 %v3350_v20, %v4105_v61  ;;  %v2266_v22 = vpop.f32.mrb[33].mxu1 }
 0x24e   : > { %v2400_v23 = vmul.f32 %v4105_v61, %v2266_v22  ;;  %v3351_v24 = vpop.f32.mrb[34].mxu1 }
 0x24f   : > { %v2441_v25 = vadd.f32 %v4110_v0, %v2402_v21  ;;  %v2403_v26 = vmul.f32 %v3351_v24, %v4105_v61  ;;  %v2269_v48 = vpop.f32.mrb[35].mxu1 }
 0x250   : > { %v2439_v27 = vadd.f32 %v4110_v0, %v2400_v23  ;;  %v2401_v49 = vmul.f32 %v4105_v61, %v2269_v48 }
 0x251   : > { %v2473_v28 = vmax.f32 %v2441_v25, 0.0  ;;  %v2442_v50 = vadd.f32 %v4110_v0, %v2403_v26 }
 0x252   : > { %v2471_v29 = vmax.f32 %v2439_v27, 0.0  ;;  %v2440_v30 = vadd.f32 %v4110_v0, %v2401_v49 }
 0x253   : > { %v2990_v31 = vpack.c.bf16 %v2473_v28, %v2473_v28  ;;  %v2474_v51 = vmax.f32 %v2442_v50, 0.0 }
 0x254   : > { %v2988_v32 = vpack.c.bf16 %v2471_v29, %v2471_v29  ;;  %v2472_v40 = vmax.f32 %v2440_v30, 0.0  ;;  %v3354_v60 = vpop.f32.mrb[36].mxu1 }
 0x255   : > { %2634 = vst.msk [vmem:[%s4123_s27 + $0x8] sm:$0xf] %vm2631_vm1, %v2990_v31  ;;  %v2991_v41 = vpack.c.bf16 %v2474_v51, %v2474_v51  ;;  %v2406_v33 = vmul.f32 %v3354_v60, %v4105_v61  ;;  %v2282_v42 = vpop.f32.mrb[37].mxu1 }
 0x256   : > { %2632 = vst.msk [vmem:[%s4123_s27] sm:$0xf] %vm2631_vm1, %v2988_v32  ;;  %v2989_v34 = vpack.c.bf16 %v2472_v40, %v2472_v40  ;;  %v2404_v62 = vmul.f32 %v4105_v61, %v2282_v42  ;;  %v3355_v63 = vpop.f32.mrb[38].mxu1 }
 0x257   : > { %2635 = vst.msk [vmem:[%s4123_s27 + $0xc] sm:$0xf] %vm2631_vm1, %v2991_v41  ;;  %v2445_v43 = vadd.f32 %v4110_v0, %v2406_v33  ;;  %v2407_v1 = vmul.f32 %v3355_v63, %v4105_v61  ;;  %v2285_v35 = vpop.f32.mrb[39].mxu1 }
 0x258   : > { %2633 = vst.msk [vmem:[%s4123_s27 + $0x4] sm:$0xf] %vm2631_vm1, %v2989_v34  ;;  %v2443_v2 = vadd.f32 %v4110_v0, %v2404_v62  ;;  %v2405_v52 = vmul.f32 %v4105_v61, %v2285_v35 }
 0x259   : > { %v2477_v3 = vmax.f32 %v2445_v43, 0.0  ;;  %v2446_v53 = vadd.f32 %v4110_v0, %v2407_v1 }
 0x25a   : > { %v2475_v4 = vmax.f32 %v2443_v2, 0.0  ;;  %v2444_v54 = vadd.f32 %v4110_v0, %v2405_v52 }
 0x25b   : > { %v2994_v5 = vpack.c.bf16 %v2477_v3, %v2477_v3  ;;  %v2478_v6 = vmax.f32 %v2446_v53, 0.0 }
 0x25c   : > { %v2992_v7 = vpack.c.bf16 %v2475_v4, %v2475_v4  ;;  %v2476_v55 = vmax.f32 %v2444_v54, 0.0  ;;  %v3358_v8 = vpop.f32.mrb[40].mxu1 }
 0x25d   : > { %2638 = vst.msk [vmem:[%s4123_s27 + $0x18] sm:$0xf] %vm2631_vm1, %v2994_v5  ;;  %v2995_v9 = vpack.c.bf16 %v2478_v6, %v2478_v6  ;;  %v2410_v10 = vmul.f32 %v3358_v8, %v4105_v61  ;;  %v2298_v11 = vpop.f32.mrb[41].mxu1 }
 0x25e   : > { %2636 = vst.msk [vmem:[%s4123_s27 + $0x10] sm:$0xf] %vm2631_vm1, %v2992_v7  ;;  %v2993_v12 = vpack.c.bf16 %v2476_v55, %v2476_v55  ;;  %v2408_v44 = vmul.f32 %v4105_v61, %v2298_v11  ;;  %v3359_v13 = vpop.f32.mrb[42].mxu1 }
 0x25f   : > { %2639 = vst.msk [vmem:[%s4123_s27 + $0x1c] sm:$0xf] %vm2631_vm1, %v2995_v9  ;;  %v2449_v45 = vadd.f32 %v4110_v0, %v2410_v10  ;;  %v2411_v14 = vmul.f32 %v3359_v13, %v4105_v61  ;;  %v2301_v46 = vpop.f32.mrb[43].mxu1 }
 0x260   : > { %2637 = vst.msk [vmem:[%s4123_s27 + $0x14] sm:$0xf] %vm2631_vm1, %v2993_v12  ;;  %v2447_v36 = vadd.f32 %v4110_v0, %v2408_v44  ;;  %v2409_v15 = vmul.f32 %v4105_v61, %v2301_v46 }
 0x261   : > { %v2481_v37 = vmax.f32 %v2449_v45, 0.0  ;;  %v2450_v56 = vadd.f32 %v4110_v0, %v2411_v14 }
 0x262   : > { %v2479_v47 = vmax.f32 %v2447_v36, 0.0  ;;  %v2448_v57 = vadd.f32 %v4110_v0, %v2409_v15 }
 0x263   : > { %v2998_v16 = vpack.c.bf16 %v2481_v37, %v2481_v37  ;;  %v2482_v58 = vmax.f32 %v2450_v56, 0.0 }
 0x264   : > { %v2996_v38 = vpack.c.bf16 %v2479_v47, %v2479_v47  ;;  %v2480_v17 = vmax.f32 %v2448_v57, 0.0  ;;  %v3362_v59 = vpop.f32.mrb[44].mxu1 }
 0x265   : > { %2642 = vst.msk [vmem:[%s4123_s27 + $0x28] sm:$0xf] %vm2631_vm1, %v2998_v16  ;;  %v2999_v18 = vpack.c.bf16 %v2482_v58, %v2482_v58  ;;  %v2414_v19 = vmul.f32 %v3362_v59, %v4105_v61  ;;  %v2314_v39 = vpop.f32.mrb[45].mxu1 }
 0x266   : > { %2640 = vst.msk [vmem:[%s4123_s27 + $0x20] sm:$0xf] %vm2631_vm1, %v2996_v38  ;;  %v2997_v20 = vpack.c.bf16 %v2480_v17, %v2480_v17  ;;  %v2412_v21 = vmul.f32 %v4105_v61, %v2314_v39  ;;  %v3363_v22 = vpop.f32.mrb[46].mxu1 }
 0x267   : > { %2643 = vst.msk [vmem:[%s4123_s27 + $0x2c] sm:$0xf] %vm2631_vm1, %v2999_v18  ;;  %v2453_v23 = vadd.f32 %v4110_v0, %v2414_v19  ;;  %v2415_v24 = vmul.f32 %v3363_v22, %v4105_v61  ;;  %v2317_v25 = vpop.f32.mrb[47].mxu1 }
 0x268   : > { %2641 = vst.msk [vmem:[%s4123_s27 + $0x24] sm:$0xf] %vm2631_vm1, %v2997_v20  ;;  %v2451_v26 = vadd.f32 %v4110_v0, %v2412_v21  ;;  %v2413_v48 = vmul.f32 %v4105_v61, %v2317_v25 }
 0x269   : > { %v2485_v27 = vmax.f32 %v2453_v23, 0.0  ;;  %v2454_v49 = vadd.f32 %v4110_v0, %v2415_v24 }
 0x26a   : > { %v2483_v28 = vmax.f32 %v2451_v26, 0.0  ;;  %v2452_v50 = vadd.f32 %v4110_v0, %v2413_v48 }
 0x26b   : > { %v3002_v29 = vpack.c.bf16 %v2485_v27, %v2485_v27  ;;  %v2486_v30 = vmax.f32 %v2454_v49, 0.0 }
 0x26c   : > { %v3000_v31 = vpack.c.bf16 %v2483_v28, %v2483_v28  ;;  %v2484_v51 = vmax.f32 %v2452_v50, 0.0  ;;  %v3366_v32 = vpop.f32.mrb[48].mxu1 }
 0x26d   : > { %2646 = vst.msk [vmem:[%s4123_s27 + $0x38] sm:$0xf] %vm2631_vm1, %v3002_v29  ;;  %v3003_v40 = vpack.c.bf16 %v2486_v30, %v2486_v30  ;;  %v2418_v60 = vmul.f32 %v3366_v32, %v4105_v61  ;;  %v2330_v41 = vpop.f32.mrb[49].mxu1 }
 0x26e   : > { %2644 = vst.msk [vmem:[%s4123_s27 + $0x30] sm:$0xf] %vm2631_vm1, %v3000_v31  ;;  %v3001_v33 = vpack.c.bf16 %v2484_v51, %v2484_v51  ;;  %v2416_v42 = vmul.f32 %v4105_v61, %v2330_v41  ;;  %v3367_v34 = vpop.f32.mrb[50].mxu1 }
 0x26f   : > { %2647 = vst.msk [vmem:[%s4123_s27 + $0x3c] sm:$0xf] %vm2631_vm1, %v3003_v40  ;;  %v2457_v62 = vadd.f32 %v4110_v0, %v2418_v60  ;;  %v2419_v63 = vmul.f32 %v3367_v34, %v4105_v61  ;;  %v2333_v43 = vpop.f32.mrb[51].mxu1 }
 0x270   : > { %2645 = vst.msk [vmem:[%s4123_s27 + $0x34] sm:$0xf] %vm2631_vm1, %v3001_v33  ;;  %v2455_v1 = vadd.f32 %v4110_v0, %v2416_v42  ;;  %v2417_v35 = vmul.f32 %v4105_v61, %v2333_v43 }
 0x271   : > { %v2489_v2 = vmax.f32 %v2457_v62, 0.0  ;;  %v2458_v52 = vadd.f32 %v4110_v0, %v2419_v63 }
 0x272   : > { %v2487_v3 = vmax.f32 %v2455_v1, 0.0  ;;  %v2456_v53 = vadd.f32 %v4110_v0, %v2417_v35 }
 0x273   : > { %v3006_v4 = vpack.c.bf16 %v2489_v2, %v2489_v2  ;;  %v2490_v54 = vmax.f32 %v2458_v52, 0.0 }
 0x274   : > { %v3004_v5 = vpack.c.bf16 %v2487_v3, %v2487_v3  ;;  %v2488_v6 = vmax.f32 %v2456_v53, 0.0  ;;  %v3370_v7 = vpop.f32.mrb[52].mxu1 }
 0x275   : > { %2650 = vst.msk [vmem:[%s4123_s27 + $0x48] sm:$0xf] %vm2631_vm1, %v3006_v4  ;;  %v3007_v55 = vpack.c.bf16 %v2490_v54, %v2490_v54  ;;  %v2422_v8 = vmul.f32 %v3370_v7, %v4105_v61  ;;  %v2346_v9 = vpop.f32.mrb[53].mxu1 }
 0x276   : > { %2648 = vst.msk [vmem:[%s4123_s27 + $0x40] sm:$0xf] %vm2631_vm1, %v3004_v5  ;;  %v3005_v10 = vpack.c.bf16 %v2488_v6, %v2488_v6  ;;  %v2420_v11 = vmul.f32 %v4105_v61, %v2346_v9  ;;  %v3371_v12 = vpop.f32.mrb[54].mxu1 }
 0x277   : > { %2651 = vst.msk [vmem:[%s4123_s27 + $0x4c] sm:$0xf] %vm2631_vm1, %v3007_v55  ;;  %v2461_v44 = vadd.f32 %v4110_v0, %v2422_v8  ;;  %v2423_v13 = vmul.f32 %v3371_v12, %v4105_v61  ;;  %v2349_v45 = vpop.f32.mrb[55].mxu1 }
 0x278   : > { %2649 = vst.msk [vmem:[%s4123_s27 + $0x44] sm:$0xf] %vm2631_vm1, %v3005_v10  ;;  %v2459_v14 = vadd.f32 %v4110_v0, %v2420_v11  ;;  %v2421_v46 = vmul.f32 %v4105_v61, %v2349_v45 }
 0x279   : > { %v2493_v36 = vmax.f32 %v2461_v44, 0.0  ;;  %v2462_v15 = vadd.f32 %v4110_v0, %v2423_v13 }
 0x27a   : > { %v2491_v37 = vmax.f32 %v2459_v14, 0.0  ;;  %v2460_v56 = vadd.f32 %v4110_v0, %v2421_v46 }
 0x27b   : > { %v3010_v47 = vpack.c.bf16 %v2493_v36, %v2493_v36  ;;  %v2494_v57 = vmax.f32 %v2462_v15, 0.0 }
 0x27c   : > { %v3008_v16 = vpack.c.bf16 %v2491_v37, %v2491_v37  ;;  %v2492_v58 = vmax.f32 %v2460_v56, 0.0  ;;  %v3374_v38 = vpop.f32.mrb[56].mxu1 }
 0x27d   : > { %2654 = vst.msk [vmem:[%s4123_s27 + $0x58] sm:$0xf] %vm2631_vm1, %v3010_v47  ;;  %v3011_v17 = vpack.c.bf16 %v2494_v57, %v2494_v57  ;;  %v2426_v59 = vmul.f32 %v3374_v38, %v4105_v61  ;;  %v2362_v18 = vpop.f32.mrb[57].mxu1 }
 0x27e   : > { %2652 = vst.msk [vmem:[%s4123_s27 + $0x50] sm:$0xf] %vm2631_vm1, %v3008_v16  ;;  %v3009_v19 = vpack.c.bf16 %v2492_v58, %v2492_v58  ;;  %v2424_v39 = vmul.f32 %v4105_v61, %v2362_v18  ;;  %v3375_v20 = vpop.f32.mrb[58].mxu1 }
 0x27f   : > { %2655 = vst.msk [vmem:[%s4123_s27 + $0x5c] sm:$0xf] %vm2631_vm1, %v3011_v17  ;;  %v2465_v21 = vadd.f32 %v4110_v0, %v2426_v59  ;;  %v2427_v22 = vmul.f32 %v3375_v20, %v4105_v61  ;;  %v2365_v23 = vpop.f32.mrb[59].mxu1 }
 0x280   : > { %2653 = vst.msk [vmem:[%s4123_s27 + $0x54] sm:$0xf] %vm2631_vm1, %v3009_v19  ;;  %v2463_v24 = vadd.f32 %v4110_v0, %v2424_v39  ;;  %v2425_v25 = vmul.f32 %v4105_v61, %v2365_v23 }
 0x281   : > { %v2497_v26 = vmax.f32 %v2465_v21, 0.0  ;;  %v2466_v48 = vadd.f32 %v4110_v0, %v2427_v22 }
 0x282   : > { %v2495_v27 = vmax.f32 %v2463_v24, 0.0  ;;  %v2464_v49 = vadd.f32 %v4110_v0, %v2425_v25 }
 0x283   : > { %v3014_v28 = vpack.c.bf16 %v2497_v26, %v2497_v26  ;;  %v2498_v50 = vmax.f32 %v2466_v48, 0.0 }
 0x284   : > { %v3012_v29 = vpack.c.bf16 %v2495_v27, %v2495_v27  ;;  %v2496_v30 = vmax.f32 %v2464_v49, 0.0  ;;  %v3378_v31 = vpop.f32.mrb[60].mxu1 }
 0x285   : > { %2658 = vst.msk [vmem:[%s4123_s27 + $0x68] sm:$0xf] %vm2631_vm1, %v3014_v28  ;;  %v3015_v51 = vpack.c.bf16 %v2498_v50, %v2498_v50  ;;  %v2430_v32 = vmul.f32 %v3378_v31, %v4105_v61  ;;  %v2378_v40 = vpop.f32.mrb[61].mxu1 }
 0x286   : > { %2656 = vst.msk [vmem:[%s4123_s27 + $0x60] sm:$0xf] %vm2631_vm1, %v3012_v29  ;;  %v3013_v60 = vpack.c.bf16 %v2496_v30, %v2496_v30  ;;  %v2428_v41 = vmul.f32 %v4105_v61, %v2378_v40  ;;  %v3379_v33 = vpop.f32.mrb[62].mxu1 }
 0x287   : > { %2659 = vst.msk [vmem:[%s4123_s27 + $0x6c] sm:$0xf] %vm2631_vm1, %v3015_v51  ;;  %v2469_v42 = vadd.f32 %v4110_v0, %v2430_v32  ;;  %v2431_v34 = vmul.f32 %v3379_v33, %v4105_v61  ;;  %v2381_v62 = vpop.f32.mrb[63].mxu1 }
 0x288   : > { %2657 = vst.msk [vmem:[%s4123_s27 + $0x64] sm:$0xf] %vm2631_vm1, %v3013_v60  ;;  %v2467_v63 = vadd.f32 %v4110_v0, %v2428_v41  ;;  %v2429_v43 = vmul.f32 %v4105_v61, %v2381_v62 }
 0x289   : > { %v2501_v1 = vmax.f32 %v2469_v42, 0.0  ;;  %v2470_v35 = vadd.f32 %v4110_v0, %v2431_v34 }
 0x28a   : > { %v2499_v2 = vmax.f32 %v2467_v63, 0.0  ;;  %v2468_v52 = vadd.f32 %v4110_v0, %v2429_v43 }
 0x28b   : > { %v3018_v3 = vpack.c.bf16 %v2501_v1, %v2501_v1  ;;  %v2502_v53 = vmax.f32 %v2470_v35, 0.0 }
 0x28c   : > { %v3016_v4 = vpack.c.bf16 %v2499_v2, %v2499_v2  ;;  %v2500_v54 = vmax.f32 %v2468_v52, 0.0 }
 0x28d   : > { %2662 = vst.msk [vmem:[%s4123_s27 + $0x78] sm:$0xf] %vm2631_vm1, %v3018_v3  ;;  %v3019_v5 = vpack.c.bf16 %v2502_v53, %v2502_v53 }
 0x28e   : > { %2660 = vst.msk [vmem:[%s4123_s27 + $0x70] sm:$0xf] %vm2631_vm1, %v3016_v4  ;;  %v3017_v6 = vpack.c.bf16 %v2500_v54, %v2500_v54 }
 0x28f   : > { %2663 = vst.msk [vmem:[%s4123_s27 + $0x7c] sm:$0xf] %vm2631_vm1, %v3019_v5 }
 0x290   : > { %2661 = vst.msk [vmem:[%s4123_s27 + $0x74] sm:$0xf] %vm2631_vm1, %v3017_v6 }
 0x291 PF: > { %s17_s24 = sadd.s32 1, %s3614_s24  }
 0x292   : > { %p14_p4 = scmp.ge.s32.totalorder %s17_s24, 4  }
 0x294   :  { %16 = sbr.rel (!%p14_p4) target bundleno = 1 (0x1), region = 82 }

// kernel: _lambda_.14
= control target key start
LH: loop header
LB: loop body
LE: loop exit
PB: predicated region body
PF: predicated region fallthrough
CT: control target
= control target key end

     0   :  { %s567_s6 = smov 0   ;;  %s569_s7 = smov 0   ;;  %s657_s0 = inlined_call_operand.vmem [shape: bf16[3,8,3,256], index: 0, kind: input, shape index: {}]   ;;  %s658_s1 = inlined_call_operand.vmem [shape: bf16[8,2,128], index: 1, kind: output, shape index: {}]  }
   0x1   :  { %s571_s8 = smov 0  }
   0x2 LB: > { %s478_s9 = sadd.s32 4294967295, %s555_s8   ;;  %s584_s10 = sadd.s32 1, %s555_s8   ;;  %s555_s8 = sphi %s571_s8, %s661_s8   ;;  %s551_s7 = sphi %s569_s7, %s660_s7   ;;  %s547_s6 = sphi %s567_s6, %s659_s6  }
   0x3   : > { %s15_s11 = ssub.s32 %s555_s8, %s584_s10  ;;  %s18_s12 = sadd.s32 1, %s551_s7 }
   0x4   : > { %p16_p0 = scmp.eq.s32.totalorder %s15_s11, 0  ;;  %p25_p1 = scmp.ne.s32.totalorder %s551_s7, %s547_s6 }
   0x5   : > { %p26_p2 = scmp.eq.s32.totalorder %s555_s8, 0  ;;  %p481_p4 = scmp.ge.s32.totalorder %s555_s8, 2 }
   0x6   : > { %s593_s13 = scalar_select %p16_p0, %s551_s7, %s18_s12  }
   0x7   : > { %p27_p3 = por %p26_p2, %p25_p1  ;;  %77 = sbr.rel (%p481_p4) target bundleno = 21 (0x15), region = 16 }
   0xe   : > { %80 = sbr.rel (!%p27_p3) target bundleno = 21 (0x15), region = 20  ;;  %s82_s14 = sand.u32 (%p27_p3), 1, %s551_s7  }
   0xf   : > { %s506_s15 = sshll.u32 (%p27_p3), %s555_s8, 4  ;;  %s507_s16 = smul.u32 (%p27_p3), 48, %s82_s14 }
  0x10   : > { %s88_s19 = scalar_lea.vmem (%p27_p3), %s657_s0, %s506_s15 }
  0x11   : > { %v104_v0 = vld [vmem:[%s88_s19] sm:$0xff] (%p27_p3)   ;;  %v108_v1 = vld [vmem:[%s88_s19 + $0x8] sm:$0xff] (%p27_p3)   ;;  %s84_s20 = scalar_lea.vmem (%p27_p3), [#allocation2], %s507_s16 }
  0x12   : > { %v112_v2 = vld [vmem:[%s88_s19 + $0x20] sm:$0xff] (%p27_p3)   ;;  %v116_v3 = vld [vmem:[%s88_s19 + $0x28] sm:$0xff] (%p27_p3)   ;;  %105 = vst [vmem:[%s84_s20] sm:$0xff] (%p27_p3), %v104_v0   ;;  %109 = vst [vmem:[%s84_s20 + $0x8] sm:$0xff] (%p27_p3), %v108_v1  }
  0x13   : > { %v120_v4 = vld [vmem:[%s88_s19 + $0x40] sm:$0xff] (%p27_p3)   ;;  %v124_v5 = vld [vmem:[%s88_s19 + $0x48] sm:$0xff] (%p27_p3)   ;;  %113 = vst [vmem:[%s84_s20 + $0x10] sm:$0xff] (%p27_p3), %v112_v2   ;;  %117 = vst [vmem:[%s84_s20 + $0x18] sm:$0xff] (%p27_p3), %v116_v3  }
  0x14   : > { %121 = vst [vmem:[%s84_s20 + $0x20] sm:$0xff] (%p27_p3), %v120_v4   ;;  %125 = vst [vmem:[%s84_s20 + $0x28] sm:$0xff] (%p27_p3), %v124_v5  }
  0x15 PF: > { %p485_p5 = scmp.ge.s32.totalorder %s555_s8, 1  ;;  %p173_p6 = scmp.lt.s32.totalorder %s555_s8, 3 }
  0x17   : > { %p174_p7 = pnand %p485_p5, %p173_p6 }
  0x18   : > { %s180_s21 = sand.u32 (!%p174_p7), 1, %s547_s6   ;;  %s614_s24 = sshll.u32 (!%p174_p7), %s478_s9, 2 }
  0x19   : > { %177 = sbr.rel (%p174_p7) target bundleno = 67 (0x43), region = 61  ;;  %p200_p8 = scmp.lt.s32.totalorder (!%p174_p7), %s614_s24, 7 }
  0x1a   : > { %s508_s22 = smul.u32 (!%p174_p7), 48, %s180_s21 }
  0x1c   : > { %s604_s23 = scalar_lea.vmem (!%p174_p7), [#allocation2], %s508_s22 }
  0x1d   : > { %v204_v6 = vld [vmem:[%s604_s23] sm:$0x5] (!%p174_p7)  ;;  %v487_v11 = vld [vmem:[%s604_s23 + $0x10] sm:$0x5] (!%p174_p7)  ;;  %v205_v23 = vld [vmem:[%s604_s23 + $0x4] sm:$0x5] (!%p174_p7) }
  0x1e   : > { %v208_v7 = vld [vmem:[%s604_s23] sm:$0xf] (!%p174_p7)  ;;  %v216_v8 = vrot.slane (!%p174_p7), %v204_v6, 2  ;;  %v491_v12 = vld [vmem:[%s604_s23 + $0x10] sm:$0xf] (!%p174_p7)  ;;  %v285_v13 = vrot.slane (!%p174_p7), %v487_v11, 2 }
  0x1f   : > { %v229_v9 = vshrl.u32 (!%p174_p7), %v208_v7, 16  ;;  %v232_v10 = vshll.u32 (!%p174_p7), %v208_v7, 16  ;;  %v495_v14 = vld [vmem:[%s604_s23 + $0x20] sm:$0x5] (!%p174_p7)  ;;  %v298_v17 = vshrl.u32 (!%p174_p7), %v491_v12, 16  ;;  %v301_v20 = vshll.u32 (!%p174_p7), %v491_v12, 16 }
  0x20   : > { %v499_v18 = vld [vmem:[%s604_s23 + $0x20] sm:$0xf]  ;;  %v224_v19 = vmax.bf16 %v216_v8, %v204_v6  ;;  %v358_v21 = vrot.slane %v495_v14, 2  ;;  %v209_v27 = vld [vmem:[%s604_s23 + $0x4] sm:$0xf]  ;;  %v217_v28 = vrot.slane %v205_v23, 2  ;;  %v293_v29 = vmax.bf16 %v487_v11, %v285_v13 }
  0x21   : > { %v231_v15 = vrot.slane %v229_v9, 6  ;;  %v234_v16 = vrot.slane %v232_v10, 7  ;;  %v371_v22 = vshrl.u32 %v499_v18, 16  ;;  %v300_v25 = vrot.slane %v298_v17, 6  ;;  %v488_v33 = vld [vmem:[%s604_s23 + $0x14] sm:$0x5] }
  0x22   : > { %v374_v26 = vshll.u32 %v499_v18, 16  ;;  %v303_v30 = vrot.slane %v301_v20, 7  ;;  %v238_v32 = vshrl.u32 %v209_v27, 16  ;;  %v366_v35 = vmax.bf16 %v495_v14, %v358_v21  ;;  %v492_v38 = vld [vmem:[%s604_s23 + $0x14] sm:$0xf]  ;;  %s663_s24 = smov (!%p200_p8, %s614_s24), 7 }
  0x23   : > { %v235_v24 = vor.u32 %v234_v16, %v231_v15  ;;  %v373_v31 = vrot.slane %v371_v22, 6  ;;  %v241_v37 = vshll.u32 %v209_v27, 16  ;;  %v286_v41 = vrot.slane %v488_v33, 2  ;;  %v496_v43 = vld [vmem:[%s604_s23 + $0x24] sm:$0x5]  ;;  %s634_s27 = scalar_lea.vmem %s658_s1, %s663_s24 }
  0x24   : > { %v376_v36 = vrot.slane %v374_v26, 7  ;;  %v304_v39 = vor.u32 %v303_v30, %v300_v25  ;;  %v240_v40 = vrot.slane %v238_v32, 6  ;;  %v307_v42 = vshrl.u32 %v492_v38, 16  ;;  %v500_v48 = vld [vmem:[%s604_s23 + $0x24] sm:$0xf] }
  0x25   : > { %v236_v34 = vrot.slane %v235_v24, 2  ;;  %v225_v45 = vmax.bf16 %v217_v28, %v205_v23  ;;  %v243_v46 = vrot.slane %v241_v37, 7  ;;  %v310_v47 = vshll.u32 %v492_v38, 16  ;;  %v206_v49 = vld [vmem:[%s604_s23 + $0x8] sm:$0x5] }
  0x26   : > { %v377_v44 = vor.u32 %v376_v36, %v373_v31  ;;  %v305_v51 = vrot.slane %v304_v39, 2  ;;  %v309_v52 = vrot.slane %v307_v42, 6  ;;  %v359_v53 = vrot.slane %v496_v43, 2  ;;  %v210_v58 = vld [vmem:[%s604_s23 + $0x8] sm:$0xf] }
  0x27   : > { %v268_v50 = vmax.bf16 %v236_v34, %v224_v19  ;;  %v244_v55 = vor.u32 %v243_v46, %v240_v40  ;;  %v312_v56 = vrot.slane %v310_v47, 7  ;;  %v380_v57 = vshrl.u32 %v500_v48, 16  ;;  %v489_v63 = vld [vmem:[%s604_s23 + $0x18] sm:$0x5]  ;;  %v497_v9 = vld [vmem:[%s604_s23 + $0x28] sm:$0x5] }
  0x28   : > { %v378_v54 = vrot.slane %v377_v44, 2  ;;  %v337_v59 = vmax.bf16 %v305_v51, %v293_v29  ;;  %v294_v60 = vmax.bf16 %v488_v33, %v286_v41  ;;  %v383_v61 = vshll.u32 %v500_v48, 16  ;;  %v493_v4 = vld [vmem:[%s604_s23 + $0x18] sm:$0xf]  ;;  %v501_v14 = vld [vmem:[%s604_s23 + $0x28] sm:$0xf] }
  0x29   : > { %v218_v62 = vrot.slane %v206_v49, 2  ;;  %v245_v1 = vrot.slane %v244_v55, 2  ;;  %v313_v2 = vor.u32 %v312_v56, %v309_v52  ;;  %v382_v3 = vrot.slane %v380_v57, 6  ;;  %v207_v23 = vld [vmem:[%s604_s23 + $0xc] sm:$0x5] }
  0x2a   : > { %v410_v0 = vmax.bf16 %v378_v54, %v366_v35  ;;  %v341_v5 = vmax.bf16 %v337_v59, %v268_v50  ;;  %v367_v6 = vmax.bf16 %v496_v43, %v359_v53  ;;  %v385_v7 = vrot.slane %v383_v61, 7  ;;  %v211_v28 = vld [vmem:[%s604_s23 + $0xc] sm:$0xf]  ;;  %v490_v37 = vld [vmem:[%s604_s23 + $0x1c] sm:$0x5] }
  0x2b   : > { %v247_v8 = vshrl.u32 %v210_v58, 16  ;;  %v269_v10 = vmax.bf16 %v245_v1, %v225_v45  ;;  %v314_v11 = vrot.slane %v313_v2, 2  ;;  %v250_v12 = vshll.u32 %v210_v58, 16  ;;  %v494_v42 = vld [vmem:[%s604_s23 + $0x1c] sm:$0xf] }
  0x2c   : > { %v287_v13 = vrot.slane %v489_v63, 2  ;;  %v414_v15 = vmax.bf16 %v410_v0, %v341_v5  ;;  %v386_v16 = vor.u32 %v385_v7, %v382_v3  ;;  %v316_v18 = vshrl.u32 %v493_v4, 16  ;;  %v498_v47 = vld [vmem:[%s604_s23 + $0x2c] sm:$0x5] }
  0x2d   : > { %v249_v17 = vrot.slane %v247_v8, 6  ;;  %v338_v19 = vmax.bf16 %v314_v11, %v294_v60  ;;  %v226_v20 = vmax.bf16 %v218_v62, %v206_v49  ;;  %v252_v21 = vrot.slane %v250_v12, 7  ;;  %v502_v48 = vld [vmem:[%s604_s23 + $0x2c] sm:$0xf] }
  0x2e   : > { %v319_v22 = vshll.u32 %v493_v4, 16  ;;  %418 = vst [vmem:[%s634_s27] sm:$0x1] %v414_v15  ;;  %v387_v24 = vrot.slane %v386_v16, 2  ;;  %v318_v25 = vrot.slane %v316_v18, 6  ;;  %v360_v26 = vrot.slane %v497_v9, 2 }
  0x2f   : > { %v389_v27 = vshrl.u32 %v501_v14, 16  ;;  %v342_v29 = vmax.bf16 %v338_v19, %v269_v10  ;;  %v253_v30 = vor.u32 %v252_v21, %v249_v17  ;;  %v392_v32 = vshll.u32 %v501_v14, 16 }
  0x30   : > { %v321_v31 = vrot.slane %v319_v22, 7  ;;  %v411_v33 = vmax.bf16 %v387_v24, %v367_v6  ;;  %v295_v34 = vmax.bf16 %v489_v63, %v287_v13  ;;  %v219_v36 = vrot.slane %v207_v23, 2 }
  0x31   : > { %v391_v35 = vrot.slane %v389_v27, 6  ;;  %v254_v38 = vrot.slane %v253_v30, 2  ;;  %v394_v40 = vrot.slane %v392_v32, 7  ;;  %v256_v41 = vshrl.u32 %v211_v28, 16 }
  0x32   : > { %v322_v39 = vor.u32 %v321_v31, %v318_v25  ;;  %v415_v43 = vmax.bf16 %v411_v33, %v342_v29  ;;  %v368_v44 = vmax.bf16 %v497_v9, %v360_v26  ;;  %v227_v45 = vmax.bf16 %v219_v36, %v207_v23 }
  0x33   : > { %v259_v46 = vshll.u32 %v211_v28, 16  ;;  %v270_v49 = vmax.bf16 %v254_v38, %v226_v20  ;;  %v395_v51 = vor.u32 %v394_v40, %v391_v35  ;;  %v258_v52 = vrot.slane %v256_v41, 6 }
  0x34   : > { %v323_v50 = vrot.slane %v322_v39, 2  ;;  %419 = vst [vmem:[%s634_s27 + $0x1] sm:$0x1] %v415_v43  ;;  %v288_v54 = vrot.slane %v490_v37, 2  ;;  %v325_v55 = vshrl.u32 %v494_v42, 16  ;;  %v328_v56 = vshll.u32 %v494_v42, 16 }
  0x35   : > { %v261_v53 = vrot.slane %v259_v46, 7  ;;  %v396_v58 = vrot.slane %v395_v51, 2  ;;  %v361_v59 = vrot.slane %v498_v47, 2  ;;  %v398_v60 = vshrl.u32 %v502_v48, 16 }
  0x36   : > { %v339_v57 = vmax.bf16 %v323_v50, %v295_v34  ;;  %v327_v62 = vrot.slane %v325_v55, 6  ;;  %v330_v63 = vrot.slane %v328_v56, 7  ;;  %v401_v0 = vshll.u32 %v502_v48, 16 }
  0x37   : > { %v262_v61 = vor.u32 %v261_v53, %v258_v52  ;;  %v412_v2 = vmax.bf16 %v396_v58, %v368_v44  ;;  %v400_v3 = vrot.slane %v398_v60, 6  ;;  %v296_v5 = vmax.bf16 %v490_v37, %v288_v54 }
  0x38   : > { %v343_v1 = vmax.bf16 %v339_v57, %v270_v49  ;;  %v331_v6 = vor.u32 %v330_v63, %v327_v62  ;;  %v403_v7 = vrot.slane %v401_v0, 7  ;;  %v369_v11 = vmax.bf16 %v498_v47, %v361_v59 }
  0x39   : > { %v263_v4 = vrot.slane %v262_v61, 2 }
  0x3a   : > { %v416_v8 = vmax.bf16 %v412_v2, %v343_v1  ;;  %v332_v10 = vrot.slane %v331_v6, 2  ;;  %v404_v12 = vor.u32 %v403_v7, %v400_v3 }
  0x3b   : > { %v271_v9 = vmax.bf16 %v263_v4, %v227_v45 }
  0x3c   : > { %420 = vst [vmem:[%s634_s27 + $0x2] sm:$0x1] %v416_v8  ;;  %v340_v13 = vmax.bf16 %v332_v10, %v296_v5  ;;  %v405_v14 = vrot.slane %v404_v12, 2 }
  0x3e   : > { %v344_v15 = vmax.bf16 %v340_v13, %v271_v9  ;;  %v413_v16 = vmax.bf16 %v405_v14, %v369_v11 }
  0x40   : > { %v417_v17 = vmax.bf16 %v413_v16, %v344_v15 }
  0x42   : > { %421 = vst [vmem:[%s634_s27 + $0x3] sm:$0x1] %v417_v17 }
  0x43 PF: > { %p8_p9 = scmp.ge.s32.totalorder %s584_s10, 4   ;;  %s659_s6 = smov %s551_s7 }
  0x44   : > { %s660_s7 = smov %s593_s13  ;;  %s661_s8 = smov %s584_s10 }
  0x45   :  { %10 = sbr.rel (!%p8_p9) target bundleno = 2 (0x2), region = 102 }

// kernel: _lambda_.13
= control target key start
LH: loop header
LB: loop body
LE: loop exit
PB: predicated region body
PF: predicated region fallthrough
CT: control target
= control target key end

     0   :  { %s1925_s24 = smov 0   ;;  %s2151_s0 = inlined_call_operand.vmem [shape: bf16[2,128,128], index: 0, kind: input, shape index: {}]   ;;  %s2152_s1 = inlined_call_operand.vmem [shape: bf16[5,128,128], index: 1, kind: input, shape index: {}]   ;;  %s2153_s2 = inlined_call_operand.vmem [shape: f32[1,128], index: 2, kind: input, shape index: {}]   ;;  %s2154_s3 = inlined_call_operand.vmem [shape: f32[1,128], index: 3, kind: input, shape index: {}]   ;;  %s2155_s4 = inlined_call_operand.vmem [shape: bf16[128,64], index: 4, kind: input, shape index: {}]   ;;  %s2156_s5 = inlined_call_operand.vmem [shape: f32[1,64], index: 5, kind: input, shape index: {}]   ;;  %s2157_s6 = inlined_call_operand.vmem [shape: f32[1,64], index: 6, kind: input, shape index: {}]   ;;  %s2158_s7 = inlined_call_operand.vmem [shape: bf16[2,64,64], index: 7, kind: output, shape index: {}]  }
   0x1 LB: > { %s1394_s25 = sadd.s32 4294967295, %s1883_s24   ;;  %p1398_p0 = scmp.ge.s32.totalorder %s1883_s24, 1  ;;  %s1883_s24 = sphi %s1925_s24, %s17_s24  }
   0x2   : > { %p237_p1 = scmp.lt.s32.totalorder %s1883_s24, 3 }
   0x4   : > { %p238_p2 = pnand %p1398_p0, %p237_p1 }
   0x5   : > { %v1812_v0 = vld [vmem:[%s2152_s1 + $0x40] sm:$0xff] (!%p238_p2)   ;;  %v1814_v2 = vld [vmem:[%s2152_s1 + $0x48] sm:$0xff] (!%p238_p2)   ;;  %p269_p3 = scmp.lt.s32.totalorder (!%p238_p2), %s1394_s25, 1  ;;  %v1816_v4 = vld [vmem:[%s2152_s1 + $0x50] sm:$0xff] (!%p238_p2)   ;;  %vm1330_vm0 = vcmask (!%p238_p2), 519168  }
   0x6   : > { %241 = sbr.rel (%p238_p2) target bundleno = 561 (0x231), region = 48  ;;  %v1813_v1 = vld [vmem:[%s2152_s1 + $0x80] sm:$0xff] (!%p238_p2)   ;;  %1628 = vmatprep.subr.bf16.mxu1 (!%p238_p2), %v1812_v0  ;;  %v1815_v3 = vld [vmem:[%s2152_s1 + $0x88] sm:$0xff] (!%p238_p2)   ;;  %v1817_v5 = vld [vmem:[%s2152_s1 + $0x90] sm:$0xff] (!%p238_p2)  }
   0x7   : > { %1676 = vmatprep.subr.bf16.mxu0 (!%p238_p2), %v1813_v1  ;;  %1629 = vmatpush3.bf16.msra.mxu1 (!%p238_p2), %v1812_v0  ;;  %v1818_v6 = vld [vmem:[%s2152_s1 + $0x58] sm:$0xff] (!%p238_p2)   ;;  %v1820_v8 = vld [vmem:[%s2152_s1 + $0x60] sm:$0xff] (!%p238_p2)   ;;  %v1822_v10 = vld [vmem:[%s2152_s1 + $0x68] sm:$0xff] (!%p238_p2)  }
   0x8   : > { %1677 = vmatpush3.bf16.msra.mxu0 (!%p238_p2), %v1813_v1  ;;  %1630 = vmatprep.subr.bf16.mxu1 (!%p238_p2), %v1814_v2  ;;  %v1819_v7 = vld [vmem:[%s2152_s1 + $0x98] sm:$0xff] (!%p238_p2)   ;;  %v1821_v9 = vld [vmem:[%s2152_s1 + $0xa0] sm:$0xff] (!%p238_p2)   ;;  %v1823_v12 = vld [vmem:[%s2152_s1 + $0xa8] sm:$0xff] (!%p238_p2)  }
   0x9   : > { %1678 = vmatprep.subr.bf16.mxu0 (!%p238_p2), %v1815_v3  ;;  %v1824_v14 = vld [vmem:[%s2152_s1 + $0x70] sm:$0xff] (!%p238_p2)   ;;  %v1826_v16 = vld [vmem:[%s2152_s1 + $0x78] sm:$0xff] (!%p238_p2)   ;;  %v1829_v18 = vld [vmem:[%s2152_s1] sm:$0xff] (!%p238_p2)  }
   0xa   : > { %v1825_v15 = vld [vmem:[%s2152_s1 + $0xb0] sm:$0xff] (!%p238_p2)   ;;  %v1827_v17 = vld [vmem:[%s2152_s1 + $0xb8] sm:$0xff] (!%p238_p2)   ;;  %v1831_v19 = vld [vmem:[%s2152_s1 + $0xc0] sm:$0xff] (!%p238_p2)  }
   0xb   : > { %1631 = vmatpush3.bf16.msra.mxu1 (!%p238_p2), %v1814_v2  ;;  %v1834_v22 = vld [vmem:[%s2152_s1 + $0x8] sm:$0xff] (!%p238_p2)   ;;  %v1836_v26 = vld [vmem:[%s2152_s1 + $0x10] sm:$0xff] (!%p238_p2)   ;;  %v1838_v28 = vld [vmem:[%s2152_s1 + $0x18] sm:$0xff] (!%p238_p2)  }
   0xc   : > { %1679 = vmatpush3.bf16.msra.mxu0 (!%p238_p2), %v1815_v3  ;;  %1632 = vmatprep.subr.bf16.mxu1 (!%p238_p2), %v1816_v4  ;;  %v1835_v23 = vld [vmem:[%s2152_s1 + $0xc8] sm:$0xff] (!%p238_p2)   ;;  %v1837_v27 = vld [vmem:[%s2152_s1 + $0xd0] sm:$0xff] (!%p238_p2)   ;;  %v1839_v31 = vld [vmem:[%s2152_s1 + $0xd8] sm:$0xff] (!%p238_p2)  }
   0xd   : > { %s2160_s25 = smov (!%p269_p3, %s1394_s25), 1  ;;  %1680 = vmatprep.subr.bf16.mxu0 %v1817_v5  ;;  %v1840_v34 = vld [vmem:[%s2152_s1 + $0x20] sm:$0xff]   ;;  %v1842_v36 = vld [vmem:[%s2152_s1 + $0x28] sm:$0xff]   ;;  %v1846_v38 = vld [vmem:[%s2152_s1 + $0x30] sm:$0xff]  }
   0xe   : > { %s1546_s19 = sshll.u32 %s2160_s25, 6  ;;  %v1841_v35 = vld [vmem:[%s2152_s1 + $0xe0] sm:$0xff]   ;;  %v1843_v37 = vld [vmem:[%s2152_s1 + $0xe8] sm:$0xff]   ;;  %v1848_v39 = vld [vmem:[%s2152_s1 + $0xf0] sm:$0xff]   ;;  %s1547_s9 = sshll.u32 %s2160_s25, 5 }
   0xf   : > { %1633 = vmatpush3.bf16.msra.mxu1 %v1816_v4  ;;  %s1969_s28 = scalar_lea.vmem %s2151_s0, %s1546_s19  ;;  %v1850_v40 = vld [vmem:[%s2152_s1 + $0x38] sm:$0xff]   ;;  %v1854_v42 = vld [vmem:[%s2152_s1 + $0x100] sm:$0xff]   ;;  %v1856_v45 = vld [vmem:[%s2152_s1 + $0x108] sm:$0xff]   ;;  %s2130_s12 = scalar_lea.vmem %s2158_s7, %s1547_s9 }
  0x10   : > { %1681 = vmatpush3.bf16.msra.mxu0 %v1817_v5  ;;  %1634 = vmatprep.subr.bf16.mxu1 %v1818_v6  ;;  %v1975_v11 = vld [vmem:[%s1969_s28 + $0x8] sm:$0xff]   ;;  %v1830_v13 = vld [vmem:[%s1969_s28 + $0x10] sm:$0xff]   ;;  %v1833_v21 = vld [vmem:[%s1969_s28 + $0x18] sm:$0xff]  }
  0x11   : > { %1682 = vmatprep.subr.bf16.mxu0 %v1819_v7  ;;  %1644 = vmatprep.mubr.bf16.mxu1 %v1975_v11  ;;  %v2001_v20 = vld [vmem:[%s1969_s28 + $0x10] sm:$0xff]   ;;  %v2011_v24 = vld [vmem:[%s1969_s28 + $0x18] sm:$0xff]   ;;  %v1847_v25 = vld [vmem:[%s1969_s28 + $0x20] sm:$0xff]  }
  0x12   : > { %1692 = vmatprep.mubr.bf16.mxu0 %v1830_v13  ;;  %v1845_v29 = vld [vmem:[%s1969_s28 + $0x20] sm:$0xff]   ;;  %v1849_v30 = vld [vmem:[%s1969_s28 + $0x28] sm:$0xff]   ;;  %v1853_v33 = vld [vmem:[%s1969_s28 + $0x18] sm:$0xff]  }
  0x13   : > { %1635 = vmatpush3.bf16.msra.mxu1 %v1818_v6  ;;  %v1852_v32 = vld [vmem:[%s1969_s28] sm:$0xff]   ;;  %v1851_v41 = vld [vmem:[%s2152_s1 + $0xf8] sm:$0xff]   ;;  %v1861_v44 = vld [vmem:[%s1969_s28 + $0x28] sm:$0xff]  }
  0x14   : > { %1683 = vmatpush3.bf16.msra.mxu0 %v1819_v7  ;;  %1636 = vmatprep.subr.bf16.mxu1 %v1820_v8  ;;  %v1855_v43 = vld [vmem:[%s1969_s28 + $0x20] sm:$0xff]   ;;  %v1857_v46 = vld [vmem:[%s2152_s1 + $0x110] sm:$0xff]   ;;  %v1858_v49 = vld [vmem:[%s2152_s1 + $0x118] sm:$0xff]  }
  0x15   : > { %1684 = vmatprep.subr.bf16.mxu0 %v1821_v9  ;;  %v1862_v47 = vld [vmem:[%s1969_s28 + $0x30] sm:$0xff]   ;;  %v1865_v48 = vld [vmem:[%s1969_s28 + $0x20] sm:$0xff]   ;;  %v1860_v51 = vld [vmem:[%s2152_s1 + $0x128] sm:$0xff]  }
  0x16   : > { %v1859_v50 = vld [vmem:[%s2152_s1 + $0x120] sm:$0xff]   ;;  %v1863_v52 = vld [vmem:[%s2152_s1 + $0x130] sm:$0xff]   ;;  %v1864_v53 = vld [vmem:[%s2152_s1 + $0x138] sm:$0xff]  }
  0x17   : > { %1637 = vmatpush3.bf16.msra.mxu1 %v1820_v8  ;;  %v1866_v54 = vld [vmem:[%s1969_s28 + $0x28] sm:$0xff]   ;;  %v1867_v55 = vld [vmem:[%s1969_s28 + $0x30] sm:$0xff]   ;;  %v1868_v56 = vld [vmem:[%s1969_s28 + $0x38] sm:$0xff]  }
  0x18   : > { %1685 = vmatpush3.bf16.msra.mxu0 %v1821_v9  ;;  %1638 = vmatprep.subr.bf16.mxu1 %v1822_v10  ;;  %v1869_v57 = vld [vmem:[%s2155_s4] sm:$0xff]   ;;  %v1870_v58 = vld [vmem:[%s2155_s4 + $0x8] sm:$0xff]   ;;  %v1871_v59 = vld [vmem:[%s2155_s4 + $0x10] sm:$0xff]  }
  0x19   : > { %1686 = vmatprep.subr.bf16.mxu0 %v1823_v12  ;;  %v1872_v60 = vld [vmem:[%s2155_s4 + $0x18] sm:$0xff]   ;;  %v1873_v61 = vld [vmem:[%s2155_s4 + $0x20] sm:$0xff]   ;;  %v1874_v62 = vld [vmem:[%s2155_s4 + $0x28] sm:$0xff]  }
  0x1a   : > { %v1875_v63 = vld [vmem:[%s2155_s4 + $0x30] sm:$0xff]   ;;  %v1876_v0 = vld [vmem:[%s2155_s4 + $0x38] sm:$0xff]   ;;  %v1525_v13 = vld [vmem:[%s2154_s3] ss:$0 sm:$0xff] }
  0x1b   : > { %1639 = vmatpush3.bf16.msra.mxu1 %v1822_v10  ;;  %v1524_v10 = vld [vmem:[%s2153_s2] ss:$0 sm:$0xff] }
  0x1c   : > { %1687 = vmatpush3.bf16.msra.mxu0 %v1823_v12  ;;  %1640 = vmatprep.subr.bf16.mxu1 %v1824_v14 }
  0x1d   : > { %1688 = vmatprep.subr.bf16.mxu0 %v1825_v15 }
  0x1f   : > { %1641 = vmatpush3.bf16.msra.mxu1 %v1824_v14 }
  0x20   : > { %1689 = vmatpush3.bf16.msra.mxu0 %v1825_v15  ;;  %1642 = vmatprep.subr.bf16.mxu1 %v1826_v16 }
  0x21   : > { %1690 = vmatprep.subr.bf16.mxu0 %v1827_v17 }
  0x23   : > { %1643 = vmatpush3.bf16.msra.mxu1 %v1826_v16 }
  0x24   : > { %1691 = vmatpush3.bf16.msra.mxu0 %v1827_v17  ;;  %1652 = vmatprep.subr.bf16.mxu1 %v1829_v18 }
  0x25   : > { %1700 = vmatprep.subr.bf16.mxu0 %v1831_v19 }
  0x26   : > { %1645 = vmatmul.mubr.bf16.vlgmr.msra.gmra.mrb[0].mxu1 %v2001_v20 }
  0x27   : > { %1653 = vmatpush3.bf16.msra.mxu1 %v1829_v18  ;;  %1693 = vmatmul.mubr.bf16.vlgmr.msra.gmra.mrb[0].mxu0 %v1833_v21 }
  0x28   : > { %1701 = vmatpush3.bf16.msra.mxu0 %v1831_v19  ;;  %1654 = vmatprep.subr.bf16.mxu1 %v1834_v22 }
  0x29   : > { %1702 = vmatprep.subr.bf16.mxu0 %v1835_v23  ;;  %1648 = vmatprep.mubr.bf16.mxu1 %v2011_v24 }
  0x2a   : > { %1696 = vmatprep.mubr.bf16.mxu0 %v1847_v25 }
  0x2b   : > { %1655 = vmatpush3.bf16.msra.mxu1 %v1834_v22 }
  0x2c   : > { %1703 = vmatpush3.bf16.msra.mxu0 %v1835_v23  ;;  %1656 = vmatprep.subr.bf16.mxu1 %v1836_v26 }
  0x2d   : > { %1704 = vmatprep.subr.bf16.mxu0 %v1837_v27 }
  0x2e   : > { %1649 = vmatmul.mubr.bf16.gmra.mrb[4].mxu1 %v1845_v29 }
  0x2f   : > { %1657 = vmatpush3.bf16.msra.mxu1 %v1836_v26  ;;  %1697 = vmatmul.mubr.bf16.gmra.mrb[4].mxu0 %v1849_v30 }
  0x30   : > { %1705 = vmatpush3.bf16.msra.mxu0 %v1837_v27  ;;  %1658 = vmatprep.subr.bf16.mxu1 %v1838_v28 }
  0x31   : > { %1706 = vmatprep.subr.bf16.mxu0 %v1839_v31  ;;  %1668 = vmatprep.mubr.bf16.mxu1 %v1852_v32 }
  0x32   : > { %1716 = vmatprep.mubr.bf16.mxu0 %v1853_v33 }
  0x33   : > { %1659 = vmatpush3.bf16.msra.mxu1 %v1838_v28 }
  0x34   : > { %1707 = vmatpush3.bf16.msra.mxu0 %v1839_v31  ;;  %1660 = vmatprep.subr.bf16.mxu1 %v1840_v34 }
  0x35   : > { %1708 = vmatprep.subr.bf16.mxu0 %v1841_v35 }
  0x37   : > { %1661 = vmatpush3.bf16.msra.mxu1 %v1840_v34 }
  0x38   : > { %1709 = vmatpush3.bf16.msra.mxu0 %v1841_v35  ;;  %1662 = vmatprep.subr.bf16.mxu1 %v1842_v36 }
  0x39   : > { %1710 = vmatprep.subr.bf16.mxu0 %v1843_v37 }
  0x3b   : > { %1663 = vmatpush3.bf16.msra.mxu1 %v1842_v36 }
  0x3c   : > { %1711 = vmatpush3.bf16.msra.mxu0 %v1843_v37  ;;  %1664 = vmatprep.subr.bf16.mxu1 %v1846_v38 }
  0x3d   : > { %1712 = vmatprep.subr.bf16.mxu0 %v1848_v39 }
  0x3f   : > { %1665 = vmatpush3.bf16.msra.mxu1 %v1846_v38 }
  0x40   : > { %1713 = vmatpush3.bf16.msra.mxu0 %v1848_v39  ;;  %1666 = vmatprep.subr.bf16.mxu1 %v1850_v40 }
  0x41   : > { %1714 = vmatprep.subr.bf16.mxu0 %v1851_v41 }
  0x43   : > { %1667 = vmatpush3.bf16.msra.mxu1 %v1850_v40 }
  0x44   : > { %1715 = vmatpush3.bf16.msra.mxu0 %v1851_v41  ;;  %1748 = vmatprep.subr.bf16.mxu1 %v1869_v57 }
  0x45   : > { %1724 = vmatprep.subr.bf16.mxu0 %v1854_v42 }
  0x46   : > { %1669 = vmatmul.mubr.bf16.vlgmr.msra.gmra.mrb[0].mxu1 %v1975_v11 }
  0x47   : > { %1717 = vmatmul.mubr.bf16.vlgmr.msra.gmra.mrb[0].mxu0 %v1855_v43  ;;  %1672 = vmatprep.mubr.bf16.mxu1 %v2001_v20 }
  0x48   : > { %1725 = vmatpush3.bf16.msra.mxu0 %v1854_v42  ;;  %1720 = vmatprep.mubr.bf16.mxu0 %v1861_v44 }
  0x49   : > { %1726 = vmatprep.subr.bf16.mxu0 %v1856_v45  ;;  %1749 = vmatpush3.bf16.msra.mxu1 %v1869_v57  ;;  %v1535_v57 = vld [vmem:[%s2157_s6] ss:$0 sm:$0xff] }
  0x4a   : > { %1750 = vmatprep.subr.bf16.mxu1 %v1870_v58 }
  0x4c   : > { %1727 = vmatpush3.bf16.msra.mxu0 %v1856_v45 }
  0x4d   : > { %1728 = vmatprep.subr.bf16.mxu0 %v1857_v46  ;;  %1751 = vmatpush3.bf16.msra.mxu1 %v1870_v58 }
  0x4e   : > { %1673 = vmatmul.mubr.bf16.gmra.mrb[4].mxu1 %v2011_v24  ;;  %1752 = vmatprep.subr.bf16.mxu1 %v1871_v59 }
  0x4f   : > { %1721 = vmatmul.mubr.bf16.gmra.mrb[4].mxu0 %v1862_v47 }
  0x50   : > { %1729 = vmatpush3.bf16.msra.mxu0 %v1857_v46  ;;  %1740 = vmatprep.mubr.bf16.mxu0 %v1865_v48 }
  0x51   : > { %1730 = vmatprep.subr.bf16.mxu0 %v1858_v49  ;;  %1753 = vmatpush3.bf16.msra.mxu1 %v1871_v59 }
  0x52   : > { %1754 = vmatprep.subr.bf16.mxu1 %v1872_v60 }
  0x54   : > { %1731 = vmatpush3.bf16.msra.mxu0 %v1858_v49 }
  0x55   : > { %1732 = vmatprep.subr.bf16.mxu0 %v1859_v50  ;;  %1755 = vmatpush3.bf16.msra.mxu1 %v1872_v60 }
  0x56   : > { %1756 = vmatprep.subr.bf16.mxu1 %v1873_v61 }
  0x58   : > { %1733 = vmatpush3.bf16.msra.mxu0 %v1859_v50 }
  0x59   : > { %1734 = vmatprep.subr.bf16.mxu0 %v1860_v51  ;;  %1757 = vmatpush3.bf16.msra.mxu1 %v1873_v61 }
  0x5a   : > { %1758 = vmatprep.subr.bf16.mxu1 %v1874_v62 }
  0x5c   : > { %1735 = vmatpush3.bf16.msra.mxu0 %v1860_v51 }
  0x5d   : > { %1736 = vmatprep.subr.bf16.mxu0 %v1863_v52  ;;  %1759 = vmatpush3.bf16.msra.mxu1 %v1874_v62 }
  0x5e   : > { %1760 = vmatprep.subr.bf16.mxu1 %v1875_v63 }
  0x60   : > { %1737 = vmatpush3.bf16.msra.mxu0 %v1863_v52 }
  0x61   : > { %1738 = vmatprep.subr.bf16.mxu0 %v1864_v53  ;;  %1761 = vmatpush3.bf16.msra.mxu1 %v1875_v63 }
  0x62   : > { %1762 = vmatprep.subr.bf16.mxu1 %v1876_v0 }
  0x64   : > { %1739 = vmatpush3.bf16.msra.mxu0 %v1864_v53 }
  0x65   : > { %1763 = vmatpush3.bf16.msra.mxu1 %v1876_v0 }
  0x67   : > { %1741 = vmatmul.mubr.bf16.vlgmr.msra.gmra.mrb[0].mxu0 %v1866_v54 }
  0x68   : > { %1744 = vmatprep.mubr.bf16.mxu0 %v1867_v55  ;;  %v1534_v55 = vld [vmem:[%s2156_s5] ss:$0 sm:$0xff] }
  0x6f   : > { %1745 = vmatmul.mubr.bf16.gmra.mrb[4].mxu0 %v1868_v56 }
 0x119   : > { %v1670_v1 = vpop.f32.mrb[0].mxu1 }
 0x11a   : > { %v548_v2 = vpop.f32.mrb[1].mxu1 }
 0x11b   : > { %v1671_v3 = vpop.f32.mrb[2].mxu1 }
 0x11c   : > { %v551_v4 = vpop.f32.mrb[3].mxu1 }
 0x121   : > { %v1674_v5 = vpop.f32.mrb[4].mxu1 }
 0x122   : > { %v564_v6 = vpop.f32.mrb[5].mxu1 }
 0x123   : > { %v1675_v7 = vpop.f32.mrb[6].mxu1 }
 0x124   : > { %v567_v8 = vpop.f32.mrb[7].mxu1 }
 0x13a   : > { %v1742_v9 = vpop.f32.mrb[0].mxu0 }
 0x13b   : > { %v1772_v11 = vadd.f32 %v1742_v9, %v1670_v1  ;;  %v1050_v12 = vpop.f32.mrb[1].mxu0 }
 0x13c   : > { %v1773_v14 = vadd.f32 %v1050_v12, %v548_v2  ;;  %v1743_v15 = vpop.f32.mrb[2].mxu0 }
 0x13d   : > { %v1098_v16 = vmul.f32 %v1772_v11, %v1524_v10  ;;  %v1774_v17 = vadd.f32 %v1743_v15, %v1671_v3  ;;  %v1053_v18 = vpop.f32.mrb[3].mxu0 }
 0x13e   : > { %v1096_v19 = vmul.f32 %v1773_v14, %v1524_v10  ;;  %v1775_v20 = vadd.f32 %v1053_v18, %v551_v4 }
 0x13f   : > { %v1113_v21 = vadd.f32 %v1525_v13, %v1098_v16  ;;  %v1099_v22 = vmul.f32 %v1774_v17, %v1524_v10 }
 0x140   : > { %v1111_v23 = vadd.f32 %v1525_v13, %v1096_v19  ;;  %v1097_v24 = vmul.f32 %v1775_v20, %v1524_v10 }
 0x141   : > { %v1114_v25 = vadd.f32 %v1525_v13, %v1099_v22  ;;  %v1121_v28 = vmax.f32 %v1113_v21, 0.0 }
 0x142   : > { %v1112_v26 = vadd.f32 %v1525_v13, %v1097_v24  ;;  %v1746_v27 = vpop.f32.mrb[4].mxu0  ;;  %v1119_v32 = vmax.f32 %v1111_v23, 0.0 }
 0x143   : > { %v1122_v29 = vmax.f32 %v1114_v25, 0.0  ;;  %v1776_v30 = vadd.f32 %v1746_v27, %v1674_v5  ;;  %v1066_v31 = vpop.f32.mrb[5].mxu0 }
 0x144   : > { %v1120_v33 = vmax.f32 %v1112_v26, 0.0  ;;  %v1777_v34 = vadd.f32 %v1066_v31, %v564_v6  ;;  %v1747_v35 = vpop.f32.mrb[6].mxu0 }
 0x145   : > { %v1128_v36 = vpack.c.bf16 %v1122_v29, %v1121_v28  ;;  %v1102_v37 = vmul.f32 %v1776_v30, %v1524_v10  ;;  %v1778_v38 = vadd.f32 %v1747_v35, %v1675_v7  ;;  %v1069_v39 = vpop.f32.mrb[7].mxu0 }
 0x146   : > { %v1100_v40 = vmul.f32 %v1777_v34, %v1524_v10  ;;  %v1779_v41 = vadd.f32 %v1069_v39, %v567_v8  ;;  %v1127_v42 = vpack.c.bf16 %v1120_v33, %v1119_v32 }
 0x147   : > { %v1117_v43 = vadd.f32 %v1525_v13, %v1102_v37  ;;  %v1103_v44 = vmul.f32 %v1778_v38, %v1524_v10 }
 0x148   : > { %v1115_v45 = vadd.f32 %v1525_v13, %v1100_v40  ;;  %v1101_v46 = vmul.f32 %v1779_v41, %v1524_v10  ;;  %1764 = vmatprep.mubr.bf16.mxu1 %v1127_v42 }
 0x149   : > { %v1118_v47 = vadd.f32 %v1525_v13, %v1103_v44  ;;  %1765 = vmatmul.mubr.bf16.vlgmr.msra.gmra.mrb[8].mxu1 %v1128_v36  ;;  %v1125_v49 = vmax.f32 %v1117_v43, 0.0 }
 0x14a   : > { %v1116_v48 = vadd.f32 %v1525_v13, %v1101_v46  ;;  %v1123_v51 = vmax.f32 %v1115_v45, 0.0 }
 0x14b   : > { %v1126_v50 = vmax.f32 %v1118_v47, 0.0 }
 0x14c   : > { %v1124_v52 = vmax.f32 %v1116_v48, 0.0 }
 0x14d   : > { %v1130_v53 = vpack.c.bf16 %v1126_v50, %v1125_v49 }
 0x14e   : > { %v1129_v54 = vpack.c.bf16 %v1124_v52, %v1123_v51 }
 0x150   : > { %1768 = vmatprep.mubr.bf16.mxu1 %v1129_v54 }
 0x151   : > { %1769 = vmatmul.mubr.bf16.gmra.mrb[12].mxu1 %v1130_v53 }
 0x21c   : > { %v1766_v56 = vpop.f32.mrb[8].mxu1 }
 0x21d   : > { %v1269_v58 = vmul.f32 %v1766_v56, %v1534_v55  ;;  %v1229_v59 = vpop.f32.mrb[9].mxu1 }
 0x21e   : > { %v1267_v60 = vmul.f32 %v1534_v55, %v1229_v59  ;;  %v1767_v61 = vpop.f32.mrb[10].mxu1 }
 0x21f   : > { %v1284_v62 = vadd.f32 %v1535_v57, %v1269_v58  ;;  %v1270_v63 = vmul.f32 %v1767_v61, %v1534_v55  ;;  %v1232_v0 = vpop.f32.mrb[11].mxu1 }
 0x220   : > { %v1282_v1 = vadd.f32 %v1535_v57, %v1267_v60  ;;  %v1268_v2 = vmul.f32 %v1534_v55, %v1232_v0 }
 0x221   : > { %v1292_v3 = vmax.f32 %v1284_v62, 0.0  ;;  %v1285_v4 = vadd.f32 %v1535_v57, %v1270_v63 }
 0x222   : > { %v1290_v5 = vmax.f32 %v1282_v1, 0.0  ;;  %v1283_v6 = vadd.f32 %v1535_v57, %v1268_v2 }
 0x223   : > { %v1550_v7 = vpack.c.bf16 %v1292_v3, %v1292_v3  ;;  %v1293_v8 = vmax.f32 %v1285_v4, 0.0 }
 0x224   : > { %v1548_v9 = vpack.c.bf16 %v1290_v5, %v1290_v5  ;;  %v1291_v10 = vmax.f32 %v1283_v6, 0.0  ;;  %v1770_v11 = vpop.f32.mrb[12].mxu1 }
 0x225   : > { %1333 = vst.msk [vmem:[%s2130_s12 + $0x8] sm:$0xf] %vm1330_vm0, %v1550_v7  ;;  %v1551_v12 = vpack.c.bf16 %v1293_v8, %v1293_v8  ;;  %v1273_v13 = vmul.f32 %v1770_v11, %v1534_v55  ;;  %v1245_v14 = vpop.f32.mrb[13].mxu1 }
 0x226   : > { %1331 = vst.msk [vmem:[%s2130_s12] sm:$0xf] %vm1330_vm0, %v1548_v9  ;;  %v1549_v15 = vpack.c.bf16 %v1291_v10, %v1291_v10  ;;  %v1271_v16 = vmul.f32 %v1534_v55, %v1245_v14  ;;  %v1771_v17 = vpop.f32.mrb[14].mxu1 }
 0x227   : > { %1334 = vst.msk [vmem:[%s2130_s12 + $0xc] sm:$0xf] %vm1330_vm0, %v1551_v12  ;;  %v1288_v18 = vadd.f32 %v1535_v57, %v1273_v13  ;;  %v1274_v19 = vmul.f32 %v1771_v17, %v1534_v55  ;;  %v1248_v20 = vpop.f32.mrb[15].mxu1 }
 0x228   : > { %1332 = vst.msk [vmem:[%s2130_s12 + $0x4] sm:$0xf] %vm1330_vm0, %v1549_v15  ;;  %v1286_v21 = vadd.f32 %v1535_v57, %v1271_v16  ;;  %v1272_v22 = vmul.f32 %v1534_v55, %v1248_v20 }
 0x229   : > { %v1296_v23 = vmax.f32 %v1288_v18, 0.0  ;;  %v1289_v24 = vadd.f32 %v1535_v57, %v1274_v19 }
 0x22a   : > { %v1294_v25 = vmax.f32 %v1286_v21, 0.0  ;;  %v1287_v26 = vadd.f32 %v1535_v57, %v1272_v22 }
 0x22b   : > { %v1554_v27 = vpack.c.bf16 %v1296_v23, %v1296_v23  ;;  %v1297_v28 = vmax.f32 %v1289_v24, 0.0 }
 0x22c   : > { %v1552_v29 = vpack.c.bf16 %v1294_v25, %v1294_v25  ;;  %v1295_v30 = vmax.f32 %v1287_v26, 0.0 }
 0x22d   : > { %1337 = vst.msk [vmem:[%s2130_s12 + $0x18] sm:$0xf] %vm1330_vm0, %v1554_v27  ;;  %v1555_v31 = vpack.c.bf16 %v1297_v28, %v1297_v28 }
 0x22e   : > { %1335 = vst.msk [vmem:[%s2130_s12 + $0x10] sm:$0xf] %vm1330_vm0, %v1552_v29  ;;  %v1553_v32 = vpack.c.bf16 %v1295_v30, %v1295_v30 }
 0x22f   : > { %1338 = vst.msk [vmem:[%s2130_s12 + $0x1c] sm:$0xf] %vm1330_vm0, %v1555_v31 }
 0x230   : > { %1336 = vst.msk [vmem:[%s2130_s12 + $0x14] sm:$0xf] %vm1330_vm0, %v1553_v32 }
 0x231 PF: > { %s17_s24 = sadd.s32 1, %s1883_s24  }
 0x232   : > { %p14_p4 = scmp.ge.s32.totalorder %s17_s24, 4  }
 0x234   :  { %16 = sbr.rel (!%p14_p4) target bundleno = 1 (0x1), region = 82 }

// kernel: _lambda_.12
= control target key start
LH: loop header
LB: loop body
LE: loop exit
PB: predicated region body
PF: predicated region fallthrough
CT: control target
= control target key end

     0   :  { %s4175_s15 = smov 0   ;;  %s5228_s0 = inlined_call_operand.vmem [shape: bf16[8,32,160], index: 0, kind: input, shape index: {}]   ;;  %s5229_s1 = inlined_call_operand.vmem [shape: bf16[5,160,128], index: 1, kind: input, shape index: {}]   ;;  %s5230_s2 = inlined_call_operand.vmem [shape: f32[1,128], index: 2, kind: input, shape index: {}]   ;;  %s5231_s3 = inlined_call_operand.vmem [shape: f32[1,128], index: 3, kind: input, shape index: {}]   ;;  %s5232_s4 = inlined_call_operand.vmem [shape: bf16[8,16,128], index: 4, kind: output, shape index: {}]  }
   0x1 LB: > { %s3127_s16 = sadd.s32 4294967295, %s4147_s15   ;;  %p3131_p0 = scmp.ge.s32.totalorder %s4147_s15, 1  ;;  %s4147_s15 = sphi %s4175_s15, %s14_s15  }
   0x2   : > { %p164_p1 = scmp.lt.s32.totalorder %s4147_s15, 3 }
   0x4   : > { %p165_p2 = pnand %p3131_p0, %p164_p1 }
   0x5   : > { %v3885_v0 = vld [vmem:[%s5229_s1 + $0x50] sm:$0xff] (!%p165_p2)   ;;  %v4149_v1 = vmov (!%p165_p2), 0   ;;  %v3887_v3 = vld [vmem:[%s5229_s1 + $0x58] sm:$0xff] (!%p165_p2)   ;;  %s3132_s25 = sshll.u32 (!%p165_p2), %s3127_s16, 2  ;;  %v3889_v5 = vld [vmem:[%s5229_s1 + $0x60] sm:$0xff] (!%p165_p2)   ;;  %vm267_vm0 = vcmask (!%p165_p2), 1045504  }
   0x6   : > { %168 = sbr.rel (%p165_p2) target bundleno = 629 (0x275), region = 36  ;;  %339 = vmatprep.subr.bf16.mxu0 (!%p165_p2), %v4149_v1  ;;  %1064 = vmatprep.subr.bf16.mxu1 (!%p165_p2), %v4149_v1  ;;  %v3886_v2 = vld [vmem:[%s5229_s1 + $0x50] sm:$0xff] (!%p165_p2)   ;;  %v3888_v4 = vld [vmem:[%s5229_s1 + $0x58] sm:$0xff] (!%p165_p2)   ;;  %p193_p3 = scmp.lt.s32.totalorder (!%p165_p2), %s3132_s25, 7  ;;  %v3890_v6 = vld [vmem:[%s5229_s1 + $0x60] sm:$0xff] (!%p165_p2)   ;;  %vm335_vm1 = vcmask (!%p165_p2), 261120  }
   0x7   : > { %340 = vmatpush1.bf16.msra.mxu0 (!%p165_p2), %v3885_v0  ;;  %1065 = vmatpush1.bf16.msra.mxu1 (!%p165_p2), %v3886_v2  ;;  %v3891_v7 = vld [vmem:[%s5229_s1 + $0x68] sm:$0xff] (!%p165_p2)   ;;  %v3893_v9 = vld [vmem:[%s5229_s1 + $0x70] sm:$0xff] (!%p165_p2)   ;;  %v3895_v11 = vld [vmem:[%s5229_s1 + $0x78] sm:$0xff] (!%p165_p2)  }
   0x8   : > { %341 = vmatprep.subr.bf16.mxu0 (!%p165_p2), %v4149_v1  ;;  %1066 = vmatprep.subr.bf16.mxu1 (!%p165_p2), %v4149_v1  ;;  %v3892_v8 = vld [vmem:[%s5229_s1 + $0x68] sm:$0xff] (!%p165_p2)   ;;  %v3894_v10 = vld [vmem:[%s5229_s1 + $0x70] sm:$0xff] (!%p165_p2)   ;;  %v3896_v12 = vld [vmem:[%s5229_s1 + $0x78] sm:$0xff] (!%p165_p2)  }
   0x9   : > { %v3897_v21 = vld [vmem:[%s5229_s1 + $0x80] sm:$0xff] (!%p165_p2)   ;;  %v3899_v30 = vld [vmem:[%s5229_s1 + $0x88] sm:$0xff] (!%p165_p2)   ;;  %v3901_v33 = vld [vmem:[%s5229_s1 + $0x90] sm:$0xff] (!%p165_p2)  }
   0xa   : > { %v3898_v24 = vld [vmem:[%s5229_s1 + $0x80] sm:$0xff] (!%p165_p2)   ;;  %v3900_v32 = vld [vmem:[%s5229_s1 + $0x88] sm:$0xff] (!%p165_p2)   ;;  %v3902_v36 = vld [vmem:[%s5229_s1 + $0x90] sm:$0xff] (!%p165_p2)  }
   0xb   : > { %342 = vmatpush1.bf16.msra.mxu0 (!%p165_p2), %v3887_v3  ;;  %1067 = vmatpush1.bf16.msra.mxu1 (!%p165_p2), %v3888_v4  ;;  %v3903_v39 = vld [vmem:[%s5229_s1 + $0x98] sm:$0xff] (!%p165_p2)   ;;  %v3911_v46 = vld [vmem:[%s5229_s1] sm:$0xff] (!%p165_p2)   ;;  %v3915_v49 = vld [vmem:[%s5229_s1 + $0x8] sm:$0xff] (!%p165_p2)  }
   0xc   : > { %343 = vmatprep.subr.bf16.mxu0 (!%p165_p2), %v4149_v1  ;;  %1068 = vmatprep.subr.bf16.mxu1 (!%p165_p2), %v4149_v1  ;;  %v3904_v40 = vld [vmem:[%s5229_s1 + $0x98] sm:$0xff] (!%p165_p2)   ;;  %v3914_v48 = vld [vmem:[%s5229_s1] sm:$0xff] (!%p165_p2)   ;;  %v3916_v50 = vld [vmem:[%s5229_s1 + $0x8] sm:$0xff] (!%p165_p2)  }
   0xd   : > { %s5234_s25 = smov (!%p193_p3, %s3132_s25), 7  ;;  %v3917_v55 = vld [vmem:[%s5229_s1 + $0x10] sm:$0xff]   ;;  %v3919_v57 = vld [vmem:[%s5229_s1 + $0x18] sm:$0xff]   ;;  %v3921_v59 = vld [vmem:[%s5229_s1 + $0x20] sm:$0xff]  }
   0xe   : > { %s3779_s10 = sshll.u32 %s5234_s25, 5  ;;  %v3918_v56 = vld [vmem:[%s5229_s1 + $0x10] sm:$0xff]   ;;  %v3920_v58 = vld [vmem:[%s5229_s1 + $0x18] sm:$0xff]   ;;  %v3922_v60 = vld [vmem:[%s5229_s1 + $0x20] sm:$0xff]   ;;  %s3780_s6 = sshll.u32 %s5234_s25, 3 }
   0xf   : > { %344 = vmatpush1.bf16.msra.mxu0 %v3889_v5  ;;  %1069 = vmatpush1.bf16.msra.mxu1 %v3890_v6  ;;  %s4229_s16 = scalar_lea.vmem %s5228_s0, %s3779_s10  ;;  %v3923_v61 = vld [vmem:[%s5229_s1 + $0x28] sm:$0xff]   ;;  %v3925_v63 = vld [vmem:[%s5229_s1 + $0x30] sm:$0xff]   ;;  %v3927_v2 = vld [vmem:[%s5229_s1 + $0x38] sm:$0xff]   ;;  %s204_s9 = scalar_lea.vmem %s5232_s4, %s3780_s6 }
  0x10   : > { %345 = vmatprep.subr.bf16.mxu0 %v4149_v1  ;;  %1070 = vmatprep.subr.bf16.mxu1 %v4149_v1  ;;  %v4240_v13 = vld [vmem:[%s4229_s16 + $0x8] sm:$0xff]  ;;  %v231_v14 = vld [vmem:[%s4229_s16] sm:$0xcc]  ;;  %v232_v15 = vld [vmem:[%s4229_s16 + $0x10] sm:$0x33] }
  0x11   : > { %v3159_v16 = vcombine.high %v231_v14, %v4240_v13  ;;  %v3161_v17 = vcombine.high %v232_v15, %v232_v15  ;;  %v4246_v18 = vld [vmem:[%s4229_s16 + $0x28] sm:$0xff]  ;;  %v3293_v19 = vld [vmem:[%s4229_s16 + $0x20] sm:$0xcc]  ;;  %v3294_v20 = vld [vmem:[%s4229_s16 + $0x30] sm:$0x33]  ;;  %v3158_v34 = vcombine.low %v231_v14, %v4240_v13  ;;  %v3160_v35 = vcombine.low %v232_v15, %v232_v15 }
  0x12   : > { %v3316_v22 = vcombine.high %v3293_v19, %v4246_v18  ;;  %v3318_v23 = vcombine.high %v3294_v20, %v3294_v20  ;;  %v3315_v37 = vcombine.low %v3293_v19, %v4246_v18  ;;  %v3317_v38 = vcombine.low %v3294_v20, %v3294_v20  ;;  %v4307_v51 = vld [vmem:[%s4229_s16] sm:$0xff]  ;;  %v3924_v62 = vld [vmem:[%s5229_s1 + $0x28] sm:$0xff]   ;;  %v3926_v0 = vld [vmem:[%s5229_s1 + $0x30] sm:$0xff]  }
  0x13   : > { %346 = vmatpush1.bf16.msra.mxu0 %v3891_v7  ;;  %1071 = vmatpush1.bf16.msra.mxu1 %v3892_v8  ;;  %v271_v25 = vrot.slane %v3159_v16, 2  ;;  %v272_v26 = vrot.slane %v3161_v17, 2  ;;  %v268_v41 = vrot.slane %v3158_v34, 2  ;;  %v269_v42 = vrot.slane %v3160_v35, 2  ;;  %v4310_v52 = vld [vmem:[%s4229_s16 + $0x20] sm:$0xff]  ;;  %v3928_v3 = vld [vmem:[%s5229_s1 + $0x38] sm:$0xff]  }
  0x14   : > { %347 = vmatprep.subr.bf16.mxu0 %v4149_v1  ;;  %1072 = vmatprep.subr.bf16.mxu1 %v4149_v1  ;;  %v997_v27 = vrot.slane %v3316_v22, 2  ;;  %v998_v28 = vrot.slane %v3318_v23, 2  ;;  %v994_v43 = vrot.slane %v3315_v37, 2  ;;  %v995_v44 = vrot.slane %v3317_v38, 2  ;;  %v3929_v4 = vld [vmem:[%s5229_s1 + $0x40] sm:$0xff]   ;;  %v3931_v6 = vld [vmem:[%s5229_s1 + $0x48] sm:$0xff]  }
  0x15   : > { %v273_v29 = vsel %vm267_vm0, %v271_v25, %v272_v26  ;;  %v270_v45 = vsel %vm267_vm0, %v268_v41, %v269_v42  ;;  %v3174_v53 = vcombine.high %v4307_v51, %v4240_v13  ;;  %v3331_v54 = vcombine.high %v4310_v52, %v4246_v18  ;;  %v3930_v5 = vld [vmem:[%s5229_s1 + $0x40] sm:$0xff]   ;;  %v3932_v7 = vld [vmem:[%s5229_s1 + $0x48] sm:$0xff]   ;;  %v3941_v20 = vld [vmem:[%s5229_s1 + $0xb0] sm:$0xff]  }
  0x16   : > { %3172 = vmatprep.mubr.msk.bf16.mxu0 %vm335_vm1, %v273_v29  ;;  %v999_v31 = vsel %vm267_vm0, %v997_v27, %v998_v28  ;;  %v996_v47 = vsel %vm267_vm0, %v994_v43, %v995_v44  ;;  %v3936_v8 = vld [vmem:[%s5229_s1 + $0xa0] sm:$0xff]   ;;  %v3939_v17 = vld [vmem:[%s5229_s1 + $0xa8] sm:$0xff]   ;;  %v3943_v22 = vld [vmem:[%s5229_s1 + $0xb8] sm:$0xff]  }
  0x17   : > { %348 = vmatpush1.bf16.msra.mxu0 %v3893_v9  ;;  %1073 = vmatpush1.bf16.msra.mxu1 %v3894_v10  ;;  %v3173_v9 = vcombine.low %v4307_v51, %v4240_v13  ;;  %v4389_v10 = vld [vmem:[%s4229_s16 + $0x10] sm:$0xff]  ;;  %v3938_v14 = vld [vmem:[%s5229_s1 + $0xa0] sm:$0xff]   ;;  %v3940_v19 = vld [vmem:[%s5229_s1 + $0xa8] sm:$0xff]  }
  0x18   : > { %349 = vmatprep.subr.bf16.mxu0 %v4149_v1  ;;  %1074 = vmatprep.subr.bf16.mxu1 %v4149_v1  ;;  %v3207_v15 = vcombine.high %v4240_v13, %v4389_v10  ;;  %v3944_v23 = vld [vmem:[%s5229_s1 + $0xb8] sm:$0xff]   ;;  %v3946_v25 = vld [vmem:[%s5229_s1 + $0xc0] sm:$0xff]   ;;  %v3947_v26 = vld [vmem:[%s5229_s1 + $0xc8] sm:$0xff]  }
  0x19   : > { %3329 = vmatprep.mubr.msk.bf16.mxu1 %vm335_vm1, %v999_v31  ;;  %v3948_v27 = vld [vmem:[%s5229_s1 + $0xc8] sm:$0xff]   ;;  %v3949_v28 = vld [vmem:[%s5229_s1 + $0xd0] sm:$0xff]   ;;  %v3952_v31 = vld [vmem:[%s5229_s1 + $0xd8] sm:$0xff]  }
  0x1a   : > { %v3950_v29 = vld [vmem:[%s5229_s1 + $0xd0] sm:$0xff]   ;;  %v3954_v34 = vld [vmem:[%s5229_s1 + $0xe0] sm:$0xff]   ;;  %v4473_v35 = vld [vmem:[%s4229_s16 + $0x18] sm:$0x33] }
  0x1b   : > { %350 = vmatpush1.bf16.msra.mxu0 %v3895_v11  ;;  %1075 = vmatpush1.bf16.msra.mxu1 %v3896_v12  ;;  %v3330_v11 = vcombine.low %v4310_v52, %v4246_v18  ;;  %v4394_v12 = vld [vmem:[%s4229_s16 + $0x30] sm:$0xff]  ;;  %v4480_v37 = vld [vmem:[%s4229_s16 + $0x38] sm:$0x33]  ;;  %v3956_v43 = vld [vmem:[%s5229_s1 + $0xe8] sm:$0xff]  }
  0x1c   : > { %351 = vmatprep.subr.bf16.mxu0 %v4149_v1  ;;  %1076 = vmatprep.subr.bf16.mxu1 %v4149_v1  ;;  %v3365_v16 = vcombine.high %v4246_v18, %v4394_v12  ;;  %v3403_v42 = vcombine.high %v4480_v37, %v4480_v37  ;;  %v3960_v44 = vld [vmem:[%s5229_s1 + $0xf0] sm:$0xff]  }
  0x1d   : > { %v3962_v51 = vld [vmem:[%s5229_s1 + $0xf0] sm:$0xff]  }
  0x1f   : > { %352 = vmatpush1.bf16.msra.mxu0 %v3897_v21  ;;  %1077 = vmatpush1.bf16.msra.mxu1 %v3898_v24  ;;  %v3942_v21 = vld [vmem:[%s5229_s1 + $0xb0] sm:$0xff]   ;;  %v3945_v24 = vld [vmem:[%s5229_s1 + $0xc0] sm:$0xff]  }
  0x20   : > { %353 = vmatprep.subr.bf16.mxu0 %v4149_v1  ;;  %1078 = vmatprep.subr.bf16.mxu1 %v4149_v1 }
  0x23   : > { %354 = vmatpush1.bf16.msra.mxu0 %v3899_v30  ;;  %1079 = vmatpush1.bf16.msra.mxu1 %v3900_v32  ;;  %v3951_v30 = vld [vmem:[%s5229_s1 + $0xd8] sm:$0xff]   ;;  %v3953_v32 = vld [vmem:[%s5229_s1 + $0xe0] sm:$0xff]  }
  0x24   : > { %355 = vmatprep.subr.bf16.mxu0 %v4149_v1  ;;  %1080 = vmatprep.subr.bf16.mxu1 %v4149_v1 }
  0x27   : > { %356 = vmatpush1.bf16.msra.mxu0 %v3901_v33  ;;  %1081 = vmatpush1.bf16.msra.mxu1 %v3902_v36  ;;  %v4467_v33 = vld [vmem:[%s4229_s16 + $0x8] sm:$0xcc] }
  0x28   : > { %357 = vmatprep.subr.bf16.mxu0 %v4149_v1  ;;  %1082 = vmatprep.subr.bf16.mxu1 %v4149_v1  ;;  %v4476_v36 = vld [vmem:[%s4229_s16 + $0x28] sm:$0xcc]  ;;  %v3240_v38 = vcombine.high %v4467_v33, %v4389_v10 }
  0x29   : > { %v3401_v41 = vcombine.high %v4476_v36, %v4394_v12 }
  0x2b   : > { %358 = vmatpush1.bf16.msra.mxu0 %v3903_v39  ;;  %1083 = vmatpush1.bf16.msra.mxu1 %v3904_v40  ;;  %v3242_v39 = vcombine.high %v4473_v35, %v4473_v35  ;;  %v3955_v40 = vld [vmem:[%s5229_s1 + $0xe8] sm:$0xff]  }
  0x2c   : > { %449 = vmatprep.subr.bf16.mxu0 %v4149_v1  ;;  %1174 = vmatprep.subr.bf16.mxu1 %v4149_v1 }
  0x2e   : > { %372 = vmatmul.mubr.bf16.vlgmr.msra.gmra.mrb[0].mxu0 %v270_v45  ;;  %1097 = vmatmul.mubr.bf16.vlgmr.msra.gmra.mrb[0].mxu1 %v996_v47  ;;  %v3206_v45 = vcombine.low %v4240_v13, %v4389_v10  ;;  %v665_v47 = vrot.slane %v3242_v39, 2  ;;  %v4003_v39 = vld [vmem:[%s5229_s1 + $0x178] sm:$0xff]  }
  0x2f   : > { %450 = vmatpush1.bf16.msra.mxu0 %v3911_v46  ;;  %1175 = vmatpush1.bf16.msra.mxu1 %v3914_v48  ;;  %v664_v46 = vrot.slane %v3240_v38, 2  ;;  %v3364_v48 = vcombine.low %v4246_v18, %v4394_v12  ;;  %v3963_v18 = vld [vmem:[%s5229_s1 + $0xf8] sm:$0xff]   ;;  %v4002_v38 = vld [vmem:[%s5229_s1 + $0x170] sm:$0xff]  }
  0x30   : > { %451 = vmatprep.subr.bf16.mxu0 %v4149_v1  ;;  %1176 = vmatprep.subr.bf16.mxu1 %v4149_v1 }
  0x31   : > { %3185 = vmatprep.mubr.msk.bf16.mxu0 %vm335_vm1, %v3174_v53  ;;  %3342 = vmatprep.mubr.msk.bf16.mxu1 %vm335_vm1, %v3331_v54  ;;  %v666_v13 = vsel %vm267_vm0, %v664_v46, %v665_v47  ;;  %v3964_v53 = vld [vmem:[%s5229_s1 + $0xf8] sm:$0xff]   ;;  %v3965_v54 = vld [vmem:[%s5229_s1 + $0x100] sm:$0xff]   ;;  %v4692_v47 = vld [vmem:[%s4229_s16 + $0x70] sm:$0x33] }
  0x32   : > { %v4689_v46 = vld [vmem:[%s4229_s16 + $0x60] sm:$0xcc] }
  0x33   : > { %452 = vmatpush1.bf16.msra.mxu0 %v3915_v49  ;;  %1177 = vmatpush1.bf16.msra.mxu1 %v3916_v50  ;;  %v1387_v49 = vrot.slane %v3401_v41, 2  ;;  %v1388_v50 = vrot.slane %v3403_v42, 2  ;;  %v4673_v41 = vld [vmem:[%s4229_s16 + $0x48] sm:$0xff]  ;;  %v4676_v42 = vld [vmem:[%s4229_s16 + $0x40] sm:$0xcc] }
  0x34   : > { %453 = vmatprep.subr.bf16.mxu0 %v4149_v1  ;;  %1178 = vmatprep.subr.bf16.mxu1 %v4149_v1 }
  0x35   : > { %v1389_v52 = vsel %vm267_vm0, %v1387_v49, %v1388_v50  ;;  %v3478_v49 = vcombine.high %v4676_v42, %v4673_v41 }
  0x37   : > { %454 = vmatpush1.bf16.msra.mxu0 %v3917_v55  ;;  %1179 = vmatpush1.bf16.msra.mxu1 %v3918_v56  ;;  %v3966_v55 = vld [vmem:[%s5229_s1 + $0x100] sm:$0xff]   ;;  %v3967_v56 = vld [vmem:[%s5229_s1 + $0x108] sm:$0xff]  }
  0x38   : > { %455 = vmatprep.subr.bf16.mxu0 %v4149_v1  ;;  %1180 = vmatprep.subr.bf16.mxu1 %v4149_v1 }
  0x3b   : > { %456 = vmatpush1.bf16.msra.mxu0 %v3919_v57  ;;  %1181 = vmatpush1.bf16.msra.mxu1 %v3920_v58  ;;  %v3968_v57 = vld [vmem:[%s5229_s1 + $0x108] sm:$0xff]   ;;  %v3969_v58 = vld [vmem:[%s5229_s1 + $0x110] sm:$0xff]  }
  0x3c   : > { %457 = vmatprep.subr.bf16.mxu0 %v4149_v1  ;;  %1182 = vmatprep.subr.bf16.mxu1 %v4149_v1 }
  0x3f   : > { %458 = vmatpush1.bf16.msra.mxu0 %v3921_v59  ;;  %1183 = vmatpush1.bf16.msra.mxu1 %v3922_v60  ;;  %v3970_v59 = vld [vmem:[%s5229_s1 + $0x110] sm:$0xff]   ;;  %v3971_v60 = vld [vmem:[%s5229_s1 + $0x118] sm:$0xff]  }
  0x40   : > { %459 = vmatprep.subr.bf16.mxu0 %v4149_v1  ;;  %1184 = vmatprep.subr.bf16.mxu1 %v4149_v1 }
  0x43   : > { %460 = vmatpush1.bf16.msra.mxu0 %v3923_v61  ;;  %1185 = vmatpush1.bf16.msra.mxu1 %v3924_v62  ;;  %v3972_v61 = vld [vmem:[%s5229_s1 + $0x118] sm:$0xff]   ;;  %v3973_v62 = vld [vmem:[%s5229_s1 + $0x120] sm:$0xff]  }
  0x44   : > { %461 = vmatprep.subr.bf16.mxu0 %v4149_v1  ;;  %1186 = vmatprep.subr.bf16.mxu1 %v4149_v1 }
  0x47   : > { %462 = vmatpush1.bf16.msra.mxu0 %v3925_v63  ;;  %1187 = vmatpush1.bf16.msra.mxu1 %v3926_v0  ;;  %v3974_v63 = vld [vmem:[%s5229_s1 + $0x120] sm:$0xff]   ;;  %v3975_v0 = vld [vmem:[%s5229_s1 + $0x128] sm:$0xff]  }
  0x48   : > { %463 = vmatprep.subr.bf16.mxu0 %v4149_v1  ;;  %1188 = vmatprep.subr.bf16.mxu1 %v4149_v1 }
  0x4b   : > { %464 = vmatpush1.bf16.msra.mxu0 %v3927_v2  ;;  %1189 = vmatpush1.bf16.msra.mxu1 %v3928_v3  ;;  %v3976_v2 = vld [vmem:[%s5229_s1 + $0x128] sm:$0xff]   ;;  %v3239_v3 = vcombine.low %v4467_v33, %v4389_v10  ;;  %v3997_v33 = vld [vmem:[%s5229_s1 + $0x160] sm:$0xff]  }
  0x4c   : > { %465 = vmatprep.subr.bf16.mxu0 %v4149_v1  ;;  %1190 = vmatprep.subr.bf16.mxu1 %v4149_v1 }
  0x4f   : > { %466 = vmatpush1.bf16.msra.mxu0 %v3929_v4  ;;  %1191 = vmatpush1.bf16.msra.mxu1 %v3930_v5  ;;  %v3241_v4 = vcombine.low %v4473_v35, %v4473_v35  ;;  %v3400_v5 = vcombine.low %v4476_v36, %v4394_v12  ;;  %v3999_v35 = vld [vmem:[%s5229_s1 + $0x168] sm:$0xff]  }
  0x50   : > { %467 = vmatprep.subr.bf16.mxu0 %v4149_v1  ;;  %1192 = vmatprep.subr.bf16.mxu1 %v4149_v1  ;;  %v4000_v36 = vld [vmem:[%s5229_s1 + $0x168] sm:$0xff]  }
  0x53   : > { %468 = vmatpush1.bf16.msra.mxu0 %v3931_v6  ;;  %1193 = vmatpush1.bf16.msra.mxu1 %v3932_v7  ;;  %v3402_v6 = vcombine.low %v4480_v37, %v4480_v37  ;;  %v3977_v7 = vld [vmem:[%s5229_s1 + $0x130] sm:$0xff]  }
  0x54   : > { %581 = vmatprep.subr.bf16.mxu0 %v4149_v1  ;;  %1305 = vmatprep.subr.bf16.mxu1 %v4149_v1  ;;  %v4001_v37 = vld [vmem:[%s5229_s1 + $0x170] sm:$0xff]  }
  0x56   : > { %482 = vmatmul.mubr.bf16.vlgmr.msra.gmra.mrb[0].mxu0 %v3173_v9  ;;  %1207 = vmatmul.mubr.bf16.vlgmr.msra.gmra.mrb[0].mxu1 %v3330_v11  ;;  %v3979_v9 = vld [vmem:[%s5229_s1 + $0x138] sm:$0xff]  }
  0x57   : > { %582 = vmatpush1.bf16.msra.mxu0 %v3936_v8  ;;  %1306 = vmatpush1.bf16.msra.mxu1 %v3938_v14  ;;  %v3978_v8 = vld [vmem:[%s5229_s1 + $0x130] sm:$0xff]   ;;  %v3980_v11 = vld [vmem:[%s5229_s1 + $0x138] sm:$0xff]   ;;  %v661_v14 = vrot.slane %v3239_v3, 2  ;;  %v4020_v3 = vld [vmem:[%s5229_s1 + $0x68] sm:$0xff]  }
  0x58   : > { %583 = vmatprep.subr.bf16.mxu0 %v4149_v1  ;;  %1307 = vmatprep.subr.bf16.mxu1 %v4149_v1 }
  0x59   : > { %3218 = vmatprep.mubr.msk.bf16.mxu0 %vm335_vm1, %v3207_v15  ;;  %3376 = vmatprep.mubr.msk.bf16.mxu1 %vm335_vm1, %v3365_v16  ;;  %v662_v15 = vrot.slane %v3241_v4, 2  ;;  %v1384_v16 = vrot.slane %v3400_v5, 2  ;;  %v4021_v4 = vld [vmem:[%s5229_s1 + $0x70] sm:$0xff]  }
  0x5a   : > { %v4022_v5 = vld [vmem:[%s5229_s1 + $0x70] sm:$0xff]  }
  0x5b   : > { %584 = vmatpush1.bf16.msra.mxu0 %v3939_v17  ;;  %1308 = vmatpush1.bf16.msra.mxu1 %v3940_v19  ;;  %v1385_v17 = vrot.slane %v3402_v6, 2  ;;  %v3987_v19 = vld [vmem:[%s5229_s1 + $0x140] sm:$0xff]   ;;  %v4023_v6 = vld [vmem:[%s5229_s1 + $0x78] sm:$0xff]  }
  0x5c   : > { %585 = vmatprep.subr.bf16.mxu0 %v4149_v1  ;;  %1309 = vmatprep.subr.bf16.mxu1 %v4149_v1 }
  0x5f   : > { %586 = vmatpush1.bf16.msra.mxu0 %v3941_v20  ;;  %1310 = vmatpush1.bf16.msra.mxu1 %v3942_v21  ;;  %v4599_v20 = vld [vmem:[%s4229_s16 + $0x18] sm:$0xff]  ;;  %v3990_v21 = vld [vmem:[%s5229_s1 + $0x140] sm:$0xff]  }
  0x60   : > { %587 = vmatprep.subr.bf16.mxu0 %v4149_v1  ;;  %1311 = vmatprep.subr.bf16.mxu1 %v4149_v1 }
  0x63   : > { %588 = vmatpush1.bf16.msra.mxu0 %v3943_v22  ;;  %1312 = vmatpush1.bf16.msra.mxu1 %v3944_v23  ;;  %v4605_v22 = vld [vmem:[%s4229_s16 + $0x38] sm:$0xff]  ;;  %v663_v23 = vsel %vm267_vm0, %v661_v14, %v662_v15  ;;  %v4028_v14 = vld [vmem:[%s5229_s1 + $0x88] sm:$0xff]   ;;  %v4029_v15 = vld [vmem:[%s5229_s1 + $0x90] sm:$0xff]  }
  0x64   : > { %589 = vmatprep.subr.bf16.mxu0 %v4149_v1  ;;  %1313 = vmatprep.subr.bf16.mxu1 %v4149_v1 }
  0x67   : > { %590 = vmatpush1.bf16.msra.mxu0 %v3945_v24  ;;  %1314 = vmatpush1.bf16.msra.mxu1 %v3946_v25  ;;  %v1386_v24 = vsel %vm267_vm0, %v1384_v16, %v1385_v17  ;;  %v3991_v25 = vld [vmem:[%s5229_s1 + $0x148] sm:$0xff]   ;;  %v3477_v16 = vcombine.low %v4676_v42, %v4673_v41  ;;  %v4048_v42 = vld [vmem:[%s5229_s1 + $0x18] sm:$0xff]  }
  0x68   : > { %591 = vmatprep.subr.bf16.mxu0 %v4149_v1  ;;  %1315 = vmatprep.subr.bf16.mxu1 %v4149_v1 }
  0x6b   : > { %592 = vmatpush1.bf16.msra.mxu0 %v3947_v26  ;;  %1316 = vmatpush1.bf16.msra.mxu1 %v3948_v27  ;;  %v3275_v26 = vcombine.high %v4389_v10, %v4599_v20  ;;  %v3992_v27 = vld [vmem:[%s5229_s1 + $0x148] sm:$0xff]  }
  0x6c   : > { %593 = vmatprep.subr.bf16.mxu0 %v4149_v1  ;;  %1317 = vmatprep.subr.bf16.mxu1 %v4149_v1 }
  0x6f   : > { %594 = vmatpush1.bf16.msra.mxu0 %v3949_v28  ;;  %1318 = vmatpush1.bf16.msra.mxu1 %v3950_v29  ;;  %v3437_v28 = vcombine.high %v4394_v12, %v4605_v22  ;;  %v3993_v29 = vld [vmem:[%s5229_s1 + $0x150] sm:$0xff]  }
  0x70   : > { %595 = vmatprep.subr.bf16.mxu0 %v4149_v1  ;;  %1319 = vmatprep.subr.bf16.mxu1 %v4149_v1 }
  0x73   : > { %596 = vmatpush1.bf16.msra.mxu0 %v3951_v30  ;;  %1320 = vmatpush1.bf16.msra.mxu1 %v3952_v31  ;;  %v3994_v30 = vld [vmem:[%s5229_s1 + $0x150] sm:$0xff]   ;;  %v3995_v31 = vld [vmem:[%s5229_s1 + $0x158] sm:$0xff]  }
  0x74   : > { %597 = vmatprep.subr.bf16.mxu0 %v4149_v1  ;;  %1321 = vmatprep.subr.bf16.mxu1 %v4149_v1 }
  0x77   : > { %598 = vmatpush1.bf16.msra.mxu0 %v3953_v32  ;;  %1322 = vmatpush1.bf16.msra.mxu1 %v3954_v34  ;;  %v3996_v32 = vld [vmem:[%s5229_s1 + $0x158] sm:$0xff]   ;;  %v3998_v34 = vld [vmem:[%s5229_s1 + $0x160] sm:$0xff]  }
  0x78   : > { %599 = vmatprep.subr.bf16.mxu0 %v4149_v1  ;;  %1323 = vmatprep.subr.bf16.mxu1 %v4149_v1 }
  0x7b   : > { %600 = vmatpush1.bf16.msra.mxu0 %v3955_v40  ;;  %1324 = vmatpush1.bf16.msra.mxu1 %v3956_v43  ;;  %v4004_v40 = vld [vmem:[%s5229_s1 + $0x178] sm:$0xff]   ;;  %v4679_v43 = vld [vmem:[%s4229_s16 + $0x50] sm:$0x33] }
  0x7c   : > { %731 = vmatprep.subr.bf16.mxu0 %v4149_v1  ;;  %1454 = vmatprep.subr.bf16.mxu1 %v4149_v1  ;;  %v3480_v50 = vcombine.high %v4679_v43, %v4679_v43  ;;  %v3479_v17 = vcombine.low %v4679_v43, %v4679_v43  ;;  %v4049_v43 = vld [vmem:[%s5229_s1 + $0x20] sm:$0xff]  }
  0x7e   : > { %614 = vmatmul.mubr.bf16.vlgmr.msra.gmra.mrb[0].mxu0 %v3206_v45  ;;  %1338 = vmatmul.mubr.bf16.vlgmr.msra.gmra.mrb[0].mxu1 %v3364_v48  ;;  %v4686_v45 = vld [vmem:[%s4229_s16 + $0x68] sm:$0xff]  ;;  %v4006_v48 = vld [vmem:[%s5229_s1 + $0x180] sm:$0xff]  }
  0x7f   : > { %732 = vmatpush1.bf16.msra.mxu0 %v3960_v44  ;;  %1455 = vmatpush1.bf16.msra.mxu1 %v3962_v51  ;;  %v4005_v44 = vld [vmem:[%s5229_s1 + $0x180] sm:$0xff]   ;;  %v4007_v51 = vld [vmem:[%s5229_s1 + $0x188] sm:$0xff]  }
  0x80   : > { %733 = vmatprep.subr.bf16.mxu0 %v4149_v1  ;;  %1456 = vmatprep.subr.bf16.mxu1 %v4149_v1 }
  0x81   : > { %3253 = vmatprep.mubr.msk.bf16.mxu0 %vm335_vm1, %v666_v13  ;;  %3414 = vmatprep.mubr.msk.bf16.mxu1 %vm335_vm1, %v1389_v52  ;;  %v4008_v13 = vld [vmem:[%s5229_s1 + $0x188] sm:$0xff]   ;;  %v3642_v52 = vcombine.high %v4692_v47, %v4692_v47 }
  0x83   : > { %734 = vmatpush1.bf16.msra.mxu0 %v3963_v18  ;;  %1457 = vmatpush1.bf16.msra.mxu1 %v3964_v53  ;;  %v3640_v18 = vcombine.high %v4689_v46, %v4686_v45  ;;  %v4013_v53 = vld [vmem:[%s5229_s1 + $0x50] sm:$0xff]  }
  0x84   : > { %735 = vmatprep.subr.bf16.mxu0 %v4149_v1  ;;  %1458 = vmatprep.subr.bf16.mxu1 %v4149_v1 }
  0x87   : > { %736 = vmatpush1.bf16.msra.mxu0 %v3965_v54  ;;  %1459 = vmatpush1.bf16.msra.mxu1 %v3966_v55  ;;  %v1708_v54 = vrot.slane %v3478_v49, 2  ;;  %v1709_v55 = vrot.slane %v3480_v50, 2  ;;  %v4054_v49 = vld [vmem:[%s5229_s1 + $0x30] sm:$0xff]   ;;  %v4055_v50 = vld [vmem:[%s5229_s1 + $0x38] sm:$0xff]  }
  0x88   : > { %737 = vmatprep.subr.bf16.mxu0 %v4149_v1  ;;  %1460 = vmatprep.subr.bf16.mxu1 %v4149_v1 }
  0x8b   : > { %738 = vmatpush1.bf16.msra.mxu0 %v3967_v56  ;;  %1461 = vmatpush1.bf16.msra.mxu1 %v3968_v57  ;;  %v3274_v56 = vcombine.low %v4389_v10, %v4599_v20  ;;  %v4014_v57 = vld [vmem:[%s5229_s1 + $0x50] sm:$0xff]   ;;  %v4015_v10 = vld [vmem:[%s5229_s1 + $0x58] sm:$0xff]   ;;  %v3639_v20 = vcombine.low %v4689_v46, %v4686_v45  ;;  %v4051_v46 = vld [vmem:[%s5229_s1 + $0x28] sm:$0xff]  }
  0x8c   : > { %739 = vmatprep.subr.bf16.mxu0 %v4149_v1  ;;  %1462 = vmatprep.subr.bf16.mxu1 %v4149_v1 }
  0x8f   : > { %740 = vmatpush1.bf16.msra.mxu0 %v3969_v58  ;;  %1463 = vmatpush1.bf16.msra.mxu1 %v3970_v59  ;;  %v2419_v58 = vrot.slane %v3640_v18, 2  ;;  %v2420_v59 = vrot.slane %v3642_v52, 2  ;;  %v4058_v18 = vld [vmem:[%s5229_s1 + $0x40] sm:$0xff]   ;;  %v4059_v52 = vld [vmem:[%s5229_s1 + $0x48] sm:$0xff]  }
  0x90   : > { %741 = vmatprep.subr.bf16.mxu0 %v4149_v1  ;;  %1464 = vmatprep.subr.bf16.mxu1 %v4149_v1 }
  0x93   : > { %742 = vmatpush1.bf16.msra.mxu0 %v3971_v60  ;;  %1465 = vmatpush1.bf16.msra.mxu1 %v3972_v61  ;;  %v3436_v60 = vcombine.low %v4394_v12, %v4605_v22  ;;  %v1710_v61 = vsel %vm267_vm0, %v1708_v54, %v1709_v55  ;;  %v4016_v12 = vld [vmem:[%s5229_s1 + $0x58] sm:$0xff]   ;;  %v4908_v55 = vld [vmem:[%s4229_s16 + $0x50] sm:$0xff] }
  0x94   : > { %743 = vmatprep.subr.bf16.mxu0 %v4149_v1  ;;  %1466 = vmatprep.subr.bf16.mxu1 %v4149_v1  ;;  %v4031_v22 = vld [vmem:[%s5229_s1 + $0x98] sm:$0xff]  }
  0x97   : > { %744 = vmatpush1.bf16.msra.mxu0 %v3973_v62  ;;  %1467 = vmatpush1.bf16.msra.mxu1 %v3974_v63  ;;  %v2421_v62 = vsel %vm267_vm0, %v2419_v58, %v2420_v59  ;;  %v4017_v63 = vld [vmem:[%s5229_s1 + $0x60] sm:$0xff]   ;;  %v4916_v58 = vld [vmem:[%s4229_s16 + $0x70] sm:$0xff] }
  0x98   : > { %745 = vmatprep.subr.bf16.mxu0 %v4149_v1  ;;  %1468 = vmatprep.subr.bf16.mxu1 %v4149_v1  ;;  %v4066_v59 = vld [vmem:[%s5229_s1 + $0xa0] sm:$0xff]  }
  0x9b   : > { %746 = vmatpush1.bf16.msra.mxu0 %v3975_v0  ;;  %1469 = vmatpush1.bf16.msra.mxu1 %v3976_v2  ;;  %v4018_v0 = vld [vmem:[%s5229_s1 + $0x60] sm:$0xff]   ;;  %v4019_v2 = vld [vmem:[%s5229_s1 + $0x68] sm:$0xff]  }
  0x9c   : > { %747 = vmatprep.subr.bf16.mxu0 %v4149_v1  ;;  %1470 = vmatprep.subr.bf16.mxu1 %v4149_v1 }
  0x9f   : > { %748 = vmatpush1.bf16.msra.mxu0 %v3977_v7  ;;  %1471 = vmatpush1.bf16.msra.mxu1 %v3978_v8  ;;  %v4024_v7 = vld [vmem:[%s5229_s1 + $0x78] sm:$0xff]   ;;  %v4025_v8 = vld [vmem:[%s5229_s1 + $0x80] sm:$0xff]  }
  0xa0   : > { %749 = vmatprep.subr.bf16.mxu0 %v4149_v1  ;;  %1472 = vmatprep.subr.bf16.mxu1 %v4149_v1 }
  0xa3   : > { %750 = vmatpush1.bf16.msra.mxu0 %v3979_v9  ;;  %1473 = vmatpush1.bf16.msra.mxu1 %v3980_v11  ;;  %v4026_v9 = vld [vmem:[%s5229_s1 + $0x80] sm:$0xff]   ;;  %v4027_v11 = vld [vmem:[%s5229_s1 + $0x88] sm:$0xff]  }
  0xa4   : > { %865 = vmatprep.subr.bf16.mxu0 %v4149_v1  ;;  %1587 = vmatprep.subr.bf16.mxu1 %v4149_v1 }
  0xa6   : > { %764 = vmatmul.mubr.bf16.vlgmr.msra.gmra.mrb[0].mxu0 %v663_v23  ;;  %1487 = vmatmul.mubr.bf16.vlgmr.msra.gmra.mrb[0].mxu1 %v1386_v24  ;;  %v1705_v23 = vrot.slane %v3477_v16, 2  ;;  %v1706_v24 = vrot.slane %v3479_v17, 2  ;;  %v4992_v16 = vld [vmem:[%s4229_s16 + $0x58] sm:$0x33]  ;;  %v4082_v17 = vld [vmem:[%s5229_s1 + $0xe0] sm:$0xff]  }
  0xa7   : > { %866 = vmatpush1.bf16.msra.mxu0 %v3987_v19  ;;  %1588 = vmatpush1.bf16.msra.mxu1 %v3990_v21  ;;  %v4030_v19 = vld [vmem:[%s5229_s1 + $0x90] sm:$0xff]   ;;  %v3641_v21 = vcombine.low %v4692_v47, %v4692_v47  ;;  %v4052_v47 = vld [vmem:[%s5229_s1 + $0x28] sm:$0xff]  }
  0xa8   : > { %867 = vmatprep.subr.bf16.mxu0 %v4149_v1  ;;  %1589 = vmatprep.subr.bf16.mxu1 %v4149_v1 }
  0xa9   : > { %3286 = vmatprep.mubr.msk.bf16.mxu0 %vm335_vm1, %v3275_v26  ;;  %3448 = vmatprep.mubr.msk.bf16.mxu1 %vm335_vm1, %v3437_v28  ;;  %v2416_v26 = vrot.slane %v3639_v20, 2  ;;  %v4812_v28 = vld [vmem:[%s4229_s16 + $0x40] sm:$0xff]  ;;  %v5002_v20 = vld [vmem:[%s4229_s16 + $0x78] sm:$0x33] }
  0xaa   : > { %v3492_v54 = vcombine.low %v4812_v28, %v4673_v41 }
  0xab   : > { %868 = vmatpush1.bf16.msra.mxu0 %v3991_v25  ;;  %1590 = vmatpush1.bf16.msra.mxu1 %v3992_v27  ;;  %v4032_v25 = vld [vmem:[%s5229_s1 + $0x98] sm:$0xff]   ;;  %v2417_v27 = vrot.slane %v3641_v21, 2 }
  0xac   : > { %869 = vmatprep.subr.bf16.mxu0 %v4149_v1  ;;  %1591 = vmatprep.subr.bf16.mxu1 %v4149_v1 }
  0xaf   : > { %870 = vmatpush1.bf16.msra.mxu0 %v3993_v29  ;;  %1592 = vmatpush1.bf16.msra.mxu1 %v3994_v30  ;;  %v1707_v29 = vsel %vm267_vm0, %v1705_v23, %v1706_v24  ;;  %v4039_v30 = vld [vmem:[%s5229_s1] sm:$0xff]   ;;  %v4083_v23 = vld [vmem:[%s5229_s1 + $0xe8] sm:$0xff]  }
  0xb0   : > { %871 = vmatprep.subr.bf16.mxu0 %v4149_v1  ;;  %1593 = vmatprep.subr.bf16.mxu1 %v4149_v1 }
  0xb3   : > { %872 = vmatpush1.bf16.msra.mxu0 %v3995_v31  ;;  %1594 = vmatpush1.bf16.msra.mxu1 %v3996_v32  ;;  %v4819_v31 = vld [vmem:[%s4229_s16 + $0x60] sm:$0xff]  ;;  %v2418_v32 = vsel %vm267_vm0, %v2416_v26, %v2417_v27  ;;  %v4084_v26 = vld [vmem:[%s5229_s1 + $0xe8] sm:$0xff]   ;;  %v3526_v27 = vcombine.low %v4673_v41, %v4908_v55 }
  0xb4   : > { %873 = vmatprep.subr.bf16.mxu0 %v4149_v1  ;;  %1595 = vmatprep.subr.bf16.mxu1 %v4149_v1 }
  0xb7   : > { %874 = vmatpush1.bf16.msra.mxu0 %v3997_v33  ;;  %1596 = vmatpush1.bf16.msra.mxu1 %v3998_v34  ;;  %v4042_v33 = vld [vmem:[%s5229_s1] sm:$0xff]   ;;  %v3493_v34 = vcombine.high %v4812_v28, %v4673_v41 }
  0xb8   : > { %875 = vmatprep.subr.bf16.mxu0 %v4149_v1  ;;  %1597 = vmatprep.subr.bf16.mxu1 %v4149_v1 }
  0xbb   : > { %876 = vmatpush1.bf16.msra.mxu0 %v3999_v35  ;;  %1598 = vmatpush1.bf16.msra.mxu1 %v4000_v36  ;;  %v3655_v35 = vcombine.high %v4819_v31, %v4686_v45  ;;  %v4043_v36 = vld [vmem:[%s5229_s1 + $0x8] sm:$0xff]  }
  0xbc   : > { %877 = vmatprep.subr.bf16.mxu0 %v4149_v1  ;;  %1599 = vmatprep.subr.bf16.mxu1 %v4149_v1 }
  0xbf   : > { %878 = vmatpush1.bf16.msra.mxu0 %v4001_v37  ;;  %1600 = vmatpush1.bf16.msra.mxu1 %v4002_v38  ;;  %v4044_v37 = vld [vmem:[%s5229_s1 + $0x8] sm:$0xff]   ;;  %v4045_v38 = vld [vmem:[%s5229_s1 + $0x10] sm:$0xff]  }
  0xc0   : > { %879 = vmatprep.subr.bf16.mxu0 %v4149_v1  ;;  %1601 = vmatprep.subr.bf16.mxu1 %v4149_v1 }
  0xc3   : > { %880 = vmatpush1.bf16.msra.mxu0 %v4003_v39  ;;  %1602 = vmatpush1.bf16.msra.mxu1 %v4004_v40  ;;  %v4046_v39 = vld [vmem:[%s5229_s1 + $0x10] sm:$0xff]   ;;  %v4047_v40 = vld [vmem:[%s5229_s1 + $0x18] sm:$0xff]  }
  0xc4   : > { %881 = vmatprep.subr.bf16.mxu0 %v4149_v1  ;;  %1603 = vmatprep.subr.bf16.mxu1 %v4149_v1 }
  0xc7   : > { %882 = vmatpush1.bf16.msra.mxu0 %v4005_v44  ;;  %1604 = vmatpush1.bf16.msra.mxu1 %v4006_v48  ;;  %v4050_v44 = vld [vmem:[%s5229_s1 + $0x20] sm:$0xff]   ;;  %v4053_v48 = vld [vmem:[%s5229_s1 + $0x30] sm:$0xff]  }
  0xc8   : > { %883 = vmatprep.subr.bf16.mxu0 %v4149_v1  ;;  %1605 = vmatprep.subr.bf16.mxu1 %v4149_v1 }
  0xcb   : > { %884 = vmatpush1.bf16.msra.mxu0 %v4007_v51  ;;  %1606 = vmatpush1.bf16.msra.mxu1 %v4008_v13  ;;  %v4056_v51 = vld [vmem:[%s5229_s1 + $0x38] sm:$0xff]   ;;  %v4057_v13 = vld [vmem:[%s5229_s1 + $0x40] sm:$0xff]  }
  0xcc   : > { %1775 = vmatprep.subr.bf16.mxu0 %v4149_v1  ;;  %2486 = vmatprep.subr.bf16.mxu1 %v4149_v1 }
  0xce   : > { %898 = vmatmul.mubr.bf16.vlgmr.msra.gmra.mrb[0].mxu0 %v3274_v56  ;;  %1620 = vmatmul.mubr.bf16.vlgmr.msra.gmra.mrb[0].mxu1 %v3436_v60  ;;  %v4064_v56 = vld [vmem:[%s5229_s1 + $0xa0] sm:$0xff]   ;;  %v3527_v60 = vcombine.high %v4673_v41, %v4908_v55 }
  0xcf   : > { %1776 = vmatpush1.bf16.msra.mxu0 %v4013_v53  ;;  %2487 = vmatpush1.bf16.msra.mxu1 %v4014_v57  ;;  %v4060_v53 = vld [vmem:[%s5229_s1 + $0x48] sm:$0xff]   ;;  %v3654_v57 = vcombine.low %v4819_v31, %v4686_v45  ;;  %v3688_v31 = vcombine.low %v4686_v45, %v4916_v58 }
  0xd0   : > { %1777 = vmatprep.subr.bf16.mxu0 %v4149_v1  ;;  %2488 = vmatprep.subr.bf16.mxu1 %v4149_v1 }
  0xd1   : > { %3491 = vmatprep.mubr.msk.bf16.mxu0 %vm335_vm1, %v1710_v61  ;;  %3653 = vmatprep.mubr.msk.bf16.mxu1 %vm335_vm1, %v2421_v62  ;;  %v3689_v61 = vcombine.high %v4686_v45, %v4916_v58  ;;  %v4068_v62 = vld [vmem:[%s5229_s1 + $0xa8] sm:$0xff]   ;;  %v4091_v45 = vld [vmem:[%s5229_s1 + $0xf8] sm:$0xff]  }
  0xd3   : > { %1778 = vmatpush1.bf16.msra.mxu0 %v4015_v10  ;;  %2489 = vmatpush1.bf16.msra.mxu1 %v4016_v12  ;;  %v4067_v10 = vld [vmem:[%s5229_s1 + $0xa8] sm:$0xff]   ;;  %v4069_v12 = vld [vmem:[%s5229_s1 + $0xb0] sm:$0xff]  }
  0xd4   : > { %1779 = vmatprep.subr.bf16.mxu0 %v4149_v1  ;;  %2490 = vmatprep.subr.bf16.mxu1 %v4149_v1 }
  0xd7   : > { %1780 = vmatpush1.bf16.msra.mxu0 %v4017_v63  ;;  %2491 = vmatpush1.bf16.msra.mxu1 %v4018_v0  ;;  %v4070_v63 = vld [vmem:[%s5229_s1 + $0xb0] sm:$0xff]   ;;  %v4071_v0 = vld [vmem:[%s5229_s1 + $0xb8] sm:$0xff]  }
  0xd8   : > { %1781 = vmatprep.subr.bf16.mxu0 %v4149_v1  ;;  %2492 = vmatprep.subr.bf16.mxu1 %v4149_v1 }
  0xdb   : > { %1782 = vmatpush1.bf16.msra.mxu0 %v4019_v2  ;;  %2493 = vmatpush1.bf16.msra.mxu1 %v4020_v3  ;;  %v4072_v2 = vld [vmem:[%s5229_s1 + $0xb8] sm:$0xff]   ;;  %v4073_v3 = vld [vmem:[%s5229_s1 + $0xc0] sm:$0xff]  }
  0xdc   : > { %1783 = vmatprep.subr.bf16.mxu0 %v4149_v1  ;;  %2494 = vmatprep.subr.bf16.mxu1 %v4149_v1 }
  0xdf   : > { %1784 = vmatpush1.bf16.msra.mxu0 %v4021_v4  ;;  %2495 = vmatpush1.bf16.msra.mxu1 %v4022_v5  ;;  %v4074_v4 = vld [vmem:[%s5229_s1 + $0xc0] sm:$0xff]   ;;  %v4075_v5 = vld [vmem:[%s5229_s1 + $0xc8] sm:$0xff]  }
  0xe0   : > { %1785 = vmatprep.subr.bf16.mxu0 %v4149_v1  ;;  %2496 = vmatprep.subr.bf16.mxu1 %v4149_v1 }
  0xe3   : > { %1786 = vmatpush1.bf16.msra.mxu0 %v4023_v6  ;;  %2497 = vmatpush1.bf16.msra.mxu1 %v4024_v7  ;;  %v4076_v6 = vld [vmem:[%s5229_s1 + $0xc8] sm:$0xff]   ;;  %v4077_v7 = vld [vmem:[%s5229_s1 + $0xd0] sm:$0xff]  }
  0xe4   : > { %1787 = vmatprep.subr.bf16.mxu0 %v4149_v1  ;;  %2498 = vmatprep.subr.bf16.mxu1 %v4149_v1 }
  0xe7   : > { %1788 = vmatpush1.bf16.msra.mxu0 %v4025_v8  ;;  %2499 = vmatpush1.bf16.msra.mxu1 %v4026_v9  ;;  %v4078_v8 = vld [vmem:[%s5229_s1 + $0xd0] sm:$0xff]   ;;  %v4079_v9 = vld [vmem:[%s5229_s1 + $0xd8] sm:$0xff]  }
  0xe8   : > { %1789 = vmatprep.subr.bf16.mxu0 %v4149_v1  ;;  %2500 = vmatprep.subr.bf16.mxu1 %v4149_v1 }
  0xeb   : > { %1790 = vmatpush1.bf16.msra.mxu0 %v4027_v11  ;;  %2501 = vmatpush1.bf16.msra.mxu1 %v4028_v14  ;;  %v4080_v11 = vld [vmem:[%s5229_s1 + $0xd8] sm:$0xff]   ;;  %v4081_v14 = vld [vmem:[%s5229_s1 + $0xe0] sm:$0xff]  }
  0xec   : > { %1791 = vmatprep.subr.bf16.mxu0 %v4149_v1  ;;  %2502 = vmatprep.subr.bf16.mxu1 %v4149_v1 }
  0xef   : > { %1792 = vmatpush1.bf16.msra.mxu0 %v4029_v15  ;;  %2503 = vmatpush1.bf16.msra.mxu1 %v4030_v19  ;;  %v4989_v15 = vld [vmem:[%s4229_s16 + $0x48] sm:$0xcc] }
  0xf0   : > { %1793 = vmatprep.subr.bf16.mxu0 %v4149_v1  ;;  %2504 = vmatprep.subr.bf16.mxu1 %v4149_v1  ;;  %v4999_v19 = vld [vmem:[%s4229_s16 + $0x68] sm:$0xcc]  ;;  %v3563_v21 = vcombine.high %v4989_v15, %v4908_v55 }
  0xf1   : > { %v3725_v24 = vcombine.high %v4999_v19, %v4916_v58 }
  0xf2   : > { %v2098_v28 = vrot.slane %v3563_v21, 2  ;;  %v4130_v21 = vld [vmem:[%s5229_s1 + $0x170] sm:$0xff]  }
  0xf3   : > { %1794 = vmatpush1.bf16.msra.mxu0 %v4031_v22  ;;  %2505 = vmatpush1.bf16.msra.mxu1 %v4032_v25  ;;  %v3565_v22 = vcombine.high %v4992_v16, %v4992_v16  ;;  %v3727_v25 = vcombine.high %v5002_v20, %v5002_v20 }
  0xf4   : > { %1885 = vmatprep.subr.bf16.mxu0 %v4149_v1  ;;  %2596 = vmatprep.subr.bf16.mxu1 %v4149_v1 }
  0xf6   : > { %1808 = vmatmul.mubr.bf16.vlgmr.msra.gmra.mrb[4].mxu0 %v1707_v29  ;;  %2519 = vmatmul.mubr.bf16.vlgmr.msra.gmra.mrb[4].mxu1 %v2418_v32  ;;  %v2099_v29 = vrot.slane %v3565_v22, 2  ;;  %v2809_v32 = vrot.slane %v3725_v24, 2  ;;  %v4131_v22 = vld [vmem:[%s5229_s1 + $0x178] sm:$0xff]   ;;  %v4133_v24 = vld [vmem:[%s5229_s1 + $0x180] sm:$0xff]  }
  0xf7   : > { %1886 = vmatpush1.bf16.msra.mxu0 %v4039_v30  ;;  %2597 = vmatpush1.bf16.msra.mxu1 %v4042_v33  ;;  %v4088_v30 = vld [vmem:[%s5229_s1 + $0xf0] sm:$0xff]   ;;  %v2810_v33 = vrot.slane %v3727_v25, 2  ;;  %v4134_v25 = vld [vmem:[%s5229_s1 + $0x180] sm:$0xff]  }
  0xf8   : > { %1887 = vmatprep.subr.bf16.mxu0 %v4149_v1  ;;  %2598 = vmatprep.subr.bf16.mxu1 %v4149_v1  ;;  %v2100_v41 = vsel %vm267_vm0, %v2098_v28, %v2099_v29 }
  0xf9   : > { %3504 = vmatprep.mubr.msk.bf16.mxu0 %vm335_vm1, %v3493_v34  ;;  %3666 = vmatprep.mubr.msk.bf16.mxu1 %vm335_vm1, %v3655_v35  ;;  %v4090_v34 = vld [vmem:[%s5229_s1 + $0xf0] sm:$0xff]   ;;  %v2811_v35 = vsel %vm267_vm0, %v2809_v32, %v2810_v33 }
  0xfb   : > { %1888 = vmatpush1.bf16.msra.mxu0 %v4043_v36  ;;  %2599 = vmatpush1.bf16.msra.mxu1 %v4044_v37  ;;  %v4092_v36 = vld [vmem:[%s5229_s1 + $0xf8] sm:$0xff]   ;;  %v4093_v37 = vld [vmem:[%s5229_s1 + $0x100] sm:$0xff]  }
  0xfc   : > { %1889 = vmatprep.subr.bf16.mxu0 %v4149_v1  ;;  %2600 = vmatprep.subr.bf16.mxu1 %v4149_v1 }
  0xff   : > { %1890 = vmatpush1.bf16.msra.mxu0 %v4045_v38  ;;  %2601 = vmatpush1.bf16.msra.mxu1 %v4046_v39  ;;  %v4094_v38 = vld [vmem:[%s5229_s1 + $0x100] sm:$0xff]   ;;  %v4095_v39 = vld [vmem:[%s5229_s1 + $0x108] sm:$0xff]  }
 0x100   : > { %1891 = vmatprep.subr.bf16.mxu0 %v4149_v1  ;;  %2602 = vmatprep.subr.bf16.mxu1 %v4149_v1 }
 0x103   : > { %1892 = vmatpush1.bf16.msra.mxu0 %v4047_v40  ;;  %2603 = vmatpush1.bf16.msra.mxu1 %v4048_v42  ;;  %v4096_v40 = vld [vmem:[%s5229_s1 + $0x108] sm:$0xff]   ;;  %v4097_v42 = vld [vmem:[%s5229_s1 + $0x110] sm:$0xff]  }
 0x104   : > { %1893 = vmatprep.subr.bf16.mxu0 %v4149_v1  ;;  %2604 = vmatprep.subr.bf16.mxu1 %v4149_v1 }
 0x107   : > { %1894 = vmatpush1.bf16.msra.mxu0 %v4049_v43  ;;  %2605 = vmatpush1.bf16.msra.mxu1 %v4050_v44  ;;  %v4098_v43 = vld [vmem:[%s5229_s1 + $0x110] sm:$0xff]   ;;  %v4099_v44 = vld [vmem:[%s5229_s1 + $0x118] sm:$0xff]  }
 0x108   : > { %1895 = vmatprep.subr.bf16.mxu0 %v4149_v1  ;;  %2606 = vmatprep.subr.bf16.mxu1 %v4149_v1 }
 0x10b   : > { %1896 = vmatpush1.bf16.msra.mxu0 %v4051_v46  ;;  %2607 = vmatpush1.bf16.msra.mxu1 %v4052_v47  ;;  %v4100_v46 = vld [vmem:[%s5229_s1 + $0x118] sm:$0xff]   ;;  %v4101_v47 = vld [vmem:[%s5229_s1 + $0x120] sm:$0xff]  }
 0x10c   : > { %1897 = vmatprep.subr.bf16.mxu0 %v4149_v1  ;;  %2608 = vmatprep.subr.bf16.mxu1 %v4149_v1 }
 0x10f   : > { %1898 = vmatpush1.bf16.msra.mxu0 %v4053_v48  ;;  %2609 = vmatpush1.bf16.msra.mxu1 %v4054_v49  ;;  %v4102_v48 = vld [vmem:[%s5229_s1 + $0x120] sm:$0xff]   ;;  %v4103_v49 = vld [vmem:[%s5229_s1 + $0x128] sm:$0xff]  }
 0x110   : > { %1899 = vmatprep.subr.bf16.mxu0 %v4149_v1  ;;  %2610 = vmatprep.subr.bf16.mxu1 %v4149_v1 }
 0x113   : > { %1900 = vmatpush1.bf16.msra.mxu0 %v4055_v50  ;;  %2611 = vmatpush1.bf16.msra.mxu1 %v4056_v51  ;;  %v4104_v50 = vld [vmem:[%s5229_s1 + $0x128] sm:$0xff]   ;;  %v4105_v51 = vld [vmem:[%s5229_s1 + $0x130] sm:$0xff]  }
 0x114   : > { %1901 = vmatprep.subr.bf16.mxu0 %v4149_v1  ;;  %2612 = vmatprep.subr.bf16.mxu1 %v4149_v1 }
 0x117   : > { %1902 = vmatpush1.bf16.msra.mxu0 %v4057_v13  ;;  %2613 = vmatpush1.bf16.msra.mxu1 %v4058_v18  ;;  %v3562_v13 = vcombine.low %v4989_v15, %v4908_v55  ;;  %v3564_v18 = vcombine.low %v4992_v16, %v4992_v16  ;;  %v4125_v15 = vld [vmem:[%s5229_s1 + $0x160] sm:$0xff]  }
 0x118   : > { %1903 = vmatprep.subr.bf16.mxu0 %v4149_v1  ;;  %2614 = vmatprep.subr.bf16.mxu1 %v4149_v1  ;;  %v4126_v16 = vld [vmem:[%s5229_s1 + $0x160] sm:$0xff]  }
 0x11b   : > { %1904 = vmatpush1.bf16.msra.mxu0 %v4059_v52  ;;  %2615 = vmatpush1.bf16.msra.mxu1 %v4060_v53  ;;  %v4106_v52 = vld [vmem:[%s5229_s1 + $0x130] sm:$0xff]   ;;  %v3724_v53 = vcombine.low %v4999_v19, %v4916_v58  ;;  %v4128_v19 = vld [vmem:[%s5229_s1 + $0x168] sm:$0xff]  }
 0x11c   : > { %2016 = vmatprep.subr.bf16.mxu0 %v4149_v1  ;;  %2727 = vmatprep.subr.bf16.mxu1 %v4149_v1 }
 0x11e   : > { %1918 = vmatmul.mubr.bf16.vlgmr.msra.gmra.mrb[4].mxu0 %v3492_v54  ;;  %2629 = vmatmul.mubr.bf16.vlgmr.msra.gmra.mrb[4].mxu1 %v3654_v57  ;;  %v3726_v54 = vcombine.low %v5002_v20, %v5002_v20  ;;  %v2095_v57 = vrot.slane %v3562_v13, 2  ;;  %v4129_v20 = vld [vmem:[%s5229_s1 + $0x170] sm:$0xff]  }
 0x11f   : > { %2017 = vmatpush1.bf16.msra.mxu0 %v4064_v56  ;;  %2728 = vmatpush1.bf16.msra.mxu1 %v4066_v59  ;;  %v4107_v56 = vld [vmem:[%s5229_s1 + $0x138] sm:$0xff]   ;;  %v2096_v59 = vrot.slane %v3564_v18, 2 }
 0x120   : > { %2018 = vmatprep.subr.bf16.mxu0 %v4149_v1  ;;  %2729 = vmatprep.subr.bf16.mxu1 %v4149_v1 }
 0x121   : > { %3538 = vmatprep.mubr.msk.bf16.mxu0 %vm335_vm1, %v3527_v60  ;;  %3700 = vmatprep.mubr.msk.bf16.mxu1 %vm335_vm1, %v3689_v61  ;;  %v4108_v60 = vld [vmem:[%s5229_s1 + $0x138] sm:$0xff]   ;;  %v2806_v61 = vrot.slane %v3724_v53, 2 }
 0x123   : > { %2019 = vmatpush1.bf16.msra.mxu0 %v4067_v10  ;;  %2730 = vmatpush1.bf16.msra.mxu1 %v4068_v62  ;;  %v2807_v10 = vrot.slane %v3726_v54, 2  ;;  %v5118_v62 = vld [vmem:[%s4229_s16 + $0x58] sm:$0xff] }
 0x124   : > { %2020 = vmatprep.subr.bf16.mxu0 %v4149_v1  ;;  %2731 = vmatprep.subr.bf16.mxu1 %v4149_v1  ;;  %v3598_v28 = vcombine.low %v4908_v55, %v5118_v62 }
 0x127   : > { %2021 = vmatpush1.bf16.msra.mxu0 %v4069_v12  ;;  %2732 = vmatpush1.bf16.msra.mxu1 %v4070_v63  ;;  %v2097_v12 = vsel %vm267_vm0, %v2095_v57, %v2096_v59  ;;  %v4115_v63 = vld [vmem:[%s5229_s1 + $0x140] sm:$0xff]  }
 0x128   : > { %2022 = vmatprep.subr.bf16.mxu0 %v4149_v1  ;;  %2733 = vmatprep.subr.bf16.mxu1 %v4149_v1 }
 0x12b   : > { %2023 = vmatpush1.bf16.msra.mxu0 %v4071_v0  ;;  %2734 = vmatpush1.bf16.msra.mxu1 %v4072_v2  ;;  %v5125_v0 = vld [vmem:[%s4229_s16 + $0x78] sm:$0xff]  ;;  %v2808_v2 = vsel %vm267_vm0, %v2806_v61, %v2807_v10 }
 0x12c   : > { %2024 = vmatprep.subr.bf16.mxu0 %v4149_v1  ;;  %2735 = vmatprep.subr.bf16.mxu1 %v4149_v1  ;;  %v3760_v29 = vcombine.low %v4916_v58, %v5125_v0 }
 0x12f   : > { %2025 = vmatpush1.bf16.msra.mxu0 %v4073_v3  ;;  %2736 = vmatpush1.bf16.msra.mxu1 %v4074_v4  ;;  %v4118_v3 = vld [vmem:[%s5229_s1 + $0x140] sm:$0xff]   ;;  %v3599_v4 = vcombine.high %v4908_v55, %v5118_v62 }
 0x130   : > { %2026 = vmatprep.subr.bf16.mxu0 %v4149_v1  ;;  %2737 = vmatprep.subr.bf16.mxu1 %v4149_v1 }
 0x133   : > { %2027 = vmatpush1.bf16.msra.mxu0 %v4075_v5  ;;  %2738 = vmatpush1.bf16.msra.mxu1 %v4076_v6  ;;  %v3761_v5 = vcombine.high %v4916_v58, %v5125_v0  ;;  %v4119_v6 = vld [vmem:[%s5229_s1 + $0x148] sm:$0xff]  }
 0x134   : > { %2028 = vmatprep.subr.bf16.mxu0 %v4149_v1  ;;  %2739 = vmatprep.subr.bf16.mxu1 %v4149_v1 }
 0x137   : > { %2029 = vmatpush1.bf16.msra.mxu0 %v4077_v7  ;;  %2740 = vmatpush1.bf16.msra.mxu1 %v4078_v8  ;;  %v4120_v7 = vld [vmem:[%s5229_s1 + $0x148] sm:$0xff]   ;;  %v4121_v8 = vld [vmem:[%s5229_s1 + $0x150] sm:$0xff]  }
 0x138   : > { %2030 = vmatprep.subr.bf16.mxu0 %v4149_v1  ;;  %2741 = vmatprep.subr.bf16.mxu1 %v4149_v1 }
 0x13b   : > { %2031 = vmatpush1.bf16.msra.mxu0 %v4079_v9  ;;  %2742 = vmatpush1.bf16.msra.mxu1 %v4080_v11  ;;  %v4122_v9 = vld [vmem:[%s5229_s1 + $0x150] sm:$0xff]   ;;  %v4123_v11 = vld [vmem:[%s5229_s1 + $0x158] sm:$0xff]  }
 0x13c   : > { %2032 = vmatprep.subr.bf16.mxu0 %v4149_v1  ;;  %2743 = vmatprep.subr.bf16.mxu1 %v4149_v1 }
 0x13f   : > { %2033 = vmatpush1.bf16.msra.mxu0 %v4081_v14  ;;  %2744 = vmatpush1.bf16.msra.mxu1 %v4082_v17  ;;  %v4124_v14 = vld [vmem:[%s5229_s1 + $0x158] sm:$0xff]   ;;  %v4127_v17 = vld [vmem:[%s5229_s1 + $0x168] sm:$0xff]  }
 0x140   : > { %2034 = vmatprep.subr.bf16.mxu0 %v4149_v1  ;;  %2745 = vmatprep.subr.bf16.mxu1 %v4149_v1 }
 0x143   : > { %2035 = vmatpush1.bf16.msra.mxu0 %v4083_v23  ;;  %2746 = vmatpush1.bf16.msra.mxu1 %v4084_v26  ;;  %v4132_v23 = vld [vmem:[%s5229_s1 + $0x178] sm:$0xff]   ;;  %v4135_v26 = vld [vmem:[%s5229_s1 + $0x188] sm:$0xff]  }
 0x144   : > { %2165 = vmatprep.subr.bf16.mxu0 %v4149_v1  ;;  %2876 = vmatprep.subr.bf16.mxu1 %v4149_v1 }
 0x146   : > { %2049 = vmatmul.mubr.bf16.vlgmr.msra.gmra.mrb[4].mxu0 %v3526_v27  ;;  %2760 = vmatmul.mubr.bf16.vlgmr.msra.gmra.mrb[4].mxu1 %v3688_v31  ;;  %v4136_v27 = vld [vmem:[%s5229_s1 + $0x188] sm:$0xff]   ;;  %v3288_v31 = vld [vmem:[%s5231_s3] ss:$0 sm:$0xff] }
 0x147   : > { %2166 = vmatpush1.bf16.msra.mxu0 %v4088_v30  ;;  %2877 = vmatpush1.bf16.msra.mxu1 %v4090_v34  ;;  %v3287_v30 = vld [vmem:[%s5230_s2] ss:$0 sm:$0xff] }
 0x148   : > { %2167 = vmatprep.subr.bf16.mxu0 %v4149_v1  ;;  %2878 = vmatprep.subr.bf16.mxu1 %v4149_v1 }
 0x149   : > { %3576 = vmatprep.mubr.msk.bf16.mxu0 %vm335_vm1, %v2100_v41  ;;  %3738 = vmatprep.mubr.msk.bf16.mxu1 %vm335_vm1, %v2811_v35 }
 0x14b   : > { %2168 = vmatpush1.bf16.msra.mxu0 %v4091_v45  ;;  %2879 = vmatpush1.bf16.msra.mxu1 %v4092_v36 }
 0x14c   : > { %2169 = vmatprep.subr.bf16.mxu0 %v4149_v1  ;;  %2880 = vmatprep.subr.bf16.mxu1 %v4149_v1 }
 0x14f   : > { %2170 = vmatpush1.bf16.msra.mxu0 %v4093_v37  ;;  %2881 = vmatpush1.bf16.msra.mxu1 %v4094_v38 }
 0x150   : > { %2171 = vmatprep.subr.bf16.mxu0 %v4149_v1  ;;  %2882 = vmatprep.subr.bf16.mxu1 %v4149_v1 }
 0x153   : > { %2172 = vmatpush1.bf16.msra.mxu0 %v4095_v39  ;;  %2883 = vmatpush1.bf16.msra.mxu1 %v4096_v40 }
 0x154   : > { %2173 = vmatprep.subr.bf16.mxu0 %v4149_v1  ;;  %2884 = vmatprep.subr.bf16.mxu1 %v4149_v1 }
 0x157   : > { %2174 = vmatpush1.bf16.msra.mxu0 %v4097_v42  ;;  %2885 = vmatpush1.bf16.msra.mxu1 %v4098_v43 }
 0x158   : > { %2175 = vmatprep.subr.bf16.mxu0 %v4149_v1  ;;  %2886 = vmatprep.subr.bf16.mxu1 %v4149_v1 }
 0x15b   : > { %2176 = vmatpush1.bf16.msra.mxu0 %v4099_v44  ;;  %2887 = vmatpush1.bf16.msra.mxu1 %v4100_v46 }
 0x15c   : > { %2177 = vmatprep.subr.bf16.mxu0 %v4149_v1  ;;  %2888 = vmatprep.subr.bf16.mxu1 %v4149_v1 }
 0x15f   : > { %2178 = vmatpush1.bf16.msra.mxu0 %v4101_v47  ;;  %2889 = vmatpush1.bf16.msra.mxu1 %v4102_v48 }
 0x160   : > { %2179 = vmatprep.subr.bf16.mxu0 %v4149_v1  ;;  %2890 = vmatprep.subr.bf16.mxu1 %v4149_v1 }
 0x163   : > { %2180 = vmatpush1.bf16.msra.mxu0 %v4103_v49  ;;  %2891 = vmatpush1.bf16.msra.mxu1 %v4104_v50 }
 0x164   : > { %2181 = vmatprep.subr.bf16.mxu0 %v4149_v1  ;;  %2892 = vmatprep.subr.bf16.mxu1 %v4149_v1 }
 0x167   : > { %2182 = vmatpush1.bf16.msra.mxu0 %v4105_v51  ;;  %2893 = vmatpush1.bf16.msra.mxu1 %v4106_v52 }
 0x168   : > { %2183 = vmatprep.subr.bf16.mxu0 %v4149_v1  ;;  %2894 = vmatprep.subr.bf16.mxu1 %v4149_v1 }
 0x16b   : > { %2184 = vmatpush1.bf16.msra.mxu0 %v4107_v56  ;;  %2895 = vmatpush1.bf16.msra.mxu1 %v4108_v60 }
 0x16c   : > { %2298 = vmatprep.subr.bf16.mxu0 %v4149_v1  ;;  %3009 = vmatprep.subr.bf16.mxu1 %v4149_v1 }
 0x16e   : > { %2198 = vmatmul.mubr.bf16.vlgmr.msra.gmra.mrb[4].mxu0 %v2097_v12  ;;  %2909 = vmatmul.mubr.bf16.vlgmr.msra.gmra.mrb[4].mxu1 %v2808_v2 }
 0x16f   : > { %2299 = vmatpush1.bf16.msra.mxu0 %v4115_v63  ;;  %3010 = vmatpush1.bf16.msra.mxu1 %v4118_v3 }
 0x170   : > { %2300 = vmatprep.subr.bf16.mxu0 %v4149_v1  ;;  %3011 = vmatprep.subr.bf16.mxu1 %v4149_v1 }
 0x171   : > { %3610 = vmatprep.mubr.msk.bf16.mxu0 %vm335_vm1, %v3599_v4  ;;  %3772 = vmatprep.mubr.msk.bf16.mxu1 %vm335_vm1, %v3761_v5 }
 0x173   : > { %2301 = vmatpush1.bf16.msra.mxu0 %v4119_v6  ;;  %3012 = vmatpush1.bf16.msra.mxu1 %v4120_v7 }
 0x174   : > { %2302 = vmatprep.subr.bf16.mxu0 %v4149_v1  ;;  %3013 = vmatprep.subr.bf16.mxu1 %v4149_v1 }
 0x177   : > { %2303 = vmatpush1.bf16.msra.mxu0 %v4121_v8  ;;  %3014 = vmatpush1.bf16.msra.mxu1 %v4122_v9 }
 0x178   : > { %2304 = vmatprep.subr.bf16.mxu0 %v4149_v1  ;;  %3015 = vmatprep.subr.bf16.mxu1 %v4149_v1 }
 0x17b   : > { %2305 = vmatpush1.bf16.msra.mxu0 %v4123_v11  ;;  %3016 = vmatpush1.bf16.msra.mxu1 %v4124_v14 }
 0x17c   : > { %2306 = vmatprep.subr.bf16.mxu0 %v4149_v1  ;;  %3017 = vmatprep.subr.bf16.mxu1 %v4149_v1 }
 0x17f   : > { %2307 = vmatpush1.bf16.msra.mxu0 %v4125_v15  ;;  %3018 = vmatpush1.bf16.msra.mxu1 %v4126_v16 }
 0x180   : > { %2308 = vmatprep.subr.bf16.mxu0 %v4149_v1  ;;  %3019 = vmatprep.subr.bf16.mxu1 %v4149_v1 }
 0x183   : > { %2309 = vmatpush1.bf16.msra.mxu0 %v4127_v17  ;;  %3020 = vmatpush1.bf16.msra.mxu1 %v4128_v19 }
 0x184   : > { %2310 = vmatprep.subr.bf16.mxu0 %v4149_v1  ;;  %3021 = vmatprep.subr.bf16.mxu1 %v4149_v1 }
 0x187   : > { %2311 = vmatpush1.bf16.msra.mxu0 %v4129_v20  ;;  %3022 = vmatpush1.bf16.msra.mxu1 %v4130_v21 }
 0x188   : > { %2312 = vmatprep.subr.bf16.mxu0 %v4149_v1  ;;  %3023 = vmatprep.subr.bf16.mxu1 %v4149_v1 }
 0x18b   : > { %2313 = vmatpush1.bf16.msra.mxu0 %v4131_v22  ;;  %3024 = vmatpush1.bf16.msra.mxu1 %v4132_v23 }
 0x18c   : > { %2314 = vmatprep.subr.bf16.mxu0 %v4149_v1  ;;  %3025 = vmatprep.subr.bf16.mxu1 %v4149_v1 }
 0x18f   : > { %2315 = vmatpush1.bf16.msra.mxu0 %v4133_v24  ;;  %3026 = vmatpush1.bf16.msra.mxu1 %v4134_v25 }
 0x190   : > { %2316 = vmatprep.subr.bf16.mxu0 %v4149_v1  ;;  %3027 = vmatprep.subr.bf16.mxu1 %v4149_v1 }
 0x193   : > { %2317 = vmatpush1.bf16.msra.mxu0 %v4135_v26  ;;  %3028 = vmatpush1.bf16.msra.mxu1 %v4136_v27 }
 0x196   : > { %2331 = vmatmul.mubr.bf16.vlgmr.msra.gmra.mrb[4].mxu0 %v3598_v28  ;;  %3042 = vmatmul.mubr.bf16.vlgmr.msra.gmra.mrb[4].mxu1 %v3760_v29 }
 0x1a1   : > { %v899_v1 = vpop.f32.mrb[0].mxu0  ;;  %v1621_v33 = vpop.f32.mrb[0].mxu1 }
 0x1a2   : > { %v914_v32 = vmul.f32 %v3287_v30, %v899_v1  ;;  %v901_v55 = vpop.f32.mrb[1].mxu0  ;;  %v1630_v34 = vmul.f32 %v3287_v30, %v1621_v33  ;;  %v1623_v41 = vpop.f32.mrb[1].mxu1 }
 0x1a3   : > { %v902_v45 = vpop.f32.mrb[2].mxu0  ;;  %v1624_v36 = vpop.f32.mrb[2].mxu1 }
 0x1a4   : > { %v922_v58 = vadd.f32 %v3288_v31, %v914_v32  ;;  %v915_v35 = vmul.f32 %v3287_v30, %v902_v45  ;;  %v904_v37 = vpop.f32.mrb[3].mxu0  ;;  %v1632_v38 = vadd.f32 %v3288_v31, %v1630_v34  ;;  %v1631_v39 = vmul.f32 %v3287_v30, %v1624_v36  ;;  %v1626_v40 = vpop.f32.mrb[3].mxu1 }
 0x1a6   : > { %v923_v42 = vadd.f32 %v3288_v31, %v915_v35  ;;  %v1633_v43 = vadd.f32 %v3288_v31, %v1631_v39  ;;  %v924_v44 = vmax.f32 %v922_v58, 0.0  ;;  %v1634_v47 = vmax.f32 %v1632_v38, 0.0 }
 0x1a8   : > { %v925_v46 = vmax.f32 %v923_v42, 0.0  ;;  %v1635_v48 = vmax.f32 %v1633_v43, 0.0 }
 0x1aa   : > { %v3792_v49 = vpack.c.bf16 %v925_v46, %v924_v44  ;;  %v3797_v50 = vpack.c.bf16 %v1635_v48, %v1634_v47 }
 0x1ac   : > { %3793 = vst [vmem:[%s204_s9] sm:$0xff] %v3792_v49   ;;  %3809 = vst [vmem:[%s204_s9 + $0x8] sm:$0xff] %v3797_v50  }
 0x269   : > { %v2332_v51 = vpop.f32.mrb[4].mxu0  ;;  %v3043_v18 = vpop.f32.mrb[4].mxu1 }
 0x26a   : > { %v2341_v13 = vmul.f32 %v3287_v30, %v2332_v51  ;;  %v2334_v52 = vpop.f32.mrb[5].mxu0  ;;  %v3052_v53 = vmul.f32 %v3287_v30, %v3043_v18  ;;  %v3045_v54 = vpop.f32.mrb[5].mxu1 }
 0x26b   : > { %v2335_v56 = vpop.f32.mrb[6].mxu0  ;;  %v3046_v60 = vpop.f32.mrb[6].mxu1 }
 0x26c   : > { %v2343_v57 = vadd.f32 %v3288_v31, %v2341_v13  ;;  %v2342_v59 = vmul.f32 %v3287_v30, %v2335_v56  ;;  %v2337_v61 = vpop.f32.mrb[7].mxu0  ;;  %v3054_v10 = vadd.f32 %v3288_v31, %v3052_v53  ;;  %v3053_v62 = vmul.f32 %v3287_v30, %v3046_v60  ;;  %v3048_v12 = vpop.f32.mrb[7].mxu1 }
 0x26e   : > { %v2344_v63 = vadd.f32 %v3288_v31, %v2342_v59  ;;  %v3055_v0 = vadd.f32 %v3288_v31, %v3053_v62  ;;  %v2345_v2 = vmax.f32 %v2343_v57, 0.0  ;;  %v3056_v4 = vmax.f32 %v3054_v10, 0.0 }
 0x270   : > { %v2346_v3 = vmax.f32 %v2344_v63, 0.0  ;;  %v3057_v5 = vmax.f32 %v3055_v0, 0.0 }
 0x272   : > { %v3802_v6 = vpack.c.bf16 %v2346_v3, %v2345_v2  ;;  %v3807_v7 = vpack.c.bf16 %v3057_v5, %v3056_v4 }
 0x274   : > { %3810 = vst [vmem:[%s204_s9 + $0x10] sm:$0xff] %v3802_v6   ;;  %3811 = vst [vmem:[%s204_s9 + $0x18] sm:$0xff] %v3807_v7  }
 0x275 PF: > { %s14_s15 = sadd.s32 1, %s4147_s15  }
 0x276   : > { %p11_p4 = scmp.ge.s32.totalorder %s14_s15, 4  }
 0x278   :  { %13 = sbr.rel (!%p11_p4) target bundleno = 1 (0x1), region = 76 }

// kernel: _lambda_.17
= control target key start
LH: loop header
LB: loop body
LE: loop exit
PB: predicated region body
PF: predicated region fallthrough
CT: control target
= control target key end

     0   :  { %6 = vsyncpa [#allocation3], 0  ;;  %s498_s0 = inlined_call_operand.vmem [shape: bf16[8,4,128], index: 0, kind: input, shape index: {}]   ;;  %s499_s1 = inlined_call_operand.hbm [shape: f32[8,1,128], index: 1, kind: output, shape index: {}]  }
   0x1   :  { %8 = vsyncpa [#allocation3 + $0x1], 0  ;;  %s392_s6 = smov 0   ;;  %s394_s7 = smov 0  }
   0x2   :  { %s396_s8 = smov 0   ;;  %s398_s9 = smov 0  }
   0x3 LB: > { %s413_s10 = sadd.s32 4294967295, %s377_s9   ;;  %s261_s11 = sadd.s32 4294967294, %s377_s9   ;;  %s377_s9 = sphi %s398_s9, %s505_s9   ;;  %s373_s8 = sphi %s396_s8, %s504_s8   ;;  %s369_s7 = sphi %s394_s7, %s503_s7   ;;  %s365_s6 = sphi %s392_s6, %s502_s6  }
   0x4   : > { %s417_s12 = sadd.s32 1, %s377_s9   ;;  %s47_s13 = sadd.s32 1, %s373_s8 }
   0x5   : > { %s44_s14 = ssub.s32 %s377_s9, %s417_s12  ;;  %p57_p0 = scmp.ne.s32.totalorder %s373_s8, %s369_s7 }
   0x6   : > { %p45_p1 = scmp.eq.s32.totalorder %s44_s14, 0  ;;  %p58_p2 = scmp.eq.s32.totalorder %s413_s10, 1 }
   0x7   : > { %p63_p3 = scmp.ne.s32.totalorder %s369_s7, %s365_s6  ;;  %p64_p4 = scmp.eq.s32.totalorder %s261_s11, 1 }
   0x8   : > { %s428_s15 = scalar_select %p45_p1, %s373_s8, %s47_s13  }
   0x9   : > { %p430_p5 = por %p58_p2, %p57_p0  ;;  %p434_p6 = por %p64_p4, %p63_p3 }
   0xa   : > { %p264_p7 = scmp.ge.s32.totalorder %s377_s9, 1  ;;  %p91_p8 = scmp.lt.s32.totalorder %s377_s9, 3 }
   0xc   : > { %p92_p9 = pnand %p264_p7, %p91_p8 }
   0xd   : > { %s266_s18 = sshll.u32 (!%p92_p9), %s413_s10, 2  ;;  %vm123_vm0 = vcmask (!%p92_p9), 1041408   ;;  %s108_s23 = sand.u32 (!%p92_p9), 1, %s369_s7  }
   0xe   : > { %95 = sbr.rel (%p92_p9) target bundleno = 63 (0x3f), region = 24  ;;  %p112_p10 = scmp.lt.s32.totalorder (!%p92_p9), %s266_s18, 7 }
   0xf   : > { %s265_s24 = sshll.u32 (!%p92_p9), %s108_s23, 2  ;;  %s273_s27 = sshll.u32 (!%p92_p9), %s413_s10, 6 }
  0x10   : > { %s110_s25 = scalar_lea.vmem (!%p92_p9), [#allocation2], %s265_s24  ;;  %s453_s30 = scalar_lea.hbm (!%p92_p9), %s499_s1, %s273_s27 }
  0x11   : > { %s199_s26 = sshll.u32 (!%p92_p9), %s110_s25, 4  ;;  %s457_s2 = scalar_lea.sflag (!%p92_p9), [#allocation3], %s108_s23  ;;  %s448_s26 = int_to_ptr.vmem [resolvable:$true] %s199_s26 }
  0x12   : > { %s315_s3 = scalar_lea.vmem (!%p92_p9), %s448_s26, 64  ;;  %s379_s4 = smov (!%p92_p9), [#allocation2]  }
  0x13   : > { %p316_p11 = scmp.ne.s32.totalorder (!%p92_p9), %s448_s26, %s315_s3  ;;  %s319_s5 = sshll.u32 (!%p92_p9), %s379_s4, 4  ;;  %s320_s5 = int_to_ptr.vmem [resolvable:$false] %s319_s5 }
  0x14   : > { %s321_s10 = scalar_lea.vmem (!%p92_p9), %s320_s5, 128  ;;  %p322_p0 = scmp.lt.s32.totalorder (!%p92_p9), %s448_s26, %s320_s5 }
  0x15   : > { %s507_s18 = smov (!%p112_p10, %s266_s18), 7  ;;  %p317_p12 = pnand %p316_p11, %p430_p5 }
  0x16   : > { %s267_s19 = sshll.u32 %s507_s18, 1  ;;  %p323_p1 = scmp.lt.s32.totalorder %s321_s10, %s315_s3 }
  0x17   : > { %s115_s22 = scalar_lea.vmem %s498_s0, %s267_s19  ;;  %p318_p13 = pneg %p317_p12 }
  0x18   : > { %v119_v0 = vld [vmem:[%s115_s22] sm:$0x3]  ;;  %v120_v1 = vld [vmem:[%s115_s22 + $0x2] sm:$0x3]  ;;  %v121_v2 = vld [vmem:[%s115_s22 + $0x4] sm:$0x3]  ;;  %p324_p2 = por %p323_p1, %p322_p0 }
  0x19   : > { %v126_v3 = vsel %vm123_vm0, %v119_v0, 4286644096  ;;  %v139_v4 = vsel %vm123_vm0, %v120_v1, 4286644096  ;;  %v152_v5 = vsel %vm123_vm0, %v121_v2, 4286644096 }
  0x1a   : > { %v128_v6 = vunpack.i.l.bf16 %v126_v3  ;;  %v129_v7 = vunpack.i.h.bf16 %v126_v3  ;;  %v141_v8 = vunpack.i.l.bf16 %v139_v4  ;;  %v142_v9 = vunpack.i.h.bf16 %v139_v4  ;;  %v122_v10 = vld [vmem:[%s115_s22 + $0x6] sm:$0x3]  ;;  %p325_p3 = pnand %p324_p2, %p318_p13 }
  0x1b   : > { %v154_v11 = vunpack.i.l.bf16 %v152_v5  ;;  %v155_v12 = vunpack.i.h.bf16 %v152_v5  ;;  %v165_v13 = vsel %vm123_vm0, %v122_v10, 4286644096 }
  0x1c   : > { %v130_v14 = vmax.f32 %v128_v6, %v129_v7  ;;  %v143_v15 = vmax.f32 %v141_v8, %v142_v9  ;;  %v167_v16 = vunpack.i.l.bf16 %v165_v13  ;;  %v168_v17 = vunpack.i.h.bf16 %v165_v13 }
  0x1d   : > { %v156_v18 = vmax.f32 %v154_v11, %v155_v12 }
  0x1e   : > { %v131_v19 = vrot.slane %v130_v14, 4  ;;  %v144_v20 = vrot.slane %v143_v15, 4  ;;  %v169_v21 = vmax.f32 %v167_v16, %v168_v17 }
  0x1f   : > { %v157_v22 = vrot.slane %v156_v18, 4 }
  0x20   : > { %v132_v23 = vmax.f32 %v130_v14, %v131_v19  ;;  %v145_v24 = vmax.f32 %v143_v15, %v144_v20  ;;  %v170_v25 = vrot.slane %v169_v21, 4 }
  0x21   : > { %v158_v26 = vmax.f32 %v156_v18, %v157_v22 }
  0x22   : > { %v133_v27 = vrot.slane %v132_v23, 2  ;;  %v146_v28 = vrot.slane %v145_v24, 2  ;;  %v171_v29 = vmax.f32 %v169_v21, %v170_v25 }
  0x23   : > { %v159_v30 = vrot.slane %v158_v26, 2 }
  0x24   : > { %v134_v31 = vmax.f32 %v132_v23, %v133_v27  ;;  %v147_v32 = vmax.f32 %v145_v24, %v146_v28  ;;  %v172_v33 = vrot.slane %v171_v29, 2 }
  0x25   : > { %v160_v34 = vmax.f32 %v158_v26, %v159_v30 }
  0x26   : > { %v135_v35 = vrot.slane %v134_v31, 1  ;;  %v148_v36 = vrot.slane %v147_v32, 1  ;;  %v173_v37 = vmax.f32 %v171_v29, %v172_v33 }
  0x27   : > { %v161_v38 = vrot.slane %v160_v34, 1 }
  0x28   : > { %v136_v39 = vmax.f32 %v134_v31, %v135_v35  ;;  %v149_v40 = vmax.f32 %v147_v32, %v148_v36  ;;  %v174_v41 = vrot.slane %v173_v37, 1 }
  0x29   : > { %v162_v42 = vmax.f32 %v160_v34, %v161_v38 }
  0x2a   : > { %v137_v43 = vpack.i.bf16 %v136_v39, %v136_v39  ;;  %v150_v44 = vpack.i.bf16 %v149_v40, %v149_v40  ;;  %v175_v45 = vmax.f32 %v173_v37, %v174_v41 }
  0x2b   : > { %v163_v46 = vpack.i.bf16 %v162_v42, %v162_v42 }
  0x2c   : > { %v177_v47 = vunpack.c.l.bf16 %v137_v43  ;;  %v178_v48 = vunpack.c.l.bf16 %v150_v44  ;;  %v176_v49 = vpack.i.bf16 %v175_v45, %v175_v45 }
  0x2d   : > { %v179_v50 = vunpack.c.l.bf16 %v163_v46 }
  0x2e   : > { %181 = vst [vmem:[%s110_s25] sm:$0x1] %v177_v47  ;;  %182 = vst [vmem:[%s110_s25 + $0x1] sm:$0x1] %v178_v48  ;;  %v180_v51 = vunpack.c.l.bf16 %v176_v49 }
  0x2f   : > { %183 = vst [vmem:[%s110_s25 + $0x2] sm:$0x1] %v179_v50 }
  0x30   : > { %184 = vst [vmem:[%s110_s25 + $0x3] sm:$0x1] %v180_v51 }
  0x31   : > { %328 = shalt.err (!%p325_p3)
}
  0x32   : > { %s329_s11 = scalar_lea.hbm %s453_s30, 64  ;;  %s333_s18 = scalar_lea.hbm %s499_s1, 128 }
  0x33   : > { %p330_p4 = scmp.ne.s32.totalorder %s453_s30, %s329_s11  ;;  %p334_p9 = scmp.lt.u32.totalorder %s453_s30, %s499_s1 }
  0x34   : > { %p335_p10 = scmp.lt.u32.totalorder %s333_s18, %s329_s11  ;;  %p337_p12 = scmp.lt.u32.totalorder %s329_s11, %s453_s30 }
  0x35   : > { %p331_p7 = pnand %p330_p4, %p430_p5 }
  0x36   : > { %p336_p11 = por %p335_p10, %p334_p9 }
  0x37   : > { %p332_p8 = pneg %p331_p7 }
  0x38   : > { %p338_p13 = por %p337_p12, %p336_p11 }
  0x3a   : > { %p339_p0 = pnand %p338_p13, %p332_p8 }
  0x3c   : > { %342 = shalt.err (!%p339_p0)
}
  0x3d   : > { %s380_s21 = smov 16   ;;  %s381_s22 = smov 1  }
  0x3e   : > { %274 = dma.vmem_to_hbm [thread:$0]  (%p430_p5), %s448_s26, 64, %s453_s30, %s457_s2, %s380_s21, %s380_s21, %s381_s22  }
  0x3f PF: > { %p280_p1 = scmp.ge.s32.totalorder %s377_s9, 2  ;;  %s214_s23 = sand.u32 1, %s365_s6  }
  0x40   : > { %s215_s24 = scalar_lea.sflag [#allocation3], %s214_s23 }
  0x41   : > { %p277_p2 = pnand %p280_p1, %p434_p6 }
  0x43   : > { %360 = dma.done.wait (!%p277_p2), %s215_s24, 64  }
  0x44   : > { %362 = vsyncadd (!%p277_p2), %s215_s24, 4294967232  ;;  %p11_p3 = scmp.ge.s32.totalorder %s417_s12, 4   ;;  %s502_s6 = smov %s369_s7 }
  0x45   : > { %s503_s7 = smov %s373_s8  ;;  %s504_s8 = smov %s428_s15 }
  0x46   : > { %s505_s9 = smov %s417_s12  ;;  %13 = sbr.rel (!%p11_p3) target bundleno = 3 (0x3), region = 59 }
  0x4d   :  { %220 = vsyncpa [#allocation3], 1 }
  0x4e   :  { %222 = vsyncpa [#allocation3 + $0x1], 1 }

// kernel: _lambda_.16
= control target key start
LH: loop header
LB: loop body
LE: loop exit
PB: predicated region body
PF: predicated region fallthrough
CT: control target
= control target key end

     0   :  { %s2542_s24 = smov 0   ;;  %s3148_s0 = inlined_call_operand.vmem [shape: bf16[2,32,256], index: 0, kind: input, shape index: {}]   ;;  %s3149_s1 = inlined_call_operand.vmem [shape: bf16[5,256,256], index: 1, kind: input, shape index: {}]   ;;  %s3150_s2 = inlined_call_operand.vmem [shape: f32[1,256], index: 2, kind: input, shape index: {}]   ;;  %s3151_s3 = inlined_call_operand.vmem [shape: f32[1,256], index: 3, kind: input, shape index: {}]   ;;  %s3152_s4 = inlined_call_operand.vmem [shape: bf16[256,128], index: 4, kind: input, shape index: {}]   ;;  %s3153_s5 = inlined_call_operand.vmem [shape: f32[1,128], index: 5, kind: input, shape index: {}]   ;;  %s3154_s6 = inlined_call_operand.vmem [shape: f32[1,128], index: 6, kind: input, shape index: {}]   ;;  %s3155_s7 = inlined_call_operand.vmem [shape: bf16[2,16,128], index: 7, kind: output, shape index: {}]  }
   0x1 LB: > { %s1836_s25 = sadd.s32 4294967295, %s2500_s24   ;;  %p1840_p0 = scmp.ge.s32.totalorder %s2500_s24, 1  ;;  %s2500_s24 = sphi %s2542_s24, %s17_s24  }
   0x2   : > { %p237_p1 = scmp.lt.s32.totalorder %s2500_s24, 3 }
   0x4   : > { %p238_p2 = pnand %p1840_p0, %p237_p1 }
   0x5   : > { %v2224_v0 = vld [vmem:[%s3149_s1 + $0x104] ss:$8 sps:$4 sm:$0xff] (!%p238_p2)   ;;  %v2228_v2 = vld [vmem:[%s3149_s1 + $0x100] ss:$8 sps:$4 sm:$0xff] (!%p238_p2)   ;;  %v2230_v4 = vld [vmem:[%s3149_s1 + $0x114] ss:$8 sps:$4 sm:$0xff] (!%p238_p2)  }
   0x6   : > { %241 = sbr.rel (%p238_p2) target bundleno = 651 (0x28b), region = 48  ;;  %v2226_v1 = vld [vmem:[%s3149_s1 + $0x204] ss:$8 sps:$4 sm:$0xff] (!%p238_p2)   ;;  %531 = vmatprep.subr.bf16.mxu1 (!%p238_p2), %v2224_v0  ;;  %v2229_v3 = vld [vmem:[%s3149_s1 + $0x200] ss:$8 sps:$4 sm:$0xff] (!%p238_p2)   ;;  %p269_p3 = scmp.lt.s32.totalorder (!%p238_p2), %s1836_s25, 1 }
   0x7   : > { %985 = vmatprep.subr.bf16.mxu0 (!%p238_p2), %v2226_v1  ;;  %532 = vmatpush1.bf16.msra.mxu1 (!%p238_p2), %v2228_v2  ;;  %v2232_v5 = vld [vmem:[%s3149_s1 + $0x214] ss:$8 sps:$4 sm:$0xff] (!%p238_p2)   ;;  %v2234_v6 = vld [vmem:[%s3149_s1 + $0x110] ss:$8 sps:$4 sm:$0xff] (!%p238_p2)   ;;  %v2236_v8 = vld [vmem:[%s3149_s1 + $0x124] ss:$8 sps:$4 sm:$0xff] (!%p238_p2)  }
   0x8   : > { %986 = vmatpush1.bf16.msra.mxu0 (!%p238_p2), %v2229_v3  ;;  %533 = vmatprep.subr.bf16.mxu1 (!%p238_p2), %v2230_v4  ;;  %v2235_v7 = vld [vmem:[%s3149_s1 + $0x210] ss:$8 sps:$4 sm:$0xff] (!%p238_p2)   ;;  %v2238_v9 = vld [vmem:[%s3149_s1 + $0x224] ss:$8 sps:$4 sm:$0xff] (!%p238_p2)   ;;  %v2240_v10 = vld [vmem:[%s3149_s1 + $0x120] ss:$8 sps:$4 sm:$0xff] (!%p238_p2)  }
   0x9   : > { %987 = vmatprep.subr.bf16.mxu0 (!%p238_p2), %v2232_v5  ;;  %v2241_v11 = vld [vmem:[%s3149_s1 + $0x220] ss:$8 sps:$4 sm:$0xff] (!%p238_p2)   ;;  %v2242_v12 = vld [vmem:[%s3149_s1 + $0x134] ss:$8 sps:$4 sm:$0xff] (!%p238_p2)   ;;  %v2246_v14 = vld [vmem:[%s3149_s1 + $0x130] ss:$8 sps:$4 sm:$0xff] (!%p238_p2)  }
   0xa   : > { %v2244_v13 = vld [vmem:[%s3149_s1 + $0x234] ss:$8 sps:$4 sm:$0xff] (!%p238_p2)   ;;  %v2247_v15 = vld [vmem:[%s3149_s1 + $0x230] ss:$8 sps:$4 sm:$0xff] (!%p238_p2)   ;;  %v2248_v16 = vld [vmem:[%s3149_s1 + $0x144] ss:$8 sps:$4 sm:$0xff] (!%p238_p2)  }
   0xb   : > { %534 = vmatpush1.bf16.msra.mxu1 (!%p238_p2), %v2234_v6  ;;  %v2250_v17 = vld [vmem:[%s3149_s1 + $0x244] ss:$8 sps:$4 sm:$0xff] (!%p238_p2)   ;;  %v2252_v18 = vld [vmem:[%s3149_s1 + $0x140] ss:$8 sps:$4 sm:$0xff] (!%p238_p2)   ;;  %v2254_v20 = vld [vmem:[%s3149_s1 + $0x154] ss:$8 sps:$4 sm:$0xff] (!%p238_p2)  }
   0xc   : > { %988 = vmatpush1.bf16.msra.mxu0 (!%p238_p2), %v2235_v7  ;;  %535 = vmatprep.subr.bf16.mxu1 (!%p238_p2), %v2236_v8  ;;  %v2253_v19 = vld [vmem:[%s3149_s1 + $0x240] ss:$8 sps:$4 sm:$0xff] (!%p238_p2)   ;;  %v2256_v21 = vld [vmem:[%s3149_s1 + $0x254] ss:$8 sps:$4 sm:$0xff] (!%p238_p2)   ;;  %v2258_v22 = vld [vmem:[%s3149_s1 + $0x150] ss:$8 sps:$4 sm:$0xff] (!%p238_p2)  }
   0xd   : > { %989 = vmatprep.subr.bf16.mxu0 %v2238_v9  ;;  %v2259_v23 = vld [vmem:[%s3149_s1 + $0x250] ss:$8 sps:$4 sm:$0xff]   ;;  %v2260_v24 = vld [vmem:[%s3149_s1 + $0x164] ss:$8 sps:$4 sm:$0xff]   ;;  %v2264_v26 = vld [vmem:[%s3149_s1 + $0x160] ss:$8 sps:$4 sm:$0xff]  }
   0xe   : > { %v2262_v25 = vld [vmem:[%s3149_s1 + $0x264] ss:$8 sps:$4 sm:$0xff]   ;;  %v2265_v27 = vld [vmem:[%s3149_s1 + $0x260] ss:$8 sps:$4 sm:$0xff]   ;;  %v2266_v28 = vld [vmem:[%s3149_s1 + $0x174] ss:$8 sps:$4 sm:$0xff]  }
   0xf   : > { %536 = vmatpush1.bf16.msra.mxu1 %v2240_v10  ;;  %v2268_v29 = vld [vmem:[%s3149_s1 + $0x274] ss:$8 sps:$4 sm:$0xff]   ;;  %v2270_v30 = vld [vmem:[%s3149_s1 + $0x170] ss:$8 sps:$4 sm:$0xff]   ;;  %v2272_v32 = vld [vmem:[%s3149_s1 + $0x184] ss:$8 sps:$4 sm:$0xff]  }
  0x10   : > { %990 = vmatpush1.bf16.msra.mxu0 %v2241_v11  ;;  %537 = vmatprep.subr.bf16.mxu1 %v2242_v12  ;;  %v2271_v31 = vld [vmem:[%s3149_s1 + $0x270] ss:$8 sps:$4 sm:$0xff]   ;;  %v2274_v33 = vld [vmem:[%s3149_s1 + $0x284] ss:$8 sps:$4 sm:$0xff]   ;;  %v2276_v34 = vld [vmem:[%s3149_s1 + $0x180] ss:$8 sps:$4 sm:$0xff]  }
  0x11   : > { %991 = vmatprep.subr.bf16.mxu0 %v2244_v13  ;;  %v2277_v35 = vld [vmem:[%s3149_s1 + $0x280] ss:$8 sps:$4 sm:$0xff]   ;;  %v2278_v36 = vld [vmem:[%s3149_s1 + $0x194] ss:$8 sps:$4 sm:$0xff]   ;;  %s3157_s25 = smov (!%p269_p3, %s1836_s25), 1  ;;  %vm362_vm0 = vcmask 1045504  }
  0x12   : > { %v2280_v37 = vld [vmem:[%s3149_s1 + $0x294] ss:$8 sps:$4 sm:$0xff]   ;;  %v2282_v38 = vld [vmem:[%s3149_s1 + $0x190] ss:$8 sps:$4 sm:$0xff]   ;;  %v2284_v40 = vld [vmem:[%s3149_s1 + $0x1a4] ss:$8 sps:$4 sm:$0xff]  }
  0x13   : > { %538 = vmatpush1.bf16.msra.mxu1 %v2246_v14  ;;  %v2283_v39 = vld [vmem:[%s3149_s1 + $0x290] ss:$8 sps:$4 sm:$0xff]   ;;  %s2169_s22 = sshll.u32 %s3157_s25, 5  ;;  %v2286_v41 = vld [vmem:[%s3149_s1 + $0x2a4] ss:$8 sps:$4 sm:$0xff]   ;;  %s2170_s18 = sshll.u32 %s3157_s25, 3 }
  0x14   : > { %992 = vmatpush1.bf16.msra.mxu0 %v2247_v15  ;;  %539 = vmatprep.subr.bf16.mxu1 %v2248_v16  ;;  %v2288_v42 = vld [vmem:[%s3149_s1 + $0x1a0] ss:$8 sps:$4 sm:$0xff]   ;;  %s2692_s10 = scalar_lea.vmem %s3148_s0, %s2169_s22  ;;  %v2290_v44 = vld [vmem:[%s3149_s1 + $0x1b4] ss:$8 sps:$4 sm:$0xff]   ;;  %v2294_v46 = vld [vmem:[%s3149_s1 + $0x1b0] ss:$8 sps:$4 sm:$0xff]   ;;  %s278_s21 = scalar_lea.vmem %s3155_s7, %s2170_s18 }
  0x15   : > { %993 = vmatprep.subr.bf16.mxu0 %v2250_v17  ;;  %v2289_v43 = vld [vmem:[%s3149_s1 + $0x2a0] ss:$8 sps:$4 sm:$0xff]   ;;  %v2292_v45 = vld [vmem:[%s3149_s1 + $0x2b4] ss:$8 sps:$4 sm:$0xff]   ;;  %v2295_v47 = vld [vmem:[%s3149_s1 + $0x2b0] ss:$8 sps:$4 sm:$0xff]  }
  0x16   : > { %v2707_v48 = vld [vmem:[%s2692_s10 + $0x8] sm:$0xff]  ;;  %v314_v49 = vld [vmem:[%s2692_s10] sm:$0xcc]  ;;  %v315_v50 = vld [vmem:[%s2692_s10 + $0x10] sm:$0x33] }
  0x17   : > { %540 = vmatpush1.bf16.msra.mxu1 %v2252_v18  ;;  %v2296_v51 = vld [vmem:[%s3149_s1 + $0x1c4] ss:$8 sps:$4 sm:$0xff]   ;;  %v1878_v53 = vcombine.high %v314_v49, %v2707_v48  ;;  %v1880_v54 = vcombine.high %v315_v50, %v315_v50  ;;  %v2719_v55 = vld [vmem:[%s2692_s10 + $0x10] sm:$0xff]  ;;  %v2300_v59 = vld [vmem:[%s3149_s1 + $0x1c0] ss:$8 sps:$4 sm:$0xff]   ;;  %v1877_v6 = vcombine.low %v314_v49, %v2707_v48  ;;  %v1879_v7 = vcombine.low %v315_v50, %v315_v50 }
  0x18   : > { %994 = vmatpush1.bf16.msra.mxu0 %v2253_v19  ;;  %541 = vmatprep.subr.bf16.mxu1 %v2254_v20  ;;  %v2298_v52 = vld [vmem:[%s3149_s1 + $0x2c4] ss:$8 sps:$4 sm:$0xff]   ;;  %v1980_v58 = vcombine.high %v2707_v48, %v2719_v55  ;;  %v2301_v60 = vld [vmem:[%s3149_s1 + $0x2c0] ss:$8 sps:$4 sm:$0xff]   ;;  %v2302_v62 = vld [vmem:[%s3149_s1 + $0x1d4] ss:$8 sps:$4 sm:$0xff]   ;;  %v1979_v17 = vcombine.low %v2707_v48, %v2719_v55 }
  0x19   : > { %995 = vmatprep.subr.bf16.mxu0 %v2256_v21  ;;  %v366_v56 = vrot.slane %v1878_v53, 2  ;;  %v367_v57 = vrot.slane %v1880_v54, 2  ;;  %v2304_v63 = vld [vmem:[%s3149_s1 + $0x2d4] ss:$8 sps:$4 sm:$0xff]   ;;  %v2306_v0 = vld [vmem:[%s3149_s1 + $0x1d0] ss:$8 sps:$4 sm:$0xff]  }
  0x1a   : > { %1017 = vmatprep.mubr.bf16.mxu0 %v1980_v58  ;;  %v2307_v1 = vld [vmem:[%s3149_s1 + $0x2d0] ss:$8 sps:$4 sm:$0xff]   ;;  %v2308_v2 = vld [vmem:[%s3149_s1 + $0x1e4] ss:$8 sps:$4 sm:$0xff]   ;;  %v2312_v4 = vld [vmem:[%s3149_s1 + $0x1e0] ss:$8 sps:$4 sm:$0xff]  }
  0x1b   : > { %542 = vmatpush1.bf16.msra.mxu1 %v2258_v22  ;;  %v368_v61 = vsel %vm362_vm0, %v366_v56, %v367_v57  ;;  %v2310_v3 = vld [vmem:[%s3149_s1 + $0x2e4] ss:$8 sps:$4 sm:$0xff]   ;;  %v2313_v5 = vld [vmem:[%s3149_s1 + $0x2e0] ss:$8 sps:$4 sm:$0xff]   ;;  %v2314_v8 = vld [vmem:[%s3149_s1 + $0x1f4] ss:$8 sps:$4 sm:$0xff]  }
  0x1c   : > { %996 = vmatpush1.bf16.msra.mxu0 %v2259_v23  ;;  %543 = vmatprep.subr.bf16.mxu1 %v2260_v24  ;;  %v2316_v9 = vld [vmem:[%s3149_s1 + $0x2f4] ss:$8 sps:$4 sm:$0xff]   ;;  %v2318_v10 = vld [vmem:[%s3149_s1 + $0x1f0] ss:$8 sps:$4 sm:$0xff]   ;;  %v363_v12 = vrot.slane %v1877_v6, 2  ;;  %v364_v13 = vrot.slane %v1879_v7, 2 }
  0x1d   : > { %997 = vmatprep.subr.bf16.mxu0 %v2262_v25  ;;  %563 = vmatprep.mubr.bf16.mxu1 %v368_v61  ;;  %v2319_v11 = vld [vmem:[%s3149_s1 + $0x2f0] ss:$8 sps:$4 sm:$0xff]   ;;  %v2324_v14 = vld [vmem:[%s3149_s1 + $0x4] ss:$8 sps:$4 sm:$0xff]   ;;  %v2322_v16 = vld [vmem:[%s3149_s1] ss:$8 sps:$4 sm:$0xff]  }
  0x1e   : > { %v2329_v15 = vld [vmem:[%s3149_s1 + $0x304] ss:$8 sps:$4 sm:$0xff]   ;;  %v2327_v18 = vld [vmem:[%s3149_s1 + $0x300] ss:$8 sps:$4 sm:$0xff]   ;;  %v365_v19 = vsel %vm362_vm0, %v363_v12, %v364_v13  ;;  %v2334_v20 = vld [vmem:[%s3149_s1 + $0x14] ss:$8 sps:$4 sm:$0xff]  }
  0x1f   : > { %544 = vmatpush1.bf16.msra.mxu1 %v2264_v26  ;;  %v2337_v21 = vld [vmem:[%s3149_s1 + $0x314] ss:$8 sps:$4 sm:$0xff]   ;;  %v2332_v22 = vld [vmem:[%s3149_s1 + $0x10] ss:$8 sps:$4 sm:$0xff]   ;;  %v2340_v24 = vld [vmem:[%s3149_s1 + $0x24] ss:$8 sps:$4 sm:$0xff]  }
  0x20   : > { %998 = vmatpush1.bf16.msra.mxu0 %v2265_v27  ;;  %545 = vmatprep.subr.bf16.mxu1 %v2266_v28  ;;  %v2335_v23 = vld [vmem:[%s3149_s1 + $0x310] ss:$8 sps:$4 sm:$0xff]   ;;  %v2343_v25 = vld [vmem:[%s3149_s1 + $0x324] ss:$8 sps:$4 sm:$0xff]   ;;  %v2338_v26 = vld [vmem:[%s3149_s1 + $0x20] ss:$8 sps:$4 sm:$0xff]  }
  0x21   : > { %999 = vmatprep.subr.bf16.mxu0 %v2268_v29  ;;  %v2341_v27 = vld [vmem:[%s3149_s1 + $0x320] ss:$8 sps:$4 sm:$0xff]   ;;  %v2346_v28 = vld [vmem:[%s3149_s1 + $0x34] ss:$8 sps:$4 sm:$0xff]   ;;  %v2368_v57 = vld [vmem:[%s3149_s1 + $0x70] ss:$8 sps:$4 sm:$0xff]  }
  0x22   : > { %v2349_v29 = vld [vmem:[%s3149_s1 + $0x334] ss:$8 sps:$4 sm:$0xff]   ;;  %v2371_v61 = vld [vmem:[%s3149_s1 + $0x370] ss:$8 sps:$4 sm:$0xff]  }
  0x23   : > { %546 = vmatpush1.bf16.msra.mxu1 %v2270_v30  ;;  %v2344_v30 = vld [vmem:[%s3149_s1 + $0x30] ss:$8 sps:$4 sm:$0xff]   ;;  %v2394_v12 = vld [vmem:[%s3149_s1 + $0xb4] ss:$8 sps:$4 sm:$0xff]  }
  0x24   : > { %1000 = vmatpush1.bf16.msra.mxu0 %v2271_v31  ;;  %547 = vmatprep.subr.bf16.mxu1 %v2272_v32  ;;  %v2347_v31 = vld [vmem:[%s3149_s1 + $0x330] ss:$8 sps:$4 sm:$0xff]   ;;  %v2352_v32 = vld [vmem:[%s3149_s1 + $0x44] ss:$8 sps:$4 sm:$0xff]   ;;  %v2397_v13 = vld [vmem:[%s3149_s1 + $0x3b4] ss:$8 sps:$4 sm:$0xff]  }
  0x25   : > { %1001 = vmatprep.subr.bf16.mxu0 %v2274_v33  ;;  %v2355_v33 = vld [vmem:[%s3149_s1 + $0x344] ss:$8 sps:$4 sm:$0xff]   ;;  %v2380_v6 = vld [vmem:[%s3149_s1 + $0x90] ss:$8 sps:$4 sm:$0xff]  }
  0x26   : > { %v2383_v7 = vld [vmem:[%s3149_s1 + $0x390] ss:$8 sps:$4 sm:$0xff]  }
  0x27   : > { %548 = vmatpush1.bf16.msra.mxu1 %v2276_v34  ;;  %v2350_v34 = vld [vmem:[%s3149_s1 + $0x40] ss:$8 sps:$4 sm:$0xff]  }
  0x28   : > { %1002 = vmatpush1.bf16.msra.mxu0 %v2277_v35  ;;  %549 = vmatprep.subr.bf16.mxu1 %v2278_v36  ;;  %v2353_v35 = vld [vmem:[%s3149_s1 + $0x340] ss:$8 sps:$4 sm:$0xff]   ;;  %v2358_v36 = vld [vmem:[%s3149_s1 + $0x54] ss:$8 sps:$4 sm:$0xff]  }
  0x29   : > { %1003 = vmatprep.subr.bf16.mxu0 %v2280_v37  ;;  %v2361_v37 = vld [vmem:[%s3149_s1 + $0x354] ss:$8 sps:$4 sm:$0xff]  }
  0x2b   : > { %550 = vmatpush1.bf16.msra.mxu1 %v2282_v38  ;;  %v2356_v38 = vld [vmem:[%s3149_s1 + $0x50] ss:$8 sps:$4 sm:$0xff]  }
  0x2c   : > { %1004 = vmatpush1.bf16.msra.mxu0 %v2283_v39  ;;  %551 = vmatprep.subr.bf16.mxu1 %v2284_v40  ;;  %v2359_v39 = vld [vmem:[%s3149_s1 + $0x350] ss:$8 sps:$4 sm:$0xff]   ;;  %v2364_v40 = vld [vmem:[%s3149_s1 + $0x64] ss:$8 sps:$4 sm:$0xff]  }
  0x2d   : > { %1005 = vmatprep.subr.bf16.mxu0 %v2286_v41  ;;  %v2367_v41 = vld [vmem:[%s3149_s1 + $0x364] ss:$8 sps:$4 sm:$0xff]  }
  0x2f   : > { %552 = vmatpush1.bf16.msra.mxu1 %v2288_v42  ;;  %v2362_v42 = vld [vmem:[%s3149_s1 + $0x60] ss:$8 sps:$4 sm:$0xff]  }
  0x30   : > { %1006 = vmatpush1.bf16.msra.mxu0 %v2289_v43  ;;  %553 = vmatprep.subr.bf16.mxu1 %v2290_v44  ;;  %v2365_v43 = vld [vmem:[%s3149_s1 + $0x360] ss:$8 sps:$4 sm:$0xff]  }
  0x31   : > { %1007 = vmatprep.subr.bf16.mxu0 %v2292_v45  ;;  %v2855_v44 = vld [vmem:[%s2692_s10] sm:$0xff]  ;;  %v1032_v45 = vld [vmem:[%s2692_s10 + $0x8] sm:$0xcc] }
  0x32   : > { %v1914_v49 = vcombine.high %v2855_v44, %v2707_v48  ;;  %v2046_v50 = vcombine.high %v1032_v45, %v2719_v55  ;;  %v2045_v53 = vcombine.low %v1032_v45, %v2719_v55  ;;  %v2443_v45 = vld [vmem:[%s3149_s1 + $0x450] ss:$8 sps:$4 sm:$0xff]  }
  0x33   : > { %554 = vmatpush1.bf16.msra.mxu1 %v2294_v46  ;;  %v1034_v46 = vld [vmem:[%s2692_s10 + $0x18] sm:$0x33] }
  0x34   : > { %1008 = vmatpush1.bf16.msra.mxu0 %v2295_v47  ;;  %555 = vmatprep.subr.bf16.mxu1 %v2296_v51  ;;  %v2370_v47 = vld [vmem:[%s3149_s1 + $0x74] ss:$8 sps:$4 sm:$0xff]   ;;  %v2047_v54 = vcombine.low %v1034_v46, %v1034_v46  ;;  %v1084_v56 = vrot.slane %v2046_v50, 2  ;;  %v2449_v50 = vld [vmem:[%s3149_s1 + $0x470] ss:$8 sps:$4 sm:$0xff]  }
  0x35   : > { %1009 = vmatprep.subr.bf16.mxu0 %v2298_v52  ;;  %v2373_v51 = vld [vmem:[%s3149_s1 + $0x374] ss:$8 sps:$4 sm:$0xff]   ;;  %v2048_v52 = vcombine.high %v1034_v46, %v1034_v46  ;;  %v2448_v46 = vld [vmem:[%s3149_s1 + $0x464] ss:$8 sps:$4 sm:$0xff]  }
  0x37   : > { %556 = vmatpush1.bf16.msra.mxu1 %v2300_v59  ;;  %v1085_v58 = vrot.slane %v2048_v52, 2  ;;  %v1081_v59 = vrot.slane %v2045_v53, 2  ;;  %v2452_v52 = vld [vmem:[%s3149_s1 + $0x480] ss:$8 sps:$4 sm:$0xff]   ;;  %v2457_v53 = vld [vmem:[%s3149_s1 + $0x494] ss:$8 sps:$4 sm:$0xff]  }
  0x38   : > { %1010 = vmatpush1.bf16.msra.mxu0 %v2301_v60  ;;  %557 = vmatprep.subr.bf16.mxu1 %v2302_v62  ;;  %v1082_v60 = vrot.slane %v2047_v54, 2  ;;  %v2376_v62 = vld [vmem:[%s3149_s1 + $0x84] ss:$8 sps:$4 sm:$0xff]   ;;  %v2455_v54 = vld [vmem:[%s3149_s1 + $0x490] ss:$8 sps:$4 sm:$0xff]  }
  0x39   : > { %1011 = vmatprep.subr.bf16.mxu0 %v2304_v63  ;;  %v2379_v63 = vld [vmem:[%s3149_s1 + $0x384] ss:$8 sps:$4 sm:$0xff]  }
  0x3b   : > { %558 = vmatpush1.bf16.msra.mxu1 %v2306_v0  ;;  %v1086_v0 = vsel %vm362_vm0, %v1084_v56, %v1085_v58  ;;  %v2460_v56 = vld [vmem:[%s3149_s1 + $0x4a4] ss:$8 sps:$4 sm:$0xff]   ;;  %v2463_v58 = vld [vmem:[%s3149_s1 + $0x4b4] ss:$8 sps:$4 sm:$0xff]  }
  0x3c   : > { %1012 = vmatpush1.bf16.msra.mxu0 %v2307_v1  ;;  %559 = vmatprep.subr.bf16.mxu1 %v2308_v2  ;;  %v2883_v1 = vsel %vm362_vm0, %v1081_v59, %v1082_v60  ;;  %v2374_v2 = vld [vmem:[%s3149_s1 + $0x80] ss:$8 sps:$4 sm:$0xff]   ;;  %v2461_v59 = vld [vmem:[%s3149_s1 + $0x4b0] ss:$8 sps:$4 sm:$0xff]   ;;  %v2466_v60 = vld [vmem:[%s3149_s1 + $0x4c4] ss:$8 sps:$4 sm:$0xff]  }
  0x3d   : > { %1013 = vmatprep.subr.bf16.mxu0 %v2310_v3  ;;  %v2377_v3 = vld [vmem:[%s3149_s1 + $0x380] ss:$8 sps:$4 sm:$0xff]  }
  0x3f   : > { %560 = vmatpush1.bf16.msra.mxu1 %v2312_v4  ;;  %v2382_v4 = vld [vmem:[%s3149_s1 + $0x94] ss:$8 sps:$4 sm:$0xff]  }
  0x40   : > { %1014 = vmatpush1.bf16.msra.mxu0 %v2313_v5  ;;  %561 = vmatprep.subr.bf16.mxu1 %v2314_v8  ;;  %v2385_v5 = vld [vmem:[%s3149_s1 + $0x394] ss:$8 sps:$4 sm:$0xff]   ;;  %v2388_v8 = vld [vmem:[%s3149_s1 + $0xa4] ss:$8 sps:$4 sm:$0xff]  }
  0x41   : > { %1015 = vmatprep.subr.bf16.mxu0 %v2316_v9  ;;  %v2391_v9 = vld [vmem:[%s3149_s1 + $0x3a4] ss:$8 sps:$4 sm:$0xff]  }
  0x43   : > { %562 = vmatpush1.bf16.msra.mxu1 %v2318_v10  ;;  %v2386_v10 = vld [vmem:[%s3149_s1 + $0xa0] ss:$8 sps:$4 sm:$0xff]  }
  0x44   : > { %1016 = vmatpush1.bf16.msra.mxu0 %v2319_v11  ;;  %741 = vmatprep.subr.bf16.mxu1 %v2324_v14  ;;  %v2389_v11 = vld [vmem:[%s3149_s1 + $0x3a0] ss:$8 sps:$4 sm:$0xff]   ;;  %v2392_v14 = vld [vmem:[%s3149_s1 + $0xb0] ss:$8 sps:$4 sm:$0xff]  }
  0x45   : > { %1249 = vmatprep.subr.bf16.mxu0 %v2329_v15  ;;  %v2395_v15 = vld [vmem:[%s3149_s1 + $0x3b0] ss:$8 sps:$4 sm:$0xff]  }
  0x46   : > { %564 = vmatmul.mubr.bf16.vlgmr.msra.gmra.mrb[0].mxu1 %v365_v19  ;;  %v2401_v19 = vld [vmem:[%s3149_s1 + $0x3c0] ss:$8 sps:$4 sm:$0xff]  }
  0x47   : > { %1018 = vmatmul.mubr.bf16.vlgmr.msra.gmra.mrb[0].mxu0 %v1979_v17  ;;  %742 = vmatpush1.bf16.msra.mxu1 %v2322_v16  ;;  %v2400_v16 = vld [vmem:[%s3149_s1 + $0xc4] ss:$8 sps:$4 sm:$0xff]  }
  0x48   : > { %1250 = vmatpush1.bf16.msra.mxu0 %v2327_v18  ;;  %743 = vmatprep.subr.bf16.mxu1 %v2334_v20  ;;  %v2403_v17 = vld [vmem:[%s3149_s1 + $0x3c4] ss:$8 sps:$4 sm:$0xff]   ;;  %v2398_v18 = vld [vmem:[%s3149_s1 + $0xc0] ss:$8 sps:$4 sm:$0xff]   ;;  %v2406_v20 = vld [vmem:[%s3149_s1 + $0xd4] ss:$8 sps:$4 sm:$0xff]  }
  0x49   : > { %1251 = vmatprep.subr.bf16.mxu0 %v2337_v21  ;;  %773 = vmatprep.mubr.bf16.mxu1 %v1914_v49  ;;  %v2409_v21 = vld [vmem:[%s3149_s1 + $0x3d4] ss:$8 sps:$4 sm:$0xff]  }
  0x4a   : > { %1281 = vmatprep.mubr.bf16.mxu0 %v1086_v0  ;;  %v2451_v49 = vld [vmem:[%s3149_s1 + $0x474] ss:$8 sps:$4 sm:$0xff]   ;;  %v2472_v0 = vld [vmem:[%s3149_s1 + $0x4e4] ss:$8 sps:$4 sm:$0xff]  }
  0x4b   : > { %744 = vmatpush1.bf16.msra.mxu1 %v2332_v22  ;;  %v2404_v22 = vld [vmem:[%s3149_s1 + $0xd0] ss:$8 sps:$4 sm:$0xff]  }
  0x4c   : > { %1252 = vmatpush1.bf16.msra.mxu0 %v2335_v23  ;;  %745 = vmatprep.subr.bf16.mxu1 %v2340_v24  ;;  %v2407_v23 = vld [vmem:[%s3149_s1 + $0x3d0] ss:$8 sps:$4 sm:$0xff]   ;;  %v2412_v24 = vld [vmem:[%s3149_s1 + $0xe4] ss:$8 sps:$4 sm:$0xff]  }
  0x4d   : > { %1253 = vmatprep.subr.bf16.mxu0 %v2343_v25  ;;  %v2415_v25 = vld [vmem:[%s3149_s1 + $0x3e4] ss:$8 sps:$4 sm:$0xff]  }
  0x4f   : > { %746 = vmatpush1.bf16.msra.mxu1 %v2338_v26  ;;  %v2410_v26 = vld [vmem:[%s3149_s1 + $0xe0] ss:$8 sps:$4 sm:$0xff]  }
  0x50   : > { %1254 = vmatpush1.bf16.msra.mxu0 %v2341_v27  ;;  %747 = vmatprep.subr.bf16.mxu1 %v2346_v28  ;;  %v2413_v27 = vld [vmem:[%s3149_s1 + $0x3e0] ss:$8 sps:$4 sm:$0xff]   ;;  %v2418_v28 = vld [vmem:[%s3149_s1 + $0xf4] ss:$8 sps:$4 sm:$0xff]  }
  0x51   : > { %1255 = vmatprep.subr.bf16.mxu0 %v2349_v29  ;;  %v2421_v29 = vld [vmem:[%s3149_s1 + $0x3f4] ss:$8 sps:$4 sm:$0xff]  }
  0x53   : > { %748 = vmatpush1.bf16.msra.mxu1 %v2344_v30  ;;  %v2416_v30 = vld [vmem:[%s3149_s1 + $0xf0] ss:$8 sps:$4 sm:$0xff]  }
  0x54   : > { %1256 = vmatpush1.bf16.msra.mxu0 %v2347_v31  ;;  %749 = vmatprep.subr.bf16.mxu1 %v2352_v32  ;;  %v2419_v31 = vld [vmem:[%s3149_s1 + $0x3f0] ss:$8 sps:$4 sm:$0xff]   ;;  %v2428_v32 = vld [vmem:[%s3149_s1 + $0x404] ss:$8 sps:$4 sm:$0xff]  }
  0x55   : > { %1257 = vmatprep.subr.bf16.mxu0 %v2355_v33  ;;  %v2979_v33 = vld [vmem:[%s2692_s10 + $0x18] sm:$0xff] }
  0x57   : > { %750 = vmatpush1.bf16.msra.mxu1 %v2350_v34  ;;  %v1913_v34 = vcombine.low %v2855_v44, %v2707_v48  ;;  %v2431_v48 = vld [vmem:[%s3149_s1 + $0x410] ss:$8 sps:$4 sm:$0xff]   ;;  %v2445_v44 = vld [vmem:[%s3149_s1 + $0x454] ss:$8 sps:$4 sm:$0xff]  }
  0x58   : > { %1258 = vmatpush1.bf16.msra.mxu0 %v2353_v35  ;;  %751 = vmatprep.subr.bf16.mxu1 %v2358_v36  ;;  %v2426_v35 = vld [vmem:[%s3149_s1 + $0x400] ss:$8 sps:$4 sm:$0xff]   ;;  %v2114_v36 = vcombine.high %v2719_v55, %v2979_v33 }
  0x59   : > { %1259 = vmatprep.subr.bf16.mxu0 %v2361_v37  ;;  %v2433_v37 = vld [vmem:[%s3149_s1 + $0x414] ss:$8 sps:$4 sm:$0xff]  }
  0x5b   : > { %752 = vmatpush1.bf16.msra.mxu1 %v2356_v38  ;;  %v2436_v38 = vld [vmem:[%s3149_s1 + $0x424] ss:$8 sps:$4 sm:$0xff]  }
  0x5c   : > { %1260 = vmatpush1.bf16.msra.mxu0 %v2359_v39  ;;  %753 = vmatprep.subr.bf16.mxu1 %v2364_v40  ;;  %v2434_v39 = vld [vmem:[%s3149_s1 + $0x420] ss:$8 sps:$4 sm:$0xff]   ;;  %v2439_v40 = vld [vmem:[%s3149_s1 + $0x434] ss:$8 sps:$4 sm:$0xff]  }
  0x5d   : > { %1261 = vmatprep.subr.bf16.mxu0 %v2367_v41  ;;  %v2437_v41 = vld [vmem:[%s3149_s1 + $0x430] ss:$8 sps:$4 sm:$0xff]  }
  0x5f   : > { %754 = vmatpush1.bf16.msra.mxu1 %v2362_v42  ;;  %v2442_v42 = vld [vmem:[%s3149_s1 + $0x444] ss:$8 sps:$4 sm:$0xff]  }
  0x60   : > { %1262 = vmatpush1.bf16.msra.mxu0 %v2365_v43  ;;  %755 = vmatprep.subr.bf16.mxu1 %v2370_v47  ;;  %v2440_v43 = vld [vmem:[%s3149_s1 + $0x440] ss:$8 sps:$4 sm:$0xff]  }
  0x61   : > { %1263 = vmatprep.subr.bf16.mxu0 %v2373_v51  ;;  %v2446_v47 = vld [vmem:[%s3149_s1 + $0x460] ss:$8 sps:$4 sm:$0xff]   ;;  %v2454_v51 = vld [vmem:[%s3149_s1 + $0x484] ss:$8 sps:$4 sm:$0xff]  }
  0x63   : > { %756 = vmatpush1.bf16.msra.mxu1 %v2368_v57  ;;  %v2458_v57 = vld [vmem:[%s3149_s1 + $0x4a0] ss:$8 sps:$4 sm:$0xff]  }
  0x64   : > { %1264 = vmatpush1.bf16.msra.mxu0 %v2371_v61  ;;  %757 = vmatprep.subr.bf16.mxu1 %v2376_v62  ;;  %v2464_v61 = vld [vmem:[%s3149_s1 + $0x4c0] ss:$8 sps:$4 sm:$0xff]   ;;  %v2469_v62 = vld [vmem:[%s3149_s1 + $0x4d4] ss:$8 sps:$4 sm:$0xff]  }
  0x65   : > { %1265 = vmatprep.subr.bf16.mxu0 %v2379_v63  ;;  %v2467_v63 = vld [vmem:[%s3149_s1 + $0x4d0] ss:$8 sps:$4 sm:$0xff]  }
  0x67   : > { %758 = vmatpush1.bf16.msra.mxu1 %v2374_v2  ;;  %v2475_v2 = vld [vmem:[%s3149_s1 + $0x4f4] ss:$8 sps:$4 sm:$0xff]  }
  0x68   : > { %1266 = vmatpush1.bf16.msra.mxu0 %v2377_v3  ;;  %759 = vmatprep.subr.bf16.mxu1 %v2382_v4  ;;  %v2473_v3 = vld [vmem:[%s3149_s1 + $0x4f0] ss:$8 sps:$4 sm:$0xff]   ;;  %v2113_v4 = vcombine.low %v2719_v55, %v2979_v33  ;;  %v2481_v55 = vld [vmem:[%s3152_s4 + $0x8] sm:$0xff]  }
  0x69   : > { %1267 = vmatprep.subr.bf16.mxu0 %v2385_v5  ;;  %v2478_v5 = vld [vmem:[%s3152_s4 + $0x40] sm:$0xff]  }
  0x6b   : > { %760 = vmatpush1.bf16.msra.mxu1 %v2380_v6  ;;  %v2479_v6 = vld [vmem:[%s3152_s4] sm:$0xff]  }
  0x6c   : > { %1268 = vmatpush1.bf16.msra.mxu0 %v2383_v7  ;;  %761 = vmatprep.subr.bf16.mxu1 %v2388_v8  ;;  %v2480_v7 = vld [vmem:[%s3152_s4 + $0x48] sm:$0xff]   ;;  %v2482_v8 = vld [vmem:[%s3152_s4 + $0x50] sm:$0xff]  }
  0x6d   : > { %1269 = vmatprep.subr.bf16.mxu0 %v2391_v9  ;;  %v2483_v9 = vld [vmem:[%s3152_s4 + $0x10] sm:$0xff]  }
  0x6f   : > { %762 = vmatpush1.bf16.msra.mxu1 %v2386_v10  ;;  %v2484_v10 = vld [vmem:[%s3152_s4 + $0x58] sm:$0xff]  }
  0x70   : > { %1270 = vmatpush1.bf16.msra.mxu0 %v2389_v11  ;;  %763 = vmatprep.subr.bf16.mxu1 %v2394_v12  ;;  %v2485_v11 = vld [vmem:[%s3152_s4 + $0x18] sm:$0xff]   ;;  %v2486_v12 = vld [vmem:[%s3152_s4 + $0x60] sm:$0xff]  }
  0x71   : > { %1271 = vmatprep.subr.bf16.mxu0 %v2397_v13  ;;  %v2487_v13 = vld [vmem:[%s3152_s4 + $0x20] sm:$0xff]  }
  0x73   : > { %764 = vmatpush1.bf16.msra.mxu1 %v2392_v14  ;;  %v2488_v14 = vld [vmem:[%s3152_s4 + $0x68] sm:$0xff]  }
  0x74   : > { %1272 = vmatpush1.bf16.msra.mxu0 %v2395_v15  ;;  %765 = vmatprep.subr.bf16.mxu1 %v2400_v16  ;;  %v2489_v15 = vld [vmem:[%s3152_s4 + $0x28] sm:$0xff]   ;;  %v2490_v16 = vld [vmem:[%s3152_s4 + $0x70] sm:$0xff]  }
  0x75   : > { %1273 = vmatprep.subr.bf16.mxu0 %v2403_v17  ;;  %v2491_v17 = vld [vmem:[%s3152_s4 + $0x30] sm:$0xff]  }
  0x77   : > { %766 = vmatpush1.bf16.msra.mxu1 %v2398_v18  ;;  %v2492_v18 = vld [vmem:[%s3152_s4 + $0x78] sm:$0xff]  }
  0x78   : > { %1274 = vmatpush1.bf16.msra.mxu0 %v2401_v19  ;;  %767 = vmatprep.subr.bf16.mxu1 %v2406_v20  ;;  %v2493_v19 = vld [vmem:[%s3152_s4 + $0x38] sm:$0xff]  }
  0x79   : > { %1275 = vmatprep.subr.bf16.mxu0 %v2409_v21 }
  0x7b   : > { %768 = vmatpush1.bf16.msra.mxu1 %v2404_v22 }
  0x7c   : > { %1276 = vmatpush1.bf16.msra.mxu0 %v2407_v23  ;;  %769 = vmatprep.subr.bf16.mxu1 %v2412_v24  ;;  %v1546_v24 = vlaneseq }
  0x7d   : > { %1277 = vmatprep.subr.bf16.mxu0 %v2415_v25 }
  0x7e   : > { %v1547_v25 = vshrl.u32 %v1546_v24, 7 }
  0x7f   : > { %770 = vmatpush1.bf16.msra.mxu1 %v2410_v26 }
  0x80   : > { %1278 = vmatpush1.bf16.msra.mxu0 %v2413_v27  ;;  %771 = vmatprep.subr.bf16.mxu1 %v2418_v28  ;;  %v1548_v26 = vsub.s32 0, %v1547_v25  ;;  %v1544_v27 = vld [vmem:[%s3150_s2] sm:$0x3]  ;;  %v1552_v28 = vsub.s32 1, %v1547_v25 }
  0x81   : > { %1279 = vmatprep.subr.bf16.mxu0 %v2421_v29  ;;  %v1560_v29 = vld [vmem:[%s3151_s3] sm:$0x3] }
  0x83   : > { %772 = vmatpush1.bf16.msra.mxu1 %v2416_v30  ;;  %v1549_v30 = vrot.slane %v1544_v27, %v1548_v26 }
  0x84   : > { %1280 = vmatpush1.bf16.msra.mxu0 %v2419_v31  ;;  %2178 = vmatprep.subr.bf16.mxu1 %v2478_v5 }
  0x85   : > { %1497 = vmatprep.subr.bf16.mxu0 %v2428_v32  ;;  %v1553_v32 = vrot.slane %v1544_v27, %v1552_v28 }
  0x86   : > { %774 = vmatmul.mubr.bf16.vlgmr.msra.gmra.mrb[0].mxu1 %v1913_v34  ;;  %v1565_v34 = vrot.slane %v1560_v29, %v1548_v26 }
  0x87   : > { %1282 = vmatmul.mubr.bf16.vlgmr.msra.gmra.mrb[0].mxu0 %v2883_v1  ;;  %v2470_v1 = vld [vmem:[%s3149_s1 + $0x4e0] ss:$8 sps:$4 sm:$0xff]   ;;  %2179 = vmatpush3.bf16.msra.mxu1 %v2479_v6 }
  0x88   : > { %1498 = vmatpush1.bf16.msra.mxu0 %v2426_v35  ;;  %1529 = vmatprep.mubr.bf16.mxu0 %v2114_v36 }
  0x89   : > { %1499 = vmatprep.subr.bf16.mxu0 %v2433_v37  ;;  %2180 = vmatprep.subr.bf16.mxu1 %v2480_v7  ;;  %v1569_v37 = vrot.slane %v1560_v29, %v1552_v28 }
  0x8b   : > { %2181 = vmatpush3.bf16.msra.mxu1 %v2481_v55 }
  0x8c   : > { %1500 = vmatpush1.bf16.msra.mxu0 %v2431_v48  ;;  %2182 = vmatprep.subr.bf16.mxu1 %v2482_v8 }
  0x8d   : > { %1501 = vmatprep.subr.bf16.mxu0 %v2436_v38 }
  0x8f   : > { %2183 = vmatpush3.bf16.msra.mxu1 %v2483_v9 }
  0x90   : > { %1502 = vmatpush1.bf16.msra.mxu0 %v2434_v39  ;;  %2184 = vmatprep.subr.bf16.mxu1 %v2484_v10 }
  0x91   : > { %1503 = vmatprep.subr.bf16.mxu0 %v2439_v40 }
  0x93   : > { %2185 = vmatpush3.bf16.msra.mxu1 %v2485_v11 }
  0x94   : > { %1504 = vmatpush1.bf16.msra.mxu0 %v2437_v41  ;;  %2186 = vmatprep.subr.bf16.mxu1 %v2486_v12 }
  0x95   : > { %1505 = vmatprep.subr.bf16.mxu0 %v2442_v42 }
  0x97   : > { %2187 = vmatpush3.bf16.msra.mxu1 %v2487_v13 }
  0x98   : > { %1506 = vmatpush1.bf16.msra.mxu0 %v2440_v43  ;;  %2188 = vmatprep.subr.bf16.mxu1 %v2488_v14 }
  0x99   : > { %1507 = vmatprep.subr.bf16.mxu0 %v2445_v44 }
  0x9b   : > { %2189 = vmatpush3.bf16.msra.mxu1 %v2489_v15 }
  0x9c   : > { %1508 = vmatpush1.bf16.msra.mxu0 %v2443_v45  ;;  %2190 = vmatprep.subr.bf16.mxu1 %v2490_v16 }
  0x9d   : > { %1509 = vmatprep.subr.bf16.mxu0 %v2448_v46 }
  0x9f   : > { %2191 = vmatpush3.bf16.msra.mxu1 %v2491_v17 }
  0xa0   : > { %1510 = vmatpush1.bf16.msra.mxu0 %v2446_v47  ;;  %2192 = vmatprep.subr.bf16.mxu1 %v2492_v18 }
  0xa1   : > { %1511 = vmatprep.subr.bf16.mxu0 %v2451_v49 }
  0xa3   : > { %2193 = vmatpush3.bf16.msra.mxu1 %v2493_v19 }
  0xa4   : > { %1512 = vmatpush1.bf16.msra.mxu0 %v2449_v50 }
  0xa5   : > { %1513 = vmatprep.subr.bf16.mxu0 %v2454_v51 }
  0xa8   : > { %1514 = vmatpush1.bf16.msra.mxu0 %v2452_v52 }
  0xa9   : > { %1515 = vmatprep.subr.bf16.mxu0 %v2457_v53 }
  0xac   : > { %1516 = vmatpush1.bf16.msra.mxu0 %v2455_v54 }
  0xad   : > { %1517 = vmatprep.subr.bf16.mxu0 %v2460_v56 }
  0xb0   : > { %1518 = vmatpush1.bf16.msra.mxu0 %v2458_v57 }
  0xb1   : > { %1519 = vmatprep.subr.bf16.mxu0 %v2463_v58 }
  0xb4   : > { %1520 = vmatpush1.bf16.msra.mxu0 %v2461_v59  ;;  %v2163_v59 = vld [vmem:[%s3153_s5] ss:$0 sm:$0xff] }
  0xb5   : > { %1521 = vmatprep.subr.bf16.mxu0 %v2466_v60 }
  0xb8   : > { %1522 = vmatpush1.bf16.msra.mxu0 %v2464_v61 }
  0xb9   : > { %1523 = vmatprep.subr.bf16.mxu0 %v2469_v62  ;;  %v2164_v62 = vld [vmem:[%s3154_s6] ss:$0 sm:$0xff] }
  0xbc   : > { %1524 = vmatpush1.bf16.msra.mxu0 %v2467_v63 }
  0xbd   : > { %1525 = vmatprep.subr.bf16.mxu0 %v2472_v0 }
  0xc0   : > { %1526 = vmatpush1.bf16.msra.mxu0 %v2470_v1 }
  0xc1   : > { %1527 = vmatprep.subr.bf16.mxu0 %v2475_v2 }
  0xc4   : > { %1528 = vmatpush1.bf16.msra.mxu0 %v2473_v3 }
  0xc7   : > { %1530 = vmatmul.mubr.bf16.vlgmr.msra.gmra.mrb[0].mxu0 %v2113_v4 }
 0x159   : > { %v775_v20 = vpop.f32.mrb[0].mxu1 }
 0x15a   : > { %v777_v21 = vpop.f32.mrb[1].mxu1 }
 0x15b   : > { %v779_v22 = vpop.f32.mrb[2].mxu1 }
 0x15c   : > { %v781_v23 = vpop.f32.mrb[3].mxu1 }
 0x19a   : > { %v1531_v31 = vpop.f32.mrb[0].mxu0 }
 0x19b   : > { %v2200_v33 = vadd.f32 %v1531_v31, %v775_v20  ;;  %v1533_v35 = vpop.f32.mrb[1].mxu0 }
 0x19c   : > { %v2201_v36 = vadd.f32 %v1533_v35, %v777_v21  ;;  %v1535_v48 = vpop.f32.mrb[2].mxu0 }
 0x19d   : > { %v1556_v38 = vmul.f32 %v2200_v33, %v1549_v30  ;;  %v2202_v39 = vadd.f32 %v1535_v48, %v779_v22  ;;  %v1537_v40 = vpop.f32.mrb[3].mxu0 }
 0x19e   : > { %v1557_v41 = vmul.f32 %v2201_v36, %v1553_v32  ;;  %v2203_v42 = vadd.f32 %v1537_v40, %v781_v23 }
 0x19f   : > { %v1572_v43 = vadd.f32 %v1565_v34, %v1556_v38  ;;  %v1558_v44 = vmul.f32 %v2202_v39, %v1549_v30 }
 0x1a0   : > { %v1573_v45 = vadd.f32 %v1569_v37, %v1557_v41  ;;  %v1559_v46 = vmul.f32 %v2203_v42, %v1553_v32 }
 0x1a1   : > { %v1574_v47 = vadd.f32 %v1565_v34, %v1558_v44  ;;  %v1576_v50 = vmax.f32 %v1572_v43, 0.0 }
 0x1a2   : > { %v1575_v49 = vadd.f32 %v1569_v37, %v1559_v46  ;;  %v1577_v52 = vmax.f32 %v1573_v45, 0.0 }
 0x1a3   : > { %v1578_v51 = vmax.f32 %v1574_v47, 0.0 }
 0x1a4   : > { %v1579_v53 = vmax.f32 %v1575_v49, 0.0 }
 0x1a5   : > { %v1580_v54 = vpack.c.bf16 %v1578_v51, %v1576_v50 }
 0x1a6   : > { %v1581_v56 = vpack.c.bf16 %v1579_v53, %v1577_v52 }
 0x1a8   : > { %1742 = vmatprep.mubr.bf16.mxu1 %v1581_v56 }
 0x1a9   : > { %1743 = vmatmul.mubr.bf16.vlgmr.msra.gmra.mrb[4].mxu1 %v1580_v54 }
 0x27c   : > { %v2194_v57 = vpop.f32.mrb[4].mxu1 }
 0x27d   : > { %v2195_v58 = vpop.f32.mrb[5].mxu1 }
 0x27e   : > { %v2196_v60 = vadd.f32 %v2195_v58, %v2194_v57  ;;  %v2197_v61 = vpop.f32.mrb[6].mxu1 }
 0x27f   : > { %v2198_v63 = vpop.f32.mrb[7].mxu1 }
 0x280   : > { %v1758_v0 = vmul.f32 %v2196_v60, %v2163_v59  ;;  %v2199_v1 = vadd.f32 %v2198_v63, %v2197_v61 }
 0x282   : > { %v1767_v2 = vadd.f32 %v2164_v62, %v1758_v0  ;;  %v1759_v3 = vmul.f32 %v2199_v1, %v2163_v59 }
 0x284   : > { %v1768_v4 = vadd.f32 %v2164_v62, %v1759_v3  ;;  %v1769_v5 = vmax.f32 %v1767_v2, 0.0 }
 0x286   : > { %v1770_v6 = vmax.f32 %v1768_v4, 0.0 }
 0x288   : > { %v2176_v7 = vpack.c.bf16 %v1770_v6, %v1769_v5 }
 0x28a   : > { %2177 = vst [vmem:[%s278_s21] sm:$0xff] %v2176_v7  }
 0x28b PF: > { %s17_s24 = sadd.s32 1, %s2500_s24  }
 0x28c   : > { %p14_p4 = scmp.ge.s32.totalorder %s17_s24, 4  }
 0x28e   :  { %16 = sbr.rel (!%p14_p4) target bundleno = 1 (0x1), region = 82 }

// kernel: _lambda_.15
= control target key start
LH: loop header
LB: loop body
LE: loop exit
PB: predicated region body
PF: predicated region fallthrough
CT: control target
= control target key end

     0   :  { %s9640_s15 = smov 0   ;;  %s11079_s0 = inlined_call_operand.vmem [shape: bf16[8,12,320], index: 0, kind: input, shape index: {}]   ;;  %s11080_s1 = inlined_call_operand.vmem [shape: bf16[5,320,256], index: 1, kind: input, shape index: {}]   ;;  %s11081_s2 = inlined_call_operand.vmem [shape: f32[1,256], index: 2, kind: input, shape index: {}]   ;;  %s11082_s3 = inlined_call_operand.vmem [shape: f32[1,256], index: 3, kind: input, shape index: {}]   ;;  %s11083_s4 = inlined_call_operand.vmem [shape: bf16[8,4,256], index: 4, kind: output, shape index: {}]  }
   0x1 LB: > { %s7208_s16 = sadd.s32 4294967295, %s9612_s15   ;;  %p7212_p0 = scmp.ge.s32.totalorder %s9612_s15, 1  ;;  %s9612_s15 = sphi %s9640_s15, %s14_s15  }
   0x2   : > { %p164_p1 = scmp.lt.s32.totalorder %s9612_s15, 3 }
   0x4   : > { %p165_p2 = pnand %p7212_p0, %p164_p1 }
   0x5   : > { %v8942_v0 = vld [vmem:[%s11080_s1 + $0x144] ss:$8 sps:$4 sm:$0xff] (!%p165_p2)   ;;  %v8944_v1 = vld [vmem:[%s11080_s1 + $0x140] ss:$8 sps:$4 sm:$0xff] (!%p165_p2)   ;;  %v8945_v2 = vld [vmem:[%s11080_s1 + $0x154] ss:$8 sps:$4 sm:$0xff] (!%p165_p2)  }
   0x6   : > { %168 = sbr.rel (%p165_p2) target bundleno = 1029 (0x405), region = 36  ;;  %511 = vmatprep.subr.bf16.mxu0 (!%p165_p2), %v8942_v0  ;;  %2264 = vmatprep.subr.bf16.mxu1 (!%p165_p2), %v8942_v0  ;;  %v8947_v3 = vld [vmem:[%s11080_s1 + $0x150] ss:$8 sps:$4 sm:$0xff] (!%p165_p2)   ;;  %s7213_s25 = sshll.u32 (!%p165_p2), %s7208_s16, 2  ;;  %v8948_v4 = vld [vmem:[%s11080_s1 + $0x164] ss:$8 sps:$4 sm:$0xff] (!%p165_p2)  }
   0x7   : > { %512 = vmatpush1.bf16.msra.mxu0 (!%p165_p2), %v8944_v1  ;;  %2265 = vmatpush1.bf16.msra.mxu1 (!%p165_p2), %v8944_v1  ;;  %p193_p3 = scmp.lt.s32.totalorder (!%p165_p2), %s7213_s25, 7  ;;  %v8950_v5 = vld [vmem:[%s11080_s1 + $0x160] ss:$8 sps:$4 sm:$0xff] (!%p165_p2)   ;;  %v8951_v6 = vld [vmem:[%s11080_s1 + $0x174] ss:$8 sps:$4 sm:$0xff] (!%p165_p2)   ;;  %v9614_v47 = vmov (!%p165_p2), 0  }
   0x8   : > { %513 = vmatprep.subr.bf16.mxu0 (!%p165_p2), %v8945_v2  ;;  %2266 = vmatprep.subr.bf16.mxu1 (!%p165_p2), %v8945_v2  ;;  %v8953_v7 = vld [vmem:[%s11080_s1 + $0x170] ss:$8 sps:$4 sm:$0xff] (!%p165_p2)   ;;  %v8954_v8 = vld [vmem:[%s11080_s1 + $0x184] ss:$8 sps:$4 sm:$0xff] (!%p165_p2)   ;;  %v8956_v9 = vld [vmem:[%s11080_s1 + $0x180] ss:$8 sps:$4 sm:$0xff] (!%p165_p2)  }
   0x9   : > { %v8957_v10 = vld [vmem:[%s11080_s1 + $0x194] ss:$8 sps:$4 sm:$0xff] (!%p165_p2)   ;;  %v8959_v11 = vld [vmem:[%s11080_s1 + $0x190] ss:$8 sps:$4 sm:$0xff] (!%p165_p2)   ;;  %v8960_v12 = vld [vmem:[%s11080_s1 + $0x1a4] ss:$8 sps:$4 sm:$0xff] (!%p165_p2)  }
   0xa   : > { %v8962_v14 = vld [vmem:[%s11080_s1 + $0x1a0] ss:$8 sps:$4 sm:$0xff] (!%p165_p2)   ;;  %v8963_v17 = vld [vmem:[%s11080_s1 + $0x1b4] ss:$8 sps:$4 sm:$0xff] (!%p165_p2)   ;;  %v8965_v21 = vld [vmem:[%s11080_s1 + $0x1b0] ss:$8 sps:$4 sm:$0xff] (!%p165_p2)  }
   0xb   : > { %514 = vmatpush1.bf16.msra.mxu0 (!%p165_p2), %v8947_v3  ;;  %2267 = vmatpush1.bf16.msra.mxu1 (!%p165_p2), %v8947_v3  ;;  %v8966_v22 = vld [vmem:[%s11080_s1 + $0x1c4] ss:$8 sps:$4 sm:$0xff] (!%p165_p2)   ;;  %v8968_v23 = vld [vmem:[%s11080_s1 + $0x1c0] ss:$8 sps:$4 sm:$0xff] (!%p165_p2)   ;;  %v8969_v24 = vld [vmem:[%s11080_s1 + $0x1d4] ss:$8 sps:$4 sm:$0xff] (!%p165_p2)  }
   0xc   : > { %515 = vmatprep.subr.bf16.mxu0 (!%p165_p2), %v8948_v4  ;;  %2268 = vmatprep.subr.bf16.mxu1 (!%p165_p2), %v8948_v4  ;;  %v8971_v25 = vld [vmem:[%s11080_s1 + $0x1d0] ss:$8 sps:$4 sm:$0xff] (!%p165_p2)   ;;  %v8972_v26 = vld [vmem:[%s11080_s1 + $0x1e4] ss:$8 sps:$4 sm:$0xff] (!%p165_p2)   ;;  %v8974_v27 = vld [vmem:[%s11080_s1 + $0x1e0] ss:$8 sps:$4 sm:$0xff] (!%p165_p2)  }
   0xd   : > { %s11085_s25 = smov (!%p193_p3, %s7213_s25), 7  ;;  %v8975_v28 = vld [vmem:[%s11080_s1 + $0x1f4] ss:$8 sps:$4 sm:$0xff]   ;;  %v8977_v29 = vld [vmem:[%s11080_s1 + $0x1f0] ss:$8 sps:$4 sm:$0xff]   ;;  %vm507_vm0 = vcmask 523264  }
   0xe   : > { %s8932_s10 = smul.u32 24, %s11085_s25  ;;  %v8978_v30 = vld [vmem:[%s11080_s1 + $0x204] ss:$8 sps:$4 sm:$0xff]   ;;  %v8980_v31 = vld [vmem:[%s11080_s1 + $0x200] ss:$8 sps:$4 sm:$0xff]   ;;  %s8784_s26 = sshll.u32 %s11085_s25, 2 }
   0xf   : > { %516 = vmatpush1.bf16.msra.mxu0 %v8950_v5  ;;  %2269 = vmatpush1.bf16.msra.mxu1 %v8950_v5  ;;  %v8981_v32 = vld [vmem:[%s11080_s1 + $0x214] ss:$8 sps:$4 sm:$0xff]   ;;  %v8983_v33 = vld [vmem:[%s11080_s1 + $0x210] ss:$8 sps:$4 sm:$0xff]   ;;  %v8984_v34 = vld [vmem:[%s11080_s1 + $0x224] ss:$8 sps:$4 sm:$0xff]   ;;  %s10762_s30 = scalar_lea.vmem %s11083_s4, %s8784_s26 }
  0x10   : > { %517 = vmatprep.subr.bf16.mxu0 %v8951_v6  ;;  %2270 = vmatprep.subr.bf16.mxu1 %v8951_v6  ;;  %s9687_s18 = scalar_lea.vmem %s11079_s0, %s8932_s10  ;;  %v8986_v35 = vld [vmem:[%s11080_s1 + $0x220] ss:$8 sps:$4 sm:$0xff]   ;;  %v8987_v36 = vld [vmem:[%s11080_s1 + $0x234] ss:$8 sps:$4 sm:$0xff]   ;;  %v8989_v39 = vld [vmem:[%s11080_s1 + $0x230] ss:$8 sps:$4 sm:$0xff]  }
  0x11   : > { %v9696_v13 = vld [vmem:[%s9687_s18] sm:$0x66]  ;;  %v9704_v16 = vld [vmem:[%s9687_s18 + $0x18] sm:$0x66] }
  0x12   : > { %v7259_v15 = vcombine.high %v9696_v13, %v9696_v13  ;;  %v7645_v19 = vcombine.high %v9704_v16, %v9704_v16  ;;  %v7258_v37 = vcombine.low %v9696_v13, %v9696_v13  ;;  %v7644_v38 = vcombine.low %v9704_v16, %v9704_v16  ;;  %v8994_v40 = vld [vmem:[%s11080_s1 + $0x244] ss:$8 sps:$4 sm:$0xff]   ;;  %v8992_v43 = vld [vmem:[%s11080_s1 + $0x240] ss:$8 sps:$4 sm:$0xff]   ;;  %v8999_v44 = vld [vmem:[%s11080_s1 + $0x254] ss:$8 sps:$4 sm:$0xff]  }
  0x13   : > { %518 = vmatpush1.bf16.msra.mxu0 %v8953_v7  ;;  %2271 = vmatpush1.bf16.msra.mxu1 %v8953_v7  ;;  %v8997_v45 = vld [vmem:[%s11080_s1 + $0x250] ss:$8 sps:$4 sm:$0xff]   ;;  %v9002_v46 = vld [vmem:[%s11080_s1 + $0x264] ss:$8 sps:$4 sm:$0xff]   ;;  %v9000_v48 = vld [vmem:[%s11080_s1 + $0x260] ss:$8 sps:$4 sm:$0xff]  }
  0x14   : > { %519 = vmatprep.subr.bf16.mxu0 %v8954_v8  ;;  %2272 = vmatprep.subr.bf16.mxu1 %v8954_v8  ;;  %v303_v18 = vrot.slane %v7259_v15, 1  ;;  %v2057_v20 = vrot.slane %v7645_v19, 1  ;;  %v302_v41 = vrot.slane %v7258_v37, 1  ;;  %v2056_v42 = vrot.slane %v7644_v38, 1  ;;  %v9005_v49 = vld [vmem:[%s11080_s1 + $0x274] ss:$8 sps:$4 sm:$0xff]  }
  0x15   : > { %v9009_v50 = vld [vmem:[%s9687_s18 + $0x8] ss:$0 sps:$4 sm:$0x66]   ;;  %v9010_v51 = vld [vmem:[%s9687_s18 + $0x20] ss:$0 sps:$4 sm:$0x66]  }
  0x16   : > { %543 = vmatprep.mubr.bf16.mxu0 %v303_v18  ;;  %2296 = vmatprep.mubr.bf16.mxu1 %v2057_v20  ;;  %v9003_v52 = vld [vmem:[%s11080_s1 + $0x270] ss:$8 sps:$4 sm:$0xff]   ;;  %v9008_v53 = vld [vmem:[%s11080_s1 + $0x4] ss:$8 sps:$4 sm:$0xff]   ;;  %v304_v56 = vrot.slane %v9009_v50, 1  ;;  %v2058_v57 = vrot.slane %v9010_v51, 1 }
  0x17   : > { %520 = vmatpush1.bf16.msra.mxu0 %v8956_v9  ;;  %2273 = vmatpush1.bf16.msra.mxu1 %v8956_v9  ;;  %v9798_v54 = vld [vmem:[%s9687_s18] sm:$0x33]  ;;  %v9801_v55 = vld [vmem:[%s9687_s18 + $0x18] sm:$0x33]  ;;  %v9933_v37 = vld [vmem:[%s9687_s18 + $0x18] sm:$0xcc] }
  0x18   : > { %521 = vmatprep.subr.bf16.mxu0 %v8957_v10  ;;  %2274 = vmatprep.subr.bf16.mxu1 %v8957_v10  ;;  %v9006_v58 = vld [vmem:[%s11080_s1] ss:$8 sps:$4 sm:$0xff]   ;;  %v9013_v59 = vld [vmem:[%s11080_s1 + $0x14] ss:$8 sps:$4 sm:$0xff]   ;;  %v7303_v60 = vcombine.high %v9798_v54, %v9798_v54  ;;  %v7689_v61 = vcombine.high %v9801_v55, %v9801_v55  ;;  %v9011_v62 = vld [vmem:[%s11080_s1 + $0x10] ss:$8 sps:$4 sm:$0xff]  }
  0x19   : > { %v9016_v63 = vld [vmem:[%s11080_s1 + $0x24] ss:$8 sps:$4 sm:$0xff]   ;;  %v9014_v0 = vld [vmem:[%s11080_s1 + $0x20] ss:$8 sps:$4 sm:$0xff]   ;;  %v9019_v1 = vld [vmem:[%s11080_s1 + $0x34] ss:$8 sps:$4 sm:$0xff]  }
  0x1a   : > { %v9017_v2 = vld [vmem:[%s11080_s1 + $0x30] ss:$8 sps:$4 sm:$0xff]   ;;  %v9022_v3 = vld [vmem:[%s11080_s1 + $0x44] ss:$8 sps:$4 sm:$0xff]   ;;  %v9020_v4 = vld [vmem:[%s11080_s1 + $0x40] ss:$8 sps:$4 sm:$0xff]  }
  0x1b   : > { %522 = vmatpush1.bf16.msra.mxu0 %v8959_v11  ;;  %2275 = vmatpush1.bf16.msra.mxu1 %v8959_v11  ;;  %v9025_v5 = vld [vmem:[%s11080_s1 + $0x54] ss:$8 sps:$4 sm:$0xff]   ;;  %v9023_v6 = vld [vmem:[%s11080_s1 + $0x50] ss:$8 sps:$4 sm:$0xff]   ;;  %v9028_v7 = vld [vmem:[%s11080_s1 + $0x64] ss:$8 sps:$4 sm:$0xff]  }
  0x1c   : > { %523 = vmatprep.subr.bf16.mxu0 %v8960_v12  ;;  %2276 = vmatprep.subr.bf16.mxu1 %v8960_v12  ;;  %v9026_v8 = vld [vmem:[%s11080_s1 + $0x60] ss:$8 sps:$4 sm:$0xff]   ;;  %v9031_v9 = vld [vmem:[%s11080_s1 + $0x74] ss:$8 sps:$4 sm:$0xff]   ;;  %v9029_v10 = vld [vmem:[%s11080_s1 + $0x70] ss:$8 sps:$4 sm:$0xff]  }
  0x1d   : > { %v9034_v11 = vld [vmem:[%s11080_s1 + $0x84] ss:$8 sps:$4 sm:$0xff]   ;;  %v9032_v12 = vld [vmem:[%s11080_s1 + $0x80] ss:$8 sps:$4 sm:$0xff]   ;;  %v9037_v13 = vld [vmem:[%s11080_s1 + $0x94] ss:$8 sps:$4 sm:$0xff]  }
  0x1e   : > { %v9040_v15 = vld [vmem:[%s11080_s1 + $0xa4] ss:$8 sps:$4 sm:$0xff]   ;;  %v9038_v16 = vld [vmem:[%s11080_s1 + $0xa0] ss:$8 sps:$4 sm:$0xff]   ;;  %v9041_v18 = vld [vmem:[%s11080_s1 + $0xb0] ss:$8 sps:$4 sm:$0xff]  }
  0x1f   : > { %524 = vmatpush1.bf16.msra.mxu0 %v8962_v14  ;;  %2277 = vmatpush1.bf16.msra.mxu1 %v8962_v14  ;;  %v9035_v14 = vld [vmem:[%s11080_s1 + $0x90] ss:$8 sps:$4 sm:$0xff]   ;;  %v9046_v19 = vld [vmem:[%s11080_s1 + $0xc4] ss:$8 sps:$4 sm:$0xff]   ;;  %v9044_v20 = vld [vmem:[%s11080_s1 + $0xc0] ss:$8 sps:$4 sm:$0xff]  }
  0x20   : > { %525 = vmatprep.subr.bf16.mxu0 %v8963_v17  ;;  %2278 = vmatprep.subr.bf16.mxu1 %v8963_v17  ;;  %v9043_v17 = vld [vmem:[%s11080_s1 + $0xb4] ss:$8 sps:$4 sm:$0xff]   ;;  %v9069_v38 = vld [vmem:[%s11080_s1 + $0x130] ss:$8 sps:$4 sm:$0xff]   ;;  %v9082_v50 = vld [vmem:[%s11080_s1 + $0x2a4] ss:$8 sps:$4 sm:$0xff]  }
  0x21   : > { %v9080_v51 = vld [vmem:[%s11080_s1 + $0x2a0] ss:$8 sps:$4 sm:$0xff]  }
  0x23   : > { %526 = vmatpush1.bf16.msra.mxu0 %v8965_v21  ;;  %2279 = vmatpush1.bf16.msra.mxu1 %v8965_v21  ;;  %v9049_v21 = vld [vmem:[%s11080_s1 + $0xd4] ss:$8 sps:$4 sm:$0xff]  }
  0x24   : > { %527 = vmatprep.subr.bf16.mxu0 %v8966_v22  ;;  %2280 = vmatprep.subr.bf16.mxu1 %v8966_v22  ;;  %v9047_v22 = vld [vmem:[%s11080_s1 + $0xd0] ss:$8 sps:$4 sm:$0xff]  }
  0x27   : > { %528 = vmatpush1.bf16.msra.mxu0 %v8968_v23  ;;  %2281 = vmatpush1.bf16.msra.mxu1 %v8968_v23  ;;  %v9052_v23 = vld [vmem:[%s11080_s1 + $0xe4] ss:$8 sps:$4 sm:$0xff]  }
  0x28   : > { %529 = vmatprep.subr.bf16.mxu0 %v8969_v24  ;;  %2282 = vmatprep.subr.bf16.mxu1 %v8969_v24  ;;  %v9050_v24 = vld [vmem:[%s11080_s1 + $0xe0] ss:$8 sps:$4 sm:$0xff]  }
  0x2b   : > { %530 = vmatpush1.bf16.msra.mxu0 %v8971_v25  ;;  %2283 = vmatpush1.bf16.msra.mxu1 %v8971_v25  ;;  %v9055_v25 = vld [vmem:[%s11080_s1 + $0xf4] ss:$8 sps:$4 sm:$0xff]  }
  0x2c   : > { %531 = vmatprep.subr.bf16.mxu0 %v8972_v26  ;;  %2284 = vmatprep.subr.bf16.mxu1 %v8972_v26  ;;  %v9053_v26 = vld [vmem:[%s11080_s1 + $0xf0] ss:$8 sps:$4 sm:$0xff]  }
  0x2f   : > { %532 = vmatpush1.bf16.msra.mxu0 %v8974_v27  ;;  %2285 = vmatpush1.bf16.msra.mxu1 %v8974_v27  ;;  %v9060_v27 = vld [vmem:[%s11080_s1 + $0x104] ss:$8 sps:$4 sm:$0xff]  }
  0x30   : > { %533 = vmatprep.subr.bf16.mxu0 %v8975_v28  ;;  %2286 = vmatprep.subr.bf16.mxu1 %v8975_v28  ;;  %v7302_v28 = vcombine.low %v9798_v54, %v9798_v54  ;;  %v9088_v54 = vld [vmem:[%s11080_s1 + $0x2c4] ss:$8 sps:$4 sm:$0xff]  }
  0x33   : > { %534 = vmatpush1.bf16.msra.mxu0 %v8977_v29  ;;  %2287 = vmatpush1.bf16.msra.mxu1 %v8977_v29  ;;  %v7688_v29 = vcombine.low %v9801_v55, %v9801_v55  ;;  %v9086_v55 = vld [vmem:[%s11080_s1 + $0x2c0] ss:$8 sps:$4 sm:$0xff]  }
  0x34   : > { %535 = vmatprep.subr.bf16.mxu0 %v8978_v30  ;;  %2288 = vmatprep.subr.bf16.mxu1 %v8978_v30  ;;  %v9058_v30 = vld [vmem:[%s11080_s1 + $0x100] ss:$8 sps:$4 sm:$0xff]  }
  0x37   : > { %536 = vmatpush1.bf16.msra.mxu0 %v8980_v31  ;;  %2289 = vmatpush1.bf16.msra.mxu1 %v8980_v31  ;;  %v9065_v31 = vld [vmem:[%s11080_s1 + $0x114] ss:$8 sps:$4 sm:$0xff]  }
  0x38   : > { %537 = vmatprep.subr.bf16.mxu0 %v8981_v32  ;;  %2290 = vmatprep.subr.bf16.mxu1 %v8981_v32  ;;  %v9063_v32 = vld [vmem:[%s11080_s1 + $0x110] ss:$8 sps:$4 sm:$0xff]  }
  0x3b   : > { %538 = vmatpush1.bf16.msra.mxu0 %v8983_v33  ;;  %2291 = vmatpush1.bf16.msra.mxu1 %v8983_v33  ;;  %v9068_v33 = vld [vmem:[%s11080_s1 + $0x124] ss:$8 sps:$4 sm:$0xff]  }
  0x3c   : > { %539 = vmatprep.subr.bf16.mxu0 %v8984_v34  ;;  %2292 = vmatprep.subr.bf16.mxu1 %v8984_v34  ;;  %v9066_v34 = vld [vmem:[%s11080_s1 + $0x120] ss:$8 sps:$4 sm:$0xff]  }
  0x3f   : > { %540 = vmatpush1.bf16.msra.mxu0 %v8986_v35  ;;  %2293 = vmatpush1.bf16.msra.mxu1 %v8986_v35  ;;  %v9071_v35 = vld [vmem:[%s11080_s1 + $0x134] ss:$8 sps:$4 sm:$0xff]  }
  0x40   : > { %541 = vmatprep.subr.bf16.mxu0 %v8987_v36  ;;  %2294 = vmatprep.subr.bf16.mxu1 %v8987_v36  ;;  %v9930_v36 = vld [vmem:[%s9687_s18] sm:$0xcc] }
  0x43   : > { %542 = vmatpush1.bf16.msra.mxu0 %v8989_v39  ;;  %2295 = vmatpush1.bf16.msra.mxu1 %v8989_v39  ;;  %v9074_v39 = vld [vmem:[%s11080_s1 + $0x284] ss:$8 sps:$4 sm:$0xff]  }
  0x44   : > { %552 = vmatprep.subr.bf16.mxu0 %v8994_v40  ;;  %2305 = vmatprep.subr.bf16.mxu1 %v8994_v40  ;;  %v9075_v40 = vld [vmem:[%s9687_s18 + $0x8] ss:$0 sps:$4 sm:$0x33]  }
  0x46   : > { %544 = vmatmul.mubr.bf16.vlgmr.msra.gmra.mrb[0].mxu0 %v302_v41  ;;  %2297 = vmatmul.mubr.bf16.vlgmr.msra.gmra.mrb[0].mxu1 %v2056_v42  ;;  %v9076_v41 = vld [vmem:[%s9687_s18 + $0x20] ss:$0 sps:$4 sm:$0x33]   ;;  %v7387_v42 = vcombine.high %v9930_v36, %v9930_v36 }
  0x47   : > { %553 = vmatpush1.bf16.msra.mxu0 %v8992_v43  ;;  %2306 = vmatpush1.bf16.msra.mxu1 %v8992_v43  ;;  %v7775_v43 = vcombine.high %v9933_v37, %v9933_v37 }
  0x48   : > { %554 = vmatprep.subr.bf16.mxu0 %v8999_v44  ;;  %2307 = vmatprep.subr.bf16.mxu1 %v8999_v44  ;;  %v9072_v44 = vld [vmem:[%s11080_s1 + $0x280] ss:$8 sps:$4 sm:$0xff]  }
  0x49   : > { %584 = vmatprep.mubr.bf16.mxu0 %v9614_v47  ;;  %2337 = vmatprep.mubr.bf16.mxu1 %v9614_v47 }
  0x4b   : > { %555 = vmatpush1.bf16.msra.mxu0 %v8997_v45  ;;  %2308 = vmatpush1.bf16.msra.mxu1 %v8997_v45  ;;  %v9079_v45 = vld [vmem:[%s11080_s1 + $0x294] ss:$8 sps:$4 sm:$0xff]  }
  0x4c   : > { %556 = vmatprep.subr.bf16.mxu0 %v9002_v46  ;;  %2309 = vmatprep.subr.bf16.mxu1 %v9002_v46  ;;  %v940_v46 = vrot.slane %v7387_v42, 2  ;;  %v9154_v42 = vld [vmem:[%s11080_s1 + $0x404] ss:$8 sps:$4 sm:$0xff]  }
  0x4f   : > { %557 = vmatpush1.bf16.msra.mxu0 %v9000_v48  ;;  %2310 = vmatpush1.bf16.msra.mxu1 %v9000_v48  ;;  %v2692_v48 = vrot.slane %v7775_v43, 2  ;;  %v9152_v43 = vld [vmem:[%s11080_s1 + $0x400] ss:$8 sps:$4 sm:$0xff]  }
  0x50   : > { %558 = vmatprep.subr.bf16.mxu0 %v9005_v49  ;;  %2311 = vmatprep.subr.bf16.mxu1 %v9005_v49  ;;  %v9077_v49 = vld [vmem:[%s11080_s1 + $0x290] ss:$8 sps:$4 sm:$0xff]  }
  0x53   : > { %559 = vmatpush1.bf16.msra.mxu0 %v9003_v52  ;;  %2312 = vmatpush1.bf16.msra.mxu1 %v9003_v52  ;;  %v9085_v52 = vld [vmem:[%s11080_s1 + $0x2b4] ss:$8 sps:$4 sm:$0xff]  }
  0x54   : > { %806 = vmatprep.subr.bf16.mxu0 %v9008_v53  ;;  %2559 = vmatprep.subr.bf16.mxu1 %v9008_v53  ;;  %v9083_v53 = vld [vmem:[%s11080_s1 + $0x2b0] ss:$8 sps:$4 sm:$0xff]  }
  0x56   : > { %7301 = vmatmul.mubr.msk.bf16.vlgmr.msra.gmra.mrb[0].mxu0 %vm507_vm0, %v304_v56  ;;  %7687 = vmatmul.mubr.msk.bf16.vlgmr.msra.gmra.mrb[0].mxu1 %vm507_vm0, %v2058_v57  ;;  %v9091_v56 = vld [vmem:[%s11080_s1 + $0x2d4] ss:$8 sps:$4 sm:$0xff]   ;;  %v9089_v57 = vld [vmem:[%s11080_s1 + $0x2d0] ss:$8 sps:$4 sm:$0xff]  }
  0x57   : > { %807 = vmatpush1.bf16.msra.mxu0 %v9006_v58  ;;  %2560 = vmatpush1.bf16.msra.mxu1 %v9006_v58  ;;  %v9094_v58 = vld [vmem:[%s11080_s1 + $0x2e4] ss:$8 sps:$4 sm:$0xff]  }
  0x58   : > { %808 = vmatprep.subr.bf16.mxu0 %v9013_v59  ;;  %2561 = vmatprep.subr.bf16.mxu1 %v9013_v59  ;;  %v9092_v59 = vld [vmem:[%s11080_s1 + $0x2e0] ss:$8 sps:$4 sm:$0xff]  }
  0x59   : > { %838 = vmatprep.mubr.bf16.mxu0 %v7303_v60  ;;  %2591 = vmatprep.mubr.bf16.mxu1 %v7689_v61  ;;  %v9097_v60 = vld [vmem:[%s11080_s1 + $0x2f4] ss:$8 sps:$4 sm:$0xff]   ;;  %v9095_v61 = vld [vmem:[%s11080_s1 + $0x2f0] ss:$8 sps:$4 sm:$0xff]  }
  0x5b   : > { %809 = vmatpush1.bf16.msra.mxu0 %v9011_v62  ;;  %2562 = vmatpush1.bf16.msra.mxu1 %v9011_v62  ;;  %v9100_v62 = vld [vmem:[%s11080_s1 + $0x304] ss:$8 sps:$4 sm:$0xff]  }
  0x5c   : > { %810 = vmatprep.subr.bf16.mxu0 %v9016_v63  ;;  %2563 = vmatprep.subr.bf16.mxu1 %v9016_v63  ;;  %v9098_v63 = vld [vmem:[%s11080_s1 + $0x300] ss:$8 sps:$4 sm:$0xff]  }
  0x5f   : > { %811 = vmatpush1.bf16.msra.mxu0 %v9014_v0  ;;  %2564 = vmatpush1.bf16.msra.mxu1 %v9014_v0  ;;  %v9103_v0 = vld [vmem:[%s11080_s1 + $0x314] ss:$8 sps:$4 sm:$0xff]  }
  0x60   : > { %812 = vmatprep.subr.bf16.mxu0 %v9019_v1  ;;  %2565 = vmatprep.subr.bf16.mxu1 %v9019_v1  ;;  %v9101_v1 = vld [vmem:[%s11080_s1 + $0x310] ss:$8 sps:$4 sm:$0xff]  }
  0x63   : > { %813 = vmatpush1.bf16.msra.mxu0 %v9017_v2  ;;  %2566 = vmatpush1.bf16.msra.mxu1 %v9017_v2  ;;  %v9106_v2 = vld [vmem:[%s11080_s1 + $0x324] ss:$8 sps:$4 sm:$0xff]  }
  0x64   : > { %814 = vmatprep.subr.bf16.mxu0 %v9022_v3  ;;  %2567 = vmatprep.subr.bf16.mxu1 %v9022_v3  ;;  %v9104_v3 = vld [vmem:[%s11080_s1 + $0x320] ss:$8 sps:$4 sm:$0xff]  }
  0x67   : > { %815 = vmatpush1.bf16.msra.mxu0 %v9020_v4  ;;  %2568 = vmatpush1.bf16.msra.mxu1 %v9020_v4  ;;  %v9109_v4 = vld [vmem:[%s11080_s1 + $0x334] ss:$8 sps:$4 sm:$0xff]  }
  0x68   : > { %816 = vmatprep.subr.bf16.mxu0 %v9025_v5  ;;  %2569 = vmatprep.subr.bf16.mxu1 %v9025_v5  ;;  %v9107_v5 = vld [vmem:[%s11080_s1 + $0x330] ss:$8 sps:$4 sm:$0xff]  }
  0x6b   : > { %817 = vmatpush1.bf16.msra.mxu0 %v9023_v6  ;;  %2570 = vmatpush1.bf16.msra.mxu1 %v9023_v6  ;;  %v9112_v6 = vld [vmem:[%s11080_s1 + $0x344] ss:$8 sps:$4 sm:$0xff]  }
  0x6c   : > { %818 = vmatprep.subr.bf16.mxu0 %v9028_v7  ;;  %2571 = vmatprep.subr.bf16.mxu1 %v9028_v7  ;;  %v9110_v7 = vld [vmem:[%s11080_s1 + $0x340] ss:$8 sps:$4 sm:$0xff]  }
  0x6f   : > { %819 = vmatpush1.bf16.msra.mxu0 %v9026_v8  ;;  %2572 = vmatpush1.bf16.msra.mxu1 %v9026_v8  ;;  %v9115_v8 = vld [vmem:[%s11080_s1 + $0x354] ss:$8 sps:$4 sm:$0xff]  }
  0x70   : > { %820 = vmatprep.subr.bf16.mxu0 %v9031_v9  ;;  %2573 = vmatprep.subr.bf16.mxu1 %v9031_v9  ;;  %v9113_v9 = vld [vmem:[%s11080_s1 + $0x350] ss:$8 sps:$4 sm:$0xff]  }
  0x73   : > { %821 = vmatpush1.bf16.msra.mxu0 %v9029_v10  ;;  %2574 = vmatpush1.bf16.msra.mxu1 %v9029_v10  ;;  %v9118_v10 = vld [vmem:[%s11080_s1 + $0x364] ss:$8 sps:$4 sm:$0xff]  }
  0x74   : > { %822 = vmatprep.subr.bf16.mxu0 %v9034_v11  ;;  %2575 = vmatprep.subr.bf16.mxu1 %v9034_v11  ;;  %v9116_v11 = vld [vmem:[%s11080_s1 + $0x360] ss:$8 sps:$4 sm:$0xff]  }
  0x77   : > { %823 = vmatpush1.bf16.msra.mxu0 %v9032_v12  ;;  %2576 = vmatpush1.bf16.msra.mxu1 %v9032_v12  ;;  %v9121_v12 = vld [vmem:[%s11080_s1 + $0x374] ss:$8 sps:$4 sm:$0xff]  }
  0x78   : > { %824 = vmatprep.subr.bf16.mxu0 %v9037_v13  ;;  %2577 = vmatprep.subr.bf16.mxu1 %v9037_v13  ;;  %v7386_v13 = vcombine.low %v9930_v36, %v9930_v36 }
  0x7b   : > { %825 = vmatpush1.bf16.msra.mxu0 %v9035_v14  ;;  %2578 = vmatpush1.bf16.msra.mxu1 %v9035_v14  ;;  %v7774_v14 = vcombine.low %v9933_v37, %v9933_v37  ;;  %v9143_v37 = vld [vmem:[%s11080_s1 + $0x3d0] ss:$8 sps:$4 sm:$0xff]  }
  0x7c   : > { %826 = vmatprep.subr.bf16.mxu0 %v9040_v15  ;;  %2579 = vmatprep.subr.bf16.mxu1 %v9040_v15  ;;  %v9119_v15 = vld [vmem:[%s11080_s1 + $0x370] ss:$8 sps:$4 sm:$0xff]  }
  0x7f   : > { %827 = vmatpush1.bf16.msra.mxu0 %v9038_v16  ;;  %2580 = vmatpush1.bf16.msra.mxu1 %v9038_v16  ;;  %v9126_v16 = vld [vmem:[%s11080_s1 + $0x384] ss:$8 sps:$4 sm:$0xff]  }
  0x80   : > { %828 = vmatprep.subr.bf16.mxu0 %v9043_v17  ;;  %2581 = vmatprep.subr.bf16.mxu1 %v9043_v17  ;;  %v939_v17 = vrot.slane %v7386_v13, 2  ;;  %v9205_v13 = vld [vmem:[%s11080_s1 + $0x4f4] ss:$8 sps:$4 sm:$0xff]  }
  0x83   : > { %829 = vmatpush1.bf16.msra.mxu0 %v9041_v18  ;;  %2582 = vmatpush1.bf16.msra.mxu1 %v9041_v18  ;;  %v2691_v18 = vrot.slane %v7774_v14, 2  ;;  %v9209_v14 = vld [vmem:[%s9687_s18 + $0x8] ss:$12 sps:$4 sm:$0x18]  }
  0x84   : > { %830 = vmatprep.subr.bf16.mxu0 %v9046_v19  ;;  %2583 = vmatprep.subr.bf16.mxu1 %v9046_v19  ;;  %v9124_v19 = vld [vmem:[%s11080_s1 + $0x380] ss:$8 sps:$4 sm:$0xff]  }
  0x87   : > { %831 = vmatpush1.bf16.msra.mxu0 %v9044_v20  ;;  %2584 = vmatpush1.bf16.msra.mxu1 %v9044_v20  ;;  %v9131_v20 = vld [vmem:[%s11080_s1 + $0x394] ss:$8 sps:$4 sm:$0xff]  }
  0x88   : > { %832 = vmatprep.subr.bf16.mxu0 %v9049_v21  ;;  %2585 = vmatprep.subr.bf16.mxu1 %v9049_v21  ;;  %v9129_v21 = vld [vmem:[%s11080_s1 + $0x390] ss:$8 sps:$4 sm:$0xff]  }
  0x8b   : > { %833 = vmatpush1.bf16.msra.mxu0 %v9047_v22  ;;  %2586 = vmatpush1.bf16.msra.mxu1 %v9047_v22  ;;  %v9134_v22 = vld [vmem:[%s11080_s1 + $0x3a4] ss:$8 sps:$4 sm:$0xff]  }
  0x8c   : > { %834 = vmatprep.subr.bf16.mxu0 %v9052_v23  ;;  %2587 = vmatprep.subr.bf16.mxu1 %v9052_v23  ;;  %v9132_v23 = vld [vmem:[%s11080_s1 + $0x3a0] ss:$8 sps:$4 sm:$0xff]  }
  0x8f   : > { %835 = vmatpush1.bf16.msra.mxu0 %v9050_v24  ;;  %2588 = vmatpush1.bf16.msra.mxu1 %v9050_v24  ;;  %v9137_v24 = vld [vmem:[%s11080_s1 + $0x3b4] ss:$8 sps:$4 sm:$0xff]  }
  0x90   : > { %836 = vmatprep.subr.bf16.mxu0 %v9055_v25  ;;  %2589 = vmatprep.subr.bf16.mxu1 %v9055_v25  ;;  %v9141_v25 = vld [vmem:[%s9687_s18 + $0x8] ss:$0 sps:$4 sm:$0xcc]  }
  0x93   : > { %837 = vmatpush1.bf16.msra.mxu0 %v9053_v26  ;;  %2590 = vmatpush1.bf16.msra.mxu1 %v9053_v26  ;;  %v9142_v26 = vld [vmem:[%s9687_s18 + $0x20] ss:$0 sps:$4 sm:$0xcc]  }
  0x94   : > { %847 = vmatprep.subr.bf16.mxu0 %v9060_v27  ;;  %2600 = vmatprep.subr.bf16.mxu1 %v9060_v27  ;;  %v9135_v27 = vld [vmem:[%s11080_s1 + $0x3b0] ss:$8 sps:$4 sm:$0xff]  }
  0x96   : > { %839 = vmatmul.mubr.bf16.vlgmr.msra.gmra.mrb[0].mxu0 %v7302_v28  ;;  %2592 = vmatmul.mubr.bf16.vlgmr.msra.gmra.mrb[0].mxu1 %v7688_v29  ;;  %v9140_v28 = vld [vmem:[%s11080_s1 + $0x3c4] ss:$8 sps:$4 sm:$0xff]  }
  0x97   : > { %848 = vmatpush1.bf16.msra.mxu0 %v9058_v30  ;;  %2601 = vmatpush1.bf16.msra.mxu1 %v9058_v30  ;;  %v9190_v29 = vld [vmem:[%s9687_s18 + $0x4] ss:$12 sps:$4 sm:$0x18]   ;;  %v9196_v30 = vld [vmem:[%s9687_s18 + $0x1c] ss:$12 sps:$4 sm:$0x18]  }
  0x98   : > { %849 = vmatprep.subr.bf16.mxu0 %v9065_v31  ;;  %2602 = vmatprep.subr.bf16.mxu1 %v9065_v31  ;;  %v941_v31 = vrot.slane %v9141_v25, 2  ;;  %v3041_v36 = vrot.slane %v9196_v30, 3  ;;  %v9217_v30 = vld [vmem:[%s11080_s1 + $0x530] ss:$8 sps:$4 sm:$0xff]  }
  0x99   : > { %879 = vmatprep.mubr.bf16.mxu0 %v9614_v47  ;;  %2632 = vmatprep.mubr.bf16.mxu1 %v9614_v47 }
  0x9b   : > { %850 = vmatpush1.bf16.msra.mxu0 %v9063_v32  ;;  %2603 = vmatpush1.bf16.msra.mxu1 %v9063_v32  ;;  %v2693_v32 = vrot.slane %v9142_v26, 2  ;;  %v9211_v26 = vld [vmem:[%s11080_s1 + $0x510] ss:$8 sps:$4 sm:$0xff]  }
  0x9c   : > { %851 = vmatprep.subr.bf16.mxu0 %v9068_v33  ;;  %2604 = vmatprep.subr.bf16.mxu1 %v9068_v33  ;;  %v9138_v33 = vld [vmem:[%s11080_s1 + $0x3c0] ss:$8 sps:$4 sm:$0xff]  }
  0x9f   : > { %852 = vmatpush1.bf16.msra.mxu0 %v9066_v34  ;;  %2605 = vmatpush1.bf16.msra.mxu1 %v9066_v34  ;;  %v9145_v34 = vld [vmem:[%s11080_s1 + $0x3d4] ss:$8 sps:$4 sm:$0xff]  }
  0xa0   : > { %853 = vmatprep.subr.bf16.mxu0 %v9071_v35  ;;  %2606 = vmatprep.subr.bf16.mxu1 %v9071_v35  ;;  %v1290_v35 = vrot.slane %v9190_v29, 3  ;;  %v9219_v29 = vld [vmem:[%s11080_s1 + $0x534] ss:$8 sps:$4 sm:$0xff]  }
  0xa3   : > { %854 = vmatpush1.bf16.msra.mxu0 %v9069_v38  ;;  %2607 = vmatpush1.bf16.msra.mxu1 %v9069_v38  ;;  %v9148_v38 = vld [vmem:[%s11080_s1 + $0x3e4] ss:$8 sps:$4 sm:$0xff]  }
  0xa4   : > { %1147 = vmatprep.subr.bf16.mxu0 %v9074_v39  ;;  %2899 = vmatprep.subr.bf16.mxu1 %v9074_v39  ;;  %v9146_v39 = vld [vmem:[%s11080_s1 + $0x3e0] ss:$8 sps:$4 sm:$0xff]  }
  0xa6   : > { %7345 = vmatmul.mubr.msk.bf16.vlgmr.msra.gmra.mrb[0].mxu0 %vm507_vm0, %v9075_v40  ;;  %7731 = vmatmul.mubr.msk.bf16.vlgmr.msra.gmra.mrb[0].mxu1 %vm507_vm0, %v9076_v41  ;;  %v9151_v40 = vld [vmem:[%s11080_s1 + $0x3f4] ss:$8 sps:$4 sm:$0xff]   ;;  %v9149_v41 = vld [vmem:[%s11080_s1 + $0x3f0] ss:$8 sps:$4 sm:$0xff]  }
  0xa7   : > { %1148 = vmatpush1.bf16.msra.mxu0 %v9072_v44  ;;  %2900 = vmatpush1.bf16.msra.mxu1 %v9072_v44  ;;  %v9157_v44 = vld [vmem:[%s11080_s1 + $0x414] ss:$8 sps:$4 sm:$0xff]  }
  0xa8   : > { %1149 = vmatprep.subr.bf16.mxu0 %v9079_v45  ;;  %2901 = vmatprep.subr.bf16.mxu1 %v9079_v45  ;;  %v9155_v45 = vld [vmem:[%s11080_s1 + $0x410] ss:$8 sps:$4 sm:$0xff]  }
  0xa9   : > { %1179 = vmatprep.mubr.bf16.mxu0 %v940_v46  ;;  %2931 = vmatprep.mubr.bf16.mxu1 %v2692_v48  ;;  %v9160_v46 = vld [vmem:[%s11080_s1 + $0x424] ss:$8 sps:$4 sm:$0xff]   ;;  %v9158_v48 = vld [vmem:[%s11080_s1 + $0x420] ss:$8 sps:$4 sm:$0xff]  }
  0xab   : > { %1150 = vmatpush1.bf16.msra.mxu0 %v9077_v49  ;;  %2902 = vmatpush1.bf16.msra.mxu1 %v9077_v49  ;;  %v9163_v49 = vld [vmem:[%s11080_s1 + $0x434] ss:$8 sps:$4 sm:$0xff]  }
  0xac   : > { %1151 = vmatprep.subr.bf16.mxu0 %v9082_v50  ;;  %2903 = vmatprep.subr.bf16.mxu1 %v9082_v50  ;;  %v9161_v50 = vld [vmem:[%s11080_s1 + $0x430] ss:$8 sps:$4 sm:$0xff]  }
  0xaf   : > { %1152 = vmatpush1.bf16.msra.mxu0 %v9080_v51  ;;  %2904 = vmatpush1.bf16.msra.mxu1 %v9080_v51  ;;  %v9166_v51 = vld [vmem:[%s11080_s1 + $0x444] ss:$8 sps:$4 sm:$0xff]  }
  0xb0   : > { %1153 = vmatprep.subr.bf16.mxu0 %v9085_v52  ;;  %2905 = vmatprep.subr.bf16.mxu1 %v9085_v52  ;;  %v9164_v52 = vld [vmem:[%s11080_s1 + $0x440] ss:$8 sps:$4 sm:$0xff]  }
  0xb3   : > { %1154 = vmatpush1.bf16.msra.mxu0 %v9083_v53  ;;  %2906 = vmatpush1.bf16.msra.mxu1 %v9083_v53  ;;  %v9169_v53 = vld [vmem:[%s11080_s1 + $0x454] ss:$8 sps:$4 sm:$0xff]  }
  0xb4   : > { %1155 = vmatprep.subr.bf16.mxu0 %v9088_v54  ;;  %2907 = vmatprep.subr.bf16.mxu1 %v9088_v54  ;;  %v9167_v54 = vld [vmem:[%s11080_s1 + $0x450] ss:$8 sps:$4 sm:$0xff]  }
  0xb7   : > { %1156 = vmatpush1.bf16.msra.mxu0 %v9086_v55  ;;  %2908 = vmatpush1.bf16.msra.mxu1 %v9086_v55  ;;  %v9172_v55 = vld [vmem:[%s11080_s1 + $0x464] ss:$8 sps:$4 sm:$0xff]  }
  0xb8   : > { %1157 = vmatprep.subr.bf16.mxu0 %v9091_v56  ;;  %2909 = vmatprep.subr.bf16.mxu1 %v9091_v56  ;;  %v9170_v56 = vld [vmem:[%s11080_s1 + $0x460] ss:$8 sps:$4 sm:$0xff]  }
  0xbb   : > { %1158 = vmatpush1.bf16.msra.mxu0 %v9089_v57  ;;  %2910 = vmatpush1.bf16.msra.mxu1 %v9089_v57  ;;  %v9175_v57 = vld [vmem:[%s11080_s1 + $0x474] ss:$8 sps:$4 sm:$0xff]  }
  0xbc   : > { %1159 = vmatprep.subr.bf16.mxu0 %v9094_v58  ;;  %2911 = vmatprep.subr.bf16.mxu1 %v9094_v58  ;;  %v9173_v58 = vld [vmem:[%s11080_s1 + $0x470] ss:$8 sps:$4 sm:$0xff]  }
  0xbf   : > { %1160 = vmatpush1.bf16.msra.mxu0 %v9092_v59  ;;  %2912 = vmatpush1.bf16.msra.mxu1 %v9092_v59  ;;  %v9178_v59 = vld [vmem:[%s11080_s1 + $0x484] ss:$8 sps:$4 sm:$0xff]  }
  0xc0   : > { %1161 = vmatprep.subr.bf16.mxu0 %v9097_v60  ;;  %2913 = vmatprep.subr.bf16.mxu1 %v9097_v60  ;;  %v9176_v60 = vld [vmem:[%s11080_s1 + $0x480] ss:$8 sps:$4 sm:$0xff]  }
  0xc3   : > { %1162 = vmatpush1.bf16.msra.mxu0 %v9095_v61  ;;  %2914 = vmatpush1.bf16.msra.mxu1 %v9095_v61  ;;  %v9181_v61 = vld [vmem:[%s11080_s1 + $0x494] ss:$8 sps:$4 sm:$0xff]  }
  0xc4   : > { %1163 = vmatprep.subr.bf16.mxu0 %v9100_v62  ;;  %2915 = vmatprep.subr.bf16.mxu1 %v9100_v62  ;;  %v9179_v62 = vld [vmem:[%s11080_s1 + $0x490] ss:$8 sps:$4 sm:$0xff]  }
  0xc7   : > { %1164 = vmatpush1.bf16.msra.mxu0 %v9098_v63  ;;  %2916 = vmatpush1.bf16.msra.mxu1 %v9098_v63  ;;  %v9184_v63 = vld [vmem:[%s11080_s1 + $0x4a4] ss:$8 sps:$4 sm:$0xff]  }
  0xc8   : > { %1165 = vmatprep.subr.bf16.mxu0 %v9103_v0  ;;  %2917 = vmatprep.subr.bf16.mxu1 %v9103_v0  ;;  %v9182_v0 = vld [vmem:[%s11080_s1 + $0x4a0] ss:$8 sps:$4 sm:$0xff]  }
  0xcb   : > { %1166 = vmatpush1.bf16.msra.mxu0 %v9101_v1  ;;  %2918 = vmatpush1.bf16.msra.mxu1 %v9101_v1  ;;  %v9187_v1 = vld [vmem:[%s11080_s1 + $0x4b4] ss:$8 sps:$4 sm:$0xff]  }
  0xcc   : > { %1167 = vmatprep.subr.bf16.mxu0 %v9106_v2  ;;  %2919 = vmatprep.subr.bf16.mxu1 %v9106_v2  ;;  %v9188_v2 = vld [vmem:[%s9687_s18] ss:$12 sps:$4 sm:$0x18]  }
  0xcf   : > { %1168 = vmatpush1.bf16.msra.mxu0 %v9104_v3  ;;  %2920 = vmatpush1.bf16.msra.mxu1 %v9104_v3  ;;  %v9194_v3 = vld [vmem:[%s9687_s18 + $0x18] ss:$12 sps:$4 sm:$0x18]  }
  0xd0   : > { %1169 = vmatprep.subr.bf16.mxu0 %v9109_v4  ;;  %2921 = vmatprep.subr.bf16.mxu1 %v9109_v4  ;;  %v9185_v4 = vld [vmem:[%s11080_s1 + $0x4b0] ss:$8 sps:$4 sm:$0xff]  }
  0xd3   : > { %1170 = vmatpush1.bf16.msra.mxu0 %v9107_v5  ;;  %2922 = vmatpush1.bf16.msra.mxu1 %v9107_v5  ;;  %v9193_v5 = vld [vmem:[%s11080_s1 + $0x4c4] ss:$8 sps:$4 sm:$0xff]  }
  0xd4   : > { %1171 = vmatprep.subr.bf16.mxu0 %v9112_v6  ;;  %2923 = vmatprep.subr.bf16.mxu1 %v9112_v6  ;;  %v1289_v6 = vrot.slane %v9188_v2, 3  ;;  %v10343_v2 = vld [vmem:[%s9687_s18 + $0x48] sm:$0x66] }
  0xd7   : > { %1172 = vmatpush1.bf16.msra.mxu0 %v9110_v7  ;;  %2924 = vmatpush1.bf16.msra.mxu1 %v9110_v7  ;;  %v3040_v7 = vrot.slane %v9194_v3, 3  ;;  %v9269_v3 = vld [vmem:[%s11080_s1 + $0x630] ss:$8 sps:$4 sm:$0xff]  }
  0xd8   : > { %1173 = vmatprep.subr.bf16.mxu0 %v9115_v8  ;;  %2925 = vmatprep.subr.bf16.mxu1 %v9115_v8  ;;  %v9191_v8 = vld [vmem:[%s11080_s1 + $0x4c0] ss:$8 sps:$4 sm:$0xff]  }
  0xdb   : > { %1174 = vmatpush1.bf16.msra.mxu0 %v9113_v9  ;;  %2926 = vmatpush1.bf16.msra.mxu1 %v9113_v9  ;;  %v9199_v9 = vld [vmem:[%s11080_s1 + $0x4d4] ss:$8 sps:$4 sm:$0xff]  }
  0xdc   : > { %1175 = vmatprep.subr.bf16.mxu0 %v9118_v10  ;;  %2927 = vmatprep.subr.bf16.mxu1 %v9118_v10  ;;  %v9197_v10 = vld [vmem:[%s11080_s1 + $0x4d0] ss:$8 sps:$4 sm:$0xff]  }
  0xdf   : > { %1176 = vmatpush1.bf16.msra.mxu0 %v9116_v11  ;;  %2928 = vmatpush1.bf16.msra.mxu1 %v9116_v11  ;;  %v9202_v11 = vld [vmem:[%s11080_s1 + $0x4e4] ss:$8 sps:$4 sm:$0xff]  }
  0xe0   : > { %1177 = vmatprep.subr.bf16.mxu0 %v9121_v12  ;;  %2929 = vmatprep.subr.bf16.mxu1 %v9121_v12  ;;  %v9200_v12 = vld [vmem:[%s11080_s1 + $0x4e0] ss:$8 sps:$4 sm:$0xff]  }
  0xe3   : > { %1178 = vmatpush1.bf16.msra.mxu0 %v9119_v15  ;;  %2930 = vmatpush1.bf16.msra.mxu1 %v9119_v15  ;;  %v9210_v15 = vld [vmem:[%s9687_s18 + $0x20] ss:$12 sps:$4 sm:$0x18]  }
  0xe4   : > { %1188 = vmatprep.subr.bf16.mxu0 %v9126_v16  ;;  %2940 = vmatprep.subr.bf16.mxu1 %v9126_v16  ;;  %v9203_v16 = vld [vmem:[%s11080_s1 + $0x4f0] ss:$8 sps:$4 sm:$0xff]  }
  0xe6   : > { %1180 = vmatmul.mubr.bf16.vlgmr.msra.gmra.mrb[0].mxu0 %v939_v17  ;;  %2932 = vmatmul.mubr.bf16.vlgmr.msra.gmra.mrb[0].mxu1 %v2691_v18  ;;  %v9208_v17 = vld [vmem:[%s11080_s1 + $0x504] ss:$8 sps:$4 sm:$0xff]   ;;  %v1291_v18 = vrot.slane %v9209_v14, 3 }
  0xe7   : > { %1189 = vmatpush1.bf16.msra.mxu0 %v9124_v19  ;;  %2941 = vmatpush1.bf16.msra.mxu1 %v9124_v19  ;;  %v3042_v19 = vrot.slane %v9210_v15, 3  ;;  %v9282_v14 = vld [vmem:[%s11080_s1 + $0x164] ss:$8 sps:$4 sm:$0xff]   ;;  %v9280_v15 = vld [vmem:[%s11080_s1 + $0x160] ss:$8 sps:$4 sm:$0xff]  }
  0xe8   : > { %1190 = vmatprep.subr.bf16.mxu0 %v9131_v20  ;;  %2942 = vmatprep.subr.bf16.mxu1 %v9131_v20  ;;  %v10208_v20 = vld [vmem:[%s9687_s18 + $0xc] sm:$0x33] }
  0xe9   : > { %1220 = vmatprep.mubr.bf16.mxu0 %v9614_v47  ;;  %2972 = vmatprep.mubr.bf16.mxu1 %v9614_v47 }
  0xeb   : > { %1191 = vmatpush1.bf16.msra.mxu0 %v9129_v21  ;;  %2943 = vmatpush1.bf16.msra.mxu1 %v9129_v21  ;;  %v10211_v21 = vld [vmem:[%s9687_s18 + $0x24] sm:$0x33] }
  0xec   : > { %1192 = vmatprep.subr.bf16.mxu0 %v9134_v22  ;;  %2944 = vmatprep.subr.bf16.mxu1 %v9134_v22  ;;  %v9206_v22 = vld [vmem:[%s11080_s1 + $0x500] ss:$8 sps:$4 sm:$0xff]   ;;  %v7949_v25 = vcombine.high %v10211_v21, %v10211_v21 }
  0xef   : > { %1193 = vmatpush1.bf16.msra.mxu0 %v9132_v23  ;;  %2945 = vmatpush1.bf16.msra.mxu1 %v9132_v23  ;;  %v9213_v23 = vld [vmem:[%s11080_s1 + $0x514] ss:$8 sps:$4 sm:$0xff]  }
  0xf0   : > { %1194 = vmatprep.subr.bf16.mxu0 %v9137_v24  ;;  %2946 = vmatprep.subr.bf16.mxu1 %v9137_v24  ;;  %v7555_v24 = vcombine.high %v10208_v20, %v10208_v20 }
  0xf3   : > { %1195 = vmatpush1.bf16.msra.mxu0 %v9135_v27  ;;  %2947 = vmatpush1.bf16.msra.mxu1 %v9135_v27  ;;  %v9216_v27 = vld [vmem:[%s11080_s1 + $0x524] ss:$8 sps:$4 sm:$0xff]  }
  0xf4   : > { %1497 = vmatprep.subr.bf16.mxu0 %v9140_v28  ;;  %3248 = vmatprep.subr.bf16.mxu1 %v9140_v28  ;;  %v9214_v28 = vld [vmem:[%s11080_s1 + $0x520] ss:$8 sps:$4 sm:$0xff]  }
  0xf6   : > { %7429 = vmatmul.mubr.msk.bf16.vlgmr.msra.gmra.mrb[0].mxu0 %vm507_vm0, %v941_v31  ;;  %7817 = vmatmul.mubr.msk.bf16.vlgmr.msra.gmra.mrb[0].mxu1 %vm507_vm0, %v2693_v32  ;;  %v9222_v31 = vld [vmem:[%s11080_s1 + $0x544] ss:$8 sps:$4 sm:$0xff]   ;;  %v9220_v32 = vld [vmem:[%s11080_s1 + $0x540] ss:$8 sps:$4 sm:$0xff]  }
  0xf7   : > { %1498 = vmatpush1.bf16.msra.mxu0 %v9138_v33  ;;  %3249 = vmatpush1.bf16.msra.mxu1 %v9138_v33  ;;  %v9225_v33 = vld [vmem:[%s11080_s1 + $0x554] ss:$8 sps:$4 sm:$0xff]  }
  0xf8   : > { %1499 = vmatprep.subr.bf16.mxu0 %v9145_v34  ;;  %3250 = vmatprep.subr.bf16.mxu1 %v9145_v34  ;;  %v9223_v34 = vld [vmem:[%s11080_s1 + $0x550] ss:$8 sps:$4 sm:$0xff]  }
  0xf9   : > { %1529 = vmatprep.mubr.bf16.mxu0 %v1290_v35  ;;  %3280 = vmatprep.mubr.bf16.mxu1 %v3041_v36  ;;  %v9228_v35 = vld [vmem:[%s11080_s1 + $0x564] ss:$8 sps:$4 sm:$0xff]   ;;  %v9226_v36 = vld [vmem:[%s11080_s1 + $0x560] ss:$8 sps:$4 sm:$0xff]  }
  0xfb   : > { %1500 = vmatpush1.bf16.msra.mxu0 %v9143_v37  ;;  %3251 = vmatpush1.bf16.msra.mxu1 %v9143_v37  ;;  %v9231_v37 = vld [vmem:[%s11080_s1 + $0x574] ss:$8 sps:$4 sm:$0xff]  }
  0xfc   : > { %1501 = vmatprep.subr.bf16.mxu0 %v9148_v38  ;;  %3252 = vmatprep.subr.bf16.mxu1 %v9148_v38  ;;  %v9229_v38 = vld [vmem:[%s11080_s1 + $0x570] ss:$8 sps:$4 sm:$0xff]  }
  0xff   : > { %1502 = vmatpush1.bf16.msra.mxu0 %v9146_v39  ;;  %3253 = vmatpush1.bf16.msra.mxu1 %v9146_v39  ;;  %v9234_v39 = vld [vmem:[%s11080_s1 + $0x584] ss:$8 sps:$4 sm:$0xff]  }
 0x100   : > { %1503 = vmatprep.subr.bf16.mxu0 %v9151_v40  ;;  %3254 = vmatprep.subr.bf16.mxu1 %v9151_v40  ;;  %v9232_v40 = vld [vmem:[%s11080_s1 + $0x580] ss:$8 sps:$4 sm:$0xff]  }
 0x103   : > { %1504 = vmatpush1.bf16.msra.mxu0 %v9149_v41  ;;  %3255 = vmatpush1.bf16.msra.mxu1 %v9149_v41  ;;  %v9237_v41 = vld [vmem:[%s11080_s1 + $0x594] ss:$8 sps:$4 sm:$0xff]  }
 0x104   : > { %1505 = vmatprep.subr.bf16.mxu0 %v9154_v42  ;;  %3256 = vmatprep.subr.bf16.mxu1 %v9154_v42  ;;  %v9235_v42 = vld [vmem:[%s11080_s1 + $0x590] ss:$8 sps:$4 sm:$0xff]  }
 0x107   : > { %1506 = vmatpush1.bf16.msra.mxu0 %v9152_v43  ;;  %3257 = vmatpush1.bf16.msra.mxu1 %v9152_v43  ;;  %v9240_v43 = vld [vmem:[%s11080_s1 + $0x5a4] ss:$8 sps:$4 sm:$0xff]  }
 0x108   : > { %1507 = vmatprep.subr.bf16.mxu0 %v9157_v44  ;;  %3258 = vmatprep.subr.bf16.mxu1 %v9157_v44  ;;  %v9238_v44 = vld [vmem:[%s11080_s1 + $0x5a0] ss:$8 sps:$4 sm:$0xff]  }
 0x10b   : > { %1508 = vmatpush1.bf16.msra.mxu0 %v9155_v45  ;;  %3259 = vmatpush1.bf16.msra.mxu1 %v9155_v45  ;;  %v9243_v45 = vld [vmem:[%s11080_s1 + $0x5b4] ss:$8 sps:$4 sm:$0xff]  }
 0x10c   : > { %1509 = vmatprep.subr.bf16.mxu0 %v9160_v46  ;;  %3260 = vmatprep.subr.bf16.mxu1 %v9160_v46  ;;  %v9241_v46 = vld [vmem:[%s11080_s1 + $0x5b0] ss:$8 sps:$4 sm:$0xff]  }
 0x10f   : > { %1510 = vmatpush1.bf16.msra.mxu0 %v9158_v48  ;;  %3261 = vmatpush1.bf16.msra.mxu1 %v9158_v48  ;;  %v9246_v48 = vld [vmem:[%s11080_s1 + $0x5c4] ss:$8 sps:$4 sm:$0xff]  }
 0x110   : > { %1511 = vmatprep.subr.bf16.mxu0 %v9163_v49  ;;  %3262 = vmatprep.subr.bf16.mxu1 %v9163_v49  ;;  %v9244_v49 = vld [vmem:[%s11080_s1 + $0x5c0] ss:$8 sps:$4 sm:$0xff]  }
 0x113   : > { %1512 = vmatpush1.bf16.msra.mxu0 %v9161_v50  ;;  %3263 = vmatpush1.bf16.msra.mxu1 %v9161_v50  ;;  %v9249_v50 = vld [vmem:[%s11080_s1 + $0x5d4] ss:$8 sps:$4 sm:$0xff]  }
 0x114   : > { %1513 = vmatprep.subr.bf16.mxu0 %v9166_v51  ;;  %3264 = vmatprep.subr.bf16.mxu1 %v9166_v51  ;;  %v9247_v51 = vld [vmem:[%s11080_s1 + $0x5d0] ss:$8 sps:$4 sm:$0xff]  }
 0x117   : > { %1514 = vmatpush1.bf16.msra.mxu0 %v9164_v52  ;;  %3265 = vmatpush1.bf16.msra.mxu1 %v9164_v52  ;;  %v9252_v52 = vld [vmem:[%s11080_s1 + $0x5e4] ss:$8 sps:$4 sm:$0xff]  }
 0x118   : > { %1515 = vmatprep.subr.bf16.mxu0 %v9169_v53  ;;  %3266 = vmatprep.subr.bf16.mxu1 %v9169_v53  ;;  %v9250_v53 = vld [vmem:[%s11080_s1 + $0x5e0] ss:$8 sps:$4 sm:$0xff]  }
 0x11b   : > { %1516 = vmatpush1.bf16.msra.mxu0 %v9167_v54  ;;  %3267 = vmatpush1.bf16.msra.mxu1 %v9167_v54  ;;  %v9255_v54 = vld [vmem:[%s11080_s1 + $0x5f4] ss:$8 sps:$4 sm:$0xff]  }
 0x11c   : > { %1517 = vmatprep.subr.bf16.mxu0 %v9172_v55  ;;  %3268 = vmatprep.subr.bf16.mxu1 %v9172_v55  ;;  %v9253_v55 = vld [vmem:[%s11080_s1 + $0x5f0] ss:$8 sps:$4 sm:$0xff]  }
 0x11f   : > { %1518 = vmatpush1.bf16.msra.mxu0 %v9170_v56  ;;  %3269 = vmatpush1.bf16.msra.mxu1 %v9170_v56  ;;  %v9260_v56 = vld [vmem:[%s11080_s1 + $0x604] ss:$8 sps:$4 sm:$0xff]  }
 0x120   : > { %1519 = vmatprep.subr.bf16.mxu0 %v9175_v57  ;;  %3270 = vmatprep.subr.bf16.mxu1 %v9175_v57  ;;  %v7554_v57 = vcombine.low %v10208_v20, %v10208_v20  ;;  %v9291_v20 = vld [vmem:[%s11080_s1 + $0x194] ss:$8 sps:$4 sm:$0xff]  }
 0x123   : > { %1520 = vmatpush1.bf16.msra.mxu0 %v9173_v58  ;;  %3271 = vmatpush1.bf16.msra.mxu1 %v9173_v58  ;;  %v7948_v58 = vcombine.low %v10211_v21, %v10211_v21  ;;  %v9289_v21 = vld [vmem:[%s11080_s1 + $0x190] ss:$8 sps:$4 sm:$0xff]  }
 0x124   : > { %1521 = vmatprep.subr.bf16.mxu0 %v9178_v59  ;;  %3272 = vmatprep.subr.bf16.mxu1 %v9178_v59  ;;  %v9258_v59 = vld [vmem:[%s11080_s1 + $0x600] ss:$8 sps:$4 sm:$0xff]  }
 0x127   : > { %1522 = vmatpush1.bf16.msra.mxu0 %v9176_v60  ;;  %3273 = vmatpush1.bf16.msra.mxu1 %v9176_v60  ;;  %v9265_v60 = vld [vmem:[%s11080_s1 + $0x614] ss:$8 sps:$4 sm:$0xff]  }
 0x128   : > { %1523 = vmatprep.subr.bf16.mxu0 %v9181_v61  ;;  %3274 = vmatprep.subr.bf16.mxu1 %v9181_v61  ;;  %v9263_v61 = vld [vmem:[%s11080_s1 + $0x610] ss:$8 sps:$4 sm:$0xff]  }
 0x12b   : > { %1524 = vmatpush1.bf16.msra.mxu0 %v9179_v62  ;;  %3275 = vmatpush1.bf16.msra.mxu1 %v9179_v62  ;;  %v9268_v62 = vld [vmem:[%s11080_s1 + $0x624] ss:$8 sps:$4 sm:$0xff]  }
 0x12c   : > { %1525 = vmatprep.subr.bf16.mxu0 %v9184_v63  ;;  %3276 = vmatprep.subr.bf16.mxu1 %v9184_v63  ;;  %v9266_v63 = vld [vmem:[%s11080_s1 + $0x620] ss:$8 sps:$4 sm:$0xff]  }
 0x12f   : > { %1526 = vmatpush1.bf16.msra.mxu0 %v9182_v0  ;;  %3277 = vmatpush1.bf16.msra.mxu1 %v9182_v0  ;;  %v9271_v0 = vld [vmem:[%s11080_s1 + $0x634] ss:$8 sps:$4 sm:$0xff]  }
 0x130   : > { %1527 = vmatprep.subr.bf16.mxu0 %v9187_v1  ;;  %3278 = vmatprep.subr.bf16.mxu1 %v9187_v1  ;;  %v10340_v1 = vld [vmem:[%s9687_s18 + $0x30] sm:$0x66] }
 0x133   : > { %1528 = vmatpush1.bf16.msra.mxu0 %v9185_v4  ;;  %3279 = vmatpush1.bf16.msra.mxu1 %v9185_v4  ;;  %v9276_v4 = vld [vmem:[%s11080_s1 + $0x144] ss:$8 sps:$4 sm:$0xff]  }
 0x134   : > { %1538 = vmatprep.subr.bf16.mxu0 %v9193_v5  ;;  %3289 = vmatprep.subr.bf16.mxu1 %v9193_v5  ;;  %v8039_v5 = vcombine.high %v10340_v1, %v10340_v1 }
 0x136   : > { %1530 = vmatmul.mubr.bf16.vlgmr.msra.gmra.mrb[0].mxu0 %v1289_v6  ;;  %3281 = vmatmul.mubr.bf16.vlgmr.msra.gmra.mrb[0].mxu1 %v3040_v7  ;;  %v8433_v6 = vcombine.high %v10343_v2, %v10343_v2  ;;  %v9272_v7 = vld [vmem:[%s9687_s18 + $0x14] ss:$0 sps:$4 sm:$0x33]  }
 0x137   : > { %1539 = vmatpush1.bf16.msra.mxu0 %v9191_v8  ;;  %3290 = vmatpush1.bf16.msra.mxu1 %v9191_v8  ;;  %v9273_v8 = vld [vmem:[%s9687_s18 + $0x2c] ss:$0 sps:$4 sm:$0x33]  }
 0x138   : > { %1540 = vmatprep.subr.bf16.mxu0 %v9199_v9  ;;  %3291 = vmatprep.subr.bf16.mxu1 %v9199_v9  ;;  %v9274_v9 = vld [vmem:[%s11080_s1 + $0x140] ss:$8 sps:$4 sm:$0xff]  }
 0x139   : > { %1570 = vmatprep.mubr.bf16.mxu0 %v9614_v47  ;;  %3321 = vmatprep.mubr.bf16.mxu1 %v9614_v47 }
 0x13b   : > { %1541 = vmatpush1.bf16.msra.mxu0 %v9197_v10  ;;  %3292 = vmatpush1.bf16.msra.mxu1 %v9197_v10  ;;  %v9279_v10 = vld [vmem:[%s11080_s1 + $0x154] ss:$8 sps:$4 sm:$0xff]  }
 0x13c   : > { %1542 = vmatprep.subr.bf16.mxu0 %v9202_v11  ;;  %3293 = vmatprep.subr.bf16.mxu1 %v9202_v11  ;;  %v3786_v11 = vrot.slane %v8039_v5, 1  ;;  %v9351_v5 = vld [vmem:[%s11080_s1 + $0x34] ss:$8 sps:$4 sm:$0xff]  }
 0x13f   : > { %1543 = vmatpush1.bf16.msra.mxu0 %v9200_v12  ;;  %3294 = vmatpush1.bf16.msra.mxu1 %v9200_v12  ;;  %v5515_v12 = vrot.slane %v8433_v6, 1  ;;  %v9349_v6 = vld [vmem:[%s11080_s1 + $0x30] ss:$8 sps:$4 sm:$0xff]  }
 0x140   : > { %1544 = vmatprep.subr.bf16.mxu0 %v9205_v13  ;;  %3295 = vmatprep.subr.bf16.mxu1 %v9205_v13  ;;  %v9277_v13 = vld [vmem:[%s11080_s1 + $0x150] ss:$8 sps:$4 sm:$0xff]  }
 0x143   : > { %1545 = vmatpush1.bf16.msra.mxu0 %v9203_v16  ;;  %3296 = vmatpush1.bf16.msra.mxu1 %v9203_v16  ;;  %v9285_v16 = vld [vmem:[%s11080_s1 + $0x174] ss:$8 sps:$4 sm:$0xff]  }
 0x144   : > { %1837 = vmatprep.subr.bf16.mxu0 %v9208_v17  ;;  %3587 = vmatprep.subr.bf16.mxu1 %v9208_v17  ;;  %v9283_v17 = vld [vmem:[%s11080_s1 + $0x170] ss:$8 sps:$4 sm:$0xff]  }
 0x146   : > { %7513 = vmatmul.mubr.msk.bf16.vlgmr.msra.gmra.mrb[0].mxu0 %vm507_vm0, %v1291_v18  ;;  %7905 = vmatmul.mubr.msk.bf16.vlgmr.msra.gmra.mrb[0].mxu1 %vm507_vm0, %v3042_v19  ;;  %v9288_v18 = vld [vmem:[%s11080_s1 + $0x184] ss:$8 sps:$4 sm:$0xff]   ;;  %v9286_v19 = vld [vmem:[%s11080_s1 + $0x180] ss:$8 sps:$4 sm:$0xff]  }
 0x147   : > { %1838 = vmatpush1.bf16.msra.mxu0 %v9206_v22  ;;  %3588 = vmatpush1.bf16.msra.mxu1 %v9206_v22  ;;  %v9294_v22 = vld [vmem:[%s11080_s1 + $0x1a4] ss:$8 sps:$4 sm:$0xff]  }
 0x148   : > { %1839 = vmatprep.subr.bf16.mxu0 %v9213_v23  ;;  %3589 = vmatprep.subr.bf16.mxu1 %v9213_v23  ;;  %v9292_v23 = vld [vmem:[%s11080_s1 + $0x1a0] ss:$8 sps:$4 sm:$0xff]  }
 0x149   : > { %1869 = vmatprep.mubr.bf16.mxu0 %v7555_v24  ;;  %3619 = vmatprep.mubr.bf16.mxu1 %v7949_v25  ;;  %v9297_v24 = vld [vmem:[%s11080_s1 + $0x1b4] ss:$8 sps:$4 sm:$0xff]   ;;  %v9295_v25 = vld [vmem:[%s11080_s1 + $0x1b0] ss:$8 sps:$4 sm:$0xff]  }
 0x14b   : > { %1840 = vmatpush1.bf16.msra.mxu0 %v9211_v26  ;;  %3590 = vmatpush1.bf16.msra.mxu1 %v9211_v26  ;;  %v9300_v26 = vld [vmem:[%s11080_s1 + $0x1c4] ss:$8 sps:$4 sm:$0xff]  }
 0x14c   : > { %1841 = vmatprep.subr.bf16.mxu0 %v9216_v27  ;;  %3591 = vmatprep.subr.bf16.mxu1 %v9216_v27  ;;  %v9298_v27 = vld [vmem:[%s11080_s1 + $0x1c0] ss:$8 sps:$4 sm:$0xff]  }
 0x14f   : > { %1842 = vmatpush1.bf16.msra.mxu0 %v9214_v28  ;;  %3592 = vmatpush1.bf16.msra.mxu1 %v9214_v28  ;;  %v9303_v28 = vld [vmem:[%s11080_s1 + $0x1d4] ss:$8 sps:$4 sm:$0xff]  }
 0x150   : > { %1843 = vmatprep.subr.bf16.mxu0 %v9219_v29  ;;  %3593 = vmatprep.subr.bf16.mxu1 %v9219_v29  ;;  %v9301_v29 = vld [vmem:[%s11080_s1 + $0x1d0] ss:$8 sps:$4 sm:$0xff]  }
 0x153   : > { %1844 = vmatpush1.bf16.msra.mxu0 %v9217_v30  ;;  %3594 = vmatpush1.bf16.msra.mxu1 %v9217_v30  ;;  %v9306_v30 = vld [vmem:[%s11080_s1 + $0x1e4] ss:$8 sps:$4 sm:$0xff]  }
 0x154   : > { %1845 = vmatprep.subr.bf16.mxu0 %v9222_v31  ;;  %3595 = vmatprep.subr.bf16.mxu1 %v9222_v31  ;;  %v9304_v31 = vld [vmem:[%s11080_s1 + $0x1e0] ss:$8 sps:$4 sm:$0xff]  }
 0x157   : > { %1846 = vmatpush1.bf16.msra.mxu0 %v9220_v32  ;;  %3596 = vmatpush1.bf16.msra.mxu1 %v9220_v32  ;;  %v9309_v32 = vld [vmem:[%s11080_s1 + $0x1f4] ss:$8 sps:$4 sm:$0xff]  }
 0x158   : > { %1847 = vmatprep.subr.bf16.mxu0 %v9225_v33  ;;  %3597 = vmatprep.subr.bf16.mxu1 %v9225_v33  ;;  %v9307_v33 = vld [vmem:[%s11080_s1 + $0x1f0] ss:$8 sps:$4 sm:$0xff]  }
 0x15b   : > { %1848 = vmatpush1.bf16.msra.mxu0 %v9223_v34  ;;  %3598 = vmatpush1.bf16.msra.mxu1 %v9223_v34  ;;  %v9312_v34 = vld [vmem:[%s11080_s1 + $0x204] ss:$8 sps:$4 sm:$0xff]  }
 0x15c   : > { %1849 = vmatprep.subr.bf16.mxu0 %v9228_v35  ;;  %3599 = vmatprep.subr.bf16.mxu1 %v9228_v35  ;;  %v9310_v35 = vld [vmem:[%s11080_s1 + $0x200] ss:$8 sps:$4 sm:$0xff]  }
 0x15f   : > { %1850 = vmatpush1.bf16.msra.mxu0 %v9226_v36  ;;  %3600 = vmatpush1.bf16.msra.mxu1 %v9226_v36  ;;  %v9315_v36 = vld [vmem:[%s11080_s1 + $0x214] ss:$8 sps:$4 sm:$0xff]  }
 0x160   : > { %1851 = vmatprep.subr.bf16.mxu0 %v9231_v37  ;;  %3601 = vmatprep.subr.bf16.mxu1 %v9231_v37  ;;  %v9313_v37 = vld [vmem:[%s11080_s1 + $0x210] ss:$8 sps:$4 sm:$0xff]  }
 0x163   : > { %1852 = vmatpush1.bf16.msra.mxu0 %v9229_v38  ;;  %3602 = vmatpush1.bf16.msra.mxu1 %v9229_v38  ;;  %v9318_v38 = vld [vmem:[%s11080_s1 + $0x224] ss:$8 sps:$4 sm:$0xff]  }
 0x164   : > { %1853 = vmatprep.subr.bf16.mxu0 %v9234_v39  ;;  %3603 = vmatprep.subr.bf16.mxu1 %v9234_v39  ;;  %v9316_v39 = vld [vmem:[%s11080_s1 + $0x220] ss:$8 sps:$4 sm:$0xff]  }
 0x167   : > { %1854 = vmatpush1.bf16.msra.mxu0 %v9232_v40  ;;  %3604 = vmatpush1.bf16.msra.mxu1 %v9232_v40  ;;  %v9321_v40 = vld [vmem:[%s11080_s1 + $0x234] ss:$8 sps:$4 sm:$0xff]  }
 0x168   : > { %1855 = vmatprep.subr.bf16.mxu0 %v9237_v41  ;;  %3605 = vmatprep.subr.bf16.mxu1 %v9237_v41  ;;  %v8038_v41 = vcombine.low %v10340_v1, %v10340_v1 }
 0x16b   : > { %1856 = vmatpush1.bf16.msra.mxu0 %v9235_v42  ;;  %3606 = vmatpush1.bf16.msra.mxu1 %v9235_v42  ;;  %v8432_v42 = vcombine.low %v10343_v2, %v10343_v2  ;;  %v9343_v2 = vld [vmem:[%s11080_s1 + $0x10] ss:$8 sps:$4 sm:$0xff]  }
 0x16c   : > { %1857 = vmatprep.subr.bf16.mxu0 %v9240_v43  ;;  %3607 = vmatprep.subr.bf16.mxu1 %v9240_v43  ;;  %v9319_v43 = vld [vmem:[%s11080_s1 + $0x230] ss:$8 sps:$4 sm:$0xff]  }
 0x16f   : > { %1858 = vmatpush1.bf16.msra.mxu0 %v9238_v44  ;;  %3608 = vmatpush1.bf16.msra.mxu1 %v9238_v44  ;;  %v9326_v44 = vld [vmem:[%s11080_s1 + $0x244] ss:$8 sps:$4 sm:$0xff]  }
 0x170   : > { %1859 = vmatprep.subr.bf16.mxu0 %v9243_v45  ;;  %3609 = vmatprep.subr.bf16.mxu1 %v9243_v45  ;;  %v3785_v45 = vrot.slane %v8038_v41, 1  ;;  %v10623_v41 = vld [vmem:[%s9687_s18 + $0x48] sm:$0xcc] }
 0x173   : > { %1860 = vmatpush1.bf16.msra.mxu0 %v9241_v46  ;;  %3610 = vmatpush1.bf16.msra.mxu1 %v9241_v46  ;;  %v5514_v46 = vrot.slane %v8432_v42, 1  ;;  %v9401_v42 = vld [vmem:[%s11080_s1 + $0x130] ss:$8 sps:$4 sm:$0xff]  }
 0x174   : > { %1861 = vmatprep.subr.bf16.mxu0 %v9246_v48  ;;  %3611 = vmatprep.subr.bf16.mxu1 %v9246_v48  ;;  %v9324_v48 = vld [vmem:[%s11080_s1 + $0x240] ss:$8 sps:$4 sm:$0xff]  }
 0x177   : > { %1862 = vmatpush1.bf16.msra.mxu0 %v9244_v49  ;;  %3612 = vmatpush1.bf16.msra.mxu1 %v9244_v49  ;;  %v9331_v49 = vld [vmem:[%s11080_s1 + $0x254] ss:$8 sps:$4 sm:$0xff]  }
 0x178   : > { %1863 = vmatprep.subr.bf16.mxu0 %v9249_v50  ;;  %3613 = vmatprep.subr.bf16.mxu1 %v9249_v50  ;;  %v9329_v50 = vld [vmem:[%s11080_s1 + $0x250] ss:$8 sps:$4 sm:$0xff]  }
 0x17b   : > { %1864 = vmatpush1.bf16.msra.mxu0 %v9247_v51  ;;  %3614 = vmatpush1.bf16.msra.mxu1 %v9247_v51  ;;  %v9334_v51 = vld [vmem:[%s11080_s1 + $0x264] ss:$8 sps:$4 sm:$0xff]  }
 0x17c   : > { %1865 = vmatprep.subr.bf16.mxu0 %v9252_v52  ;;  %3615 = vmatprep.subr.bf16.mxu1 %v9252_v52  ;;  %v9332_v52 = vld [vmem:[%s11080_s1 + $0x260] ss:$8 sps:$4 sm:$0xff]  }
 0x17f   : > { %1866 = vmatpush1.bf16.msra.mxu0 %v9250_v53  ;;  %3616 = vmatpush1.bf16.msra.mxu1 %v9250_v53  ;;  %v9337_v53 = vld [vmem:[%s11080_s1 + $0x274] ss:$8 sps:$4 sm:$0xff]  }
 0x180   : > { %1867 = vmatprep.subr.bf16.mxu0 %v9255_v54  ;;  %3617 = vmatprep.subr.bf16.mxu1 %v9255_v54  ;;  %v9341_v54 = vld [vmem:[%s9687_s18 + $0x38] ss:$0 sps:$4 sm:$0x66]  }
 0x183   : > { %1868 = vmatpush1.bf16.msra.mxu0 %v9253_v55  ;;  %3618 = vmatpush1.bf16.msra.mxu1 %v9253_v55  ;;  %v9342_v55 = vld [vmem:[%s9687_s18 + $0x50] ss:$0 sps:$4 sm:$0x66]  }
 0x184   : > { %1878 = vmatprep.subr.bf16.mxu0 %v9260_v56  ;;  %3628 = vmatprep.subr.bf16.mxu1 %v9260_v56  ;;  %v9335_v56 = vld [vmem:[%s11080_s1 + $0x270] ss:$8 sps:$4 sm:$0xff]  }
 0x186   : > { %1870 = vmatmul.mubr.bf16.vlgmr.msra.gmra.mrb[0].mxu0 %v7554_v57  ;;  %3620 = vmatmul.mubr.bf16.vlgmr.msra.gmra.mrb[0].mxu1 %v7948_v58  ;;  %v9340_v57 = vld [vmem:[%s11080_s1 + $0x4] ss:$8 sps:$4 sm:$0xff]   ;;  %v3787_v58 = vrot.slane %v9341_v54, 1 }
 0x187   : > { %1879 = vmatpush1.bf16.msra.mxu0 %v9258_v59  ;;  %3629 = vmatpush1.bf16.msra.mxu1 %v9258_v59  ;;  %v5516_v59 = vrot.slane %v9342_v55, 1  ;;  %v9414_v54 = vld [vmem:[%s11080_s1 + $0x2a4] ss:$8 sps:$4 sm:$0xff]   ;;  %v9412_v55 = vld [vmem:[%s11080_s1 + $0x2a0] ss:$8 sps:$4 sm:$0xff]  }
 0x188   : > { %1880 = vmatprep.subr.bf16.mxu0 %v9265_v60  ;;  %3630 = vmatprep.subr.bf16.mxu1 %v9265_v60  ;;  %v10488_v60 = vld [vmem:[%s9687_s18 + $0x30] sm:$0x33] }
 0x189   : > { %1910 = vmatprep.mubr.bf16.mxu0 %v9614_v47  ;;  %3660 = vmatprep.mubr.bf16.mxu1 %v9614_v47 }
 0x18b   : > { %1881 = vmatpush1.bf16.msra.mxu0 %v9263_v61  ;;  %3631 = vmatpush1.bf16.msra.mxu1 %v9263_v61  ;;  %v10491_v61 = vld [vmem:[%s9687_s18 + $0x48] sm:$0x33] }
 0x18c   : > { %1882 = vmatprep.subr.bf16.mxu0 %v9268_v62  ;;  %3632 = vmatprep.subr.bf16.mxu1 %v9268_v62  ;;  %v9338_v62 = vld [vmem:[%s11080_s1] ss:$8 sps:$4 sm:$0xff]   ;;  %v8477_v1 = vcombine.high %v10491_v61, %v10491_v61 }
 0x18f   : > { %1883 = vmatpush1.bf16.msra.mxu0 %v9266_v63  ;;  %3633 = vmatpush1.bf16.msra.mxu1 %v9266_v63  ;;  %v9345_v63 = vld [vmem:[%s11080_s1 + $0x14] ss:$8 sps:$4 sm:$0xff]  }
 0x190   : > { %1884 = vmatprep.subr.bf16.mxu0 %v9271_v0  ;;  %3634 = vmatprep.subr.bf16.mxu1 %v9271_v0  ;;  %v8083_v0 = vcombine.high %v10488_v60, %v10488_v60 }
 0x193   : > { %1885 = vmatpush1.bf16.msra.mxu0 %v9269_v3  ;;  %3635 = vmatpush1.bf16.msra.mxu1 %v9269_v3  ;;  %v9348_v3 = vld [vmem:[%s11080_s1 + $0x24] ss:$8 sps:$4 sm:$0xff]  }
 0x194   : > { %3993 = vmatprep.subr.bf16.mxu0 %v9276_v4  ;;  %5722 = vmatprep.subr.bf16.mxu1 %v9276_v4  ;;  %v9346_v4 = vld [vmem:[%s11080_s1 + $0x20] ss:$8 sps:$4 sm:$0xff]  }
 0x196   : > { %7597 = vmatmul.mubr.msk.bf16.vlgmr.msra.gmra.mrb[0].mxu0 %vm507_vm0, %v9272_v7  ;;  %7991 = vmatmul.mubr.msk.bf16.vlgmr.msra.gmra.mrb[0].mxu1 %vm507_vm0, %v9273_v8  ;;  %v9354_v7 = vld [vmem:[%s11080_s1 + $0x44] ss:$8 sps:$4 sm:$0xff]   ;;  %v9352_v8 = vld [vmem:[%s11080_s1 + $0x40] ss:$8 sps:$4 sm:$0xff]  }
 0x197   : > { %3994 = vmatpush1.bf16.msra.mxu0 %v9274_v9  ;;  %5723 = vmatpush1.bf16.msra.mxu1 %v9274_v9  ;;  %v9357_v9 = vld [vmem:[%s11080_s1 + $0x54] ss:$8 sps:$4 sm:$0xff]  }
 0x198   : > { %3995 = vmatprep.subr.bf16.mxu0 %v9279_v10  ;;  %5724 = vmatprep.subr.bf16.mxu1 %v9279_v10  ;;  %v9355_v10 = vld [vmem:[%s11080_s1 + $0x50] ss:$8 sps:$4 sm:$0xff]  }
 0x199   : > { %4025 = vmatprep.mubr.bf16.mxu0 %v3786_v11  ;;  %5754 = vmatprep.mubr.bf16.mxu1 %v5515_v12  ;;  %v9360_v11 = vld [vmem:[%s11080_s1 + $0x64] ss:$8 sps:$4 sm:$0xff]   ;;  %v9358_v12 = vld [vmem:[%s11080_s1 + $0x60] ss:$8 sps:$4 sm:$0xff]  }
 0x19b   : > { %3996 = vmatpush1.bf16.msra.mxu0 %v9277_v13  ;;  %5725 = vmatpush1.bf16.msra.mxu1 %v9277_v13  ;;  %v9363_v13 = vld [vmem:[%s11080_s1 + $0x74] ss:$8 sps:$4 sm:$0xff]  }
 0x19c   : > { %3997 = vmatprep.subr.bf16.mxu0 %v9282_v14  ;;  %5726 = vmatprep.subr.bf16.mxu1 %v9282_v14  ;;  %v9361_v14 = vld [vmem:[%s11080_s1 + $0x70] ss:$8 sps:$4 sm:$0xff]  }
 0x19f   : > { %3998 = vmatpush1.bf16.msra.mxu0 %v9280_v15  ;;  %5727 = vmatpush1.bf16.msra.mxu1 %v9280_v15  ;;  %v9366_v15 = vld [vmem:[%s11080_s1 + $0x84] ss:$8 sps:$4 sm:$0xff]  }
 0x1a0   : > { %3999 = vmatprep.subr.bf16.mxu0 %v9285_v16  ;;  %5728 = vmatprep.subr.bf16.mxu1 %v9285_v16  ;;  %v9364_v16 = vld [vmem:[%s11080_s1 + $0x80] ss:$8 sps:$4 sm:$0xff]  }
 0x1a3   : > { %4000 = vmatpush1.bf16.msra.mxu0 %v9283_v17  ;;  %5729 = vmatpush1.bf16.msra.mxu1 %v9283_v17  ;;  %v9369_v17 = vld [vmem:[%s11080_s1 + $0x94] ss:$8 sps:$4 sm:$0xff]  }
 0x1a4   : > { %4001 = vmatprep.subr.bf16.mxu0 %v9288_v18  ;;  %5730 = vmatprep.subr.bf16.mxu1 %v9288_v18  ;;  %v9367_v18 = vld [vmem:[%s11080_s1 + $0x90] ss:$8 sps:$4 sm:$0xff]  }
 0x1a7   : > { %4002 = vmatpush1.bf16.msra.mxu0 %v9286_v19  ;;  %5731 = vmatpush1.bf16.msra.mxu1 %v9286_v19  ;;  %v9372_v19 = vld [vmem:[%s11080_s1 + $0xa4] ss:$8 sps:$4 sm:$0xff]  }
 0x1a8   : > { %4003 = vmatprep.subr.bf16.mxu0 %v9291_v20  ;;  %5732 = vmatprep.subr.bf16.mxu1 %v9291_v20  ;;  %v9370_v20 = vld [vmem:[%s11080_s1 + $0xa0] ss:$8 sps:$4 sm:$0xff]  }
 0x1ab   : > { %4004 = vmatpush1.bf16.msra.mxu0 %v9289_v21  ;;  %5733 = vmatpush1.bf16.msra.mxu1 %v9289_v21  ;;  %v9375_v21 = vld [vmem:[%s11080_s1 + $0xb4] ss:$8 sps:$4 sm:$0xff]  }
 0x1ac   : > { %4005 = vmatprep.subr.bf16.mxu0 %v9294_v22  ;;  %5734 = vmatprep.subr.bf16.mxu1 %v9294_v22  ;;  %v9373_v22 = vld [vmem:[%s11080_s1 + $0xb0] ss:$8 sps:$4 sm:$0xff]  }
 0x1af   : > { %4006 = vmatpush1.bf16.msra.mxu0 %v9292_v23  ;;  %5735 = vmatpush1.bf16.msra.mxu1 %v9292_v23  ;;  %v9378_v23 = vld [vmem:[%s11080_s1 + $0xc4] ss:$8 sps:$4 sm:$0xff]  }
 0x1b0   : > { %4007 = vmatprep.subr.bf16.mxu0 %v9297_v24  ;;  %5736 = vmatprep.subr.bf16.mxu1 %v9297_v24  ;;  %v9376_v24 = vld [vmem:[%s11080_s1 + $0xc0] ss:$8 sps:$4 sm:$0xff]  }
 0x1b3   : > { %4008 = vmatpush1.bf16.msra.mxu0 %v9295_v25  ;;  %5737 = vmatpush1.bf16.msra.mxu1 %v9295_v25  ;;  %v9381_v25 = vld [vmem:[%s11080_s1 + $0xd4] ss:$8 sps:$4 sm:$0xff]  }
 0x1b4   : > { %4009 = vmatprep.subr.bf16.mxu0 %v9300_v26  ;;  %5738 = vmatprep.subr.bf16.mxu1 %v9300_v26  ;;  %v9379_v26 = vld [vmem:[%s11080_s1 + $0xd0] ss:$8 sps:$4 sm:$0xff]  }
 0x1b7   : > { %4010 = vmatpush1.bf16.msra.mxu0 %v9298_v27  ;;  %5739 = vmatpush1.bf16.msra.mxu1 %v9298_v27  ;;  %v9384_v27 = vld [vmem:[%s11080_s1 + $0xe4] ss:$8 sps:$4 sm:$0xff]  }
 0x1b8   : > { %4011 = vmatprep.subr.bf16.mxu0 %v9303_v28  ;;  %5740 = vmatprep.subr.bf16.mxu1 %v9303_v28  ;;  %v9382_v28 = vld [vmem:[%s11080_s1 + $0xe0] ss:$8 sps:$4 sm:$0xff]  }
 0x1bb   : > { %4012 = vmatpush1.bf16.msra.mxu0 %v9301_v29  ;;  %5741 = vmatpush1.bf16.msra.mxu1 %v9301_v29  ;;  %v9387_v29 = vld [vmem:[%s11080_s1 + $0xf4] ss:$8 sps:$4 sm:$0xff]  }
 0x1bc   : > { %4013 = vmatprep.subr.bf16.mxu0 %v9306_v30  ;;  %5742 = vmatprep.subr.bf16.mxu1 %v9306_v30  ;;  %v9385_v30 = vld [vmem:[%s11080_s1 + $0xf0] ss:$8 sps:$4 sm:$0xff]  }
 0x1bf   : > { %4014 = vmatpush1.bf16.msra.mxu0 %v9304_v31  ;;  %5743 = vmatpush1.bf16.msra.mxu1 %v9304_v31  ;;  %v9392_v31 = vld [vmem:[%s11080_s1 + $0x104] ss:$8 sps:$4 sm:$0xff]  }
 0x1c0   : > { %4015 = vmatprep.subr.bf16.mxu0 %v9309_v32  ;;  %5744 = vmatprep.subr.bf16.mxu1 %v9309_v32  ;;  %v8082_v32 = vcombine.low %v10488_v60, %v10488_v60  ;;  %v9423_v60 = vld [vmem:[%s11080_s1 + $0x2d4] ss:$8 sps:$4 sm:$0xff]  }
 0x1c3   : > { %4016 = vmatpush1.bf16.msra.mxu0 %v9307_v33  ;;  %5745 = vmatpush1.bf16.msra.mxu1 %v9307_v33  ;;  %v8476_v33 = vcombine.low %v10491_v61, %v10491_v61  ;;  %v9421_v61 = vld [vmem:[%s11080_s1 + $0x2d0] ss:$8 sps:$4 sm:$0xff]  }
 0x1c4   : > { %4017 = vmatprep.subr.bf16.mxu0 %v9312_v34  ;;  %5746 = vmatprep.subr.bf16.mxu1 %v9312_v34  ;;  %v9390_v34 = vld [vmem:[%s11080_s1 + $0x100] ss:$8 sps:$4 sm:$0xff]  }
 0x1c7   : > { %4018 = vmatpush1.bf16.msra.mxu0 %v9310_v35  ;;  %5747 = vmatpush1.bf16.msra.mxu1 %v9310_v35  ;;  %v9397_v35 = vld [vmem:[%s11080_s1 + $0x114] ss:$8 sps:$4 sm:$0xff]  }
 0x1c8   : > { %4019 = vmatprep.subr.bf16.mxu0 %v9315_v36  ;;  %5748 = vmatprep.subr.bf16.mxu1 %v9315_v36  ;;  %v9395_v36 = vld [vmem:[%s11080_s1 + $0x110] ss:$8 sps:$4 sm:$0xff]  }
 0x1cb   : > { %4020 = vmatpush1.bf16.msra.mxu0 %v9313_v37  ;;  %5749 = vmatpush1.bf16.msra.mxu1 %v9313_v37  ;;  %v9400_v37 = vld [vmem:[%s11080_s1 + $0x124] ss:$8 sps:$4 sm:$0xff]  }
 0x1cc   : > { %4021 = vmatprep.subr.bf16.mxu0 %v9318_v38  ;;  %5750 = vmatprep.subr.bf16.mxu1 %v9318_v38  ;;  %v9398_v38 = vld [vmem:[%s11080_s1 + $0x120] ss:$8 sps:$4 sm:$0xff]  }
 0x1cf   : > { %4022 = vmatpush1.bf16.msra.mxu0 %v9316_v39  ;;  %5751 = vmatpush1.bf16.msra.mxu1 %v9316_v39  ;;  %v9403_v39 = vld [vmem:[%s11080_s1 + $0x134] ss:$8 sps:$4 sm:$0xff]  }
 0x1d0   : > { %4023 = vmatprep.subr.bf16.mxu0 %v9321_v40  ;;  %5752 = vmatprep.subr.bf16.mxu1 %v9321_v40  ;;  %v10620_v40 = vld [vmem:[%s9687_s18 + $0x30] sm:$0xcc] }
 0x1d3   : > { %4024 = vmatpush1.bf16.msra.mxu0 %v9319_v43  ;;  %5753 = vmatpush1.bf16.msra.mxu1 %v9319_v43  ;;  %v9406_v43 = vld [vmem:[%s11080_s1 + $0x284] ss:$8 sps:$4 sm:$0xff]  }
 0x1d4   : > { %4034 = vmatprep.subr.bf16.mxu0 %v9326_v44  ;;  %5763 = vmatprep.subr.bf16.mxu1 %v9326_v44  ;;  %v8169_v44 = vcombine.high %v10620_v40, %v10620_v40 }
 0x1d6   : > { %4026 = vmatmul.mubr.bf16.vlgmr.msra.gmra.mrb[4].mxu0 %v3785_v45  ;;  %5755 = vmatmul.mubr.bf16.vlgmr.msra.gmra.mrb[4].mxu1 %v5514_v46  ;;  %v8563_v45 = vcombine.high %v10623_v41, %v10623_v41  ;;  %v9407_v46 = vld [vmem:[%s9687_s18 + $0x38] ss:$0 sps:$4 sm:$0x33]  }
 0x1d7   : > { %4035 = vmatpush1.bf16.msra.mxu0 %v9324_v48  ;;  %5764 = vmatpush1.bf16.msra.mxu1 %v9324_v48  ;;  %v9408_v48 = vld [vmem:[%s9687_s18 + $0x50] ss:$0 sps:$4 sm:$0x33]  }
 0x1d8   : > { %4036 = vmatprep.subr.bf16.mxu0 %v9331_v49  ;;  %5765 = vmatprep.subr.bf16.mxu1 %v9331_v49  ;;  %v9404_v49 = vld [vmem:[%s11080_s1 + $0x280] ss:$8 sps:$4 sm:$0xff]  }
 0x1d9   : > { %4066 = vmatprep.mubr.bf16.mxu0 %v9614_v47  ;;  %5795 = vmatprep.mubr.bf16.mxu1 %v9614_v47 }
 0x1db   : > { %4037 = vmatpush1.bf16.msra.mxu0 %v9329_v50  ;;  %5766 = vmatpush1.bf16.msra.mxu1 %v9329_v50  ;;  %v9411_v50 = vld [vmem:[%s11080_s1 + $0x294] ss:$8 sps:$4 sm:$0xff]  }
 0x1dc   : > { %4038 = vmatprep.subr.bf16.mxu0 %v9334_v51  ;;  %5767 = vmatprep.subr.bf16.mxu1 %v9334_v51  ;;  %v4421_v51 = vrot.slane %v8169_v44, 2 }
 0x1df   : > { %4039 = vmatpush1.bf16.msra.mxu0 %v9332_v52  ;;  %5768 = vmatpush1.bf16.msra.mxu1 %v9332_v52  ;;  %v6150_v52 = vrot.slane %v8563_v45, 2 }
 0x1e0   : > { %4040 = vmatprep.subr.bf16.mxu0 %v9337_v53  ;;  %5769 = vmatprep.subr.bf16.mxu1 %v9337_v53  ;;  %v9409_v53 = vld [vmem:[%s11080_s1 + $0x290] ss:$8 sps:$4 sm:$0xff]  }
 0x1e3   : > { %4041 = vmatpush1.bf16.msra.mxu0 %v9335_v56  ;;  %5770 = vmatpush1.bf16.msra.mxu1 %v9335_v56  ;;  %v9417_v56 = vld [vmem:[%s11080_s1 + $0x2b4] ss:$8 sps:$4 sm:$0xff]  }
 0x1e4   : > { %4288 = vmatprep.subr.bf16.mxu0 %v9340_v57  ;;  %6017 = vmatprep.subr.bf16.mxu1 %v9340_v57  ;;  %v9415_v57 = vld [vmem:[%s11080_s1 + $0x2b0] ss:$8 sps:$4 sm:$0xff]  }
 0x1e6   : > { %8081 = vmatmul.mubr.msk.bf16.vlgmr.msra.gmra.mrb[4].mxu0 %vm507_vm0, %v3787_v58  ;;  %8475 = vmatmul.mubr.msk.bf16.vlgmr.msra.gmra.mrb[4].mxu1 %vm507_vm0, %v5516_v59  ;;  %v9420_v58 = vld [vmem:[%s11080_s1 + $0x2c4] ss:$8 sps:$4 sm:$0xff]   ;;  %v9418_v59 = vld [vmem:[%s11080_s1 + $0x2c0] ss:$8 sps:$4 sm:$0xff]  }
 0x1e7   : > { %4289 = vmatpush1.bf16.msra.mxu0 %v9338_v62  ;;  %6018 = vmatpush1.bf16.msra.mxu1 %v9338_v62  ;;  %v9426_v62 = vld [vmem:[%s11080_s1 + $0x2e4] ss:$8 sps:$4 sm:$0xff]  }
 0x1e8   : > { %4290 = vmatprep.subr.bf16.mxu0 %v9345_v63  ;;  %6019 = vmatprep.subr.bf16.mxu1 %v9345_v63  ;;  %v9424_v63 = vld [vmem:[%s11080_s1 + $0x2e0] ss:$8 sps:$4 sm:$0xff]  }
 0x1e9   : > { %4320 = vmatprep.mubr.bf16.mxu0 %v8083_v0  ;;  %6049 = vmatprep.mubr.bf16.mxu1 %v8477_v1  ;;  %v9429_v0 = vld [vmem:[%s11080_s1 + $0x2f4] ss:$8 sps:$4 sm:$0xff]   ;;  %v9427_v1 = vld [vmem:[%s11080_s1 + $0x2f0] ss:$8 sps:$4 sm:$0xff]  }
 0x1eb   : > { %4291 = vmatpush1.bf16.msra.mxu0 %v9343_v2  ;;  %6020 = vmatpush1.bf16.msra.mxu1 %v9343_v2  ;;  %v9432_v2 = vld [vmem:[%s11080_s1 + $0x304] ss:$8 sps:$4 sm:$0xff]  }
 0x1ec   : > { %4292 = vmatprep.subr.bf16.mxu0 %v9348_v3  ;;  %6021 = vmatprep.subr.bf16.mxu1 %v9348_v3  ;;  %v9430_v3 = vld [vmem:[%s11080_s1 + $0x300] ss:$8 sps:$4 sm:$0xff]  }
 0x1ef   : > { %4293 = vmatpush1.bf16.msra.mxu0 %v9346_v4  ;;  %6022 = vmatpush1.bf16.msra.mxu1 %v9346_v4  ;;  %v9435_v4 = vld [vmem:[%s11080_s1 + $0x314] ss:$8 sps:$4 sm:$0xff]  }
 0x1f0   : > { %4294 = vmatprep.subr.bf16.mxu0 %v9351_v5  ;;  %6023 = vmatprep.subr.bf16.mxu1 %v9351_v5  ;;  %v9433_v5 = vld [vmem:[%s11080_s1 + $0x310] ss:$8 sps:$4 sm:$0xff]  }
 0x1f3   : > { %4295 = vmatpush1.bf16.msra.mxu0 %v9349_v6  ;;  %6024 = vmatpush1.bf16.msra.mxu1 %v9349_v6  ;;  %v9438_v6 = vld [vmem:[%s11080_s1 + $0x324] ss:$8 sps:$4 sm:$0xff]  }
 0x1f4   : > { %4296 = vmatprep.subr.bf16.mxu0 %v9354_v7  ;;  %6025 = vmatprep.subr.bf16.mxu1 %v9354_v7  ;;  %v1922_v7 = vlaneseq }
 0x1f7   : > { %4297 = vmatpush1.bf16.msra.mxu0 %v9352_v8  ;;  %6026 = vmatpush1.bf16.msra.mxu1 %v9352_v8  ;;  %v9436_v8 = vld [vmem:[%s11080_s1 + $0x320] ss:$8 sps:$4 sm:$0xff]  }
 0x1f8   : > { %4298 = vmatprep.subr.bf16.mxu0 %v9357_v9  ;;  %6027 = vmatprep.subr.bf16.mxu1 %v9357_v9  ;;  %v9441_v9 = vld [vmem:[%s11080_s1 + $0x334] ss:$8 sps:$4 sm:$0xff]  }
 0x1fb   : > { %4299 = vmatpush1.bf16.msra.mxu0 %v9355_v10  ;;  %6028 = vmatpush1.bf16.msra.mxu1 %v9355_v10  ;;  %v1923_v10 = vshrl.u32 %v1922_v7, 7  ;;  %v9477_v7 = vld [vmem:[%s11080_s1 + $0x3d4] ss:$8 sps:$4 sm:$0xff]  }
 0x1fc   : > { %4300 = vmatprep.subr.bf16.mxu0 %v9360_v11  ;;  %6029 = vmatprep.subr.bf16.mxu1 %v9360_v11  ;;  %v9439_v11 = vld [vmem:[%s11080_s1 + $0x330] ss:$8 sps:$4 sm:$0xff]  }
 0x1ff   : > { %4301 = vmatpush1.bf16.msra.mxu0 %v9358_v12  ;;  %6030 = vmatpush1.bf16.msra.mxu1 %v9358_v12  ;;  %v9444_v12 = vld [vmem:[%s11080_s1 + $0x344] ss:$8 sps:$4 sm:$0xff]  }
 0x200   : > { %4302 = vmatprep.subr.bf16.mxu0 %v9363_v13  ;;  %6031 = vmatprep.subr.bf16.mxu1 %v9363_v13  ;;  %v1924_v13 = vsub.s32 0, %v1923_v10 }
 0x203   : > { %4303 = vmatpush1.bf16.msra.mxu0 %v9361_v14  ;;  %6032 = vmatpush1.bf16.msra.mxu1 %v9361_v14  ;;  %v9442_v14 = vld [vmem:[%s11080_s1 + $0x340] ss:$8 sps:$4 sm:$0xff]  }
 0x204   : > { %4304 = vmatprep.subr.bf16.mxu0 %v9366_v15  ;;  %6033 = vmatprep.subr.bf16.mxu1 %v9366_v15  ;;  %v207_v15 = vld [vmem:[%s11081_s2] sm:$0x3] }
 0x207   : > { %4305 = vmatpush1.bf16.msra.mxu0 %v9364_v16  ;;  %6034 = vmatpush1.bf16.msra.mxu1 %v9364_v16  ;;  %v1928_v16 = vsub.s32 1, %v1923_v10  ;;  %v9475_v10 = vld [vmem:[%s11080_s1 + $0x3d0] ss:$8 sps:$4 sm:$0xff]  }
 0x208   : > { %4306 = vmatprep.subr.bf16.mxu0 %v9369_v17  ;;  %6035 = vmatprep.subr.bf16.mxu1 %v9369_v17  ;;  %v9447_v17 = vld [vmem:[%s11080_s1 + $0x354] ss:$8 sps:$4 sm:$0xff]  }
 0x20b   : > { %4307 = vmatpush1.bf16.msra.mxu0 %v9367_v18  ;;  %6036 = vmatpush1.bf16.msra.mxu1 %v9367_v18  ;;  %v208_v18 = vld [vmem:[%s11082_s3] sm:$0x3] }
 0x20c   : > { %4308 = vmatprep.subr.bf16.mxu0 %v9372_v19  ;;  %6037 = vmatprep.subr.bf16.mxu1 %v9372_v19  ;;  %v10723_v19 = vrot.slane %v207_v15, %v1924_v13 }
 0x20f   : > { %4309 = vmatpush1.bf16.msra.mxu0 %v9370_v20  ;;  %6038 = vmatpush1.bf16.msra.mxu1 %v9370_v20  ;;  %v10725_v20 = vrot.slane %v207_v15, %v1928_v16  ;;  %v9486_v15 = vld [vmem:[%s11080_s1 + $0x404] ss:$8 sps:$4 sm:$0xff]  }
 0x210   : > { %4310 = vmatprep.subr.bf16.mxu0 %v9375_v21  ;;  %6039 = vmatprep.subr.bf16.mxu1 %v9375_v21  ;;  %v9445_v21 = vld [vmem:[%s11080_s1 + $0x350] ss:$8 sps:$4 sm:$0xff]  }
 0x213   : > { %4311 = vmatpush1.bf16.msra.mxu0 %v9373_v22  ;;  %6040 = vmatpush1.bf16.msra.mxu1 %v9373_v22  ;;  %v10730_v22 = vrot.slane %v208_v18, %v1924_v13  ;;  %v9483_v13 = vld [vmem:[%s11080_s1 + $0x3f4] ss:$8 sps:$4 sm:$0xff]  }
 0x214   : > { %4312 = vmatprep.subr.bf16.mxu0 %v9378_v23  ;;  %6041 = vmatprep.subr.bf16.mxu1 %v9378_v23  ;;  %v9450_v23 = vld [vmem:[%s11080_s1 + $0x364] ss:$8 sps:$4 sm:$0xff]  }
 0x217   : > { %4313 = vmatpush1.bf16.msra.mxu0 %v9376_v24  ;;  %6042 = vmatpush1.bf16.msra.mxu1 %v9376_v24 }
 0x218   : > { %4314 = vmatprep.subr.bf16.mxu0 %v9381_v25  ;;  %6043 = vmatprep.subr.bf16.mxu1 %v9381_v25 }
 0x21b   : > { %4315 = vmatpush1.bf16.msra.mxu0 %v9379_v26  ;;  %6044 = vmatpush1.bf16.msra.mxu1 %v9379_v26  ;;  %v10735_v26 = vrot.slane %v208_v18, %v1928_v16  ;;  %v9484_v16 = vld [vmem:[%s11080_s1 + $0x400] ss:$8 sps:$4 sm:$0xff]   ;;  %v9487_v18 = vld [vmem:[%s11080_s1 + $0x410] ss:$8 sps:$4 sm:$0xff]  }
 0x21c   : > { %4316 = vmatprep.subr.bf16.mxu0 %v9384_v27  ;;  %6045 = vmatprep.subr.bf16.mxu1 %v9384_v27 }
 0x21f   : > { %4317 = vmatpush1.bf16.msra.mxu0 %v9382_v28  ;;  %6046 = vmatpush1.bf16.msra.mxu1 %v9382_v28 }
 0x220   : > { %4318 = vmatprep.subr.bf16.mxu0 %v9387_v29  ;;  %6047 = vmatprep.subr.bf16.mxu1 %v9387_v29 }
 0x223   : > { %4319 = vmatpush1.bf16.msra.mxu0 %v9385_v30  ;;  %6048 = vmatpush1.bf16.msra.mxu1 %v9385_v30 }
 0x224   : > { %4329 = vmatprep.subr.bf16.mxu0 %v9392_v31  ;;  %6058 = vmatprep.subr.bf16.mxu1 %v9392_v31 }
 0x226   : > { %4321 = vmatmul.mubr.bf16.vlgmr.msra.gmra.mrb[4].mxu0 %v8082_v32  ;;  %6050 = vmatmul.mubr.bf16.vlgmr.msra.gmra.mrb[4].mxu1 %v8476_v33 }
 0x227   : > { %4330 = vmatpush1.bf16.msra.mxu0 %v9390_v34  ;;  %6059 = vmatpush1.bf16.msra.mxu1 %v9390_v34 }
 0x228   : > { %4331 = vmatprep.subr.bf16.mxu0 %v9397_v35  ;;  %6060 = vmatprep.subr.bf16.mxu1 %v9397_v35  ;;  %v9448_v35 = vld [vmem:[%s11080_s1 + $0x360] ss:$8 sps:$4 sm:$0xff]  }
 0x229   : > { %4361 = vmatprep.mubr.bf16.mxu0 %v9614_v47  ;;  %6090 = vmatprep.mubr.bf16.mxu1 %v9614_v47 }
 0x22b   : > { %4332 = vmatpush1.bf16.msra.mxu0 %v9395_v36  ;;  %6061 = vmatpush1.bf16.msra.mxu1 %v9395_v36 }
 0x22c   : > { %4333 = vmatprep.subr.bf16.mxu0 %v9400_v37  ;;  %6062 = vmatprep.subr.bf16.mxu1 %v9400_v37 }
 0x22f   : > { %4334 = vmatpush1.bf16.msra.mxu0 %v9398_v38  ;;  %6063 = vmatpush1.bf16.msra.mxu1 %v9398_v38 }
 0x230   : > { %4335 = vmatprep.subr.bf16.mxu0 %v9403_v39  ;;  %6064 = vmatprep.subr.bf16.mxu1 %v9403_v39 }
 0x233   : > { %4336 = vmatpush1.bf16.msra.mxu0 %v9401_v42  ;;  %6065 = vmatpush1.bf16.msra.mxu1 %v9401_v42  ;;  %v9453_v42 = vld [vmem:[%s11080_s1 + $0x374] ss:$8 sps:$4 sm:$0xff]  }
 0x234   : > { %4628 = vmatprep.subr.bf16.mxu0 %v9406_v43  ;;  %6357 = vmatprep.subr.bf16.mxu1 %v9406_v43 }
 0x236   : > { %8125 = vmatmul.mubr.msk.bf16.vlgmr.msra.gmra.mrb[4].mxu0 %vm507_vm0, %v9407_v46  ;;  %8519 = vmatmul.mubr.msk.bf16.vlgmr.msra.gmra.mrb[4].mxu1 %vm507_vm0, %v9408_v48  ;;  %v8168_v48 = vcombine.low %v10620_v40, %v10620_v40  ;;  %v9458_v40 = vld [vmem:[%s11080_s1 + $0x384] ss:$8 sps:$4 sm:$0xff]  }
 0x237   : > { %4629 = vmatpush1.bf16.msra.mxu0 %v9404_v49  ;;  %6358 = vmatpush1.bf16.msra.mxu1 %v9404_v49  ;;  %v8562_v49 = vcombine.low %v10623_v41, %v10623_v41 }
 0x238   : > { %4630 = vmatprep.subr.bf16.mxu0 %v9411_v50  ;;  %6359 = vmatprep.subr.bf16.mxu1 %v9411_v50 }
 0x239   : > { %4660 = vmatprep.mubr.bf16.mxu0 %v4421_v51  ;;  %6389 = vmatprep.mubr.bf16.mxu1 %v6150_v52  ;;  %v9451_v52 = vld [vmem:[%s11080_s1 + $0x370] ss:$8 sps:$4 sm:$0xff]  }
 0x23b   : > { %4631 = vmatpush1.bf16.msra.mxu0 %v9409_v53  ;;  %6360 = vmatpush1.bf16.msra.mxu1 %v9409_v53 }
 0x23c   : > { %4632 = vmatprep.subr.bf16.mxu0 %v9414_v54  ;;  %6361 = vmatprep.subr.bf16.mxu1 %v9414_v54  ;;  %v4420_v54 = vrot.slane %v8168_v48, 2  ;;  %v9525_v48 = vld [vmem:[%s11080_s1 + $0x4c4] ss:$8 sps:$4 sm:$0xff]  }
 0x23f   : > { %4633 = vmatpush1.bf16.msra.mxu0 %v9412_v55  ;;  %6362 = vmatpush1.bf16.msra.mxu1 %v9412_v55  ;;  %v6149_v55 = vrot.slane %v8562_v49, 2 }
 0x240   : > { %4634 = vmatprep.subr.bf16.mxu0 %v9417_v56  ;;  %6363 = vmatprep.subr.bf16.mxu1 %v9417_v56  ;;  %v9456_v56 = vld [vmem:[%s11080_s1 + $0x380] ss:$8 sps:$4 sm:$0xff]  }
 0x243   : > { %4635 = vmatpush1.bf16.msra.mxu0 %v9415_v57  ;;  %6364 = vmatpush1.bf16.msra.mxu1 %v9415_v57  ;;  %v9463_v57 = vld [vmem:[%s11080_s1 + $0x394] ss:$8 sps:$4 sm:$0xff]  }
 0x244   : > { %4636 = vmatprep.subr.bf16.mxu0 %v9420_v58  ;;  %6365 = vmatprep.subr.bf16.mxu1 %v9420_v58  ;;  %v9461_v58 = vld [vmem:[%s11080_s1 + $0x390] ss:$8 sps:$4 sm:$0xff]  }
 0x247   : > { %4637 = vmatpush1.bf16.msra.mxu0 %v9418_v59  ;;  %6366 = vmatpush1.bf16.msra.mxu1 %v9418_v59  ;;  %v9466_v59 = vld [vmem:[%s11080_s1 + $0x3a4] ss:$8 sps:$4 sm:$0xff]  }
 0x248   : > { %4638 = vmatprep.subr.bf16.mxu0 %v9423_v60  ;;  %6367 = vmatprep.subr.bf16.mxu1 %v9423_v60  ;;  %v9464_v60 = vld [vmem:[%s11080_s1 + $0x3a0] ss:$8 sps:$4 sm:$0xff]  }
 0x24b   : > { %4639 = vmatpush1.bf16.msra.mxu0 %v9421_v61  ;;  %6368 = vmatpush1.bf16.msra.mxu1 %v9421_v61  ;;  %v9469_v61 = vld [vmem:[%s11080_s1 + $0x3b4] ss:$8 sps:$4 sm:$0xff]  }
 0x24c   : > { %4640 = vmatprep.subr.bf16.mxu0 %v9426_v62  ;;  %6369 = vmatprep.subr.bf16.mxu1 %v9426_v62  ;;  %v9473_v62 = vld [vmem:[%s9687_s18 + $0x38] ss:$0 sps:$4 sm:$0xcc]  }
 0x24f   : > { %4641 = vmatpush1.bf16.msra.mxu0 %v9424_v63  ;;  %6370 = vmatpush1.bf16.msra.mxu1 %v9424_v63  ;;  %v9474_v63 = vld [vmem:[%s9687_s18 + $0x50] ss:$0 sps:$4 sm:$0xcc]  }
 0x250   : > { %4642 = vmatprep.subr.bf16.mxu0 %v9429_v0  ;;  %6371 = vmatprep.subr.bf16.mxu1 %v9429_v0  ;;  %v9467_v0 = vld [vmem:[%s11080_s1 + $0x3b0] ss:$8 sps:$4 sm:$0xff]  }
 0x253   : > { %4643 = vmatpush1.bf16.msra.mxu0 %v9427_v1  ;;  %6372 = vmatpush1.bf16.msra.mxu1 %v9427_v1  ;;  %v9472_v1 = vld [vmem:[%s11080_s1 + $0x3c4] ss:$8 sps:$4 sm:$0xff]  }
 0x254   : > { %4644 = vmatprep.subr.bf16.mxu0 %v9432_v2  ;;  %6373 = vmatprep.subr.bf16.mxu1 %v9432_v2  ;;  %v9522_v2 = vld [vmem:[%s9687_s18 + $0x34] ss:$12 sps:$4 sm:$0x18]  }
 0x257   : > { %4645 = vmatpush1.bf16.msra.mxu0 %v9430_v3  ;;  %6374 = vmatpush1.bf16.msra.mxu1 %v9430_v3  ;;  %v9528_v3 = vld [vmem:[%s9687_s18 + $0x4c] ss:$12 sps:$4 sm:$0x18]  }
 0x258   : > { %4646 = vmatprep.subr.bf16.mxu0 %v9435_v4  ;;  %6375 = vmatprep.subr.bf16.mxu1 %v9435_v4  ;;  %v4422_v4 = vrot.slane %v9473_v62, 2  ;;  %v10931_v62 = vld [vmem:[%s9687_s18 + $0x54] sm:$0x33] }
 0x25b   : > { %4647 = vmatpush1.bf16.msra.mxu0 %v9433_v5  ;;  %6376 = vmatpush1.bf16.msra.mxu1 %v9433_v5  ;;  %v6151_v5 = vrot.slane %v9474_v63, 2  ;;  %v9538_v63 = vld [vmem:[%s11080_s1 + $0x500] ss:$8 sps:$4 sm:$0xff]  }
 0x25c   : > { %4648 = vmatprep.subr.bf16.mxu0 %v9438_v6  ;;  %6377 = vmatprep.subr.bf16.mxu1 %v9438_v6  ;;  %v9470_v6 = vld [vmem:[%s11080_s1 + $0x3c0] ss:$8 sps:$4 sm:$0xff]  }
 0x25f   : > { %4649 = vmatpush1.bf16.msra.mxu0 %v9436_v8  ;;  %6378 = vmatpush1.bf16.msra.mxu1 %v9436_v8  ;;  %v4770_v8 = vrot.slane %v9522_v2, 3  ;;  %v8737_v2 = vcombine.high %v10931_v62, %v10931_v62 }
 0x260   : > { %4650 = vmatprep.subr.bf16.mxu0 %v9441_v9  ;;  %6379 = vmatprep.subr.bf16.mxu1 %v9441_v9  ;;  %v6499_v9 = vrot.slane %v9528_v3, 3  ;;  %v9543_v3 = vld [vmem:[%s11080_s1 + $0x510] ss:$8 sps:$4 sm:$0xff]  }
 0x263   : > { %4651 = vmatpush1.bf16.msra.mxu0 %v9439_v11  ;;  %6380 = vmatpush1.bf16.msra.mxu1 %v9439_v11  ;;  %v9480_v11 = vld [vmem:[%s11080_s1 + $0x3e4] ss:$8 sps:$4 sm:$0xff]  }
 0x264   : > { %4652 = vmatprep.subr.bf16.mxu0 %v9444_v12  ;;  %6381 = vmatprep.subr.bf16.mxu1 %v9444_v12  ;;  %v9478_v12 = vld [vmem:[%s11080_s1 + $0x3e0] ss:$8 sps:$4 sm:$0xff]  }
 0x267   : > { %4653 = vmatpush1.bf16.msra.mxu0 %v9442_v14  ;;  %6382 = vmatpush1.bf16.msra.mxu1 %v9442_v14  ;;  %v9481_v14 = vld [vmem:[%s11080_s1 + $0x3f0] ss:$8 sps:$4 sm:$0xff]  }
 0x268   : > { %4654 = vmatprep.subr.bf16.mxu0 %v9447_v17  ;;  %6383 = vmatprep.subr.bf16.mxu1 %v9447_v17  ;;  %v9489_v17 = vld [vmem:[%s11080_s1 + $0x414] ss:$8 sps:$4 sm:$0xff]  }
 0x269   : > { %v1912_v24 = vpop.f32.mrb[0].mxu0  ;;  %v3662_v25 = vpop.f32.mrb[0].mxu1 }
 0x26a   : > { %v1932_v27 = vmul.f32 %v10723_v19, %v1912_v24  ;;  %v3671_v28 = vmul.f32 %v3662_v25, %v10723_v19  ;;  %v1914_v29 = vpop.f32.mrb[1].mxu0  ;;  %v3664_v30 = vpop.f32.mrb[1].mxu1  ;;  %v9495_v24 = vld [vmem:[%s11080_s1 + $0x434] ss:$8 sps:$4 sm:$0xff]   ;;  %v9493_v25 = vld [vmem:[%s11080_s1 + $0x430] ss:$8 sps:$4 sm:$0xff]  }
 0x26b   : > { %v1933_v31 = vmul.f32 %v10725_v20, %v1914_v29  ;;  %v3672_v32 = vmul.f32 %v3664_v30, %v10725_v20  ;;  %v1916_v33 = vpop.f32.mrb[2].mxu0  ;;  %v3666_v34 = vpop.f32.mrb[2].mxu1  ;;  %4655 = vmatpush1.bf16.msra.mxu0 %v9445_v21  ;;  %6384 = vmatpush1.bf16.msra.mxu1 %v9445_v21  ;;  %v9492_v21 = vld [vmem:[%s11080_s1 + $0x424] ss:$8 sps:$4 sm:$0xff]   ;;  %v9501_v29 = vld [vmem:[%s11080_s1 + $0x454] ss:$8 sps:$4 sm:$0xff]  }
 0x26c   : > { %v1945_v36 = vadd.f32 %v10730_v22, %v1932_v27  ;;  %v3673_v37 = vadd.f32 %v3671_v28, %v10730_v22  ;;  %v1917_v38 = vpop.f32.mrb[3].mxu0  ;;  %v3667_v39 = vpop.f32.mrb[3].mxu1  ;;  %4656 = vmatprep.subr.bf16.mxu0 %v9450_v23  ;;  %6385 = vmatprep.subr.bf16.mxu1 %v9450_v23  ;;  %v9490_v23 = vld [vmem:[%s11080_s1 + $0x420] ss:$8 sps:$4 sm:$0xff]   ;;  %v9498_v27 = vld [vmem:[%s11080_s1 + $0x444] ss:$8 sps:$4 sm:$0xff]  }
 0x26d   : > { %v1946_v43 = vadd.f32 %v10735_v26, %v1933_v31  ;;  %v3674_v44 = vadd.f32 %v3672_v32, %v10735_v26  ;;  %v9496_v28 = vld [vmem:[%s11080_s1 + $0x440] ss:$8 sps:$4 sm:$0xff]   ;;  %v9499_v30 = vld [vmem:[%s11080_s1 + $0x450] ss:$8 sps:$4 sm:$0xff]   ;;  %v9504_v31 = vld [vmem:[%s11080_s1 + $0x464] ss:$8 sps:$4 sm:$0xff]  }
 0x26e   : > { %v1947_v45 = vmax.f32 %v1945_v36, 0.0  ;;  %v3675_v46 = vmax.f32 %v3673_v37, 0.0  ;;  %v9502_v32 = vld [vmem:[%s11080_s1 + $0x460] ss:$8 sps:$4 sm:$0xff]   ;;  %v9507_v33 = vld [vmem:[%s11080_s1 + $0x474] ss:$8 sps:$4 sm:$0xff]  }
 0x26f   : > { %v1948_v50 = vmax.f32 %v1946_v43, 0.0  ;;  %v3676_v51 = vmax.f32 %v3674_v44, 0.0  ;;  %4657 = vmatpush1.bf16.msra.mxu0 %v9448_v35  ;;  %6386 = vmatpush1.bf16.msra.mxu1 %v9448_v35  ;;  %v9505_v34 = vld [vmem:[%s11080_s1 + $0x470] ss:$8 sps:$4 sm:$0xff]   ;;  %v9510_v35 = vld [vmem:[%s11080_s1 + $0x484] ss:$8 sps:$4 sm:$0xff]  }
 0x270   : > { %4658 = vmatprep.subr.bf16.mxu0 %v9453_v42  ;;  %6387 = vmatprep.subr.bf16.mxu1 %v9453_v42  ;;  %v9508_v36 = vld [vmem:[%s11080_s1 + $0x480] ss:$8 sps:$4 sm:$0xff]   ;;  %v9513_v37 = vld [vmem:[%s11080_s1 + $0x494] ss:$8 sps:$4 sm:$0xff]   ;;  %v9511_v38 = vld [vmem:[%s11080_s1 + $0x490] ss:$8 sps:$4 sm:$0xff]  }
 0x271   : > { %v7598_v41 = vpack.c.bf16 %v1948_v50, %v1947_v45  ;;  %v7992_v53 = vpack.c.bf16 %v3676_v51, %v3675_v46  ;;  %v9516_v39 = vld [vmem:[%s11080_s1 + $0x4a4] ss:$8 sps:$4 sm:$0xff]   ;;  %v9514_v42 = vld [vmem:[%s11080_s1 + $0x4a0] ss:$8 sps:$4 sm:$0xff]   ;;  %v9519_v43 = vld [vmem:[%s11080_s1 + $0x4b4] ss:$8 sps:$4 sm:$0xff]  }
 0x272   : > { %v9520_v44 = vld [vmem:[%s9687_s18 + $0x30] ss:$12 sps:$4 sm:$0x18]   ;;  %v9526_v45 = vld [vmem:[%s9687_s18 + $0x48] ss:$12 sps:$4 sm:$0x18]  }
 0x273   : > { %7599 = vst.sshfl [vmem:[%s10762_s30] sm:$0x33 pattern:$0x76325410] %v7598_v41  ;;  %4659 = vmatpush1.bf16.msra.mxu0 %v9451_v52  ;;  %6388 = vmatpush1.bf16.msra.mxu1 %v9451_v52  ;;  %v9517_v46 = vld [vmem:[%s11080_s1 + $0x4b0] ss:$8 sps:$4 sm:$0xff]   ;;  %v4769_v49 = vrot.slane %v9520_v44, 3 }
 0x274   : > { %8785 = vst.sshfl [vmem:[%s10762_s30 + $0x4] sm:$0x33 pattern:$0x76325410] %v7992_v53  ;;  %4669 = vmatprep.subr.bf16.mxu0 %v9458_v40  ;;  %6398 = vmatprep.subr.bf16.mxu1 %v9458_v40  ;;  %v6498_v50 = vrot.slane %v9526_v45, 3 }
 0x275   : > { %v9523_v51 = vld [vmem:[%s11080_s1 + $0x4c0] ss:$8 sps:$4 sm:$0xff]   ;;  %v9531_v52 = vld [vmem:[%s11080_s1 + $0x4d4] ss:$8 sps:$4 sm:$0xff]   ;;  %v9529_v40 = vld [vmem:[%s11080_s1 + $0x4d0] ss:$8 sps:$4 sm:$0xff]  }
 0x276   : > { %4661 = vmatmul.mubr.bf16.vlgmr.msra.gmra.mrb[4].mxu0 %v4420_v54  ;;  %6390 = vmatmul.mubr.bf16.vlgmr.msra.gmra.mrb[4].mxu1 %v6149_v55  ;;  %v9534_v41 = vld [vmem:[%s11080_s1 + $0x4e4] ss:$8 sps:$4 sm:$0xff]   ;;  %v9532_v53 = vld [vmem:[%s11080_s1 + $0x4e0] ss:$8 sps:$4 sm:$0xff]   ;;  %v9537_v54 = vld [vmem:[%s11080_s1 + $0x4f4] ss:$8 sps:$4 sm:$0xff]  }
 0x277   : > { %4670 = vmatpush1.bf16.msra.mxu0 %v9456_v56  ;;  %6399 = vmatpush1.bf16.msra.mxu1 %v9456_v56  ;;  %v9541_v55 = vld [vmem:[%s9687_s18 + $0x38] ss:$12 sps:$4 sm:$0x18]   ;;  %v9542_v56 = vld [vmem:[%s9687_s18 + $0x50] ss:$12 sps:$4 sm:$0x18]  }
 0x278   : > { %4671 = vmatprep.subr.bf16.mxu0 %v9463_v57  ;;  %6400 = vmatprep.subr.bf16.mxu1 %v9463_v57  ;;  %v9535_v57 = vld [vmem:[%s11080_s1 + $0x4f0] ss:$8 sps:$4 sm:$0xff]   ;;  %v9600_v44 = vld [vmem:[%s11080_s1 + $0x624] ss:$8 sps:$4 sm:$0xff]   ;;  %v9598_v45 = vld [vmem:[%s11080_s1 + $0x620] ss:$8 sps:$4 sm:$0xff]  }
 0x279   : > { %4701 = vmatprep.mubr.bf16.mxu0 %v9614_v47  ;;  %6430 = vmatprep.mubr.bf16.mxu1 %v9614_v47 }
 0x27b   : > { %4672 = vmatpush1.bf16.msra.mxu0 %v9461_v58  ;;  %6401 = vmatpush1.bf16.msra.mxu1 %v9461_v58  ;;  %v9540_v58 = vld [vmem:[%s11080_s1 + $0x504] ss:$8 sps:$4 sm:$0xff]  }
 0x27c   : > { %4673 = vmatprep.subr.bf16.mxu0 %v9466_v59  ;;  %6402 = vmatprep.subr.bf16.mxu1 %v9466_v59  ;;  %v4771_v59 = vrot.slane %v9541_v55, 3 }
 0x27f   : > { %4674 = vmatpush1.bf16.msra.mxu0 %v9464_v60  ;;  %6403 = vmatpush1.bf16.msra.mxu1 %v9464_v60  ;;  %v6500_v60 = vrot.slane %v9542_v56, 3 }
 0x280   : > { %4675 = vmatprep.subr.bf16.mxu0 %v9469_v61  ;;  %6404 = vmatprep.subr.bf16.mxu1 %v9469_v61  ;;  %v10928_v61 = vld [vmem:[%s9687_s18 + $0x3c] sm:$0x33] }
 0x283   : > { %4676 = vmatpush1.bf16.msra.mxu0 %v9467_v0  ;;  %6405 = vmatpush1.bf16.msra.mxu1 %v9467_v0  ;;  %v9545_v0 = vld [vmem:[%s11080_s1 + $0x514] ss:$8 sps:$4 sm:$0xff]  }
 0x284   : > { %4977 = vmatprep.subr.bf16.mxu0 %v9472_v1  ;;  %6706 = vmatprep.subr.bf16.mxu1 %v9472_v1  ;;  %v8343_v1 = vcombine.high %v10928_v61, %v10928_v61 }
 0x286   : > { %8211 = vmatmul.mubr.msk.bf16.vlgmr.msra.gmra.mrb[4].mxu0 %vm507_vm0, %v4422_v4  ;;  %8605 = vmatmul.mubr.msk.bf16.vlgmr.msra.gmra.mrb[4].mxu1 %vm507_vm0, %v6151_v5  ;;  %v9548_v4 = vld [vmem:[%s11080_s1 + $0x524] ss:$8 sps:$4 sm:$0xff]   ;;  %v9546_v5 = vld [vmem:[%s11080_s1 + $0x520] ss:$8 sps:$4 sm:$0xff]  }
 0x287   : > { %4978 = vmatpush1.bf16.msra.mxu0 %v9470_v6  ;;  %6707 = vmatpush1.bf16.msra.mxu1 %v9470_v6  ;;  %v9551_v6 = vld [vmem:[%s11080_s1 + $0x534] ss:$8 sps:$4 sm:$0xff]  }
 0x288   : > { %4979 = vmatprep.subr.bf16.mxu0 %v9477_v7  ;;  %6708 = vmatprep.subr.bf16.mxu1 %v9477_v7  ;;  %v9549_v7 = vld [vmem:[%s11080_s1 + $0x530] ss:$8 sps:$4 sm:$0xff]  }
 0x289   : > { %5009 = vmatprep.mubr.bf16.mxu0 %v4770_v8  ;;  %6738 = vmatprep.mubr.bf16.mxu1 %v6499_v9  ;;  %v9554_v8 = vld [vmem:[%s11080_s1 + $0x544] ss:$8 sps:$4 sm:$0xff]   ;;  %v9552_v9 = vld [vmem:[%s11080_s1 + $0x540] ss:$8 sps:$4 sm:$0xff]  }
 0x28b   : > { %4980 = vmatpush1.bf16.msra.mxu0 %v9475_v10  ;;  %6709 = vmatpush1.bf16.msra.mxu1 %v9475_v10  ;;  %v9557_v10 = vld [vmem:[%s11080_s1 + $0x554] ss:$8 sps:$4 sm:$0xff]  }
 0x28c   : > { %4981 = vmatprep.subr.bf16.mxu0 %v9480_v11  ;;  %6710 = vmatprep.subr.bf16.mxu1 %v9480_v11  ;;  %v9555_v11 = vld [vmem:[%s11080_s1 + $0x550] ss:$8 sps:$4 sm:$0xff]  }
 0x28f   : > { %4982 = vmatpush1.bf16.msra.mxu0 %v9478_v12  ;;  %6711 = vmatpush1.bf16.msra.mxu1 %v9478_v12  ;;  %v9560_v12 = vld [vmem:[%s11080_s1 + $0x564] ss:$8 sps:$4 sm:$0xff]  }
 0x290   : > { %4983 = vmatprep.subr.bf16.mxu0 %v9483_v13  ;;  %6712 = vmatprep.subr.bf16.mxu1 %v9483_v13  ;;  %v9558_v13 = vld [vmem:[%s11080_s1 + $0x560] ss:$8 sps:$4 sm:$0xff]  }
 0x293   : > { %4984 = vmatpush1.bf16.msra.mxu0 %v9481_v14  ;;  %6713 = vmatpush1.bf16.msra.mxu1 %v9481_v14  ;;  %v9563_v14 = vld [vmem:[%s11080_s1 + $0x574] ss:$8 sps:$4 sm:$0xff]  }
 0x294   : > { %4985 = vmatprep.subr.bf16.mxu0 %v9486_v15  ;;  %6714 = vmatprep.subr.bf16.mxu1 %v9486_v15  ;;  %v9561_v15 = vld [vmem:[%s11080_s1 + $0x570] ss:$8 sps:$4 sm:$0xff]  }
 0x297   : > { %4986 = vmatpush1.bf16.msra.mxu0 %v9484_v16  ;;  %6715 = vmatpush1.bf16.msra.mxu1 %v9484_v16  ;;  %v9566_v16 = vld [vmem:[%s11080_s1 + $0x584] ss:$8 sps:$4 sm:$0xff]  }
 0x298   : > { %4987 = vmatprep.subr.bf16.mxu0 %v9489_v17  ;;  %6716 = vmatprep.subr.bf16.mxu1 %v9489_v17  ;;  %v9564_v17 = vld [vmem:[%s11080_s1 + $0x580] ss:$8 sps:$4 sm:$0xff]  }
 0x29b   : > { %4988 = vmatpush1.bf16.msra.mxu0 %v9487_v18  ;;  %6717 = vmatpush1.bf16.msra.mxu1 %v9487_v18  ;;  %v9569_v18 = vld [vmem:[%s11080_s1 + $0x594] ss:$8 sps:$4 sm:$0xff]  }
 0x29c   : > { %4989 = vmatprep.subr.bf16.mxu0 %v9492_v21  ;;  %6718 = vmatprep.subr.bf16.mxu1 %v9492_v21  ;;  %v9567_v21 = vld [vmem:[%s11080_s1 + $0x590] ss:$8 sps:$4 sm:$0xff]  }
 0x29f   : > { %4990 = vmatpush1.bf16.msra.mxu0 %v9490_v23  ;;  %6719 = vmatpush1.bf16.msra.mxu1 %v9490_v23  ;;  %v9572_v23 = vld [vmem:[%s11080_s1 + $0x5a4] ss:$8 sps:$4 sm:$0xff]  }
 0x2a0   : > { %4991 = vmatprep.subr.bf16.mxu0 %v9495_v24  ;;  %6720 = vmatprep.subr.bf16.mxu1 %v9495_v24  ;;  %v9570_v24 = vld [vmem:[%s11080_s1 + $0x5a0] ss:$8 sps:$4 sm:$0xff]  }
 0x2a3   : > { %4992 = vmatpush1.bf16.msra.mxu0 %v9493_v25  ;;  %6721 = vmatpush1.bf16.msra.mxu1 %v9493_v25  ;;  %v9575_v25 = vld [vmem:[%s11080_s1 + $0x5b4] ss:$8 sps:$4 sm:$0xff]  }
 0x2a4   : > { %4993 = vmatprep.subr.bf16.mxu0 %v9498_v27  ;;  %6722 = vmatprep.subr.bf16.mxu1 %v9498_v27  ;;  %v9573_v27 = vld [vmem:[%s11080_s1 + $0x5b0] ss:$8 sps:$4 sm:$0xff]  }
 0x2a7   : > { %4994 = vmatpush1.bf16.msra.mxu0 %v9496_v28  ;;  %6723 = vmatpush1.bf16.msra.mxu1 %v9496_v28  ;;  %v9578_v28 = vld [vmem:[%s11080_s1 + $0x5c4] ss:$8 sps:$4 sm:$0xff]  }
 0x2a8   : > { %4995 = vmatprep.subr.bf16.mxu0 %v9501_v29  ;;  %6724 = vmatprep.subr.bf16.mxu1 %v9501_v29  ;;  %v9576_v29 = vld [vmem:[%s11080_s1 + $0x5c0] ss:$8 sps:$4 sm:$0xff]  }
 0x2ab   : > { %4996 = vmatpush1.bf16.msra.mxu0 %v9499_v30  ;;  %6725 = vmatpush1.bf16.msra.mxu1 %v9499_v30  ;;  %v9581_v30 = vld [vmem:[%s11080_s1 + $0x5d4] ss:$8 sps:$4 sm:$0xff]  }
 0x2ac   : > { %4997 = vmatprep.subr.bf16.mxu0 %v9504_v31  ;;  %6726 = vmatprep.subr.bf16.mxu1 %v9504_v31  ;;  %v9579_v31 = vld [vmem:[%s11080_s1 + $0x5d0] ss:$8 sps:$4 sm:$0xff]  }
 0x2af   : > { %4998 = vmatpush1.bf16.msra.mxu0 %v9502_v32  ;;  %6727 = vmatpush1.bf16.msra.mxu1 %v9502_v32  ;;  %v9584_v32 = vld [vmem:[%s11080_s1 + $0x5e4] ss:$8 sps:$4 sm:$0xff]  }
 0x2b0   : > { %4999 = vmatprep.subr.bf16.mxu0 %v9507_v33  ;;  %6728 = vmatprep.subr.bf16.mxu1 %v9507_v33  ;;  %v9582_v33 = vld [vmem:[%s11080_s1 + $0x5e0] ss:$8 sps:$4 sm:$0xff]  }
 0x2b3   : > { %5000 = vmatpush1.bf16.msra.mxu0 %v9505_v34  ;;  %6729 = vmatpush1.bf16.msra.mxu1 %v9505_v34  ;;  %v9587_v34 = vld [vmem:[%s11080_s1 + $0x5f4] ss:$8 sps:$4 sm:$0xff]  }
 0x2b4   : > { %5001 = vmatprep.subr.bf16.mxu0 %v9510_v35  ;;  %6730 = vmatprep.subr.bf16.mxu1 %v9510_v35  ;;  %v9585_v35 = vld [vmem:[%s11080_s1 + $0x5f0] ss:$8 sps:$4 sm:$0xff]  }
 0x2b7   : > { %5002 = vmatpush1.bf16.msra.mxu0 %v9508_v36  ;;  %6731 = vmatpush1.bf16.msra.mxu1 %v9508_v36  ;;  %v9592_v36 = vld [vmem:[%s11080_s1 + $0x604] ss:$8 sps:$4 sm:$0xff]  }
 0x2b8   : > { %5003 = vmatprep.subr.bf16.mxu0 %v9513_v37  ;;  %6732 = vmatprep.subr.bf16.mxu1 %v9513_v37  ;;  %v8342_v37 = vcombine.low %v10928_v61, %v10928_v61 }
 0x2bb   : > { %5004 = vmatpush1.bf16.msra.mxu0 %v9511_v38  ;;  %6733 = vmatpush1.bf16.msra.mxu1 %v9511_v38  ;;  %v8736_v38 = vcombine.low %v10931_v62, %v10931_v62 }
 0x2bc   : > { %5005 = vmatprep.subr.bf16.mxu0 %v9516_v39  ;;  %6734 = vmatprep.subr.bf16.mxu1 %v9516_v39  ;;  %v9590_v39 = vld [vmem:[%s11080_s1 + $0x600] ss:$8 sps:$4 sm:$0xff]  }
 0x2bf   : > { %5006 = vmatpush1.bf16.msra.mxu0 %v9514_v42  ;;  %6735 = vmatpush1.bf16.msra.mxu1 %v9514_v42  ;;  %v9597_v42 = vld [vmem:[%s11080_s1 + $0x614] ss:$8 sps:$4 sm:$0xff]  }
 0x2c0   : > { %5007 = vmatprep.subr.bf16.mxu0 %v9519_v43  ;;  %6736 = vmatprep.subr.bf16.mxu1 %v9519_v43  ;;  %v9595_v43 = vld [vmem:[%s11080_s1 + $0x610] ss:$8 sps:$4 sm:$0xff]  }
 0x2c3   : > { %5008 = vmatpush1.bf16.msra.mxu0 %v9517_v46  ;;  %6737 = vmatpush1.bf16.msra.mxu1 %v9517_v46  ;;  %v9603_v46 = vld [vmem:[%s11080_s1 + $0x634] ss:$8 sps:$4 sm:$0xff]  }
 0x2c4   : > { %5018 = vmatprep.subr.bf16.mxu0 %v9525_v48  ;;  %6747 = vmatprep.subr.bf16.mxu1 %v9525_v48  ;;  %v9601_v48 = vld [vmem:[%s11080_s1 + $0x630] ss:$8 sps:$4 sm:$0xff]  }
 0x2c6   : > { %5010 = vmatmul.mubr.bf16.vlgmr.msra.gmra.mrb[4].mxu0 %v4769_v49  ;;  %6739 = vmatmul.mubr.bf16.vlgmr.msra.gmra.mrb[4].mxu1 %v6498_v50  ;;  %v9605_v49 = vld [vmem:[%s9687_s18 + $0x5c] ss:$0 sps:$4 sm:$0x33]  }
 0x2c7   : > { %5019 = vmatpush1.bf16.msra.mxu0 %v9523_v51  ;;  %6748 = vmatpush1.bf16.msra.mxu1 %v9523_v51 }
 0x2c8   : > { %5020 = vmatprep.subr.bf16.mxu0 %v9531_v52  ;;  %6749 = vmatprep.subr.bf16.mxu1 %v9531_v52 }
 0x2c9   : > { %5050 = vmatprep.mubr.bf16.mxu0 %v9614_v47  ;;  %6779 = vmatprep.mubr.bf16.mxu1 %v9614_v47 }
 0x2cb   : > { %5021 = vmatpush1.bf16.msra.mxu0 %v9529_v40  ;;  %6750 = vmatpush1.bf16.msra.mxu1 %v9529_v40 }
 0x2cc   : > { %5022 = vmatprep.subr.bf16.mxu0 %v9534_v41  ;;  %6751 = vmatprep.subr.bf16.mxu1 %v9534_v41 }
 0x2cf   : > { %5023 = vmatpush1.bf16.msra.mxu0 %v9532_v53  ;;  %6752 = vmatpush1.bf16.msra.mxu1 %v9532_v53 }
 0x2d0   : > { %5024 = vmatprep.subr.bf16.mxu0 %v9537_v54  ;;  %6753 = vmatprep.subr.bf16.mxu1 %v9537_v54 }
 0x2d3   : > { %5025 = vmatpush1.bf16.msra.mxu0 %v9535_v57  ;;  %6754 = vmatpush1.bf16.msra.mxu1 %v9535_v57 }
 0x2d4   : > { %5316 = vmatprep.subr.bf16.mxu0 %v9540_v58  ;;  %7045 = vmatprep.subr.bf16.mxu1 %v9540_v58 }
 0x2d6   : > { %8299 = vmatmul.mubr.msk.bf16.vlgmr.msra.gmra.mrb[4].mxu0 %vm507_vm0, %v4771_v59  ;;  %8693 = vmatmul.mubr.msk.bf16.vlgmr.msra.gmra.mrb[4].mxu1 %vm507_vm0, %v6500_v60 }
 0x2d7   : > { %5317 = vmatpush1.bf16.msra.mxu0 %v9538_v63  ;;  %7046 = vmatpush1.bf16.msra.mxu1 %v9538_v63 }
 0x2d8   : > { %5318 = vmatprep.subr.bf16.mxu0 %v9545_v0  ;;  %7047 = vmatprep.subr.bf16.mxu1 %v9545_v0 }
 0x2d9   : > { %5348 = vmatprep.mubr.bf16.mxu0 %v8343_v1  ;;  %7077 = vmatprep.mubr.bf16.mxu1 %v8737_v2 }
 0x2db   : > { %5319 = vmatpush1.bf16.msra.mxu0 %v9543_v3  ;;  %7048 = vmatpush1.bf16.msra.mxu1 %v9543_v3 }
 0x2dc   : > { %5320 = vmatprep.subr.bf16.mxu0 %v9548_v4  ;;  %7049 = vmatprep.subr.bf16.mxu1 %v9548_v4 }
 0x2df   : > { %5321 = vmatpush1.bf16.msra.mxu0 %v9546_v5  ;;  %7050 = vmatpush1.bf16.msra.mxu1 %v9546_v5 }
 0x2e0   : > { %5322 = vmatprep.subr.bf16.mxu0 %v9551_v6  ;;  %7051 = vmatprep.subr.bf16.mxu1 %v9551_v6 }
 0x2e3   : > { %5323 = vmatpush1.bf16.msra.mxu0 %v9549_v7  ;;  %7052 = vmatpush1.bf16.msra.mxu1 %v9549_v7 }
 0x2e4   : > { %5324 = vmatprep.subr.bf16.mxu0 %v9554_v8  ;;  %7053 = vmatprep.subr.bf16.mxu1 %v9554_v8 }
 0x2e7   : > { %5325 = vmatpush1.bf16.msra.mxu0 %v9552_v9  ;;  %7054 = vmatpush1.bf16.msra.mxu1 %v9552_v9 }
 0x2e8   : > { %5326 = vmatprep.subr.bf16.mxu0 %v9557_v10  ;;  %7055 = vmatprep.subr.bf16.mxu1 %v9557_v10 }
 0x2eb   : > { %5327 = vmatpush1.bf16.msra.mxu0 %v9555_v11  ;;  %7056 = vmatpush1.bf16.msra.mxu1 %v9555_v11 }
 0x2ec   : > { %5328 = vmatprep.subr.bf16.mxu0 %v9560_v12  ;;  %7057 = vmatprep.subr.bf16.mxu1 %v9560_v12 }
 0x2ef   : > { %5329 = vmatpush1.bf16.msra.mxu0 %v9558_v13  ;;  %7058 = vmatpush1.bf16.msra.mxu1 %v9558_v13 }
 0x2f0   : > { %5330 = vmatprep.subr.bf16.mxu0 %v9563_v14  ;;  %7059 = vmatprep.subr.bf16.mxu1 %v9563_v14 }
 0x2f3   : > { %5331 = vmatpush1.bf16.msra.mxu0 %v9561_v15  ;;  %7060 = vmatpush1.bf16.msra.mxu1 %v9561_v15 }
 0x2f4   : > { %5332 = vmatprep.subr.bf16.mxu0 %v9566_v16  ;;  %7061 = vmatprep.subr.bf16.mxu1 %v9566_v16 }
 0x2f7   : > { %5333 = vmatpush1.bf16.msra.mxu0 %v9564_v17  ;;  %7062 = vmatpush1.bf16.msra.mxu1 %v9564_v17 }
 0x2f8   : > { %5334 = vmatprep.subr.bf16.mxu0 %v9569_v18  ;;  %7063 = vmatprep.subr.bf16.mxu1 %v9569_v18 }
 0x2fb   : > { %5335 = vmatpush1.bf16.msra.mxu0 %v9567_v21  ;;  %7064 = vmatpush1.bf16.msra.mxu1 %v9567_v21 }
 0x2fc   : > { %5336 = vmatprep.subr.bf16.mxu0 %v9572_v23  ;;  %7065 = vmatprep.subr.bf16.mxu1 %v9572_v23 }
 0x2ff   : > { %5337 = vmatpush1.bf16.msra.mxu0 %v9570_v24  ;;  %7066 = vmatpush1.bf16.msra.mxu1 %v9570_v24 }
 0x300   : > { %5338 = vmatprep.subr.bf16.mxu0 %v9575_v25  ;;  %7067 = vmatprep.subr.bf16.mxu1 %v9575_v25 }
 0x303   : > { %5339 = vmatpush1.bf16.msra.mxu0 %v9573_v27  ;;  %7068 = vmatpush1.bf16.msra.mxu1 %v9573_v27 }
 0x304   : > { %5340 = vmatprep.subr.bf16.mxu0 %v9578_v28  ;;  %7069 = vmatprep.subr.bf16.mxu1 %v9578_v28 }
 0x307   : > { %5341 = vmatpush1.bf16.msra.mxu0 %v9576_v29  ;;  %7070 = vmatpush1.bf16.msra.mxu1 %v9576_v29 }
 0x308   : > { %5342 = vmatprep.subr.bf16.mxu0 %v9581_v30  ;;  %7071 = vmatprep.subr.bf16.mxu1 %v9581_v30 }
 0x30b   : > { %5343 = vmatpush1.bf16.msra.mxu0 %v9579_v31  ;;  %7072 = vmatpush1.bf16.msra.mxu1 %v9579_v31 }
 0x30c   : > { %5344 = vmatprep.subr.bf16.mxu0 %v9584_v32  ;;  %7073 = vmatprep.subr.bf16.mxu1 %v9584_v32 }
 0x30f   : > { %5345 = vmatpush1.bf16.msra.mxu0 %v9582_v33  ;;  %7074 = vmatpush1.bf16.msra.mxu1 %v9582_v33 }
 0x310   : > { %5346 = vmatprep.subr.bf16.mxu0 %v9587_v34  ;;  %7075 = vmatprep.subr.bf16.mxu1 %v9587_v34 }
 0x313   : > { %5347 = vmatpush1.bf16.msra.mxu0 %v9585_v35  ;;  %7076 = vmatpush1.bf16.msra.mxu1 %v9585_v35 }
 0x314   : > { %5357 = vmatprep.subr.bf16.mxu0 %v9592_v36  ;;  %7086 = vmatprep.subr.bf16.mxu1 %v9592_v36 }
 0x316   : > { %5349 = vmatmul.mubr.bf16.vlgmr.msra.gmra.mrb[4].mxu0 %v8342_v37  ;;  %7078 = vmatmul.mubr.bf16.vlgmr.msra.gmra.mrb[4].mxu1 %v8736_v38 }
 0x317   : > { %5358 = vmatpush1.bf16.msra.mxu0 %v9590_v39  ;;  %7087 = vmatpush1.bf16.msra.mxu1 %v9590_v39 }
 0x318   : > { %5359 = vmatprep.subr.bf16.mxu0 %v9597_v42  ;;  %7088 = vmatprep.subr.bf16.mxu1 %v9597_v42 }
 0x319   : > { %5389 = vmatprep.mubr.bf16.mxu0 %v9614_v47  ;;  %7118 = vmatprep.mubr.bf16.mxu1 %v9614_v47  ;;  %v9604_v47 = vld [vmem:[%s9687_s18 + $0x44] ss:$0 sps:$4 sm:$0x33]  }
 0x31b   : > { %5360 = vmatpush1.bf16.msra.mxu0 %v9595_v43  ;;  %7089 = vmatpush1.bf16.msra.mxu1 %v9595_v43 }
 0x31c   : > { %5361 = vmatprep.subr.bf16.mxu0 %v9600_v44  ;;  %7090 = vmatprep.subr.bf16.mxu1 %v9600_v44 }
 0x31f   : > { %5362 = vmatpush1.bf16.msra.mxu0 %v9598_v45  ;;  %7091 = vmatpush1.bf16.msra.mxu1 %v9598_v45 }
 0x320   : > { %5363 = vmatprep.subr.bf16.mxu0 %v9603_v46  ;;  %7092 = vmatprep.subr.bf16.mxu1 %v9603_v46 }
 0x323   : > { %5364 = vmatpush1.bf16.msra.mxu0 %v9601_v48  ;;  %7093 = vmatpush1.bf16.msra.mxu1 %v9601_v48 }
 0x326   : > { %8385 = vmatmul.mubr.msk.bf16.vlgmr.msra.gmra.mrb[4].mxu0 %vm507_vm0, %v9604_v47  ;;  %8779 = vmatmul.mubr.msk.bf16.vlgmr.msra.gmra.mrb[4].mxu1 %vm507_vm0, %v9605_v49 }
 0x3f9   : > { %v5391_v50 = vpop.f32.mrb[4].mxu0  ;;  %v7120_v51 = vpop.f32.mrb[4].mxu1 }
 0x3fa   : > { %v5400_v52 = vmul.f32 %v5391_v50, %v10723_v19  ;;  %v7129_v40 = vmul.f32 %v7120_v51, %v10723_v19  ;;  %v5393_v41 = vpop.f32.mrb[5].mxu0  ;;  %v7122_v53 = vpop.f32.mrb[5].mxu1 }
 0x3fb   : > { %v5401_v54 = vmul.f32 %v5393_v41, %v10725_v20  ;;  %v7130_v55 = vmul.f32 %v7122_v53, %v10725_v20  ;;  %v5395_v56 = vpop.f32.mrb[6].mxu0  ;;  %v7124_v57 = vpop.f32.mrb[6].mxu1 }
 0x3fc   : > { %v5402_v58 = vadd.f32 %v5400_v52, %v10730_v22  ;;  %v7131_v59 = vadd.f32 %v7129_v40, %v10730_v22  ;;  %v5396_v60 = vpop.f32.mrb[7].mxu0  ;;  %v7125_v61 = vpop.f32.mrb[7].mxu1 }
 0x3fd   : > { %v5403_v62 = vadd.f32 %v5401_v54, %v10735_v26  ;;  %v7132_v19 = vadd.f32 %v7130_v55, %v10735_v26 }
 0x3fe   : > { %v5404_v63 = vmax.f32 %v5402_v58, 0.0  ;;  %v7133_v0 = vmax.f32 %v7131_v59, 0.0 }
 0x3ff   : > { %v5405_v1 = vmax.f32 %v5403_v62, 0.0  ;;  %v7134_v2 = vmax.f32 %v7132_v19, 0.0 }
 0x401   : > { %v8386_v3 = vpack.c.bf16 %v5405_v1, %v5404_v63  ;;  %v8780_v4 = vpack.c.bf16 %v7134_v2, %v7133_v0 }
 0x403   : > { %8786 = vst.sshfl [vmem:[%s10762_s30 + $0x8] sm:$0x33 pattern:$0x76325410] %v8386_v3 }
 0x404   : > { %8787 = vst.sshfl [vmem:[%s10762_s30 + $0xc] sm:$0x33 pattern:$0x76325410] %v8780_v4 }
 0x405 PF: > { %s14_s15 = sadd.s32 1, %s9612_s15  }
 0x406   : > { %p11_p4 = scmp.ge.s32.totalorder %s14_s15, 4  }
 0x408   :  { %13 = sbr.rel (!%p11_p4) target bundleno = 1 (0x1), region = 76 }

</bundles_post_ra>
